<compile_context>
chip_gen: v7x
topology: tpu7x:2x2x1
jax: 0.10.0
libtpu: 0.0.40
codegen_flags: <defaults>
</compile_context>

<pallas_src>
import functools
import math

import numpy as np
import jax
import jax.numpy as jnp
from jax.experimental import pallas as pl
from jax.experimental.pallas import tpu as pltpu

# ----------------------------- small synthetic config -----------------------------
B = 2                 # batch
IMG = 32              # image size (224 in the real model)
IN_CH = 3
PATCH = 4
EMBED = 32            # 192 in swin-large
DEPTHS = (2, 2)       # (2, 2, 18, 2) in swin-large
HEADS = (2, 4)        # (6, 12, 24, 48) in swin-large
WINDOW = 4            # 7 in swin-large
MLP_RATIO = 4
NUM_CLASSES = 18      # matches the PyTorch module (num_classes=18)
LN_EPS = 1e-5


# =========================== generation-aware VMEM plan ============================

def _vmem_plan():
    """Per-call scoped-VMEM limit and a conservative tile-picker budget."""
    try:
        cap = int(pltpu.get_tpu_info().vmem_capacity_bytes)
    except Exception:
        cap = 64 * 1024 * 1024          # safe fallback (v7x-sized)
    limit = min(int(cap * 0.70), 100 * 1024 * 1024)
    budget = limit // 2                 # block estimates below already count double-buffering
    return limit, budget


VMEM_LIMIT_BYTES, VMEM_BUDGET_BYTES = _vmem_plan()
_TM_CANDIDATES = (4096, 2048, 1024, 512, 256, 128, 64, 32, 16, 8)


# ================================ tile selection ===================================

def _pick_rows(M, fits):
    best = min(M, 8)
    for cand in _TM_CANDIDATES:          # biggest row tile that fits VMEM
        if cand <= M and fits(cand):
            best = cand
            break
    for cand in _TM_CANDIDATES:          # prefer >= 2 row tiles (v7x megacore)
        if cand <= M and M // cand >= 2 and fits(cand):
            return cand
    return best


def _divisor_tiles(total, align=128):
    """Divisors of `total` that are multiples of `align`, plus `total` itself (largest first)."""
    cands = {d for d in range(align, total + 1, align) if total % d == 0}
    cands.add(total)
    return sorted(cands, reverse=True)


def _linear_block_bytes(tm, K, tk, tn, use_pre_ln):
    xin = 2 * tm * tk * 4                           # x chunk (<= f32), double-buffered
    if use_pre_ln:
        xin += 2 * tm * K * 4                       # full-K x block for LN stats
        xin += 2 * 2 * tk * 4                       # gamma/beta chunks
    wgt = 2 * (tk * tn * 2 + tn * 4 + 2 * tn * 4)   # bf16 weight chunk + biases/post-LN
    out = 2 * tm * tn * 2                           # bf16 output block
    scratch = tm * tn * 4 + 2 * tm * 4              # f32 accumulator + LN stats
    temps = tm * tn * 4 + tm * tk * 4
    return xin + wgt + out + scratch + temps


def _pick_linear_tiles(M, K, N, need_full_n, use_pre_ln):
    tn_opts = [N] if need_full_n else _divisor_tiles(N)
    tk_opts = _divisor_tiles(K)
    tn, tk = tn_opts[-1], tk_opts[-1]
    done = False
    for cand_tn in tn_opts:
        for cand_tk in tk_opts:
            if _linear_block_bytes(8, K, cand_tk, cand_tn, use_pre_ln) <= VMEM_BUDGET_BYTES:
                tn, tk = cand_tn, cand_tk
                done = True
                break
        if done:
            break
    tm = _pick_rows(M, lambda t: _linear_block_bytes(t, K, tk, tn, use_pre_ln)
                    <= VMEM_BUDGET_BYTES)
    return tm, tn, tk


def _mlp_block_bytes(tm, C, th):
    io = 2 * (tm * C * 2 + tm * C * 2)                                # bf16 x + bf16 out
    wgt = 2 * (C * th * 2 + th * 4 + th * C * 2 + C * 4 + 2 * C * 4)
    scratch = tm * C * 4 + tm * C * 2                                 # f32 acc + bf16 xn
    temps = 2 * tm * th * 4
    return io + wgt + scratch + temps


def _pick_mlp_tiles(M, C, Hd):
    th_opts = _divisor_tiles(Hd)
    th = th_opts[-1]
    for cand in th_opts:
        if _mlp_block_bytes(8, C, cand) <= VMEM_BUDGET_BYTES:
            th = cand
            break
    tm = _pick_rows(M, lambda t: _mlp_block_bytes(t, C, th) <= VMEM_BUDGET_BYTES)
    return tm, th


def _attn_block_bytes(G, N, C, nh, mask_rows):
    io = 2 * (2 * G * N * C * 2)                                      # bf16 x in + bf16 out
    wgt = 2 * ((C * 3 * C + C * C) * 2 + (3 * C + C + 2 * C) * 4)
    bias = 2 * (nh * N * N * 4 + mask_rows * N * N * 4)
    temps = (G * N * C * 4            # LN'd x (f32)
             + G * N * 3 * C * 4      # qkv f32 (transient)
             + G * N * 3 * C * 2      # qkv bf16
             + 2 * G * N * N * 4      # per-head scores + probs (f32)
             + G * N * C * 2          # concatenated head outputs (bf16)
             + 2 * G * N * C * 4)     # proj output / residual (f32)
    return io + wgt + bias + temps


def _pick_window_group(nWt, period, N, C, nh, use_mask):
    """Window group per grid step: divides nWt, is period-compatible for the shift mask
    (divides period or is a multiple of it), fits VMEM, and leaves >= 2 grid steps when
    possible (v7x has two TensorCores)."""
    def compatible(g):
        if nWt % g != 0:
            return False
        if use_mask and not (period % g == 0 or g % period == 0):
            return False
        return True

    def fits(g):
        mrows = min(g, period) if use_mask else 0
        return _attn_block_bytes(g, N, C, nh, mrows) <= VMEM_BUDGET_BYTES

    cands = [g for g in range(1, nWt + 1) if compatible(g) and fits(g)]
    if not cands:
        return 1
    two = [g for g in cands if nWt // g >= 2]
    return max(two) if two else max(cands)


# ================================ Pallas kernels ==================================

def _layernorm_f32(x, gamma, beta):
    mu = jnp.mean(x, axis=-1, keepdims=True)
    var = jnp.mean(jnp.square(x - mu), axis=-1, keepdims=True)
    return (x - mu) * jax.lax.rsqrt(var + LN_EPS) * gamma + beta


# ---------------------------- fused linear (K-tiled) -------------------------------

def _linear_kernel(*refs, act, use_pre_ln, use_post_ln):
    it = iter(refs)
    xf_ref = next(it) if use_pre_ln else None
    xk_ref = next(it)
    pg_ref = next(it) if use_pre_ln else None
    pb_ref = next(it) if use_pre_ln else None
    w_ref = next(it)
    b_ref = next(it)
    qg_ref = next(it) if use_post_ln else None
    qb_ref = next(it) if use_post_ln else None
    o_ref = next(it)
    rest = list(it)
    acc_ref = rest[0]
    mu_ref = rest[1] if use_pre_ln else None
    rs_ref = rest[2] if use_pre_ln else None

    k = pl.program_id(2)

    @pl.when(k == 0)
    def _():
        acc_ref[...] = jnp.zeros_like(acc_ref)
        if use_pre_ln:
            xf = xf_ref[...].astype(jnp.float32)
            mu = jnp.mean(xf, axis=-1, keepdims=True)
            var = jnp.mean(jnp.square(xf - mu), axis=-1, keepdims=True)
            mu_ref[...] = mu
            rs_ref[...] = jax.lax.rsqrt(var + LN_EPS)

    xk = xk_ref[...].astype(jnp.float32)
    if use_pre_ln:
        xk = (xk - mu_ref[...]) * rs_ref[...] * pg_ref[...] + pb_ref[...]
    acc_ref[...] += jnp.dot(xk.astype(jnp.bfloat16), w_ref[...].astype(jnp.bfloat16),
                            preferred_element_type=jnp.float32)

    @pl.when(k == pl.num_programs(2) - 1)
    def _():
        y = acc_ref[...] + b_ref[...]
        if act == "gelu":
            # TODO(synk): timm uses exact (erf) GELU; tanh approximation used for Mosaic.
            y = jax.nn.gelu(y, approximate=True)
        if use_post_ln:
            y = _layernorm_f32(y, qg_ref[...], qb_ref[...])
        o_ref[...] = y.astype(o_ref.dtype)


def pallas_linear(x, w, b=None, act=None, pre_ln=None, post_ln=None,
                  out_dtype=jnp.bfloat16):
    """y = post_ln(act(pre_ln(x) @ w + b)), K-tiled with an f32 accumulator.

    x: (M, K), w: (K, N) (bf16 ok), b: (N,). Output dtype bf16 (residual stream)."""
    M, K = x.shape
    N = w.shape[1]
    if b is None:
        b = jnp.zeros((N,), jnp.float32)
    use_pre_ln = pre_ln is not None
    tm, tn, tk = _pick_linear_tiles(M, K, N, need_full_n=(post_ln is not None),
                                    use_pre_ln=use_pre_ln)
    grid = (pl.cdiv(M, tm), pl.cdiv(N, tn), K // tk)

    in_specs = []
    args = []
    if use_pre_ln:
        # Full-K row block, resident across k, used only for LN statistics at k == 0.
        in_specs.append(pl.BlockSpec((tm, K), lambda i, j, k: (i, 0)))
        args.append(x)
    in_specs.append(pl.BlockSpec((tm, tk), lambda i, j, k: (i, k)))
    args.append(x)
    if use_pre_ln:
        g1, b1 = pre_ln
        in_specs += [pl.BlockSpec((1, tk), lambda i, j, k: (0, k)),
                     pl.BlockSpec((1, tk), lambda i, j, k: (0, k))]
        args += [g1.reshape(1, K), b1.reshape(1, K)]
    in_specs += [pl.BlockSpec((tk, tn), lambda i, j, k: (k, j)),
                 pl.BlockSpec((1, tn), lambda i, j, k: (0, j))]
    args += [w, b.reshape(1, N)]
    if post_ln is not None:
        g2, b2 = post_ln
        in_specs += [pl.BlockSpec((1, tn), lambda i, j, k: (0, j)),
                     pl.BlockSpec((1, tn), lambda i, j, k: (0, j))]
        args += [g2.reshape(1, N), b2.reshape(1, N)]

    scratch = [pltpu.VMEM((tm, tn), jnp.float32)]
    if use_pre_ln:
        scratch += [pltpu.VMEM((tm, 1), jnp.float32), pltpu.VMEM((tm, 1), jnp.float32)]

    kernel = functools.partial(_linear_kernel, act=act,
                               use_pre_ln=use_pre_ln,
                               use_post_ln=post_ln is not None)
    return pl.pallas_call(
        kernel,
        out_shape=jax.ShapeDtypeStruct((M, N), out_dtype),
        grid=grid,
        in_specs=in_specs,
        out_specs=pl.BlockSpec((tm, tn), lambda i, j, k: (i, j)),
        scratch_shapes=scratch,
        compiler_params=pltpu.CompilerParams(
            dimension_semantics=("parallel", "parallel", "arbitrary"),
            vmem_limit_bytes=VMEM_LIMIT_BYTES),
    )(*args)


# ------------------------- fused LN + MLP (+ residual) -----------------------------

def _ln_mlp_kernel(x_ref, g_ref, b_ref, w1_ref, b1_ref, w2_ref, b2_ref, o_ref,
                   acc_ref, xn_ref):
    j = pl.program_id(1)

    @pl.when(j == 0)
    def _():
        # LayerNorm (and its bf16 cast) hoisted out of the hidden-tile loop.
        x = x_ref[...].astype(jnp.float32)
        xn_ref[...] = _layernorm_f32(x, g_ref[...], b_ref[...]).astype(jnp.bfloat16)
        acc_ref[...] = jnp.zeros_like(acc_ref)

    h = jnp.dot(xn_ref[...], w1_ref[...].astype(jnp.bfloat16),
                preferred_element_type=jnp.float32) + b1_ref[...]
    # TODO(synk): timm uses exact (erf) GELU; tanh approximation used for Mosaic lowering.
    h = jax.nn.gelu(h, approximate=True)
    acc_ref[...] += jnp.dot(h.astype(jnp.bfloat16), w2_ref[...].astype(jnp.bfloat16),
                            preferred_element_type=jnp.float32)

    @pl.when(j == pl.num_programs(1) - 1)
    def _():
        # Residual add fused into the epilogue: out = x + fc2(gelu(fc1(ln(x)))).
        y = x_ref[...].astype(jnp.float32) + acc_ref[...] + b2_ref[...]
        o_ref[...] = y.astype(o_ref.dtype)


def pallas_ln_mlp(x, gamma, beta, w1, b1, w2, b2):
    """x + fc2(gelu(fc1(LN(x)))) with hidden-dim tiling, f32 accumulator, bf16 output."""
    M, C = x.shape
    Hd = w1.shape[1]
    tm, th = _pick_mlp_tiles(M, C, Hd)
    grid = (pl.cdiv(M, tm), Hd // th)
    return pl.pallas_call(
        _ln_mlp_kernel,
        out_shape=jax.ShapeDtypeStruct((M, C), x.dtype),
        grid=grid,
        in_specs=[
            pl.BlockSpec((tm, C), lambda i, j: (i, 0)),
            pl.BlockSpec((1, C), lambda i, j: (0, 0)),
            pl.BlockSpec((1, C), lambda i, j: (0, 0)),
            pl.BlockSpec((C, th), lambda i, j: (0, j)),
            pl.BlockSpec((1, th), lambda i, j: (0, j)),
            pl.BlockSpec((th, C), lambda i, j: (j, 0)),
            pl.BlockSpec((1, C), lambda i, j: (0, 0)),
        ],
        out_specs=pl.BlockSpec((tm, C), lambda i, j: (i, 0)),
        scratch_shapes=[pltpu.VMEM((tm, C), jnp.float32),
                        pltpu.VMEM((tm, C), jnp.bfloat16)],
        compiler_params=pltpu.CompilerParams(
            dimension_semantics=("parallel", "arbitrary"),
            vmem_limit_bytes=VMEM_LIMIT_BYTES),
    )(x, gamma.reshape(1, C), beta.reshape(1, C),
      w1, b1.reshape(1, Hd), w2, b2.reshape(1, C))


# --------------------- fused LN + window attention (+ residual) --------------------

def _fused_attn_kernel(x_ref, g_ref, b_ref, qkvw_ref, qkvb_ref, relb_ref,
                       projw_ref, projb_ref, *rest, nh, scale, mask_reps):
    if mask_reps:
        mask_ref, o_ref = rest
    else:
        (o_ref,) = rest

    G, N, C = x_ref.shape
    d = C // nh

    # Fused pre-LayerNorm (f32 math; LN commutes with the roll/window permutation).
    x = x_ref[...].astype(jnp.float32)                                   # (G, N, C)
    xn = _layernorm_f32(x, g_ref[...], b_ref[...])

    # Fused QKV projection: one lane-dense (G*N, C) @ (C, 3C) bf16 MXU matmul.
    xb = xn.reshape(G * N, C).astype(jnp.bfloat16)
    qkv = jnp.dot(xb, qkvw_ref[...].astype(jnp.bfloat16),
                  preferred_element_type=jnp.float32) + qkvb_ref[...]    # (G*N, 3C)
    # Downcast once: all per-head slices read bf16 (halves the largest live temp).
    qkv = qkv.astype(jnp.bfloat16).reshape(G, N, 3 * C)

    if mask_reps:
        m = mask_ref[...].astype(jnp.float32)                            # (<=G, N, N)
        if mask_reps > 1:
            m = jnp.tile(m, (mask_reps, 1, 1))                           # (G, N, N)

    # TODO(synk): a single head-batched einsum needs a (G,N,nh,d)->(G,nh,N,d) transpose,
    # which Mosaic does not lower in-kernel; per-head loop kept, but the output projection
    # below is a single full-K matmul instead of nh K=d matmuls.
    heads_out = []
    for h in range(nh):
        q = qkv[:, :, h * d:(h + 1) * d]                                 # (G, N, d) bf16
        k = qkv[:, :, C + h * d:C + (h + 1) * d]
        v = qkv[:, :, 2 * C + h * d:2 * C + (h + 1) * d]
        s = jnp.einsum("gnd,gmd->gnm", q, k,
                       preferred_element_type=jnp.float32)               # (G, N, N)
        s = s * scale + relb_ref[h]                                      # rel-pos bias in-kernel
        if mask_reps:
            s = s + m                                                    # shift mask in-kernel
        s = s - jnp.max(s, axis=-1, keepdims=True)
        p = jnp.exp(s)
        p = p * pl.reciprocal(jnp.sum(p, axis=-1, keepdims=True), approx=True)
        o = jnp.einsum("gnm,gmd->gnd", p.astype(jnp.bfloat16), v,
                       preferred_element_type=jnp.float32)               # (G, N, d)
        heads_out.append(o.astype(jnp.bfloat16))

    # Single full-contraction output projection over all heads at once.
    o_all = jnp.concatenate(heads_out, axis=-1).reshape(G * N, C)        # (G*N, C) bf16
    y = jnp.dot(o_all, projw_ref[...].astype(jnp.bfloat16),
                preferred_element_type=jnp.float32) + projb_ref[...]     # (G*N, C) f32
    # Residual add fused: output = windowed input + attention output.
    y = y.reshape(G, N, C) + x
    o_ref[...] = y.astype(o_ref.dtype)


def pallas_window_attention_block(xw, ln_g, ln_b, qkv_w, qkv_b, rel_bias,
                                  proj_w, proj_b, *, nh, scale, attn_mask=None):
    """Fused LN + QKV + multi-head window attention + output projection + residual.

    xw: (nWt, N, C) window-partitioned tokens; rel_bias: (nh, N, N);
    attn_mask: (nW_per_img, N, N) or None. Output: (nWt, N, C) = xw + attn(LN(xw)).
    """
    nWt, N, C = xw.shape
    use_mask = attn_mask is not None
    period = attn_mask.shape[0] if use_mask else 1
    G = _pick_window_group(nWt, period, N, C, nh, use_mask)
    grid = (nWt // G,)

    in_specs = [
        pl.BlockSpec((G, N, C), lambda i: (i, 0, 0)),
        pl.BlockSpec((1, C), lambda i: (0, 0)),
        pl.BlockSpec((1, C), lambda i: (0, 0)),
        pl.BlockSpec((C, 3 * C), lambda i: (0, 0)),
        pl.BlockSpec((1, 3 * C), lambda i: (0, 0)),
        pl.BlockSpec((nh, N, N), lambda i: (0, 0, 0)),
        pl.BlockSpec((C, C), lambda i: (0, 0)),
        pl.BlockSpec((1, C), lambda i: (0, 0)),
    ]
    args = [xw, ln_g.reshape(1, C), ln_b.reshape(1, C), qkv_w,
            qkv_b.reshape(1, 3 * C), rel_bias, proj_w, proj_b.reshape(1, C)]

    mask_reps = 0
    if use_mask:
        if G <= period:
            # Window group is a slice of one image's windows: pick the matching mask slab.
            blocks_per_img = period // G
            in_specs.append(pl.BlockSpec((G, N, N),
                                         lambda i: (i % blocks_per_img, 0, 0)))
            mask_reps = 1
        else:
            # Group spans several images: full-period mask block, tiled in-kernel.
            in_specs.append(pl.BlockSpec((period, N, N), lambda i: (0, 0, 0)))
            mask_reps = G // period
        args.append(attn_mask)

    kernel = functools.partial(_fused_attn_kernel, nh=nh, scale=scale,
                               mask_reps=mask_reps)
    return pl.pallas_call(
        kernel,
        out_shape=jax.ShapeDtypeStruct((nWt, N, C), xw.dtype),
        grid=grid,
        in_specs=in_specs,
        out_specs=pl.BlockSpec((G, N, C), lambda i: (i, 0, 0)),
        compiler_params=pltpu.CompilerParams(
            dimension_semantics=("parallel",),
            vmem_limit_bytes=VMEM_LIMIT_BYTES),
    )(*args)


# ------------------------- final LN + pool + classifier ----------------------------

def _pool_head_kernel(x_ref, g_ref, b_ref, w_ref, hb_ref, o_ref):
    x = x_ref[0].astype(jnp.float32)                           # (L, C)
    xn = _layernorm_f32(x, g_ref[...], b_ref[...])             # final LN fused here
    pooled = jnp.mean(xn, axis=0, keepdims=True)               # (1, C) global avg pool
    y = jnp.dot(pooled.astype(jnp.bfloat16), w_ref[...].astype(jnp.bfloat16),
                preferred_element_type=jnp.float32) + hb_ref[...]
    o_ref[...] = y[None].astype(o_ref.dtype)                   # (1, 1, num_classes)


def pallas_pool_head(x, norm_g, norm_b, w, b):
    """Fused final LayerNorm + global average pool + classifier head. x: (B, L, C)."""
    Bn, L, C = x.shape
    N = w.shape[1]
    out = pl.pallas_call(
        _pool_head_kernel,
        out_shape=jax.ShapeDtypeStruct((Bn, 1, N), jnp.float32),
        grid=(Bn,),
        in_specs=[
            pl.BlockSpec((1, L, C), lambda i: (i, 0, 0)),
            pl.BlockSpec((1, C), lambda i: (0, 0)),
            pl.BlockSpec((1, C), lambda i: (0, 0)),
            pl.BlockSpec((C, N), lambda i: (0, 0)),
            pl.BlockSpec((1, N), lambda i: (0, 0)),
        ],
        out_specs=pl.BlockSpec((1, 1, N), lambda i: (i, 0, 0)),
        compiler_params=pltpu.CompilerParams(
            dimension_semantics=("parallel",),
            vmem_limit_bytes=VMEM_LIMIT_BYTES),
    )(x, norm_g.reshape(1, C), norm_b.reshape(1, C), w, b.reshape(1, N))
    return out.reshape(Bn, N)


# ================================== JAX glue =======================================
# TODO(synk): fold these permutations (window partition/reverse, cyclic roll) into the
# attention BlockSpec DMA to remove the remaining full HBM passes per block.

def window_partition(x, ws):
    Bn, H, W, C = x.shape
    x = x.reshape(Bn, H // ws, ws, W // ws, ws, C)
    x = jnp.transpose(x, (0, 1, 3, 2, 4, 5)).reshape(-1, ws * ws, C)
    return x


def window_reverse(windows, ws, H, W, Bn):
    x = windows.reshape(Bn, H // ws, W // ws, ws, ws, -1)
    x = jnp.transpose(x, (0, 1, 3, 2, 4, 5)).reshape(Bn, H, W, -1)
    return x


def _rel_pos_index(ws):
    coords = np.stack(np.meshgrid(np.arange(ws), np.arange(ws), indexing="ij"))
    flat = coords.reshape(2, -1)
    rel = flat[:, :, None] - flat[:, None, :]
    rel = rel.transpose(1, 2, 0) + (ws - 1)
    return (rel[..., 0] * (2 * ws - 1) + rel[..., 1]).astype(np.int32)  # (N, N)


def relative_position_bias(table, ws, nh):
    """Expand a ((2w-1)^2, nh) table into a dense (nh, N, N) bias (done once at init)."""
    idx = jnp.asarray(_rel_pos_index(ws))
    N = ws * ws
    bias = jnp.take(table, idx.reshape(-1), axis=0).reshape(N, N, nh)
    return jnp.transpose(bias, (2, 0, 1)).astype(jnp.float32)  # (nh, N, N)


def build_shift_mask(H, W, ws, shift):
    img = np.zeros((H, W), dtype=np.int32)
    cnt = 0
    for hs in (slice(0, -ws), slice(-ws, -shift), slice(-shift, None)):
        for wsl in (slice(0, -ws), slice(-ws, -shift), slice(-shift, None)):
            img[hs, wsl] = cnt
            cnt += 1
    mw = img.reshape(H // ws, ws, W // ws, ws).transpose(0, 2, 1, 3).reshape(-1, ws * ws)
    attn_mask = mw[:, None, :] - mw[:, :, None]
    attn_mask = np.where(attn_mask != 0, -100.0, 0.0).astype(np.float32)
    return jnp.asarray(attn_mask)  # (nW_per_img, N, N)


# =============================== model components ==================================

def patch_embed(x_nchw, p):
    Bn = x_nchw.shape[0]
    x = jnp.transpose(x_nchw, (0, 2, 3, 1))                    # -> NHWC
    H, W, C = x.shape[1], x.shape[2], x.shape[3]
    gh, gw = H // PATCH, W // PATCH
    # conv(stride=4, ks=4) == matmul over flattened (kh, kw, c) patch vectors
    x = x.reshape(Bn, gh, PATCH, gw, PATCH, C)
    x = jnp.transpose(x, (0, 1, 3, 2, 4, 5)).reshape(Bn * gh * gw, PATCH * PATCH * C)
    x = pallas_linear(x, p["w"], p["b"], post_ln=(p["norm_g"], p["norm_b"]))
    return x.reshape(Bn, gh * gw, EMBED), gh, gw


def swin_block(x, bp, H, W, nh, ws, shift, attn_mask):
    Bn, L, C = x.shape
    d = C // nh
    scale = d ** -0.5

    # LayerNorm + residual add are fused into the attention kernel (both commute with
    # the roll / window-partition permutation).
    y = x.reshape(Bn, H, W, C)
    if shift > 0:
        y = jnp.roll(y, shift=(-shift, -shift), axis=(1, 2))
    xw = window_partition(y, ws)                                # (nWt, N, C)

    attn = pallas_window_attention_block(
        xw, bp["norm1_g"], bp["norm1_b"], bp["qkv_w"], bp["qkv_b"],
        bp["rel_bias"], bp["proj_w"], bp["proj_b"],
        nh=nh, scale=scale, attn_mask=attn_mask)                # (nWt, N, C) = xw + attn

    y = window_reverse(attn, ws, H, W, Bn)
    if shift > 0:
        y = jnp.roll(y, shift=(shift, shift), axis=(1, 2))
    x = y.reshape(Bn, L, C)                                     # = shortcut + attention

    # Fused LN + MLP (fc1 + GELU + fc2) + residual with hidden-dim tiling.
    z = pallas_ln_mlp(x.reshape(Bn * L, C), bp["norm2_g"], bp["norm2_b"],
                      bp["fc1_w"], bp["fc1_b"], bp["fc2_w"], bp["fc2_b"])
    return z.reshape(Bn, L, C)


def patch_merging(x, mp, H, W):
    Bn, L, C = x.shape
    x = x.reshape(Bn, H, W, C)
    x0 = x[:, 0::2, 0::2, :]
    x1 = x[:, 1::2, 0::2, :]
    x2 = x[:, 0::2, 1::2, :]
    x3 = x[:, 1::2, 1::2, :]
    x = jnp.concatenate([x0, x1, x2, x3], axis=-1)
    x = x.reshape(Bn * (H // 2) * (W // 2), 4 * C)
    # LN fused into the K-tiled reduction matmul (no bias in Swin's merging reduction).
    x = pallas_linear(x, mp["red_w"], b=None,
                      pre_ln=(mp["norm_g"], mp["norm_b"]))
    return x.reshape(Bn, (H // 2) * (W // 2), 2 * C)


def forward(params, x_nchw):
    x, H, W = patch_embed(x_nchw, params["patch_embed"])
    for si, stage in enumerate(params["stages"]):
        nh = HEADS[si]
        ws = min(WINDOW, H)
        for bi, bp in enumerate(stage["blocks"]):
            shift = 0 if (bi % 2 == 0 or ws >= H) else ws // 2
            mask = build_shift_mask(H, W, ws, shift) if shift > 0 else None
            x = swin_block(x, bp, H, W, nh, ws, shift, mask)
        if "merge" in stage:
            x = patch_merging(x, stage["merge"], H, W)
            H, W = H // 2, W // 2
    logits = pallas_pool_head(x, params["norm_g"], params["norm_b"],
                              params["head_w"], params["head_b"])
    return logits


# ================================ parameter init ===================================

class KeyGen:
    def __init__(self, key):
        self.key = key

    def next(self):
        self.key, sub = jax.random.split(self.key)
        return sub

    def normal(self, shape, scale=0.02):
        return scale * jax.random.normal(self.next(), shape, jnp.float32)


def init_model_params(key):
    kg = KeyGen(key)
    bf16 = jnp.bfloat16  # MXU-side weights stored in bf16 (halves HBM/VMEM traffic)
    params = {
        "patch_embed": {
            "w": kg.normal((PATCH * PATCH * IN_CH, EMBED)).astype(bf16),
            "b": jnp.zeros((EMBED,), jnp.float32),
            "norm_g": jnp.ones((EMBED,), jnp.float32),
            "norm_b": jnp.zeros((EMBED,), jnp.float32),
        }
    }
    stages = []
    dim = EMBED
    res = IMG // PATCH
    for si, (depth, nh) in enumerate(zip(DEPTHS, HEADS)):
        ws = min(WINDOW, res)
        blocks = []
        for _ in range(depth):
            # Relative-position bias table expanded to (nh, N, N) ONCE here (no per-forward
            # gather/transpose in the traced graph).
            rel_table = kg.normal(((2 * ws - 1) ** 2, nh))
            blocks.append({
                "norm1_g": jnp.ones((dim,), jnp.float32),
                "norm1_b": jnp.zeros((dim,), jnp.float32),
                "qkv_w": kg.normal((dim, 3 * dim)).astype(bf16),
                "qkv_b": jnp.zeros((3 * dim,), jnp.float32),
                "rel_bias": relative_position_bias(rel_table, ws, nh),
                "proj_w": kg.normal((dim, dim)).astype(bf16),
                "proj_b": jnp.zeros((dim,), jnp.float32),
                "norm2_g": jnp.ones((dim,), jnp.float32),
                "norm2_b": jnp.zeros((dim,), jnp.float32),
                "fc1_w": kg.normal((dim, MLP_RATIO * dim)).astype(bf16),
                "fc1_b": jnp.zeros((MLP_RATIO * dim,), jnp.float32),
                "fc2_w": kg.normal((MLP_RATIO * dim, dim)).astype(bf16),
                "fc2_b": jnp.zeros((dim,), jnp.float32),
            })
        stage = {"blocks": blocks}
        if si < len(DEPTHS) - 1:
            stage["merge"] = {
                "norm_g": jnp.ones((4 * dim,), jnp.float32),
                "norm_b": jnp.zeros((4 * dim,), jnp.float32),
                "red_w": kg.normal((4 * dim, 2 * dim)).astype(bf16),
            }
            dim *= 2
            res //= 2
        stages.append(stage)
    params["stages"] = stages
    params["norm_g"] = jnp.ones((dim,), jnp.float32)
    params["norm_b"] = jnp.zeros((dim,), jnp.float32)
    # head init mirrors the module's kaiming_uniform_ + uniform(-stdv, stdv) bias
    bound = math.sqrt(6.0 / dim)
    stdv = 1.0 / math.sqrt(dim)
    params["head_w"] = jax.random.uniform(kg.next(), (dim, NUM_CLASSES), jnp.float32,
                                          -bound, bound)
    params["head_b"] = jax.random.uniform(kg.next(), (NUM_CLASSES,), jnp.float32,
                                          -stdv, stdv)
    return params


# ===================================== main =========================================

if __name__ == "__main__":
    root = jax.random.PRNGKey(0)
    pkey, xkey = jax.random.split(root)
    params = init_model_params(pkey)
    x = jax.random.normal(xkey, (B, IN_CH, IMG, IMG), jnp.float32)  # NCHW input

    fwd = jax.jit(forward)
    out = jax.block_until_ready(fwd(params, x))
    assert out.shape == (B, NUM_CLASSES), out.shape
    assert bool(jnp.all(jnp.isfinite(out)))
    print("KERNEL_OK")
</pallas_src>

<mosaic_0001>
module attributes {stable_mosaic.version = 11 : i64} {
  func.func @_linear_kernel(%arg0: i32, %arg1: i32, %arg2: i32, %arg3: memref<64x48xf32, #tpu.memory_space<vmem>>, %arg4: memref<48x32xbf16, #tpu.memory_space<vmem>>, %arg5: memref<1x32xf32, #tpu.memory_space<vmem>>, %arg6: memref<1x32xf32, #tpu.memory_space<vmem>>, %arg7: memref<1x32xf32, #tpu.memory_space<vmem>>, %arg8: memref<64x32xbf16, #tpu.memory_space<vmem>>, %arg9: memref<64x32xf32, #tpu.memory_space<vmem>>) attributes {dimension_semantics = [#tpu.dimension_semantics<parallel>, #tpu.dimension_semantics<parallel>, #tpu.dimension_semantics<arbitrary>], iteration_bounds = array<i64: 2, 1, 1>, scalar_prefetch = 0 : i64, scratch_operands = 1 : i64, tpu.core_type = #tpu.core_type<tc>, window_params = [{transform_indices = @transform_0, window_bounds = array<i64: 64, 48>}, {transform_indices = @transform_1, window_bounds = array<i64: 48, 32>}, {transform_indices = @transform_2, window_bounds = array<i64: 1, 32>}, {transform_indices = @transform_3, window_bounds = array<i64: 1, 32>}, {transform_indices = @transform_4, window_bounds = array<i64: 1, 32>}, {transform_indices = @transform_5, window_bounds = array<i64: 64, 32>}]} {
    %c0_i32 = arith.constant 0 : i32
    %0 = arith.cmpi eq, %arg2, %c0_i32 : i32
    %1 = arith.extui %0 : i1 to i32
    %c0_i32_0 = arith.constant 0 : i32
    %2 = arith.cmpi ne, %1, %c0_i32_0 : i32
    scf.if %2 {
      %cst_10 = arith.constant 0.000000e+00 : f32
      %13 = vector.broadcast %cst_10 : f32 to vector<64x32xf32>
      %c0_11 = arith.constant 0 : index
      %c0_12 = arith.constant 0 : index
      %14 = vector.load %arg9[%c0_11, %c0_12] : memref<64x32xf32, #tpu.memory_space<vmem>>, vector<64x32xf32>
      tpu.vector_store %arg9[%c0_11, %c0_12], %13 {strides = array<i32>} : memref<64x32xf32, #tpu.memory_space<vmem>>, vector<64x32xf32>,
    } else {
    }
    %c0 = arith.constant 0 : index
    %c0_1 = arith.constant 0 : index
    %3 = vector.load %arg3[%c0, %c0_1] : memref<64x48xf32, #tpu.memory_space<vmem>>, vector<64x48xf32>
    %c0_2 = arith.constant 0 : index
    %c0_3 = arith.constant 0 : index
    %4 = vector.load %arg9[%c0_2, %c0_3] : memref<64x32xf32, #tpu.memory_space<vmem>>, vector<64x32xf32>
    %5 = arith.truncf %3 : vector<64x48xf32> to vector<64x48xbf16>
    %c0_4 = arith.constant 0 : index
    %c0_5 = arith.constant 0 : index
    %6 = vector.load %arg4[%c0_4, %c0_5] : memref<48x32xbf16, #tpu.memory_space<vmem>>, vector<48x32xbf16>
    %cst = arith.constant dense<0.000000e+00> : vector<64x32xf32>
    %7 = tpu.matmul %5, %6, %cst {dimension_numbers = #tpu.dot_dimension_numbers<[1], [0], [0], [1], [0, 0, 1, 1], [], []>} : vector<64x48xbf16>, vector<48x32xbf16>, vector<64x32xf32> -> vector<64x32xf32>
    %8 = arith.addf %4, %7 : vector<64x32xf32>
    %c0_6 = arith.constant 0 : index
    %c0_7 = arith.constant 0 : index
    %9 = vector.load %arg9[%c0_6, %c0_7] : memref<64x32xf32, #tpu.memory_space<vmem>>, vector<64x32xf32>
    tpu.vector_store %arg9[%c0_6, %c0_7], %8 {strides = array<i32>} : memref<64x32xf32, #tpu.memory_space<vmem>>, vector<64x32xf32>,
    %c0_i32_8 = arith.constant 0 : i32
    %10 = arith.cmpi eq, %arg2, %c0_i32_8 : i32
    %11 = arith.extui %10 : i1 to i32
    %c0_i32_9 = arith.constant 0 : i32
    %12 = arith.cmpi ne, %11, %c0_i32_9 : i32
    scf.if %12 {
      %c0_10 = arith.constant 0 : index
      %c0_11 = arith.constant 0 : index
      %13 = vector.load %arg9[%c0_10, %c0_11] : memref<64x32xf32, #tpu.memory_space<vmem>>, vector<64x32xf32>
      %c0_12 = arith.constant 0 : index
      %c0_13 = arith.constant 0 : index
      %14 = vector.load %arg5[%c0_12, %c0_13] : memref<1x32xf32, #tpu.memory_space<vmem>>, vector<1x32xf32>
      %15 = vector.broadcast %14 : vector<1x32xf32> to vector<64x32xf32>
      %16 = arith.addf %13, %15 : vector<64x32xf32>
      %c0_14 = arith.constant 0 : index
      %c0_15 = arith.constant 0 : index
      %17 = vector.load %arg6[%c0_14, %c0_15] : memref<1x32xf32, #tpu.memory_space<vmem>>, vector<1x32xf32>
      %c0_16 = arith.constant 0 : index
      %c0_17 = arith.constant 0 : index
      %18 = vector.load %arg7[%c0_16, %c0_17] : memref<1x32xf32, #tpu.memory_space<vmem>>, vector<1x32xf32>
      %cst_18 = arith.constant dense<0.000000e+00> : vector<64xf32>
      %19 = vector.multi_reduction <add>, %16, %cst_18 [1] : vector<64x32xf32> to vector<64xf32>
      %20 = vector.shape_cast %19 : vector<64xf32> to vector<64x1xf32>
      %cst_19 = arith.constant 3.200000e+01 : f32
      %21 = vector.broadcast %cst_19 : f32 to vector<64x1xf32>
      %22 = arith.divf %20, %21 : vector<64x1xf32>
      %23 = vector.broadcast %22 : vector<64x1xf32> to vector<64x32xf32>
      %24 = arith.subf %16, %23 : vector<64x32xf32>
      %25 = arith.mulf %24, %24 : vector<64x32xf32>
      %cst_20 = arith.constant dense<0.000000e+00> : vector<64xf32>
      %26 = vector.multi_reduction <add>, %25, %cst_20 [1] : vector<64x32xf32> to vector<64xf32>
      %27 = vector.shape_cast %26 : vector<64xf32> to vector<64x1xf32>
      %cst_21 = arith.constant 3.200000e+01 : f32
      %28 = vector.broadcast %cst_21 : f32 to vector<64x1xf32>
      %29 = arith.divf %27, %28 : vector<64x1xf32>
      %30 = vector.broadcast %22 : vector<64x1xf32> to vector<64x32xf32>
      %31 = arith.subf %16, %30 : vector<64x32xf32>
      %cst_22 = arith.constant 9.99999974E-6 : f32
      %32 = vector.broadcast %cst_22 : f32 to vector<64x1xf32>
      %33 = arith.addf %29, %32 : vector<64x1xf32>
      %34 = math.rsqrt %33 : vector<64x1xf32>
      %35 = vector.broadcast %34 : vector<64x1xf32> to vector<64x32xf32>
      %36 = arith.mulf %31, %35 : vector<64x32xf32>
      %37 = vector.broadcast %17 : vector<1x32xf32> to vector<64x32xf32>
      %38 = arith.mulf %36, %37 : vector<64x32xf32>
      %39 = vector.broadcast %18 : vector<1x32xf32> to vector<64x32xf32>
      %40 = arith.addf %38, %39 : vector<64x32xf32>
      %41 = arith.truncf %40 : vector<64x32xf32> to vector<64x32xbf16>
      %c0_23 = arith.constant 0 : index
      %c0_24 = arith.constant 0 : index
      %42 = vector.load %arg8[%c0_23, %c0_24] : memref<64x32xbf16, #tpu.memory_space<vmem>>, vector<64x32xbf16>
      tpu.vector_store %arg8[%c0_23, %c0_24], %41 {strides = array<i32>} : memref<64x32xbf16, #tpu.memory_space<vmem>>, vector<64x32xbf16>,
    } else {
    }
    return
  }
  func.func @transform_0(%arg0: i32, %arg1: i32, %arg2: i32) -> (i32, i32) {
    %c0_i32 = arith.constant 0 : i32
    return %arg0, %arg2 : i32, i32
  }
  func.func @transform_1(%arg0: i32, %arg1: i32, %arg2: i32) -> (i32, i32) {
    %c0_i32 = arith.constant 0 : i32
    return %arg2, %arg1 : i32, i32
  }
  func.func @transform_2(%arg0: i32, %arg1: i32, %arg2: i32) -> (i32, i32) {
    %c0_i32 = arith.constant 0 : i32
    %c0_i32_0 = arith.constant 0 : i32
    return %c0_i32, %arg1 : i32, i32
  }
  func.func @transform_3(%arg0: i32, %arg1: i32, %arg2: i32) -> (i32, i32) {
    %c0_i32 = arith.constant 0 : i32
    %c0_i32_0 = arith.constant 0 : i32
    return %c0_i32, %arg1 : i32, i32
  }
  func.func @transform_4(%arg0: i32, %arg1: i32, %arg2: i32) -> (i32, i32) {
    %c0_i32 = arith.constant 0 : i32
    %c0_i32_0 = arith.constant 0 : i32
    return %c0_i32, %arg1 : i32, i32
  }
  func.func @transform_5(%arg0: i32, %arg1: i32, %arg2: i32) -> (i32, i32) {
    %c0_i32 = arith.constant 0 : i32
    return %arg0, %arg1 : i32, i32
  }
}

module attributes {stable_mosaic.version = 11 : i64} {
  func.func @_fused_attn_kernel(%arg0: i32, %arg1: memref<4x16x32xbf16, #tpu.memory_space<vmem>>, %arg2: memref<1x32xf32, #tpu.memory_space<vmem>>, %arg3: memref<1x32xf32, #tpu.memory_space<vmem>>, %arg4: memref<32x96xbf16, #tpu.memory_space<vmem>>, %arg5: memref<1x96xf32, #tpu.memory_space<vmem>>, %arg6: memref<2x16x16xf32, #tpu.memory_space<vmem>>, %arg7: memref<32x32xbf16, #tpu.memory_space<vmem>>, %arg8: memref<1x32xf32, #tpu.memory_space<vmem>>, %arg9: memref<4x16x32xbf16, #tpu.memory_space<vmem>>) attributes {dimension_semantics = [#tpu.dimension_semantics<parallel>], iteration_bounds = array<i64: 2>, scalar_prefetch = 0 : i64, scratch_operands = 0 : i64, tpu.core_type = #tpu.core_type<tc>, window_params = [{transform_indices = @transform_0, window_bounds = array<i64: 4, 16, 32>}, {pipeline_mode = #tpu.pipeline_mode<synchronous>, transform_indices = @transform_1, window_bounds = array<i64: 1, 32>}, {pipeline_mode = #tpu.pipeline_mode<synchronous>, transform_indices = @transform_2, window_bounds = array<i64: 1, 32>}, {pipeline_mode = #tpu.pipeline_mode<synchronous>, transform_indices = @transform_3, window_bounds = array<i64: 32, 96>}, {pipeline_mode = #tpu.pipeline_mode<synchronous>, transform_indices = @transform_4, window_bounds = array<i64: 1, 96>}, {pipeline_mode = #tpu.pipeline_mode<synchronous>, transform_indices = @transform_5, window_bounds = array<i64: 2, 16, 16>}, {pipeline_mode = #tpu.pipeline_mode<synchronous>, transform_indices = @transform_6, window_bounds = array<i64: 32, 32>}, {pipeline_mode = #tpu.pipeline_mode<synchronous>, transform_indices = @transform_7, window_bounds = array<i64: 1, 32>}, {transform_indices = @transform_8, window_bounds = array<i64: 4, 16, 32>}]} {
    %c0 = arith.constant 0 : index
    %c0_0 = arith.constant 0 : index
    %c0_1 = arith.constant 0 : index
    %0 = vector.load %arg1[%c0, %c0_0, %c0_1] : memref<4x16x32xbf16, #tpu.memory_space<vmem>>, vector<4x16x32xbf16>
    %1 = arith.extf %0 : vector<4x16x32xbf16> to vector<4x16x32xf32>
    %c0_2 = arith.constant 0 : index
    %c0_3 = arith.constant 0 : index
    %2 = vector.load %arg2[%c0_2, %c0_3] : memref<1x32xf32, #tpu.memory_space<vmem>>, vector<1x32xf32>
    %c0_4 = arith.constant 0 : index
    %c0_5 = arith.constant 0 : index
    %3 = vector.load %arg3[%c0_4, %c0_5] : memref<1x32xf32, #tpu.memory_space<vmem>>, vector<1x32xf32>
    %cst = arith.constant dense<0.000000e+00> : vector<4x16xf32>
    %4 = vector.multi_reduction <add>, %1, %cst [2] : vector<4x16x32xf32> to vector<4x16xf32>
    %5 = vector.shape_cast %4 : vector<4x16xf32> to vector<4x16x1xf32>
    %cst_6 = arith.constant 3.200000e+01 : f32
    %6 = vector.broadcast %cst_6 : f32 to vector<4x16x1xf32>
    %7 = arith.divf %5, %6 : vector<4x16x1xf32>
    %8 = vector.broadcast %7 : vector<4x16x1xf32> to vector<4x16x32xf32>
    %9 = arith.subf %1, %8 : vector<4x16x32xf32>
    %10 = arith.mulf %9, %9 : vector<4x16x32xf32>
    %cst_7 = arith.constant dense<0.000000e+00> : vector<4x16xf32>
    %11 = vector.multi_reduction <add>, %10, %cst_7 [2] : vector<4x16x32xf32> to vector<4x16xf32>
    %12 = vector.shape_cast %11 : vector<4x16xf32> to vector<4x16x1xf32>
    %cst_8 = arith.constant 3.200000e+01 : f32
    %13 = vector.broadcast %cst_8 : f32 to vector<4x16x1xf32>
    %14 = arith.divf %12, %13 : vector<4x16x1xf32>
    %15 = vector.broadcast %7 : vector<4x16x1xf32> to vector<4x16x32xf32>
    %16 = arith.subf %1, %15 : vector<4x16x32xf32>
    %cst_9 = arith.constant 9.99999974E-6 : f32
    %17 = vector.broadcast %cst_9 : f32 to vector<4x16x1xf32>
    %18 = arith.addf %14, %17 : vector<4x16x1xf32>
    %19 = math.rsqrt %18 : vector<4x16x1xf32>
    %20 = vector.broadcast %19 : vector<4x16x1xf32> to vector<4x16x32xf32>
    %21 = arith.mulf %16, %20 : vector<4x16x32xf32>
    %22 = vector.shape_cast %2 : vector<1x32xf32> to vector<1x1x32xf32>
    %23 = vector.broadcast %22 : vector<1x1x32xf32> to vector<4x16x32xf32>
    %24 = arith.mulf %21, %23 : vector<4x16x32xf32>
    %25 = vector.shape_cast %3 : vector<1x32xf32> to vector<1x1x32xf32>
    %26 = vector.broadcast %25 : vector<1x1x32xf32> to vector<4x16x32xf32>
    %27 = arith.addf %24, %26 : vector<4x16x32xf32>
    %28 = vector.shape_cast %27 : vector<4x16x32xf32> to vector<64x32xf32>
    %29 = arith.truncf %28 : vector<64x32xf32> to vector<64x32xbf16>
    %c0_10 = arith.constant 0 : index
    %c0_11 = arith.constant 0 : index
    %30 = vector.load %arg4[%c0_10, %c0_11] : memref<32x96xbf16, #tpu.memory_space<vmem>>, vector<32x96xbf16>
    %cst_12 = arith.constant dense<0.000000e+00> : vector<64x96xf32>
    %31 = tpu.matmul %29, %30, %cst_12 {dimension_numbers = #tpu.dot_dimension_numbers<[1], [0], [0], [1], [0, 0, 1, 1], [], []>} : vector<64x32xbf16>, vector<32x96xbf16>, vector<64x96xf32> -> vector<64x96xf32>
    %c0_13 = arith.constant 0 : index
    %c0_14 = arith.constant 0 : index
    %32 = vector.load %arg5[%c0_13, %c0_14] : memref<1x96xf32, #tpu.memory_space<vmem>>, vector<1x96xf32>
    %33 = vector.broadcast %32 : vector<1x96xf32> to vector<64x96xf32>
    %34 = arith.addf %31, %33 : vector<64x96xf32>
    %35 = arith.truncf %34 : vector<64x96xf32> to vector<64x96xbf16>
    %36 = vector.shape_cast %35 : vector<64x96xbf16> to vector<4x16x96xbf16>
    %37 = vector.extract_strided_slice %36 {offsets = [0, 0, 0], sizes = [4, 16, 16], strides = [1, 1, 1]} : vector<4x16x96xbf16> to vector<4x16x16xbf16>
    %38 = vector.extract_strided_slice %36 {offsets = [0, 0, 32], sizes = [4, 16, 16], strides = [1, 1, 1]} : vector<4x16x96xbf16> to vector<4x16x16xbf16>
    %39 = vector.extract_strided_slice %36 {offsets = [0, 0, 64], sizes = [4, 16, 16], strides = [1, 1, 1]} : vector<4x16x96xbf16> to vector<4x16x16xbf16>
    "tpu.trace_start"() <{level = 10 : i32, message = "gnd,gmd->gnm"}> : () -> ()
    %cst_15 = arith.constant dense<0.000000e+00> : vector<4x16x16xf32>
    %40 = tpu.matmul %37, %38, %cst_15 {dimension_numbers = #tpu.dot_dimension_numbers<[2], [2], [1], [1], [0, 0, 0, 1, 1, 1], [0], [0]>} : vector<4x16x16xbf16>, vector<4x16x16xbf16>, vector<4x16x16xf32> -> vector<4x16x16xf32>
    "tpu.trace_stop"() : () -> ()
    %cst_16 = arith.constant 2.500000e-01 : f32
    %41 = vector.broadcast %cst_16 : f32 to vector<4x16x16xf32>
    %42 = arith.mulf %40, %41 : vector<4x16x16xf32>
    %c0_17 = arith.constant 0 : index
    %c0_18 = arith.constant 0 : index
    %c0_19 = arith.constant 0 : index
    %43 = vector.load %arg6[%c0_17, %c0_18, %c0_19] : memref<2x16x16xf32, #tpu.memory_space<vmem>>, vector<1x16x16xf32>
    %44 = vector.shape_cast %43 : vector<1x16x16xf32> to vector<16x16xf32>
    %45 = vector.shape_cast %44 : vector<16x16xf32> to vector<1x16x16xf32>
    %46 = vector.broadcast %45 : vector<1x16x16xf32> to vector<4x16x16xf32>
    %47 = arith.addf %42, %46 : vector<4x16x16xf32>
    %cst_20 = arith.constant dense<0xFF800000> : vector<4x16xf32>
    %48 = vector.multi_reduction <maximumf>, %47, %cst_20 [2] : vector<4x16x16xf32> to vector<4x16xf32>
    %49 = vector.shape_cast %48 : vector<4x16xf32> to vector<4x16x1xf32>
    %50 = vector.broadcast %49 : vector<4x16x1xf32> to vector<4x16x16xf32>
    %51 = arith.subf %47, %50 : vector<4x16x16xf32>
    %52 = math.exp %51 : vector<4x16x16xf32>
    %cst_21 = arith.constant dense<0.000000e+00> : vector<4x16xf32>
    %53 = vector.multi_reduction <add>, %52, %cst_21 [2] : vector<4x16x16xf32> to vector<4x16xf32>
    %54 = vector.shape_cast %53 : vector<4x16xf32> to vector<4x16x1xf32>
    %55 = tpu.reciprocal %54 {approx = true} : vector<4x16x1xf32> -> vector<4x16x1xf32>
    %56 = vector.broadcast %55 : vector<4x16x1xf32> to vector<4x16x16xf32>
    %57 = arith.mulf %52, %56 : vector<4x16x16xf32>
    %58 = arith.truncf %57 : vector<4x16x16xf32> to vector<4x16x16xbf16>
    "tpu.trace_start"() <{level = 10 : i32, message = "gnm,gmd->gnd"}> : () -> ()
    %cst_22 = arith.constant dense<0.000000e+00> : vector<4x16x16xf32>
    %59 = tpu.matmul %58, %39, %cst_22 {dimension_numbers = #tpu.dot_dimension_numbers<[2], [1], [1], [2], [0, 0, 0, 1, 1, 2], [0], [0]>} : vector<4x16x16xbf16>, vector<4x16x16xbf16>, vector<4x16x16xf32> -> vector<4x16x16xf32>
    "tpu.trace_stop"() : () -> ()
    %60 = arith.truncf %59 : vector<4x16x16xf32> to vector<4x16x16xbf16>
    %61 = vector.extract_strided_slice %36 {offsets = [0, 0, 16], sizes = [4, 16, 16], strides = [1, 1, 1]} : vector<4x16x96xbf16> to vector<4x16x16xbf16>
    %62 = vector.extract_strided_slice %36 {offsets = [0, 0, 48], sizes = [4, 16, 16], strides = [1, 1, 1]} : vector<4x16x96xbf16> to vector<4x16x16xbf16>
    %63 = vector.extract_strided_slice %36 {offsets = [0, 0, 80], sizes = [4, 16, 16], strides = [1, 1, 1]} : vector<4x16x96xbf16> to vector<4x16x16xbf16>
    "tpu.trace_start"() <{level = 10 : i32, message = "gnd,gmd->gnm"}> : () -> ()
    %cst_23 = arith.constant dense<0.000000e+00> : vector<4x16x16xf32>
    %64 = tpu.matmul %61, %62, %cst_23 {dimension_numbers = #tpu.dot_dimension_numbers<[2], [2], [1], [1], [0, 0, 0, 1, 1, 1], [0], [0]>} : vector<4x16x16xbf16>, vector<4x16x16xbf16>, vector<4x16x16xf32> -> vector<4x16x16xf32>
    "tpu.trace_stop"() : () -> ()
    %cst_24 = arith.constant 2.500000e-01 : f32
    %65 = vector.broadcast %cst_24 : f32 to vector<4x16x16xf32>
    %66 = arith.mulf %64, %65 : vector<4x16x16xf32>
    %c1 = arith.constant 1 : index
    %c0_25 = arith.constant 0 : index
    %c0_26 = arith.constant 0 : index
    %67 = vector.load %arg6[%c1, %c0_25, %c0_26] : memref<2x16x16xf32, #tpu.memory_space<vmem>>, vector<1x16x16xf32>
    %68 = vector.shape_cast %67 : vector<1x16x16xf32> to vector<16x16xf32>
    %69 = vector.shape_cast %68 : vector<16x16xf32> to vector<1x16x16xf32>
    %70 = vector.broadcast %69 : vector<1x16x16xf32> to vector<4x16x16xf32>
    %71 = arith.addf %66, %70 : vector<4x16x16xf32>
    %cst_27 = arith.constant dense<0xFF800000> : vector<4x16xf32>
    %72 = vector.multi_reduction <maximumf>, %71, %cst_27 [2] : vector<4x16x16xf32> to vector<4x16xf32>
    %73 = vector.shape_cast %72 : vector<4x16xf32> to vector<4x16x1xf32>
    %74 = vector.broadcast %73 : vector<4x16x1xf32> to vector<4x16x16xf32>
    %75 = arith.subf %71, %74 : vector<4x16x16xf32>
    %76 = math.exp %75 : vector<4x16x16xf32>
    %cst_28 = arith.constant dense<0.000000e+00> : vector<4x16xf32>
    %77 = vector.multi_reduction <add>, %76, %cst_28 [2] : vector<4x16x16xf32> to vector<4x16xf32>
    %78 = vector.shape_cast %77 : vector<4x16xf32> to vector<4x16x1xf32>
    %79 = tpu.reciprocal %78 {approx = true} : vector<4x16x1xf32> -> vector<4x16x1xf32>
    %80 = vector.broadcast %79 : vector<4x16x1xf32> to vector<4x16x16xf32>
    %81 = arith.mulf %76, %80 : vector<4x16x16xf32>
    %82 = arith.truncf %81 : vector<4x16x16xf32> to vector<4x16x16xbf16>
    "tpu.trace_start"() <{level = 10 : i32, message = "gnm,gmd->gnd"}> : () -> ()
    %cst_29 = arith.constant dense<0.000000e+00> : vector<4x16x16xf32>
    %83 = tpu.matmul %82, %63, %cst_29 {dimension_numbers = #tpu.dot_dimension_numbers<[2], [1], [1], [2], [0, 0, 0, 1, 1, 2], [0], [0]>} : vector<4x16x16xbf16>, vector<4x16x16xbf16>, vector<4x16x16xf32> -> vector<4x16x16xf32>
    "tpu.trace_stop"() : () -> ()
    %84 = arith.truncf %83 : vector<4x16x16xf32> to vector<4x16x16xbf16>
    %85 = tpu.concatenate %60, %84 in 2 : vector<4x16x16xbf16>, vector<4x16x16xbf16> -> vector<4x16x32xbf16>
    %86 = vector.shape_cast %85 : vector<4x16x32xbf16> to vector<64x32xbf16>
    %c0_30 = arith.constant 0 : index
    %c0_31 = arith.constant 0 : index
    %87 = vector.load %arg7[%c0_30, %c0_31] : memref<32x32xbf16, #tpu.memory_space<vmem>>, vector<32x32xbf16>
    %cst_32 = arith.constant dense<0.000000e+00> : vector<64x32xf32>
    %88 = tpu.matmul %86, %87, %cst_32 {dimension_numbers = #tpu.dot_dimension_numbers<[1], [0], [0], [1], [0, 0, 1, 1], [], []>} : vector<64x32xbf16>, vector<32x32xbf16>, vector<64x32xf32> -> vector<64x32xf32>
    %c0_33 = arith.constant 0 : index
    %c0_34 = arith.constant 0 : index
    %89 = vector.load %arg8[%c0_33, %c0_34] : memref<1x32xf32, #tpu.memory_space<vmem>>, vector<1x32xf32>
    %90 = vector.broadcast %89 : vector<1x32xf32> to vector<64x32xf32>
    %91 = arith.addf %88, %90 : vector<64x32xf32>
    %92 = vector.shape_cast %91 : vector<64x32xf32> to vector<4x16x32xf32>
    %93 = arith.addf %92, %1 : vector<4x16x32xf32>
    %94 = arith.truncf %93 : vector<4x16x32xf32> to vector<4x16x32xbf16>
    %c0_35 = arith.constant 0 : index
    %c0_36 = arith.constant 0 : index
    %c0_37 = arith.constant 0 : index
    %95 = vector.load %arg9[%c0_35, %c0_36, %c0_37] : memref<4x16x32xbf16, #tpu.memory_space<vmem>>, vector<4x16x32xbf16>
    tpu.vector_store %arg9[%c0_35, %c0_36, %c0_37], %94 {strides = array<i32>} : memref<4x16x32xbf16, #tpu.memory_space<vmem>>, vector<4x16x32xbf16>,
    return
  }
  func.func @transform_0(%arg0: i32) -> (i32, i32, i32) {
    %c0_i32 = arith.constant 0 : i32
    %c0_i32_0 = arith.constant 0 : i32
    %c0_i32_1 = arith.constant 0 : i32
    return %arg0, %c0_i32, %c0_i32_0 : i32, i32, i32
  }
  func.func @transform_1(%arg0: i32) -> (i32, i32) {
    %c0_i32 = arith.constant 0 : i32
    %c0_i32_0 = arith.constant 0 : i32
    %c0_i32_1 = arith.constant 0 : i32
    return %c0_i32, %c0_i32_0 : i32, i32
  }
  func.func @transform_2(%arg0: i32) -> (i32, i32) {
    %c0_i32 = arith.constant 0 : i32
    %c0_i32_0 = arith.constant 0 : i32
    %c0_i32_1 = arith.constant 0 : i32
    return %c0_i32, %c0_i32_0 : i32, i32
  }
  func.func @transform_3(%arg0: i32) -> (i32, i32) {
    %c0_i32 = arith.constant 0 : i32
    %c0_i32_0 = arith.constant 0 : i32
    %c0_i32_1 = arith.constant 0 : i32
    return %c0_i32, %c0_i32_0 : i32, i32
  }
  func.func @transform_4(%arg0: i32) -> (i32, i32) {
    %c0_i32 = arith.constant 0 : i32
    %c0_i32_0 = arith.constant 0 : i32
    %c0_i32_1 = arith.constant 0 : i32
    return %c0_i32, %c0_i32_0 : i32, i32
  }
  func.func @transform_5(%arg0: i32) -> (i32, i32, i32) {
    %c0_i32 = arith.constant 0 : i32
    %c0_i32_0 = arith.constant 0 : i32
    %c0_i32_1 = arith.constant 0 : i32
    %c0_i32_2 = arith.constant 0 : i32
    return %c0_i32, %c0_i32_0, %c0_i32_1 : i32, i32, i32
  }
  func.func @transform_6(%arg0: i32) -> (i32, i32) {
    %c0_i32 = arith.constant 0 : i32
    %c0_i32_0 = arith.constant 0 : i32
    %c0_i32_1 = arith.constant 0 : i32
    return %c0_i32, %c0_i32_0 : i32, i32
  }
  func.func @transform_7(%arg0: i32) -> (i32, i32) {
    %c0_i32 = arith.constant 0 : i32
    %c0_i32_0 = arith.constant 0 : i32
    %c0_i32_1 = arith.constant 0 : i32
    return %c0_i32, %c0_i32_0 : i32, i32
  }
  func.func @transform_8(%arg0: i32) -> (i32, i32, i32) {
    %c0_i32 = arith.constant 0 : i32
    %c0_i32_0 = arith.constant 0 : i32
    %c0_i32_1 = arith.constant 0 : i32
    return %arg0, %c0_i32, %c0_i32_0 : i32, i32, i32
  }
}

module attributes {stable_mosaic.version = 11 : i64} {
  func.func @_ln_mlp_kernel(%arg0: i32, %arg1: i32, %arg2: memref<64x32xbf16, #tpu.memory_space<vmem>>, %arg3: memref<1x32xf32, #tpu.memory_space<vmem>>, %arg4: memref<1x32xf32, #tpu.memory_space<vmem>>, %arg5: memref<32x128xbf16, #tpu.memory_space<vmem>>, %arg6: memref<1x128xf32, #tpu.memory_space<vmem>>, %arg7: memref<128x32xbf16, #tpu.memory_space<vmem>>, %arg8: memref<1x32xf32, #tpu.memory_space<vmem>>, %arg9: memref<64x32xbf16, #tpu.memory_space<vmem>>, %arg10: memref<64x32xf32, #tpu.memory_space<vmem>>, %arg11: memref<64x32xbf16, #tpu.memory_space<vmem>>) attributes {dimension_semantics = [#tpu.dimension_semantics<parallel>, #tpu.dimension_semantics<arbitrary>], iteration_bounds = array<i64: 2, 1>, scalar_prefetch = 0 : i64, scratch_operands = 2 : i64, tpu.core_type = #tpu.core_type<tc>, window_params = [{transform_indices = @transform_0, window_bounds = array<i64: 64, 32>}, {pipeline_mode = #tpu.pipeline_mode<synchronous>, transform_indices = @transform_1, window_bounds = array<i64: 1, 32>}, {pipeline_mode = #tpu.pipeline_mode<synchronous>, transform_indices = @transform_2, window_bounds = array<i64: 1, 32>}, {transform_indices = @transform_3, window_bounds = array<i64: 32, 128>}, {transform_indices = @transform_4, window_bounds = array<i64: 1, 128>}, {transform_indices = @transform_5, window_bounds = array<i64: 128, 32>}, {pipeline_mode = #tpu.pipeline_mode<synchronous>, transform_indices = @transform_6, window_bounds = array<i64: 1, 32>}, {transform_indices = @transform_7, window_bounds = array<i64: 64, 32>}]} {
    %c0_i32 = arith.constant 0 : i32
    %0 = arith.cmpi eq, %arg1, %c0_i32 : i32
    %1 = arith.extui %0 : i1 to i32
    %c0_i32_0 = arith.constant 0 : i32
    %2 = arith.cmpi ne, %1, %c0_i32_0 : i32
    scf.if %2 {
      %c0_19 = arith.constant 0 : index
      %c0_20 = arith.constant 0 : index
      %31 = vector.load %arg2[%c0_19, %c0_20] : memref<64x32xbf16, #tpu.memory_space<vmem>>, vector<64x32xbf16>
      %32 = arith.extf %31 : vector<64x32xbf16> to vector<64x32xf32>
      %c0_21 = arith.constant 0 : index
      %c0_22 = arith.constant 0 : index
      %33 = vector.load %arg3[%c0_21, %c0_22] : memref<1x32xf32, #tpu.memory_space<vmem>>, vector<1x32xf32>
      %c0_23 = arith.constant 0 : index
      %c0_24 = arith.constant 0 : index
      %34 = vector.load %arg4[%c0_23, %c0_24] : memref<1x32xf32, #tpu.memory_space<vmem>>, vector<1x32xf32>
      %cst_25 = arith.constant dense<0.000000e+00> : vector<64xf32>
      %35 = vector.multi_reduction <add>, %32, %cst_25 [1] : vector<64x32xf32> to vector<64xf32>
      %36 = vector.shape_cast %35 : vector<64xf32> to vector<64x1xf32>
      %cst_26 = arith.constant 3.200000e+01 : f32
      %37 = vector.broadcast %cst_26 : f32 to vector<64x1xf32>
      %38 = arith.divf %36, %37 : vector<64x1xf32>
      %39 = vector.broadcast %38 : vector<64x1xf32> to vector<64x32xf32>
      %40 = arith.subf %32, %39 : vector<64x32xf32>
      %41 = arith.mulf %40, %40 : vector<64x32xf32>
      %cst_27 = arith.constant dense<0.000000e+00> : vector<64xf32>
      %42 = vector.multi_reduction <add>, %41, %cst_27 [1] : vector<64x32xf32> to vector<64xf32>
      %43 = vector.shape_cast %42 : vector<64xf32> to vector<64x1xf32>
      %cst_28 = arith.constant 3.200000e+01 : f32
      %44 = vector.broadcast %cst_28 : f32 to vector<64x1xf32>
      %45 = arith.divf %43, %44 : vector<64x1xf32>
      %46 = vector.broadcast %38 : vector<64x1xf32> to vector<64x32xf32>
      %47 = arith.subf %32, %46 : vector<64x32xf32>
      %cst_29 = arith.constant 9.99999974E-6 : f32
      %48 = vector.broadcast %cst_29 : f32 to vector<64x1xf32>
      %49 = arith.addf %45, %48 : vector<64x1xf32>
      %50 = math.rsqrt %49 : vector<64x1xf32>
      %51 = vector.broadcast %50 : vector<64x1xf32> to vector<64x32xf32>
      %52 = arith.mulf %47, %51 : vector<64x32xf32>
      %53 = vector.broadcast %33 : vector<1x32xf32> to vector<64x32xf32>
      %54 = arith.mulf %52, %53 : vector<64x32xf32>
      %55 = vector.broadcast %34 : vector<1x32xf32> to vector<64x32xf32>
      %56 = arith.addf %54, %55 : vector<64x32xf32>
      %57 = arith.truncf %56 : vector<64x32xf32> to vector<64x32xbf16>
      %c0_30 = arith.constant 0 : index
      %c0_31 = arith.constant 0 : index
      %58 = vector.load %arg11[%c0_30, %c0_31] : memref<64x32xbf16, #tpu.memory_space<vmem>>, vector<64x32xbf16>
      tpu.vector_store %arg11[%c0_30, %c0_31], %57 {strides = array<i32>} : memref<64x32xbf16, #tpu.memory_space<vmem>>, vector<64x32xbf16>,
      %cst_32 = arith.constant 0.000000e+00 : f32
      %59 = vector.broadcast %cst_32 : f32 to vector<64x32xf32>
      %c0_33 = arith.constant 0 : index
      %c0_34 = arith.constant 0 : index
      %60 = vector.load %arg10[%c0_33, %c0_34] : memref<64x32xf32, #tpu.memory_space<vmem>>, vector<64x32xf32>
      tpu.vector_store %arg10[%c0_33, %c0_34], %59 {strides = array<i32>} : memref<64x32xf32, #tpu.memory_space<vmem>>, vector<64x32xf32>,
    } else {
    }
    %c0 = arith.constant 0 : index
    %c0_1 = arith.constant 0 : index
    %3 = vector.load %arg11[%c0, %c0_1] : memref<64x32xbf16, #tpu.memory_space<vmem>>, vector<64x32xbf16>
    %c0_2 = arith.constant 0 : index
    %c0_3 = arith.constant 0 : index
    %4 = vector.load %arg5[%c0_2, %c0_3] : memref<32x128xbf16, #tpu.memory_space<vmem>>, vector<32x128xbf16>
    %cst = arith.constant dense<0.000000e+00> : vector<64x128xf32>
    %5 = tpu.matmul %3, %4, %cst {dimension_numbers = #tpu.dot_dimension_numbers<[1], [0], [0], [1], [0, 0, 1, 1], [], []>} : vector<64x32xbf16>, vector<32x128xbf16>, vector<64x128xf32> -> vector<64x128xf32>
    %c0_4 = arith.constant 0 : index
    %c0_5 = arith.constant 0 : index
    %6 = vector.load %arg6[%c0_4, %c0_5] : memref<1x128xf32, #tpu.memory_space<vmem>>, vector<1x128xf32>
    %7 = vector.broadcast %6 : vector<1x128xf32> to vector<64x128xf32>
    %8 = arith.addf %5, %7 : vector<64x128xf32>
    %9 = arith.mulf %8, %8 : vector<64x128xf32>
    %10 = arith.mulf %8, %9 : vector<64x128xf32>
    %cst_6 = arith.constant 4.471500e-02 : f32
    %11 = vector.broadcast %cst_6 : f32 to vector<64x128xf32>
    %12 = arith.mulf %11, %10 : vector<64x128xf32>
    %13 = arith.addf %8, %12 : vector<64x128xf32>
    %cst_7 = arith.constant 0.797884583 : f32
    %14 = vector.broadcast %cst_7 : f32 to vector<64x128xf32>
    %15 = arith.mulf %14, %13 : vector<64x128xf32>
    %16 = math.tanh %15 : vector<64x128xf32>
    %cst_8 = arith.constant 1.000000e+00 : f32
    %17 = vector.broadcast %cst_8 : f32 to vector<64x128xf32>
    %18 = arith.addf %17, %16 : vector<64x128xf32>
    %cst_9 = arith.constant 5.000000e-01 : f32
    %19 = vector.broadcast %cst_9 : f32 to vector<64x128xf32>
    %20 = arith.mulf %19, %18 : vector<64x128xf32>
    %21 = arith.mulf %8, %20 : vector<64x128xf32>
    %c0_10 = arith.constant 0 : index
    %c0_11 = arith.constant 0 : index
    %22 = vector.load %arg10[%c0_10, %c0_11] : memref<64x32xf32, #tpu.memory_space<vmem>>, vector<64x32xf32>
    %23 = arith.truncf %21 : vector<64x128xf32> to vector<64x128xbf16>
    %c0_12 = arith.constant 0 : index
    %c0_13 = arith.constant 0 : index
    %24 = vector.load %arg7[%c0_12, %c0_13] : memref<128x32xbf16, #tpu.memory_space<vmem>>, vector<128x32xbf16>
    %cst_14 = arith.constant dense<0.000000e+00> : vector<64x32xf32>
    %25 = tpu.matmul %23, %24, %cst_14 {dimension_numbers = #tpu.dot_dimension_numbers<[1], [0], [0], [1], [0, 0, 1, 1], [], []>} : vector<64x128xbf16>, vector<128x32xbf16>, vector<64x32xf32> -> vector<64x32xf32>
    %26 = arith.addf %22, %25 : vector<64x32xf32>
    %c0_15 = arith.constant 0 : index
    %c0_16 = arith.constant 0 : index
    %27 = vector.load %arg10[%c0_15, %c0_16] : memref<64x32xf32, #tpu.memory_space<vmem>>, vector<64x32xf32>
    tpu.vector_store %arg10[%c0_15, %c0_16], %26 {strides = array<i32>} : memref<64x32xf32, #tpu.memory_space<vmem>>, vector<64x32xf32>,
    %c0_i32_17 = arith.constant 0 : i32
    %28 = arith.cmpi eq, %arg1, %c0_i32_17 : i32
    %29 = arith.extui %28 : i1 to i32
    %c0_i32_18 = arith.constant 0 : i32
    %30 = arith.cmpi ne, %29, %c0_i32_18 : i32
    scf.if %30 {
      %c0_19 = arith.constant 0 : index
      %c0_20 = arith.constant 0 : index
      %31 = vector.load %arg2[%c0_19, %c0_20] : memref<64x32xbf16, #tpu.memory_space<vmem>>, vector<64x32xbf16>
      %32 = arith.extf %31 : vector<64x32xbf16> to vector<64x32xf32>
      %c0_21 = arith.constant 0 : index
      %c0_22 = arith.constant 0 : index
      %33 = vector.load %arg10[%c0_21, %c0_22] : memref<64x32xf32, #tpu.memory_space<vmem>>, vector<64x32xf32>
      %34 = arith.addf %32, %33 : vector<64x32xf32>
      %c0_23 = arith.constant 0 : index
      %c0_24 = arith.constant 0 : index
      %35 = vector.load %arg8[%c0_23, %c0_24] : memref<1x32xf32, #tpu.memory_space<vmem>>, vector<1x32xf32>
      %36 = vector.broadcast %35 : vector<1x32xf32> to vector<64x32xf32>
      %37 = arith.addf %34, %36 : vector<64x32xf32>
      %38 = arith.truncf %37 : vector<64x32xf32> to vector<64x32xbf16>
      %c0_25 = arith.constant 0 : index
      %c0_26 = arith.constant 0 : index
      %39 = vector.load %arg9[%c0_25, %c0_26] : memref<64x32xbf16, #tpu.memory_space<vmem>>, vector<64x32xbf16>
      tpu.vector_store %arg9[%c0_25, %c0_26], %38 {strides = array<i32>} : memref<64x32xbf16, #tpu.memory_space<vmem>>, vector<64x32xbf16>,
    } else {
    }
    return
  }
  func.func @transform_0(%arg0: i32, %arg1: i32) -> (i32, i32) {
    %c0_i32 = arith.constant 0 : i32
    %c0_i32_0 = arith.constant 0 : i32
    return %arg0, %c0_i32 : i32, i32
  }
  func.func @transform_1(%arg0: i32, %arg1: i32) -> (i32, i32) {
    %c0_i32 = arith.constant 0 : i32
    %c0_i32_0 = arith.constant 0 : i32
    %c0_i32_1 = arith.constant 0 : i32
    return %c0_i32, %c0_i32_0 : i32, i32
  }
  func.func @transform_2(%arg0: i32, %arg1: i32) -> (i32, i32) {
    %c0_i32 = arith.constant 0 : i32
    %c0_i32_0 = arith.constant 0 : i32
    %c0_i32_1 = arith.constant 0 : i32
    return %c0_i32, %c0_i32_0 : i32, i32
  }
  func.func @transform_3(%arg0: i32, %arg1: i32) -> (i32, i32) {
    %c0_i32 = arith.constant 0 : i32
    %c0_i32_0 = arith.constant 0 : i32
    return %c0_i32, %arg1 : i32, i32
  }
  func.func @transform_4(%arg0: i32, %arg1: i32) -> (i32, i32) {
    %c0_i32 = arith.constant 0 : i32
    %c0_i32_0 = arith.constant 0 : i32
    return %c0_i32, %arg1 : i32, i32
  }
  func.func @transform_5(%arg0: i32, %arg1: i32) -> (i32, i32) {
    %c0_i32 = arith.constant 0 : i32
    %c0_i32_0 = arith.constant 0 : i32
    return %arg1, %c0_i32 : i32, i32
  }
  func.func @transform_6(%arg0: i32, %arg1: i32) -> (i32, i32) {
    %c0_i32 = arith.constant 0 : i32
    %c0_i32_0 = arith.constant 0 : i32
    %c0_i32_1 = arith.constant 0 : i32
    return %c0_i32, %c0_i32_0 : i32, i32
  }
  func.func @transform_7(%arg0: i32, %arg1: i32) -> (i32, i32) {
    %c0_i32 = arith.constant 0 : i32
    %c0_i32_0 = arith.constant 0 : i32
    return %arg0, %c0_i32 : i32, i32
  }
}

module attributes {stable_mosaic.version = 11 : i64} {
  func.func @_fused_attn_kernel(%arg0: i32, %arg1: memref<4x16x32xbf16, #tpu.memory_space<vmem>>, %arg2: memref<1x32xf32, #tpu.memory_space<vmem>>, %arg3: memref<1x32xf32, #tpu.memory_space<vmem>>, %arg4: memref<32x96xbf16, #tpu.memory_space<vmem>>, %arg5: memref<1x96xf32, #tpu.memory_space<vmem>>, %arg6: memref<2x16x16xf32, #tpu.memory_space<vmem>>, %arg7: memref<32x32xbf16, #tpu.memory_space<vmem>>, %arg8: memref<1x32xf32, #tpu.memory_space<vmem>>, %arg9: memref<4x16x16xf32, #tpu.memory_space<vmem>>, %arg10: memref<4x16x32xbf16, #tpu.memory_space<vmem>>) attributes {dimension_semantics = [#tpu.dimension_semantics<parallel>], iteration_bounds = array<i64: 2>, scalar_prefetch = 0 : i64, scratch_operands = 0 : i64, tpu.core_type = #tpu.core_type<tc>, window_params = [{transform_indices = @transform_0, window_bounds = array<i64: 4, 16, 32>}, {pipeline_mode = #tpu.pipeline_mode<synchronous>, transform_indices = @transform_1, window_bounds = array<i64: 1, 32>}, {pipeline_mode = #tpu.pipeline_mode<synchronous>, transform_indices = @transform_2, window_bounds = array<i64: 1, 32>}, {pipeline_mode = #tpu.pipeline_mode<synchronous>, transform_indices = @transform_3, window_bounds = array<i64: 32, 96>}, {pipeline_mode = #tpu.pipeline_mode<synchronous>, transform_indices = @transform_4, window_bounds = array<i64: 1, 96>}, {pipeline_mode = #tpu.pipeline_mode<synchronous>, transform_indices = @transform_5, window_bounds = array<i64: 2, 16, 16>}, {pipeline_mode = #tpu.pipeline_mode<synchronous>, transform_indices = @transform_6, window_bounds = array<i64: 32, 32>}, {pipeline_mode = #tpu.pipeline_mode<synchronous>, transform_indices = @transform_7, window_bounds = array<i64: 1, 32>}, {transform_indices = @transform_8, window_bounds = array<i64: 4, 16, 16>}, {transform_indices = @transform_9, window_bounds = array<i64: 4, 16, 32>}]} {
    %c0 = arith.constant 0 : index
    %c0_0 = arith.constant 0 : index
    %c0_1 = arith.constant 0 : index
    %0 = vector.load %arg1[%c0, %c0_0, %c0_1] : memref<4x16x32xbf16, #tpu.memory_space<vmem>>, vector<4x16x32xbf16>
    %1 = arith.extf %0 : vector<4x16x32xbf16> to vector<4x16x32xf32>
    %c0_2 = arith.constant 0 : index
    %c0_3 = arith.constant 0 : index
    %2 = vector.load %arg2[%c0_2, %c0_3] : memref<1x32xf32, #tpu.memory_space<vmem>>, vector<1x32xf32>
    %c0_4 = arith.constant 0 : index
    %c0_5 = arith.constant 0 : index
    %3 = vector.load %arg3[%c0_4, %c0_5] : memref<1x32xf32, #tpu.memory_space<vmem>>, vector<1x32xf32>
    %cst = arith.constant dense<0.000000e+00> : vector<4x16xf32>
    %4 = vector.multi_reduction <add>, %1, %cst [2] : vector<4x16x32xf32> to vector<4x16xf32>
    %5 = vector.shape_cast %4 : vector<4x16xf32> to vector<4x16x1xf32>
    %cst_6 = arith.constant 3.200000e+01 : f32
    %6 = vector.broadcast %cst_6 : f32 to vector<4x16x1xf32>
    %7 = arith.divf %5, %6 : vector<4x16x1xf32>
    %8 = vector.broadcast %7 : vector<4x16x1xf32> to vector<4x16x32xf32>
    %9 = arith.subf %1, %8 : vector<4x16x32xf32>
    %10 = arith.mulf %9, %9 : vector<4x16x32xf32>
    %cst_7 = arith.constant dense<0.000000e+00> : vector<4x16xf32>
    %11 = vector.multi_reduction <add>, %10, %cst_7 [2] : vector<4x16x32xf32> to vector<4x16xf32>
    %12 = vector.shape_cast %11 : vector<4x16xf32> to vector<4x16x1xf32>
    %cst_8 = arith.constant 3.200000e+01 : f32
    %13 = vector.broadcast %cst_8 : f32 to vector<4x16x1xf32>
    %14 = arith.divf %12, %13 : vector<4x16x1xf32>
    %15 = vector.broadcast %7 : vector<4x16x1xf32> to vector<4x16x32xf32>
    %16 = arith.subf %1, %15 : vector<4x16x32xf32>
    %cst_9 = arith.constant 9.99999974E-6 : f32
    %17 = vector.broadcast %cst_9 : f32 to vector<4x16x1xf32>
    %18 = arith.addf %14, %17 : vector<4x16x1xf32>
    %19 = math.rsqrt %18 : vector<4x16x1xf32>
    %20 = vector.broadcast %19 : vector<4x16x1xf32> to vector<4x16x32xf32>
    %21 = arith.mulf %16, %20 : vector<4x16x32xf32>
    %22 = vector.shape_cast %2 : vector<1x32xf32> to vector<1x1x32xf32>
    %23 = vector.broadcast %22 : vector<1x1x32xf32> to vector<4x16x32xf32>
    %24 = arith.mulf %21, %23 : vector<4x16x32xf32>
    %25 = vector.shape_cast %3 : vector<1x32xf32> to vector<1x1x32xf32>
    %26 = vector.broadcast %25 : vector<1x1x32xf32> to vector<4x16x32xf32>
    %27 = arith.addf %24, %26 : vector<4x16x32xf32>
    %28 = vector.shape_cast %27 : vector<4x16x32xf32> to vector<64x32xf32>
    %29 = arith.truncf %28 : vector<64x32xf32> to vector<64x32xbf16>
    %c0_10 = arith.constant 0 : index
    %c0_11 = arith.constant 0 : index
    %30 = vector.load %arg4[%c0_10, %c0_11] : memref<32x96xbf16, #tpu.memory_space<vmem>>, vector<32x96xbf16>
    %cst_12 = arith.constant dense<0.000000e+00> : vector<64x96xf32>
    %31 = tpu.matmul %29, %30, %cst_12 {dimension_numbers = #tpu.dot_dimension_numbers<[1], [0], [0], [1], [0, 0, 1, 1], [], []>} : vector<64x32xbf16>, vector<32x96xbf16>, vector<64x96xf32> -> vector<64x96xf32>
    %c0_13 = arith.constant 0 : index
    %c0_14 = arith.constant 0 : index
    %32 = vector.load %arg5[%c0_13, %c0_14] : memref<1x96xf32, #tpu.memory_space<vmem>>, vector<1x96xf32>
    %33 = vector.broadcast %32 : vector<1x96xf32> to vector<64x96xf32>
    %34 = arith.addf %31, %33 : vector<64x96xf32>
    %35 = arith.truncf %34 : vector<64x96xf32> to vector<64x96xbf16>
    %36 = vector.shape_cast %35 : vector<64x96xbf16> to vector<4x16x96xbf16>
    %c0_15 = arith.constant 0 : index
    %c0_16 = arith.constant 0 : index
    %c0_17 = arith.constant 0 : index
    %37 = vector.load %arg9[%c0_15, %c0_16, %c0_17] : memref<4x16x16xf32, #tpu.memory_space<vmem>>, vector<4x16x16xf32>
    %38 = vector.extract_strided_slice %36 {offsets = [0, 0, 0], sizes = [4, 16, 16], strides = [1, 1, 1]} : vector<4x16x96xbf16> to vector<4x16x16xbf16>
    %39 = vector.extract_strided_slice %36 {offsets = [0, 0, 32], sizes = [4, 16, 16], strides = [1, 1, 1]} : vector<4x16x96xbf16> to vector<4x16x16xbf16>
    %40 = vector.extract_strided_slice %36 {offsets = [0, 0, 64], sizes = [4, 16, 16], strides = [1, 1, 1]} : vector<4x16x96xbf16> to vector<4x16x16xbf16>
    "tpu.trace_start"() <{level = 10 : i32, message = "gnd,gmd->gnm"}> : () -> ()
    %cst_18 = arith.constant dense<0.000000e+00> : vector<4x16x16xf32>
    %41 = tpu.matmul %38, %39, %cst_18 {dimension_numbers = #tpu.dot_dimension_numbers<[2], [2], [1], [1], [0, 0, 0, 1, 1, 1], [0], [0]>} : vector<4x16x16xbf16>, vector<4x16x16xbf16>, vector<4x16x16xf32> -> vector<4x16x16xf32>
    "tpu.trace_stop"() : () -> ()
    %cst_19 = arith.constant 2.500000e-01 : f32
    %42 = vector.broadcast %cst_19 : f32 to vector<4x16x16xf32>
    %43 = arith.mulf %41, %42 : vector<4x16x16xf32>
    %c0_20 = arith.constant 0 : index
    %c0_21 = arith.constant 0 : index
    %c0_22 = arith.constant 0 : index
    %44 = vector.load %arg6[%c0_20, %c0_21, %c0_22] : memref<2x16x16xf32, #tpu.memory_space<vmem>>, vector<1x16x16xf32>
    %45 = vector.shape_cast %44 : vector<1x16x16xf32> to vector<16x16xf32>
    %46 = vector.shape_cast %45 : vector<16x16xf32> to vector<1x16x16xf32>
    %47 = vector.broadcast %46 : vector<1x16x16xf32> to vector<4x16x16xf32>
    %48 = arith.addf %43, %47 : vector<4x16x16xf32>
    %49 = arith.addf %48, %37 : vector<4x16x16xf32>
    %cst_23 = arith.constant dense<0xFF800000> : vector<4x16xf32>
    %50 = vector.multi_reduction <maximumf>, %49, %cst_23 [2] : vector<4x16x16xf32> to vector<4x16xf32>
    %51 = vector.shape_cast %50 : vector<4x16xf32> to vector<4x16x1xf32>
    %52 = vector.broadcast %51 : vector<4x16x1xf32> to vector<4x16x16xf32>
    %53 = arith.subf %49, %52 : vector<4x16x16xf32>
    %54 = math.exp %53 : vector<4x16x16xf32>
    %cst_24 = arith.constant dense<0.000000e+00> : vector<4x16xf32>
    %55 = vector.multi_reduction <add>, %54, %cst_24 [2] : vector<4x16x16xf32> to vector<4x16xf32>
    %56 = vector.shape_cast %55 : vector<4x16xf32> to vector<4x16x1xf32>
    %57 = tpu.reciprocal %56 {approx = true} : vector<4x16x1xf32> -> vector<4x16x1xf32>
    %58 = vector.broadcast %57 : vector<4x16x1xf32> to vector<4x16x16xf32>
    %59 = arith.mulf %54, %58 : vector<4x16x16xf32>
    %60 = arith.truncf %59 : vector<4x16x16xf32> to vector<4x16x16xbf16>
    "tpu.trace_start"() <{level = 10 : i32, message = "gnm,gmd->gnd"}> : () -> ()
    %cst_25 = arith.constant dense<0.000000e+00> : vector<4x16x16xf32>
    %61 = tpu.matmul %60, %40, %cst_25 {dimension_numbers = #tpu.dot_dimension_numbers<[2], [1], [1], [2], [0, 0, 0, 1, 1, 2], [0], [0]>} : vector<4x16x16xbf16>, vector<4x16x16xbf16>, vector<4x16x16xf32> -> vector<4x16x16xf32>
    "tpu.trace_stop"() : () -> ()
    %62 = arith.truncf %61 : vector<4x16x16xf32> to vector<4x16x16xbf16>
    %63 = vector.extract_strided_slice %36 {offsets = [0, 0, 16], sizes = [4, 16, 16], strides = [1, 1, 1]} : vector<4x16x96xbf16> to vector<4x16x16xbf16>
    %64 = vector.extract_strided_slice %36 {offsets = [0, 0, 48], sizes = [4, 16, 16], strides = [1, 1, 1]} : vector<4x16x96xbf16> to vector<4x16x16xbf16>
    %65 = vector.extract_strided_slice %36 {offsets = [0, 0, 80], sizes = [4, 16, 16], strides = [1, 1, 1]} : vector<4x16x96xbf16> to vector<4x16x16xbf16>
    "tpu.trace_start"() <{level = 10 : i32, message = "gnd,gmd->gnm"}> : () -> ()
    %cst_26 = arith.constant dense<0.000000e+00> : vector<4x16x16xf32>
    %66 = tpu.matmul %63, %64, %cst_26 {dimension_numbers = #tpu.dot_dimension_numbers<[2], [2], [1], [1], [0, 0, 0, 1, 1, 1], [0], [0]>} : vector<4x16x16xbf16>, vector<4x16x16xbf16>, vector<4x16x16xf32> -> vector<4x16x16xf32>
    "tpu.trace_stop"() : () -> ()
    %cst_27 = arith.constant 2.500000e-01 : f32
    %67 = vector.broadcast %cst_27 : f32 to vector<4x16x16xf32>
    %68 = arith.mulf %66, %67 : vector<4x16x16xf32>
    %c1 = arith.constant 1 : index
    %c0_28 = arith.constant 0 : index
    %c0_29 = arith.constant 0 : index
    %69 = vector.load %arg6[%c1, %c0_28, %c0_29] : memref<2x16x16xf32, #tpu.memory_space<vmem>>, vector<1x16x16xf32>
    %70 = vector.shape_cast %69 : vector<1x16x16xf32> to vector<16x16xf32>
    %71 = vector.shape_cast %70 : vector<16x16xf32> to vector<1x16x16xf32>
    %72 = vector.broadcast %71 : vector<1x16x16xf32> to vector<4x16x16xf32>
    %73 = arith.addf %68, %72 : vector<4x16x16xf32>
    %74 = arith.addf %73, %37 : vector<4x16x16xf32>
    %cst_30 = arith.constant dense<0xFF800000> : vector<4x16xf32>
    %75 = vector.multi_reduction <maximumf>, %74, %cst_30 [2] : vector<4x16x16xf32> to vector<4x16xf32>
    %76 = vector.shape_cast %75 : vector<4x16xf32> to vector<4x16x1xf32>
    %77 = vector.broadcast %76 : vector<4x16x1xf32> to vector<4x16x16xf32>
    %78 = arith.subf %74, %77 : vector<4x16x16xf32>
    %79 = math.exp %78 : vector<4x16x16xf32>
    %cst_31 = arith.constant dense<0.000000e+00> : vector<4x16xf32>
    %80 = vector.multi_reduction <add>, %79, %cst_31 [2] : vector<4x16x16xf32> to vector<4x16xf32>
    %81 = vector.shape_cast %80 : vector<4x16xf32> to vector<4x16x1xf32>
    %82 = tpu.reciprocal %81 {approx = true} : vector<4x16x1xf32> -> vector<4x16x1xf32>
    %83 = vector.broadcast %82 : vector<4x16x1xf32> to vector<4x16x16xf32>
    %84 = arith.mulf %79, %83 : vector<4x16x16xf32>
    %85 = arith.truncf %84 : vector<4x16x16xf32> to vector<4x16x16xbf16>
    "tpu.trace_start"() <{level = 10 : i32, message = "gnm,gmd->gnd"}> : () -> ()
    %cst_32 = arith.constant dense<0.000000e+00> : vector<4x16x16xf32>
    %86 = tpu.matmul %85, %65, %cst_32 {dimension_numbers = #tpu.dot_dimension_numbers<[2], [1], [1], [2], [0, 0, 0, 1, 1, 2], [0], [0]>} : vector<4x16x16xbf16>, vector<4x16x16xbf16>, vector<4x16x16xf32> -> vector<4x16x16xf32>
    "tpu.trace_stop"() : () -> ()
    %87 = arith.truncf %86 : vector<4x16x16xf32> to vector<4x16x16xbf16>
    %88 = tpu.concatenate %62, %87 in 2 : vector<4x16x16xbf16>, vector<4x16x16xbf16> -> vector<4x16x32xbf16>
    %89 = vector.shape_cast %88 : vector<4x16x32xbf16> to vector<64x32xbf16>
    %c0_33 = arith.constant 0 : index
    %c0_34 = arith.constant 0 : index
    %90 = vector.load %arg7[%c0_33, %c0_34] : memref<32x32xbf16, #tpu.memory_space<vmem>>, vector<32x32xbf16>
    %cst_35 = arith.constant dense<0.000000e+00> : vector<64x32xf32>
    %91 = tpu.matmul %89, %90, %cst_35 {dimension_numbers = #tpu.dot_dimension_numbers<[1], [0], [0], [1], [0, 0, 1, 1], [], []>} : vector<64x32xbf16>, vector<32x32xbf16>, vector<64x32xf32> -> vector<64x32xf32>
    %c0_36 = arith.constant 0 : index
    %c0_37 = arith.constant 0 : index
    %92 = vector.load %arg8[%c0_36, %c0_37] : memref<1x32xf32, #tpu.memory_space<vmem>>, vector<1x32xf32>
    %93 = vector.broadcast %92 : vector<1x32xf32> to vector<64x32xf32>
    %94 = arith.addf %91, %93 : vector<64x32xf32>
    %95 = vector.shape_cast %94 : vector<64x32xf32> to vector<4x16x32xf32>
    %96 = arith.addf %95, %1 : vector<4x16x32xf32>
    %97 = arith.truncf %96 : vector<4x16x32xf32> to vector<4x16x32xbf16>
    %c0_38 = arith.constant 0 : index
    %c0_39 = arith.constant 0 : index
    %c0_40 = arith.constant 0 : index
    %98 = vector.load %arg10[%c0_38, %c0_39, %c0_40] : memref<4x16x32xbf16, #tpu.memory_space<vmem>>, vector<4x16x32xbf16>
    tpu.vector_store %arg10[%c0_38, %c0_39, %c0_40], %97 {strides = array<i32>} : memref<4x16x32xbf16, #tpu.memory_space<vmem>>, vector<4x16x32xbf16>,
    return
  }
  func.func @transform_0(%arg0: i32) -> (i32, i32, i32) {
    %c0_i32 = arith.constant 0 : i32
    %c0_i32_0 = arith.constant 0 : i32
    %c0_i32_1 = arith.constant 0 : i32
    return %arg0, %c0_i32, %c0_i32_0 : i32, i32, i32
  }
  func.func @transform_1(%arg0: i32) -> (i32, i32) {
    %c0_i32 = arith.constant 0 : i32
    %c0_i32_0 = arith.constant 0 : i32
    %c0_i32_1 = arith.constant 0 : i32
    return %c0_i32, %c0_i32_0 : i32, i32
  }
  func.func @transform_2(%arg0: i32) -> (i32, i32) {
    %c0_i32 = arith.constant 0 : i32
    %c0_i32_0 = arith.constant 0 : i32
    %c0_i32_1 = arith.constant 0 : i32
    return %c0_i32, %c0_i32_0 : i32, i32
  }
  func.func @transform_3(%arg0: i32) -> (i32, i32) {
    %c0_i32 = arith.constant 0 : i32
    %c0_i32_0 = arith.constant 0 : i32
    %c0_i32_1 = arith.constant 0 : i32
    return %c0_i32, %c0_i32_0 : i32, i32
  }
  func.func @transform_4(%arg0: i32) -> (i32, i32) {
    %c0_i32 = arith.constant 0 : i32
    %c0_i32_0 = arith.constant 0 : i32
    %c0_i32_1 = arith.constant 0 : i32
    return %c0_i32, %c0_i32_0 : i32, i32
  }
  func.func @transform_5(%arg0: i32) -> (i32, i32, i32) {
    %c0_i32 = arith.constant 0 : i32
    %c0_i32_0 = arith.constant 0 : i32
    %c0_i32_1 = arith.constant 0 : i32
    %c0_i32_2 = arith.constant 0 : i32
    return %c0_i32, %c0_i32_0, %c0_i32_1 : i32, i32, i32
  }
  func.func @transform_6(%arg0: i32) -> (i32, i32) {
    %c0_i32 = arith.constant 0 : i32
    %c0_i32_0 = arith.constant 0 : i32
    %c0_i32_1 = arith.constant 0 : i32
    return %c0_i32, %c0_i32_0 : i32, i32
  }
  func.func @transform_7(%arg0: i32) -> (i32, i32) {
    %c0_i32 = arith.constant 0 : i32
    %c0_i32_0 = arith.constant 0 : i32
    %c0_i32_1 = arith.constant 0 : i32
    return %c0_i32, %c0_i32_0 : i32, i32
  }
  func.func @transform_8(%arg0: i32) -> (i32, i32, i32) {
    %c1_i32 = arith.constant 1 : i32
    %c0_i32 = arith.constant 0 : i32
    %0 = arith.cmpi eq, %c1_i32, %c0_i32 : i32
    %c1_i32_0 = arith.constant 1 : i32
    %1 = arith.select %0, %c1_i32_0, %c1_i32 : i32
    %2 = arith.remsi %arg0, %1 : i32
    %c0_i32_1 = arith.constant 0 : i32
    %3 = arith.cmpi ne, %2, %c0_i32_1 : i32
    %c0_i32_2 = arith.constant 0 : i32
    %4 = arith.cmpi slt, %2, %c0_i32_2 : i32
    %c0_i32_3 = arith.constant 0 : i32
    %5 = arith.cmpi slt, %1, %c0_i32_3 : i32
    %6 = arith.xori %4, %5 : i1
    %7 = arith.andi %6, %3 : i1
    %8 = arith.addi %2, %1 : i32
    %9 = arith.select %7, %8, %2 : i32
    %c0_i32_4 = arith.constant 0 : i32
    %c0_i32_5 = arith.constant 0 : i32
    %c0_i32_6 = arith.constant 0 : i32
    return %9, %c0_i32_4, %c0_i32_5 : i32, i32, i32
  }
  func.func @transform_9(%arg0: i32) -> (i32, i32, i32) {
    %c0_i32 = arith.constant 0 : i32
    %c0_i32_0 = arith.constant 0 : i32
    %c0_i32_1 = arith.constant 0 : i32
    return %arg0, %c0_i32, %c0_i32_0 : i32, i32, i32
  }
}

module attributes {stable_mosaic.version = 11 : i64} {
  func.func @_linear_kernel(%arg0: i32, %arg1: i32, %arg2: i32, %arg3: memref<16x128xbf16, #tpu.memory_space<vmem>>, %arg4: memref<16x128xbf16, #tpu.memory_space<vmem>>, %arg5: memref<1x128xf32, #tpu.memory_space<vmem>>, %arg6: memref<1x128xf32, #tpu.memory_space<vmem>>, %arg7: memref<128x64xbf16, #tpu.memory_space<vmem>>, %arg8: memref<1x64xf32, #tpu.memory_space<vmem>>, %arg9: memref<16x64xbf16, #tpu.memory_space<vmem>>, %arg10: memref<16x64xf32, #tpu.memory_space<vmem>>, %arg11: memref<16x1xf32, #tpu.memory_space<vmem>>, %arg12: memref<16x1xf32, #tpu.memory_space<vmem>>) attributes {dimension_semantics = [#tpu.dimension_semantics<parallel>, #tpu.dimension_semantics<parallel>, #tpu.dimension_semantics<arbitrary>], iteration_bounds = array<i64: 2, 1, 1>, scalar_prefetch = 0 : i64, scratch_operands = 3 : i64, tpu.core_type = #tpu.core_type<tc>, window_params = [{transform_indices = @transform_0, window_bounds = array<i64: 16, 128>}, {transform_indices = @transform_1, window_bounds = array<i64: 16, 128>}, {transform_indices = @transform_2, window_bounds = array<i64: 1, 128>}, {transform_indices = @transform_3, window_bounds = array<i64: 1, 128>}, {transform_indices = @transform_4, window_bounds = array<i64: 128, 64>}, {transform_indices = @transform_5, window_bounds = array<i64: 1, 64>}, {transform_indices = @transform_6, window_bounds = array<i64: 16, 64>}]} {
    %c0_i32 = arith.constant 0 : i32
    %0 = arith.cmpi eq, %arg2, %c0_i32 : i32
    %1 = arith.extui %0 : i1 to i32
    %c0_i32_0 = arith.constant 0 : i32
    %2 = arith.cmpi ne, %1, %c0_i32_0 : i32
    scf.if %2 {
      %cst_18 = arith.constant 0.000000e+00 : f32
      %26 = vector.broadcast %cst_18 : f32 to vector<16x64xf32>
      %c0_19 = arith.constant 0 : index
      %c0_20 = arith.constant 0 : index
      %27 = vector.load %arg10[%c0_19, %c0_20] : memref<16x64xf32, #tpu.memory_space<vmem>>, vector<16x64xf32>
      tpu.vector_store %arg10[%c0_19, %c0_20], %26 {strides = array<i32>} : memref<16x64xf32, #tpu.memory_space<vmem>>, vector<16x64xf32>,
      %c0_21 = arith.constant 0 : index
      %c0_22 = arith.constant 0 : index
      %28 = vector.load %arg3[%c0_21, %c0_22] : memref<16x128xbf16, #tpu.memory_space<vmem>>, vector<16x128xbf16>
      %29 = arith.extf %28 : vector<16x128xbf16> to vector<16x128xf32>
      %cst_23 = arith.constant dense<0.000000e+00> : vector<16xf32>
      %30 = vector.multi_reduction <add>, %29, %cst_23 [1] : vector<16x128xf32> to vector<16xf32>
      %31 = vector.shape_cast %30 : vector<16xf32> to vector<16x1xf32>
      %cst_24 = arith.constant 1.280000e+02 : f32
      %32 = vector.broadcast %cst_24 : f32 to vector<16x1xf32>
      %33 = arith.divf %31, %32 : vector<16x1xf32>
      %34 = vector.broadcast %33 : vector<16x1xf32> to vector<16x128xf32>
      %35 = arith.subf %29, %34 : vector<16x128xf32>
      %36 = arith.mulf %35, %35 : vector<16x128xf32>
      %cst_25 = arith.constant dense<0.000000e+00> : vector<16xf32>
      %37 = vector.multi_reduction <add>, %36, %cst_25 [1] : vector<16x128xf32> to vector<16xf32>
      %38 = vector.shape_cast %37 : vector<16xf32> to vector<16x1xf32>
      %cst_26 = arith.constant 1.280000e+02 : f32
      %39 = vector.broadcast %cst_26 : f32 to vector<16x1xf32>
      %40 = arith.divf %38, %39 : vector<16x1xf32>
      %c0_27 = arith.constant 0 : index
      %c0_28 = arith.constant 0 : index
      %41 = vector.load %arg11[%c0_27, %c0_28] : memref<16x1xf32, #tpu.memory_space<vmem>>, vector<16x1xf32>
      tpu.vector_store %arg11[%c0_27, %c0_28], %33 {strides = array<i32>} : memref<16x1xf32, #tpu.memory_space<vmem>>, vector<16x1xf32>,
      %cst_29 = arith.constant 9.99999974E-6 : f32
      %42 = vector.broadcast %cst_29 : f32 to vector<16x1xf32>
      %43 = arith.addf %40, %42 : vector<16x1xf32>
      %44 = math.rsqrt %43 : vector<16x1xf32>
      %c0_30 = arith.constant 0 : index
      %c0_31 = arith.constant 0 : index
      %45 = vector.load %arg12[%c0_30, %c0_31] : memref<16x1xf32, #tpu.memory_space<vmem>>, vector<16x1xf32>
      tpu.vector_store %arg12[%c0_30, %c0_31], %44 {strides = array<i32>} : memref<16x1xf32, #tpu.memory_space<vmem>>, vector<16x1xf32>,
    } else {
    }
    %c0 = arith.constant 0 : index
    %c0_1 = arith.constant 0 : index
    %3 = vector.load %arg4[%c0, %c0_1] : memref<16x128xbf16, #tpu.memory_space<vmem>>, vector<16x128xbf16>
    %4 = arith.extf %3 : vector<16x128xbf16> to vector<16x128xf32>
    %c0_2 = arith.constant 0 : index
    %c0_3 = arith.constant 0 : index
    %5 = vector.load %arg11[%c0_2, %c0_3] : memref<16x1xf32, #tpu.memory_space<vmem>>, vector<16x1xf32>
    %6 = vector.broadcast %5 : vector<16x1xf32> to vector<16x128xf32>
    %7 = arith.subf %4, %6 : vector<16x128xf32>
    %c0_4 = arith.constant 0 : index
    %c0_5 = arith.constant 0 : index
    %8 = vector.load %arg12[%c0_4, %c0_5] : memref<16x1xf32, #tpu.memory_space<vmem>>, vector<16x1xf32>
    %9 = vector.broadcast %8 : vector<16x1xf32> to vector<16x128xf32>
    %10 = arith.mulf %7, %9 : vector<16x128xf32>
    %c0_6 = arith.constant 0 : index
    %c0_7 = arith.constant 0 : index
    %11 = vector.load %arg5[%c0_6, %c0_7] : memref<1x128xf32, #tpu.memory_space<vmem>>, vector<1x128xf32>
    %12 = vector.broadcast %11 : vector<1x128xf32> to vector<16x128xf32>
    %13 = arith.mulf %10, %12 : vector<16x128xf32>
    %c0_8 = arith.constant 0 : index
    %c0_9 = arith.constant 0 : index
    %14 = vector.load %arg6[%c0_8, %c0_9] : memref<1x128xf32, #tpu.memory_space<vmem>>, vector<1x128xf32>
    %15 = vector.broadcast %14 : vector<1x128xf32> to vector<16x128xf32>
    %16 = arith.addf %13, %15 : vector<16x128xf32>
    %c0_10 = arith.constant 0 : index
    %c0_11 = arith.constant 0 : index
    %17 = vector.load %arg10[%c0_10, %c0_11] : memref<16x64xf32, #tpu.memory_space<vmem>>, vector<16x64xf32>
    %18 = arith.truncf %16 : vector<16x128xf32> to vector<16x128xbf16>
    %c0_12 = arith.constant 0 : index
    %c0_13 = arith.constant 0 : index
    %19 = vector.load %arg7[%c0_12, %c0_13] : memref<128x64xbf16, #tpu.memory_space<vmem>>, vector<128x64xbf16>
    %cst = arith.constant dense<0.000000e+00> : vector<16x64xf32>
    %20 = tpu.matmul %18, %19, %cst {dimension_numbers = #tpu.dot_dimension_numbers<[1], [0], [0], [1], [0, 0, 1, 1], [], []>} : vector<16x128xbf16>, vector<128x64xbf16>, vector<16x64xf32> -> vector<16x64xf32>
    %21 = arith.addf %17, %20 : vector<16x64xf32>
    %c0_14 = arith.constant 0 : index
    %c0_15 = arith.constant 0 : index
    %22 = vector.load %arg10[%c0_14, %c0_15] : memref<16x64xf32, #tpu.memory_space<vmem>>, vector<16x64xf32>
    tpu.vector_store %arg10[%c0_14, %c0_15], %21 {strides = array<i32>} : memref<16x64xf32, #tpu.memory_space<vmem>>, vector<16x64xf32>,
    %c0_i32_16 = arith.constant 0 : i32
    %23 = arith.cmpi eq, %arg2, %c0_i32_16 : i32
    %24 = arith.extui %23 : i1 to i32
    %c0_i32_17 = arith.constant 0 : i32
    %25 = arith.cmpi ne, %24, %c0_i32_17 : i32
    scf.if %25 {
      %c0_18 = arith.constant 0 : index
      %c0_19 = arith.constant 0 : index
      %26 = vector.load %arg10[%c0_18, %c0_19] : memref<16x64xf32, #tpu.memory_space<vmem>>, vector<16x64xf32>
      %c0_20 = arith.constant 0 : index
      %c0_21 = arith.constant 0 : index
      %27 = vector.load %arg8[%c0_20, %c0_21] : memref<1x64xf32, #tpu.memory_space<vmem>>, vector<1x64xf32>
      %28 = vector.broadcast %27 : vector<1x64xf32> to vector<16x64xf32>
      %29 = arith.addf %26, %28 : vector<16x64xf32>
      %30 = arith.truncf %29 : vector<16x64xf32> to vector<16x64xbf16>
      %c0_22 = arith.constant 0 : index
      %c0_23 = arith.constant 0 : index
      %31 = vector.load %arg9[%c0_22, %c0_23] : memref<16x64xbf16, #tpu.memory_space<vmem>>, vector<16x64xbf16>
      tpu.vector_store %arg9[%c0_22, %c0_23], %30 {strides = array<i32>} : memref<16x64xbf16, #tpu.memory_space<vmem>>, vector<16x64xbf16>,
    } else {
    }
    return
  }
  func.func @transform_0(%arg0: i32, %arg1: i32, %arg2: i32) -> (i32, i32) {
    %c0_i32 = arith.constant 0 : i32
    %c0_i32_0 = arith.constant 0 : i32
    return %arg0, %c0_i32 : i32, i32
  }
  func.func @transform_1(%arg0: i32, %arg1: i32, %arg2: i32) -> (i32, i32) {
    %c0_i32 = arith.constant 0 : i32
    return %arg0, %arg2 : i32, i32
  }
  func.func @transform_2(%arg0: i32, %arg1: i32, %arg2: i32) -> (i32, i32) {
    %c0_i32 = arith.constant 0 : i32
    %c0_i32_0 = arith.constant 0 : i32
    return %c0_i32, %arg2 : i32, i32
  }
  func.func @transform_3(%arg0: i32, %arg1: i32, %arg2: i32) -> (i32, i32) {
    %c0_i32 = arith.constant 0 : i32
    %c0_i32_0 = arith.constant 0 : i32
    return %c0_i32, %arg2 : i32, i32
  }
  func.func @transform_4(%arg0: i32, %arg1: i32, %arg2: i32) -> (i32, i32) {
    %c0_i32 = arith.constant 0 : i32
    return %arg2, %arg1 : i32, i32
  }
  func.func @transform_5(%arg0: i32, %arg1: i32, %arg2: i32) -> (i32, i32) {
    %c0_i32 = arith.constant 0 : i32
    %c0_i32_0 = arith.constant 0 : i32
    return %c0_i32, %arg1 : i32, i32
  }
  func.func @transform_6(%arg0: i32, %arg1: i32, %arg2: i32) -> (i32, i32) {
    %c0_i32 = arith.constant 0 : i32
    return %arg0, %arg1 : i32, i32
  }
}

module attributes {stable_mosaic.version = 11 : i64} {
  func.func @_ln_mlp_kernel(%arg0: i32, %arg1: i32, %arg2: memref<16x64xbf16, #tpu.memory_space<vmem>>, %arg3: memref<1x64xf32, #tpu.memory_space<vmem>>, %arg4: memref<1x64xf32, #tpu.memory_space<vmem>>, %arg5: memref<64x256xbf16, #tpu.memory_space<vmem>>, %arg6: memref<1x256xf32, #tpu.memory_space<vmem>>, %arg7: memref<256x64xbf16, #tpu.memory_space<vmem>>, %arg8: memref<1x64xf32, #tpu.memory_space<vmem>>, %arg9: memref<16x64xbf16, #tpu.memory_space<vmem>>, %arg10: memref<16x64xf32, #tpu.memory_space<vmem>>, %arg11: memref<16x64xbf16, #tpu.memory_space<vmem>>) attributes {dimension_semantics = [#tpu.dimension_semantics<parallel>, #tpu.dimension_semantics<arbitrary>], iteration_bounds = array<i64: 2, 1>, scalar_prefetch = 0 : i64, scratch_operands = 2 : i64, tpu.core_type = #tpu.core_type<tc>, window_params = [{transform_indices = @transform_0, window_bounds = array<i64: 16, 64>}, {pipeline_mode = #tpu.pipeline_mode<synchronous>, transform_indices = @transform_1, window_bounds = array<i64: 1, 64>}, {pipeline_mode = #tpu.pipeline_mode<synchronous>, transform_indices = @transform_2, window_bounds = array<i64: 1, 64>}, {transform_indices = @transform_3, window_bounds = array<i64: 64, 256>}, {transform_indices = @transform_4, window_bounds = array<i64: 1, 256>}, {transform_indices = @transform_5, window_bounds = array<i64: 256, 64>}, {pipeline_mode = #tpu.pipeline_mode<synchronous>, transform_indices = @transform_6, window_bounds = array<i64: 1, 64>}, {transform_indices = @transform_7, window_bounds = array<i64: 16, 64>}]} {
    %c0_i32 = arith.constant 0 : i32
    %0 = arith.cmpi eq, %arg1, %c0_i32 : i32
    %1 = arith.extui %0 : i1 to i32
    %c0_i32_0 = arith.constant 0 : i32
    %2 = arith.cmpi ne, %1, %c0_i32_0 : i32
    scf.if %2 {
      %c0_19 = arith.constant 0 : index
      %c0_20 = arith.constant 0 : index
      %31 = vector.load %arg2[%c0_19, %c0_20] : memref<16x64xbf16, #tpu.memory_space<vmem>>, vector<16x64xbf16>
      %32 = arith.extf %31 : vector<16x64xbf16> to vector<16x64xf32>
      %c0_21 = arith.constant 0 : index
      %c0_22 = arith.constant 0 : index
      %33 = vector.load %arg3[%c0_21, %c0_22] : memref<1x64xf32, #tpu.memory_space<vmem>>, vector<1x64xf32>
      %c0_23 = arith.constant 0 : index
      %c0_24 = arith.constant 0 : index
      %34 = vector.load %arg4[%c0_23, %c0_24] : memref<1x64xf32, #tpu.memory_space<vmem>>, vector<1x64xf32>
      %cst_25 = arith.constant dense<0.000000e+00> : vector<16xf32>
      %35 = vector.multi_reduction <add>, %32, %cst_25 [1] : vector<16x64xf32> to vector<16xf32>
      %36 = vector.shape_cast %35 : vector<16xf32> to vector<16x1xf32>
      %cst_26 = arith.constant 6.400000e+01 : f32
      %37 = vector.broadcast %cst_26 : f32 to vector<16x1xf32>
      %38 = arith.divf %36, %37 : vector<16x1xf32>
      %39 = vector.broadcast %38 : vector<16x1xf32> to vector<16x64xf32>
      %40 = arith.subf %32, %39 : vector<16x64xf32>
      %41 = arith.mulf %40, %40 : vector<16x64xf32>
      %cst_27 = arith.constant dense<0.000000e+00> : vector<16xf32>
      %42 = vector.multi_reduction <add>, %41, %cst_27 [1] : vector<16x64xf32> to vector<16xf32>
      %43 = vector.shape_cast %42 : vector<16xf32> to vector<16x1xf32>
      %cst_28 = arith.constant 6.400000e+01 : f32
      %44 = vector.broadcast %cst_28 : f32 to vector<16x1xf32>
      %45 = arith.divf %43, %44 : vector<16x1xf32>
      %46 = vector.broadcast %38 : vector<16x1xf32> to vector<16x64xf32>
      %47 = arith.subf %32, %46 : vector<16x64xf32>
      %cst_29 = arith.constant 9.99999974E-6 : f32
      %48 = vector.broadcast %cst_29 : f32 to vector<16x1xf32>
      %49 = arith.addf %45, %48 : vector<16x1xf32>
      %50 = math.rsqrt %49 : vector<16x1xf32>
      %51 = vector.broadcast %50 : vector<16x1xf32> to vector<16x64xf32>
      %52 = arith.mulf %47, %51 : vector<16x64xf32>
      %53 = vector.broadcast %33 : vector<1x64xf32> to vector<16x64xf32>
      %54 = arith.mulf %52, %53 : vector<16x64xf32>
      %55 = vector.broadcast %34 : vector<1x64xf32> to vector<16x64xf32>
      %56 = arith.addf %54, %55 : vector<16x64xf32>
      %57 = arith.truncf %56 : vector<16x64xf32> to vector<16x64xbf16>
      %c0_30 = arith.constant 0 : index
      %c0_31 = arith.constant 0 : index
      %58 = vector.load %arg11[%c0_30, %c0_31] : memref<16x64xbf16, #tpu.memory_space<vmem>>, vector<16x64xbf16>
      tpu.vector_store %arg11[%c0_30, %c0_31], %57 {strides = array<i32>} : memref<16x64xbf16, #tpu.memory_space<vmem>>, vector<16x64xbf16>,
      %cst_32 = arith.constant 0.000000e+00 : f32
      %59 = vector.broadcast %cst_32 : f32 to vector<16x64xf32>
      %c0_33 = arith.constant 0 : index
      %c0_34 = arith.constant 0 : index
      %60 = vector.load %arg10[%c0_33, %c0_34] : memref<16x64xf32, #tpu.memory_space<vmem>>, vector<16x64xf32>
      tpu.vector_store %arg10[%c0_33, %c0_34], %59 {strides = array<i32>} : memref<16x64xf32, #tpu.memory_space<vmem>>, vector<16x64xf32>,
    } else {
    }
    %c0 = arith.constant 0 : index
    %c0_1 = arith.constant 0 : index
    %3 = vector.load %arg11[%c0, %c0_1] : memref<16x64xbf16, #tpu.memory_space<vmem>>, vector<16x64xbf16>
    %c0_2 = arith.constant 0 : index
    %c0_3 = arith.constant 0 : index
    %4 = vector.load %arg5[%c0_2, %c0_3] : memref<64x256xbf16, #tpu.memory_space<vmem>>, vector<64x256xbf16>
    %cst = arith.constant dense<0.000000e+00> : vector<16x256xf32>
    %5 = tpu.matmul %3, %4, %cst {dimension_numbers = #tpu.dot_dimension_numbers<[1], [0], [0], [1], [0, 0, 1, 1], [], []>} : vector<16x64xbf16>, vector<64x256xbf16>, vector<16x256xf32> -> vector<16x256xf32>
    %c0_4 = arith.constant 0 : index
    %c0_5 = arith.constant 0 : index
    %6 = vector.load %arg6[%c0_4, %c0_5] : memref<1x256xf32, #tpu.memory_space<vmem>>, vector<1x256xf32>
    %7 = vector.broadcast %6 : vector<1x256xf32> to vector<16x256xf32>
    %8 = arith.addf %5, %7 : vector<16x256xf32>
    %9 = arith.mulf %8, %8 : vector<16x256xf32>
    %10 = arith.mulf %8, %9 : vector<16x256xf32>
    %cst_6 = arith.constant 4.471500e-02 : f32
    %11 = vector.broadcast %cst_6 : f32 to vector<16x256xf32>
    %12 = arith.mulf %11, %10 : vector<16x256xf32>
    %13 = arith.addf %8, %12 : vector<16x256xf32>
    %cst_7 = arith.constant 0.797884583 : f32
    %14 = vector.broadcast %cst_7 : f32 to vector<16x256xf32>
    %15 = arith.mulf %14, %13 : vector<16x256xf32>
    %16 = math.tanh %15 : vector<16x256xf32>
    %cst_8 = arith.constant 1.000000e+00 : f32
    %17 = vector.broadcast %cst_8 : f32 to vector<16x256xf32>
    %18 = arith.addf %17, %16 : vector<16x256xf32>
    %cst_9 = arith.constant 5.000000e-01 : f32
    %19 = vector.broadcast %cst_9 : f32 to vector<16x256xf32>
    %20 = arith.mulf %19, %18 : vector<16x256xf32>
    %21 = arith.mulf %8, %20 : vector<16x256xf32>
    %c0_10 = arith.constant 0 : index
    %c0_11 = arith.constant 0 : index
    %22 = vector.load %arg10[%c0_10, %c0_11] : memref<16x64xf32, #tpu.memory_space<vmem>>, vector<16x64xf32>
    %23 = arith.truncf %21 : vector<16x256xf32> to vector<16x256xbf16>
    %c0_12 = arith.constant 0 : index
    %c0_13 = arith.constant 0 : index
    %24 = vector.load %arg7[%c0_12, %c0_13] : memref<256x64xbf16, #tpu.memory_space<vmem>>, vector<256x64xbf16>
    %cst_14 = arith.constant dense<0.000000e+00> : vector<16x64xf32>
    %25 = tpu.matmul %23, %24, %cst_14 {dimension_numbers = #tpu.dot_dimension_numbers<[1], [0], [0], [1], [0, 0, 1, 1], [], []>} : vector<16x256xbf16>, vector<256x64xbf16>, vector<16x64xf32> -> vector<16x64xf32>
    %26 = arith.addf %22, %25 : vector<16x64xf32>
    %c0_15 = arith.constant 0 : index
    %c0_16 = arith.constant 0 : index
    %27 = vector.load %arg10[%c0_15, %c0_16] : memref<16x64xf32, #tpu.memory_space<vmem>>, vector<16x64xf32>
    tpu.vector_store %arg10[%c0_15, %c0_16], %26 {strides = array<i32>} : memref<16x64xf32, #tpu.memory_space<vmem>>, vector<16x64xf32>,
    %c0_i32_17 = arith.constant 0 : i32
    %28 = arith.cmpi eq, %arg1, %c0_i32_17 : i32
    %29 = arith.extui %28 : i1 to i32
    %c0_i32_18 = arith.constant 0 : i32
    %30 = arith.cmpi ne, %29, %c0_i32_18 : i32
    scf.if %30 {
      %c0_19 = arith.constant 0 : index
      %c0_20 = arith.constant 0 : index
      %31 = vector.load %arg2[%c0_19, %c0_20] : memref<16x64xbf16, #tpu.memory_space<vmem>>, vector<16x64xbf16>
      %32 = arith.extf %31 : vector<16x64xbf16> to vector<16x64xf32>
      %c0_21 = arith.constant 0 : index
      %c0_22 = arith.constant 0 : index
      %33 = vector.load %arg10[%c0_21, %c0_22] : memref<16x64xf32, #tpu.memory_space<vmem>>, vector<16x64xf32>
      %34 = arith.addf %32, %33 : vector<16x64xf32>
      %c0_23 = arith.constant 0 : index
      %c0_24 = arith.constant 0 : index
      %35 = vector.load %arg8[%c0_23, %c0_24] : memref<1x64xf32, #tpu.memory_space<vmem>>, vector<1x64xf32>
      %36 = vector.broadcast %35 : vector<1x64xf32> to vector<16x64xf32>
      %37 = arith.addf %34, %36 : vector<16x64xf32>
      %38 = arith.truncf %37 : vector<16x64xf32> to vector<16x64xbf16>
      %c0_25 = arith.constant 0 : index
      %c0_26 = arith.constant 0 : index
      %39 = vector.load %arg9[%c0_25, %c0_26] : memref<16x64xbf16, #tpu.memory_space<vmem>>, vector<16x64xbf16>
      tpu.vector_store %arg9[%c0_25, %c0_26], %38 {strides = array<i32>} : memref<16x64xbf16, #tpu.memory_space<vmem>>, vector<16x64xbf16>,
    } else {
    }
    return
  }
  func.func @transform_0(%arg0: i32, %arg1: i32) -> (i32, i32) {
    %c0_i32 = arith.constant 0 : i32
    %c0_i32_0 = arith.constant 0 : i32
    return %arg0, %c0_i32 : i32, i32
  }
  func.func @transform_1(%arg0: i32, %arg1: i32) -> (i32, i32) {
    %c0_i32 = arith.constant 0 : i32
    %c0_i32_0 = arith.constant 0 : i32
    %c0_i32_1 = arith.constant 0 : i32
    return %c0_i32, %c0_i32_0 : i32, i32
  }
  func.func @transform_2(%arg0: i32, %arg1: i32) -> (i32, i32) {
    %c0_i32 = arith.constant 0 : i32
    %c0_i32_0 = arith.constant 0 : i32
    %c0_i32_1 = arith.constant 0 : i32
    return %c0_i32, %c0_i32_0 : i32, i32
  }
  func.func @transform_3(%arg0: i32, %arg1: i32) -> (i32, i32) {
    %c0_i32 = arith.constant 0 : i32
    %c0_i32_0 = arith.constant 0 : i32
    return %c0_i32, %arg1 : i32, i32
  }
  func.func @transform_4(%arg0: i32, %arg1: i32) -> (i32, i32) {
    %c0_i32 = arith.constant 0 : i32
    %c0_i32_0 = arith.constant 0 : i32
    return %c0_i32, %arg1 : i32, i32
  }
  func.func @transform_5(%arg0: i32, %arg1: i32) -> (i32, i32) {
    %c0_i32 = arith.constant 0 : i32
    %c0_i32_0 = arith.constant 0 : i32
    return %arg1, %c0_i32 : i32, i32
  }
  func.func @transform_6(%arg0: i32, %arg1: i32) -> (i32, i32) {
    %c0_i32 = arith.constant 0 : i32
    %c0_i32_0 = arith.constant 0 : i32
    %c0_i32_1 = arith.constant 0 : i32
    return %c0_i32, %c0_i32_0 : i32, i32
  }
  func.func @transform_7(%arg0: i32, %arg1: i32) -> (i32, i32) {
    %c0_i32 = arith.constant 0 : i32
    %c0_i32_0 = arith.constant 0 : i32
    return %arg0, %c0_i32 : i32, i32
  }
}

module attributes {stable_mosaic.version = 11 : i64} {
  func.func @_fused_attn_kernel(%arg0: i32, %arg1: memref<1x16x64xbf16, #tpu.memory_space<vmem>>, %arg2: memref<1x64xf32, #tpu.memory_space<vmem>>, %arg3: memref<1x64xf32, #tpu.memory_space<vmem>>, %arg4: memref<64x192xbf16, #tpu.memory_space<vmem>>, %arg5: memref<1x192xf32, #tpu.memory_space<vmem>>, %arg6: memref<4x16x16xf32, #tpu.memory_space<vmem>>, %arg7: memref<64x64xbf16, #tpu.memory_space<vmem>>, %arg8: memref<1x64xf32, #tpu.memory_space<vmem>>, %arg9: memref<1x16x64xbf16, #tpu.memory_space<vmem>>) attributes {dimension_semantics = [#tpu.dimension_semantics<parallel>], iteration_bounds = array<i64: 2>, scalar_prefetch = 0 : i64, scratch_operands = 0 : i64, tpu.core_type = #tpu.core_type<tc>, window_params = [{transform_indices = @transform_0, window_bounds = array<i64: 1, 16, 64>}, {pipeline_mode = #tpu.pipeline_mode<synchronous>, transform_indices = @transform_1, window_bounds = array<i64: 1, 64>}, {pipeline_mode = #tpu.pipeline_mode<synchronous>, transform_indices = @transform_2, window_bounds = array<i64: 1, 64>}, {pipeline_mode = #tpu.pipeline_mode<synchronous>, transform_indices = @transform_3, window_bounds = array<i64: 64, 192>}, {pipeline_mode = #tpu.pipeline_mode<synchronous>, transform_indices = @transform_4, window_bounds = array<i64: 1, 192>}, {pipeline_mode = #tpu.pipeline_mode<synchronous>, transform_indices = @transform_5, window_bounds = array<i64: 4, 16, 16>}, {pipeline_mode = #tpu.pipeline_mode<synchronous>, transform_indices = @transform_6, window_bounds = array<i64: 64, 64>}, {pipeline_mode = #tpu.pipeline_mode<synchronous>, transform_indices = @transform_7, window_bounds = array<i64: 1, 64>}, {transform_indices = @transform_8, window_bounds = array<i64: 1, 16, 64>}]} {
    %c0 = arith.constant 0 : index
    %c0_0 = arith.constant 0 : index
    %c0_1 = arith.constant 0 : index
    %0 = vector.load %arg1[%c0, %c0_0, %c0_1] : memref<1x16x64xbf16, #tpu.memory_space<vmem>>, vector<1x16x64xbf16>
    %1 = arith.extf %0 : vector<1x16x64xbf16> to vector<1x16x64xf32>
    %c0_2 = arith.constant 0 : index
    %c0_3 = arith.constant 0 : index
    %2 = vector.load %arg2[%c0_2, %c0_3] : memref<1x64xf32, #tpu.memory_space<vmem>>, vector<1x64xf32>
    %c0_4 = arith.constant 0 : index
    %c0_5 = arith.constant 0 : index
    %3 = vector.load %arg3[%c0_4, %c0_5] : memref<1x64xf32, #tpu.memory_space<vmem>>, vector<1x64xf32>
    %cst = arith.constant dense<0.000000e+00> : vector<1x16xf32>
    %4 = vector.multi_reduction <add>, %1, %cst [2] : vector<1x16x64xf32> to vector<1x16xf32>
    %5 = vector.shape_cast %4 : vector<1x16xf32> to vector<1x16x1xf32>
    %cst_6 = arith.constant 6.400000e+01 : f32
    %6 = vector.broadcast %cst_6 : f32 to vector<1x16x1xf32>
    %7 = arith.divf %5, %6 : vector<1x16x1xf32>
    %8 = vector.broadcast %7 : vector<1x16x1xf32> to vector<1x16x64xf32>
    %9 = arith.subf %1, %8 : vector<1x16x64xf32>
    %10 = arith.mulf %9, %9 : vector<1x16x64xf32>
    %cst_7 = arith.constant dense<0.000000e+00> : vector<1x16xf32>
    %11 = vector.multi_reduction <add>, %10, %cst_7 [2] : vector<1x16x64xf32> to vector<1x16xf32>
    %12 = vector.shape_cast %11 : vector<1x16xf32> to vector<1x16x1xf32>
    %cst_8 = arith.constant 6.400000e+01 : f32
    %13 = vector.broadcast %cst_8 : f32 to vector<1x16x1xf32>
    %14 = arith.divf %12, %13 : vector<1x16x1xf32>
    %15 = vector.broadcast %7 : vector<1x16x1xf32> to vector<1x16x64xf32>
    %16 = arith.subf %1, %15 : vector<1x16x64xf32>
    %cst_9 = arith.constant 9.99999974E-6 : f32
    %17 = vector.broadcast %cst_9 : f32 to vector<1x16x1xf32>
    %18 = arith.addf %14, %17 : vector<1x16x1xf32>
    %19 = math.rsqrt %18 : vector<1x16x1xf32>
    %20 = vector.broadcast %19 : vector<1x16x1xf32> to vector<1x16x64xf32>
    %21 = arith.mulf %16, %20 : vector<1x16x64xf32>
    %22 = vector.shape_cast %2 : vector<1x64xf32> to vector<1x1x64xf32>
    %23 = vector.broadcast %22 : vector<1x1x64xf32> to vector<1x16x64xf32>
    %24 = arith.mulf %21, %23 : vector<1x16x64xf32>
    %25 = vector.shape_cast %3 : vector<1x64xf32> to vector<1x1x64xf32>
    %26 = vector.broadcast %25 : vector<1x1x64xf32> to vector<1x16x64xf32>
    %27 = arith.addf %24, %26 : vector<1x16x64xf32>
    %28 = vector.shape_cast %27 : vector<1x16x64xf32> to vector<16x64xf32>
    %29 = arith.truncf %28 : vector<16x64xf32> to vector<16x64xbf16>
    %c0_10 = arith.constant 0 : index
    %c0_11 = arith.constant 0 : index
    %30 = vector.load %arg4[%c0_10, %c0_11] : memref<64x192xbf16, #tpu.memory_space<vmem>>, vector<64x192xbf16>
    %cst_12 = arith.constant dense<0.000000e+00> : vector<16x192xf32>
    %31 = tpu.matmul %29, %30, %cst_12 {dimension_numbers = #tpu.dot_dimension_numbers<[1], [0], [0], [1], [0, 0, 1, 1], [], []>} : vector<16x64xbf16>, vector<64x192xbf16>, vector<16x192xf32> -> vector<16x192xf32>
    %c0_13 = arith.constant 0 : index
    %c0_14 = arith.constant 0 : index
    %32 = vector.load %arg5[%c0_13, %c0_14] : memref<1x192xf32, #tpu.memory_space<vmem>>, vector<1x192xf32>
    %33 = vector.broadcast %32 : vector<1x192xf32> to vector<16x192xf32>
    %34 = arith.addf %31, %33 : vector<16x192xf32>
    %35 = arith.truncf %34 : vector<16x192xf32> to vector<16x192xbf16>
    %36 = vector.shape_cast %35 : vector<16x192xbf16> to vector<1x16x192xbf16>
    %37 = vector.extract_strided_slice %36 {offsets = [0, 0, 0], sizes = [1, 16, 16], strides = [1, 1, 1]} : vector<1x16x192xbf16> to vector<1x16x16xbf16>
    %38 = vector.extract_strided_slice %36 {offsets = [0, 0, 64], sizes = [1, 16, 16], strides = [1, 1, 1]} : vector<1x16x192xbf16> to vector<1x16x16xbf16>
    %39 = vector.extract_strided_slice %36 {offsets = [0, 0, 128], sizes = [1, 16, 16], strides = [1, 1, 1]} : vector<1x16x192xbf16> to vector<1x16x16xbf16>
    "tpu.trace_start"() <{level = 10 : i32, message = "gnd,gmd->gnm"}> : () -> ()
    %cst_15 = arith.constant dense<0.000000e+00> : vector<1x16x16xf32>
    %40 = tpu.matmul %37, %38, %cst_15 {dimension_numbers = #tpu.dot_dimension_numbers<[2], [2], [1], [1], [0, 0, 0, 1, 1, 1], [0], [0]>} : vector<1x16x16xbf16>, vector<1x16x16xbf16>, vector<1x16x16xf32> -> vector<1x16x16xf32>
    "tpu.trace_stop"() : () -> ()
    %cst_16 = arith.constant 2.500000e-01 : f32
    %41 = vector.broadcast %cst_16 : f32 to vector<1x16x16xf32>
    %42 = arith.mulf %40, %41 : vector<1x16x16xf32>
    %c0_17 = arith.constant 0 : index
    %c0_18 = arith.constant 0 : index
    %c0_19 = arith.constant 0 : index
    %43 = vector.load %arg6[%c0_17, %c0_18, %c0_19] : memref<4x16x16xf32, #tpu.memory_space<vmem>>, vector<1x16x16xf32>
    %44 = vector.shape_cast %43 : vector<1x16x16xf32> to vector<16x16xf32>
    %45 = vector.shape_cast %44 : vector<16x16xf32> to vector<1x16x16xf32>
    %46 = arith.addf %42, %45 : vector<1x16x16xf32>
    %cst_20 = arith.constant dense<0xFF800000> : vector<1x16xf32>
    %47 = vector.multi_reduction <maximumf>, %46, %cst_20 [2] : vector<1x16x16xf32> to vector<1x16xf32>
    %48 = vector.shape_cast %47 : vector<1x16xf32> to vector<1x16x1xf32>
    %49 = vector.broadcast %48 : vector<1x16x1xf32> to vector<1x16x16xf32>
    %50 = arith.subf %46, %49 : vector<1x16x16xf32>
    %51 = math.exp %50 : vector<1x16x16xf32>
    %cst_21 = arith.constant dense<0.000000e+00> : vector<1x16xf32>
    %52 = vector.multi_reduction <add>, %51, %cst_21 [2] : vector<1x16x16xf32> to vector<1x16xf32>
    %53 = vector.shape_cast %52 : vector<1x16xf32> to vector<1x16x1xf32>
    %54 = tpu.reciprocal %53 {approx = true} : vector<1x16x1xf32> -> vector<1x16x1xf32>
    %55 = vector.broadcast %54 : vector<1x16x1xf32> to vector<1x16x16xf32>
    %56 = arith.mulf %51, %55 : vector<1x16x16xf32>
    %57 = arith.truncf %56 : vector<1x16x16xf32> to vector<1x16x16xbf16>
    "tpu.trace_start"() <{level = 10 : i32, message = "gnm,gmd->gnd"}> : () -> ()
    %cst_22 = arith.constant dense<0.000000e+00> : vector<1x16x16xf32>
    %58 = tpu.matmul %57, %39, %cst_22 {dimension_numbers = #tpu.dot_dimension_numbers<[2], [1], [1], [2], [0, 0, 0, 1, 1, 2], [0], [0]>} : vector<1x16x16xbf16>, vector<1x16x16xbf16>, vector<1x16x16xf32> -> vector<1x16x16xf32>
    "tpu.trace_stop"() : () -> ()
    %59 = arith.truncf %58 : vector<1x16x16xf32> to vector<1x16x16xbf16>
    %60 = vector.extract_strided_slice %36 {offsets = [0, 0, 16], sizes = [1, 16, 16], strides = [1, 1, 1]} : vector<1x16x192xbf16> to vector<1x16x16xbf16>
    %61 = vector.extract_strided_slice %36 {offsets = [0, 0, 80], sizes = [1, 16, 16], strides = [1, 1, 1]} : vector<1x16x192xbf16> to vector<1x16x16xbf16>
    %62 = vector.extract_strided_slice %36 {offsets = [0, 0, 144], sizes = [1, 16, 16], strides = [1, 1, 1]} : vector<1x16x192xbf16> to vector<1x16x16xbf16>
    "tpu.trace_start"() <{level = 10 : i32, message = "gnd,gmd->gnm"}> : () -> ()
    %cst_23 = arith.constant dense<0.000000e+00> : vector<1x16x16xf32>
    %63 = tpu.matmul %60, %61, %cst_23 {dimension_numbers = #tpu.dot_dimension_numbers<[2], [2], [1], [1], [0, 0, 0, 1, 1, 1], [0], [0]>} : vector<1x16x16xbf16>, vector<1x16x16xbf16>, vector<1x16x16xf32> -> vector<1x16x16xf32>
    "tpu.trace_stop"() : () -> ()
    %cst_24 = arith.constant 2.500000e-01 : f32
    %64 = vector.broadcast %cst_24 : f32 to vector<1x16x16xf32>
    %65 = arith.mulf %63, %64 : vector<1x16x16xf32>
    %c1 = arith.constant 1 : index
    %c0_25 = arith.constant 0 : index
    %c0_26 = arith.constant 0 : index
    %66 = vector.load %arg6[%c1, %c0_25, %c0_26] : memref<4x16x16xf32, #tpu.memory_space<vmem>>, vector<1x16x16xf32>
    %67 = vector.shape_cast %66 : vector<1x16x16xf32> to vector<16x16xf32>
    %68 = vector.shape_cast %67 : vector<16x16xf32> to vector<1x16x16xf32>
    %69 = arith.addf %65, %68 : vector<1x16x16xf32>
    %cst_27 = arith.constant dense<0xFF800000> : vector<1x16xf32>
    %70 = vector.multi_reduction <maximumf>, %69, %cst_27 [2] : vector<1x16x16xf32> to vector<1x16xf32>
    %71 = vector.shape_cast %70 : vector<1x16xf32> to vector<1x16x1xf32>
    %72 = vector.broadcast %71 : vector<1x16x1xf32> to vector<1x16x16xf32>
    %73 = arith.subf %69, %72 : vector<1x16x16xf32>
    %74 = math.exp %73 : vector<1x16x16xf32>
    %cst_28 = arith.constant dense<0.000000e+00> : vector<1x16xf32>
    %75 = vector.multi_reduction <add>, %74, %cst_28 [2] : vector<1x16x16xf32> to vector<1x16xf32>
    %76 = vector.shape_cast %75 : vector<1x16xf32> to vector<1x16x1xf32>
    %77 = tpu.reciprocal %76 {approx = true} : vector<1x16x1xf32> -> vector<1x16x1xf32>
    %78 = vector.broadcast %77 : vector<1x16x1xf32> to vector<1x16x16xf32>
    %79 = arith.mulf %74, %78 : vector<1x16x16xf32>
    %80 = arith.truncf %79 : vector<1x16x16xf32> to vector<1x16x16xbf16>
    "tpu.trace_start"() <{level = 10 : i32, message = "gnm,gmd->gnd"}> : () -> ()
    %cst_29 = arith.constant dense<0.000000e+00> : vector<1x16x16xf32>
    %81 = tpu.matmul %80, %62, %cst_29 {dimension_numbers = #tpu.dot_dimension_numbers<[2], [1], [1], [2], [0, 0, 0, 1, 1, 2], [0], [0]>} : vector<1x16x16xbf16>, vector<1x16x16xbf16>, vector<1x16x16xf32> -> vector<1x16x16xf32>
    "tpu.trace_stop"() : () -> ()
    %82 = arith.truncf %81 : vector<1x16x16xf32> to vector<1x16x16xbf16>
    %83 = vector.extract_strided_slice %36 {offsets = [0, 0, 32], sizes = [1, 16, 16], strides = [1, 1, 1]} : vector<1x16x192xbf16> to vector<1x16x16xbf16>
    %84 = vector.extract_strided_slice %36 {offsets = [0, 0, 96], sizes = [1, 16, 16], strides = [1, 1, 1]} : vector<1x16x192xbf16> to vector<1x16x16xbf16>
    %85 = vector.extract_strided_slice %36 {offsets = [0, 0, 160], sizes = [1, 16, 16], strides = [1, 1, 1]} : vector<1x16x192xbf16> to vector<1x16x16xbf16>
    "tpu.trace_start"() <{level = 10 : i32, message = "gnd,gmd->gnm"}> : () -> ()
    %cst_30 = arith.constant dense<0.000000e+00> : vector<1x16x16xf32>
    %86 = tpu.matmul %83, %84, %cst_30 {dimension_numbers = #tpu.dot_dimension_numbers<[2], [2], [1], [1], [0, 0, 0, 1, 1, 1], [0], [0]>} : vector<1x16x16xbf16>, vector<1x16x16xbf16>, vector<1x16x16xf32> -> vector<1x16x16xf32>
    "tpu.trace_stop"() : () -> ()
    %cst_31 = arith.constant 2.500000e-01 : f32
    %87 = vector.broadcast %cst_31 : f32 to vector<1x16x16xf32>
    %88 = arith.mulf %86, %87 : vector<1x16x16xf32>
    %c2 = arith.constant 2 : index
    %c0_32 = arith.constant 0 : index
    %c0_33 = arith.constant 0 : index
    %89 = vector.load %arg6[%c2, %c0_32, %c0_33] : memref<4x16x16xf32, #tpu.memory_space<vmem>>, vector<1x16x16xf32>
    %90 = vector.shape_cast %89 : vector<1x16x16xf32> to vector<16x16xf32>
    %91 = vector.shape_cast %90 : vector<16x16xf32> to vector<1x16x16xf32>
    %92 = arith.addf %88, %91 : vector<1x16x16xf32>
    %cst_34 = arith.constant dense<0xFF800000> : vector<1x16xf32>
    %93 = vector.multi_reduction <maximumf>, %92, %cst_34 [2] : vector<1x16x16xf32> to vector<1x16xf32>
    %94 = vector.shape_cast %93 : vector<1x16xf32> to vector<1x16x1xf32>
    %95 = vector.broadcast %94 : vector<1x16x1xf32> to vector<1x16x16xf32>
    %96 = arith.subf %92, %95 : vector<1x16x16xf32>
    %97 = math.exp %96 : vector<1x16x16xf32>
    %cst_35 = arith.constant dense<0.000000e+00> : vector<1x16xf32>
    %98 = vector.multi_reduction <add>, %97, %cst_35 [2] : vector<1x16x16xf32> to vector<1x16xf32>
    %99 = vector.shape_cast %98 : vector<1x16xf32> to vector<1x16x1xf32>
    %100 = tpu.reciprocal %99 {approx = true} : vector<1x16x1xf32> -> vector<1x16x1xf32>
    %101 = vector.broadcast %100 : vector<1x16x1xf32> to vector<1x16x16xf32>
    %102 = arith.mulf %97, %101 : vector<1x16x16xf32>
    %103 = arith.truncf %102 : vector<1x16x16xf32> to vector<1x16x16xbf16>
    "tpu.trace_start"() <{level = 10 : i32, message = "gnm,gmd->gnd"}> : () -> ()
    %cst_36 = arith.constant dense<0.000000e+00> : vector<1x16x16xf32>
    %104 = tpu.matmul %103, %85, %cst_36 {dimension_numbers = #tpu.dot_dimension_numbers<[2], [1], [1], [2], [0, 0, 0, 1, 1, 2], [0], [0]>} : vector<1x16x16xbf16>, vector<1x16x16xbf16>, vector<1x16x16xf32> -> vector<1x16x16xf32>
    "tpu.trace_stop"() : () -> ()
    %105 = arith.truncf %104 : vector<1x16x16xf32> to vector<1x16x16xbf16>
    %106 = vector.extract_strided_slice %36 {offsets = [0, 0, 48], sizes = [1, 16, 16], strides = [1, 1, 1]} : vector<1x16x192xbf16> to vector<1x16x16xbf16>
    %107 = vector.extract_strided_slice %36 {offsets = [0, 0, 112], sizes = [1, 16, 16], strides = [1, 1, 1]} : vector<1x16x192xbf16> to vector<1x16x16xbf16>
    %108 = vector.extract_strided_slice %36 {offsets = [0, 0, 176], sizes = [1, 16, 16], strides = [1, 1, 1]} : vector<1x16x192xbf16> to vector<1x16x16xbf16>
    "tpu.trace_start"() <{level = 10 : i32, message = "gnd,gmd->gnm"}> : () -> ()
    %cst_37 = arith.constant dense<0.000000e+00> : vector<1x16x16xf32>
    %109 = tpu.matmul %106, %107, %cst_37 {dimension_numbers = #tpu.dot_dimension_numbers<[2], [2], [1], [1], [0, 0, 0, 1, 1, 1], [0], [0]>} : vector<1x16x16xbf16>, vector<1x16x16xbf16>, vector<1x16x16xf32> -> vector<1x16x16xf32>
    "tpu.trace_stop"() : () -> ()
    %cst_38 = arith.constant 2.500000e-01 : f32
    %110 = vector.broadcast %cst_38 : f32 to vector<1x16x16xf32>
    %111 = arith.mulf %109, %110 : vector<1x16x16xf32>
    %c3 = arith.constant 3 : index
    %c0_39 = arith.constant 0 : index
    %c0_40 = arith.constant 0 : index
    %112 = vector.load %arg6[%c3, %c0_39, %c0_40] : memref<4x16x16xf32, #tpu.memory_space<vmem>>, vector<1x16x16xf32>
    %113 = vector.shape_cast %112 : vector<1x16x16xf32> to vector<16x16xf32>
    %114 = vector.shape_cast %113 : vector<16x16xf32> to vector<1x16x16xf32>
    %115 = arith.addf %111, %114 : vector<1x16x16xf32>
    %cst_41 = arith.constant dense<0xFF800000> : vector<1x16xf32>
    %116 = vector.multi_reduction <maximumf>, %115, %cst_41 [2] : vector<1x16x16xf32> to vector<1x16xf32>
    %117 = vector.shape_cast %116 : vector<1x16xf32> to vector<1x16x1xf32>
    %118 = vector.broadcast %117 : vector<1x16x1xf32> to vector<1x16x16xf32>
    %119 = arith.subf %115, %118 : vector<1x16x16xf32>
    %120 = math.exp %119 : vector<1x16x16xf32>
    %cst_42 = arith.constant dense<0.000000e+00> : vector<1x16xf32>
    %121 = vector.multi_reduction <add>, %120, %cst_42 [2] : vector<1x16x16xf32> to vector<1x16xf32>
    %122 = vector.shape_cast %121 : vector<1x16xf32> to vector<1x16x1xf32>
    %123 = tpu.reciprocal %122 {approx = true} : vector<1x16x1xf32> -> vector<1x16x1xf32>
    %124 = vector.broadcast %123 : vector<1x16x1xf32> to vector<1x16x16xf32>
    %125 = arith.mulf %120, %124 : vector<1x16x16xf32>
    %126 = arith.truncf %125 : vector<1x16x16xf32> to vector<1x16x16xbf16>
    "tpu.trace_start"() <{level = 10 : i32, message = "gnm,gmd->gnd"}> : () -> ()
    %cst_43 = arith.constant dense<0.000000e+00> : vector<1x16x16xf32>
    %127 = tpu.matmul %126, %108, %cst_43 {dimension_numbers = #tpu.dot_dimension_numbers<[2], [1], [1], [2], [0, 0, 0, 1, 1, 2], [0], [0]>} : vector<1x16x16xbf16>, vector<1x16x16xbf16>, vector<1x16x16xf32> -> vector<1x16x16xf32>
    "tpu.trace_stop"() : () -> ()
    %128 = arith.truncf %127 : vector<1x16x16xf32> to vector<1x16x16xbf16>
    %129 = tpu.concatenate %59, %82, %105, %128 in 2 : vector<1x16x16xbf16>, vector<1x16x16xbf16>, vector<1x16x16xbf16>, vector<1x16x16xbf16> -> vector<1x16x64xbf16>
    %130 = vector.shape_cast %129 : vector<1x16x64xbf16> to vector<16x64xbf16>
    %c0_44 = arith.constant 0 : index
    %c0_45 = arith.constant 0 : index
    %131 = vector.load %arg7[%c0_44, %c0_45] : memref<64x64xbf16, #tpu.memory_space<vmem>>, vector<64x64xbf16>
    %cst_46 = arith.constant dense<0.000000e+00> : vector<16x64xf32>
    %132 = tpu.matmul %130, %131, %cst_46 {dimension_numbers = #tpu.dot_dimension_numbers<[1], [0], [0], [1], [0, 0, 1, 1], [], []>} : vector<16x64xbf16>, vector<64x64xbf16>, vector<16x64xf32> -> vector<16x64xf32>
    %c0_47 = arith.constant 0 : index
    %c0_48 = arith.constant 0 : index
    %133 = vector.load %arg8[%c0_47, %c0_48] : memref<1x64xf32, #tpu.memory_space<vmem>>, vector<1x64xf32>
    %134 = vector.broadcast %133 : vector<1x64xf32> to vector<16x64xf32>
    %135 = arith.addf %132, %134 : vector<16x64xf32>
    %136 = vector.shape_cast %135 : vector<16x64xf32> to vector<1x16x64xf32>
    %137 = arith.addf %136, %1 : vector<1x16x64xf32>
    %138 = arith.truncf %137 : vector<1x16x64xf32> to vector<1x16x64xbf16>
    %c0_49 = arith.constant 0 : index
    %c0_50 = arith.constant 0 : index
    %c0_51 = arith.constant 0 : index
    %139 = vector.load %arg9[%c0_49, %c0_50, %c0_51] : memref<1x16x64xbf16, #tpu.memory_space<vmem>>, vector<1x16x64xbf16>
    tpu.vector_store %arg9[%c0_49, %c0_50, %c0_51], %138 {strides = array<i32>} : memref<1x16x64xbf16, #tpu.memory_space<vmem>>, vector<1x16x64xbf16>,
    return
  }
  func.func @transform_0(%arg0: i32) -> (i32, i32, i32) {
    %c0_i32 = arith.constant 0 : i32
    %c0_i32_0 = arith.constant 0 : i32
    %c0_i32_1 = arith.constant 0 : i32
    return %arg0, %c0_i32, %c0_i32_0 : i32, i32, i32
  }
  func.func @transform_1(%arg0: i32) -> (i32, i32) {
    %c0_i32 = arith.constant 0 : i32
    %c0_i32_0 = arith.constant 0 : i32
    %c0_i32_1 = arith.constant 0 : i32
    return %c0_i32, %c0_i32_0 : i32, i32
  }
  func.func @transform_2(%arg0: i32) -> (i32, i32) {
    %c0_i32 = arith.constant 0 : i32
    %c0_i32_0 = arith.constant 0 : i32
    %c0_i32_1 = arith.constant 0 : i32
    return %c0_i32, %c0_i32_0 : i32, i32
  }
  func.func @transform_3(%arg0: i32) -> (i32, i32) {
    %c0_i32 = arith.constant 0 : i32
    %c0_i32_0 = arith.constant 0 : i32
    %c0_i32_1 = arith.constant 0 : i32
    return %c0_i32, %c0_i32_0 : i32, i32
  }
  func.func @transform_4(%arg0: i32) -> (i32, i32) {
    %c0_i32 = arith.constant 0 : i32
    %c0_i32_0 = arith.constant 0 : i32
    %c0_i32_1 = arith.constant 0 : i32
    return %c0_i32, %c0_i32_0 : i32, i32
  }
  func.func @transform_5(%arg0: i32) -> (i32, i32, i32) {
    %c0_i32 = arith.constant 0 : i32
    %c0_i32_0 = arith.constant 0 : i32
    %c0_i32_1 = arith.constant 0 : i32
    %c0_i32_2 = arith.constant 0 : i32
    return %c0_i32, %c0_i32_0, %c0_i32_1 : i32, i32, i32
  }
  func.func @transform_6(%arg0: i32) -> (i32, i32) {
    %c0_i32 = arith.constant 0 : i32
    %c0_i32_0 = arith.constant 0 : i32
    %c0_i32_1 = arith.constant 0 : i32
    return %c0_i32, %c0_i32_0 : i32, i32
  }
  func.func @transform_7(%arg0: i32) -> (i32, i32) {
    %c0_i32 = arith.constant 0 : i32
    %c0_i32_0 = arith.constant 0 : i32
    %c0_i32_1 = arith.constant 0 : i32
    return %c0_i32, %c0_i32_0 : i32, i32
  }
  func.func @transform_8(%arg0: i32) -> (i32, i32, i32) {
    %c0_i32 = arith.constant 0 : i32
    %c0_i32_0 = arith.constant 0 : i32
    %c0_i32_1 = arith.constant 0 : i32
    return %arg0, %c0_i32, %c0_i32_0 : i32, i32, i32
  }
}

module attributes {stable_mosaic.version = 11 : i64} {
  func.func @_pool_head_kernel(%arg0: i32, %arg1: memref<1x16x64xbf16, #tpu.memory_space<vmem>>, %arg2: memref<1x64xf32, #tpu.memory_space<vmem>>, %arg3: memref<1x64xf32, #tpu.memory_space<vmem>>, %arg4: memref<64x18xf32, #tpu.memory_space<vmem>>, %arg5: memref<1x18xf32, #tpu.memory_space<vmem>>, %arg6: memref<1x1x18xf32, #tpu.memory_space<vmem>>) attributes {dimension_semantics = [#tpu.dimension_semantics<parallel>], iteration_bounds = array<i64: 2>, scalar_prefetch = 0 : i64, scratch_operands = 0 : i64, tpu.core_type = #tpu.core_type<tc>, window_params = [{transform_indices = @transform_0, window_bounds = array<i64: 1, 16, 64>}, {pipeline_mode = #tpu.pipeline_mode<synchronous>, transform_indices = @transform_1, window_bounds = array<i64: 1, 64>}, {pipeline_mode = #tpu.pipeline_mode<synchronous>, transform_indices = @transform_2, window_bounds = array<i64: 1, 64>}, {pipeline_mode = #tpu.pipeline_mode<synchronous>, transform_indices = @transform_3, window_bounds = array<i64: 64, 18>}, {pipeline_mode = #tpu.pipeline_mode<synchronous>, transform_indices = @transform_4, window_bounds = array<i64: 1, 18>}, {transform_indices = @transform_5, window_bounds = array<i64: 1, 1, 18>}]} {
    %c0 = arith.constant 0 : index
    %c0_0 = arith.constant 0 : index
    %c0_1 = arith.constant 0 : index
    %0 = vector.load %arg1[%c0, %c0_0, %c0_1] : memref<1x16x64xbf16, #tpu.memory_space<vmem>>, vector<1x16x64xbf16>
    %1 = vector.shape_cast %0 : vector<1x16x64xbf16> to vector<16x64xbf16>
    %2 = arith.extf %1 : vector<16x64xbf16> to vector<16x64xf32>
    %c0_2 = arith.constant 0 : index
    %c0_3 = arith.constant 0 : index
    %3 = vector.load %arg2[%c0_2, %c0_3] : memref<1x64xf32, #tpu.memory_space<vmem>>, vector<1x64xf32>
    %c0_4 = arith.constant 0 : index
    %c0_5 = arith.constant 0 : index
    %4 = vector.load %arg3[%c0_4, %c0_5] : memref<1x64xf32, #tpu.memory_space<vmem>>, vector<1x64xf32>
    %cst = arith.constant dense<0.000000e+00> : vector<16xf32>
    %5 = vector.multi_reduction <add>, %2, %cst [1] : vector<16x64xf32> to vector<16xf32>
    %6 = vector.shape_cast %5 : vector<16xf32> to vector<16x1xf32>
    %cst_6 = arith.constant 6.400000e+01 : f32
    %7 = vector.broadcast %cst_6 : f32 to vector<16x1xf32>
    %8 = arith.divf %6, %7 : vector<16x1xf32>
    %9 = vector.broadcast %8 : vector<16x1xf32> to vector<16x64xf32>
    %10 = arith.subf %2, %9 : vector<16x64xf32>
    %11 = arith.mulf %10, %10 : vector<16x64xf32>
    %cst_7 = arith.constant dense<0.000000e+00> : vector<16xf32>
    %12 = vector.multi_reduction <add>, %11, %cst_7 [1] : vector<16x64xf32> to vector<16xf32>
    %13 = vector.shape_cast %12 : vector<16xf32> to vector<16x1xf32>
    %cst_8 = arith.constant 6.400000e+01 : f32
    %14 = vector.broadcast %cst_8 : f32 to vector<16x1xf32>
    %15 = arith.divf %13, %14 : vector<16x1xf32>
    %16 = vector.broadcast %8 : vector<16x1xf32> to vector<16x64xf32>
    %17 = arith.subf %2, %16 : vector<16x64xf32>
    %cst_9 = arith.constant 9.99999974E-6 : f32
    %18 = vector.broadcast %cst_9 : f32 to vector<16x1xf32>
    %19 = arith.addf %15, %18 : vector<16x1xf32>
    %20 = math.rsqrt %19 : vector<16x1xf32>
    %21 = vector.broadcast %20 : vector<16x1xf32> to vector<16x64xf32>
    %22 = arith.mulf %17, %21 : vector<16x64xf32>
    %23 = vector.broadcast %3 : vector<1x64xf32> to vector<16x64xf32>
    %24 = arith.mulf %22, %23 : vector<16x64xf32>
    %25 = vector.broadcast %4 : vector<1x64xf32> to vector<16x64xf32>
    %26 = arith.addf %24, %25 : vector<16x64xf32>
    %cst_10 = arith.constant dense<0.000000e+00> : vector<64xf32>
    %27 = vector.multi_reduction <add>, %26, %cst_10 [0] : vector<16x64xf32> to vector<64xf32>
    %28 = vector.shape_cast %27 : vector<64xf32> to vector<1x64xf32>
    %cst_11 = arith.constant 1.600000e+01 : f32
    %29 = vector.broadcast %cst_11 : f32 to vector<1x64xf32>
    %30 = arith.divf %28, %29 : vector<1x64xf32>
    %31 = arith.truncf %30 : vector<1x64xf32> to vector<1x64xbf16>
    %c0_12 = arith.constant 0 : index
    %c0_13 = arith.constant 0 : index
    %32 = vector.load %arg4[%c0_12, %c0_13] : memref<64x18xf32, #tpu.memory_space<vmem>>, vector<64x18xf32>
    %33 = arith.truncf %32 : vector<64x18xf32> to vector<64x18xbf16>
    %cst_14 = arith.constant dense<0.000000e+00> : vector<1x18xf32>
    %34 = tpu.matmul %31, %33, %cst_14 {dimension_numbers = #tpu.dot_dimension_numbers<[1], [0], [0], [1], [0, 0, 1, 1], [], []>} : vector<1x64xbf16>, vector<64x18xbf16>, vector<1x18xf32> -> vector<1x18xf32>
    %c0_15 = arith.constant 0 : index
    %c0_16 = arith.constant 0 : index
    %35 = vector.load %arg5[%c0_15, %c0_16] : memref<1x18xf32, #tpu.memory_space<vmem>>, vector<1x18xf32>
    %36 = arith.addf %34, %35 : vector<1x18xf32>
    %37 = vector.shape_cast %36 : vector<1x18xf32> to vector<1x1x18xf32>
    %c0_17 = arith.constant 0 : index
    %c0_18 = arith.constant 0 : index
    %c0_19 = arith.constant 0 : index
    %38 = vector.load %arg6[%c0_17, %c0_18, %c0_19] : memref<1x1x18xf32, #tpu.memory_space<vmem>>, vector<1x1x18xf32>
    tpu.vector_store %arg6[%c0_17, %c0_18, %c0_19], %37 {strides = array<i32>} : memref<1x1x18xf32, #tpu.memory_space<vmem>>, vector<1x1x18xf32>,
    return
  }
  func.func @transform_0(%arg0: i32) -> (i32, i32, i32) {
    %c0_i32 = arith.constant 0 : i32
    %c0_i32_0 = arith.constant 0 : i32
    %c0_i32_1 = arith.constant 0 : i32
    return %arg0, %c0_i32, %c0_i32_0 : i32, i32, i32
  }
  func.func @transform_1(%arg0: i32) -> (i32, i32) {
    %c0_i32 = arith.constant 0 : i32
    %c0_i32_0 = arith.constant 0 : i32
    %c0_i32_1 = arith.constant 0 : i32
    return %c0_i32, %c0_i32_0 : i32, i32
  }
  func.func @transform_2(%arg0: i32) -> (i32, i32) {
    %c0_i32 = arith.constant 0 : i32
    %c0_i32_0 = arith.constant 0 : i32
    %c0_i32_1 = arith.constant 0 : i32
    return %c0_i32, %c0_i32_0 : i32, i32
  }
  func.func @transform_3(%arg0: i32) -> (i32, i32) {
    %c0_i32 = arith.constant 0 : i32
    %c0_i32_0 = arith.constant 0 : i32
    %c0_i32_1 = arith.constant 0 : i32
    return %c0_i32, %c0_i32_0 : i32, i32
  }
  func.func @transform_4(%arg0: i32) -> (i32, i32) {
    %c0_i32 = arith.constant 0 : i32
    %c0_i32_0 = arith.constant 0 : i32
    %c0_i32_1 = arith.constant 0 : i32
    return %c0_i32, %c0_i32_0 : i32, i32
  }
  func.func @transform_5(%arg0: i32) -> (i32, i32, i32) {
    %c0_i32 = arith.constant 0 : i32
    %c0_i32_0 = arith.constant 0 : i32
    %c0_i32_1 = arith.constant 0 : i32
    return %arg0, %c0_i32, %c0_i32_0 : i32, i32, i32
  }
}

</mosaic_0001>

<bundles_post_ra>
// kernel: forward.11
= control target key start
LH: loop header
LB: loop body
LE: loop exit
PB: predicated region body
PF: predicated region fallthrough
CT: control target
= control target key end

     0   :  { %s998_s18 = smov 0   ;;  %s1000_s19 = smov 0   ;;  %s1147_s0 = inlined_call_operand.vmem [shape: f32[128,48], index: 0, kind: input, shape index: {}]   ;;  %s1148_s1 = inlined_call_operand.vmem [shape: bf16[48,32], index: 1, kind: input, shape index: {}]   ;;  %s1149_s2 = inlined_call_operand.vmem [shape: f32[1,32], index: 2, kind: input, shape index: {}]   ;;  %s1150_s3 = inlined_call_operand.vmem [shape: f32[1,32], index: 3, kind: input, shape index: {}]   ;;  %s1151_s4 = inlined_call_operand.vmem [shape: f32[1,32], index: 4, kind: input, shape index: {}]   ;;  %s1152_s5 = inlined_call_operand.vmem [shape: bf16[128,32], index: 5, kind: output, shape index: {}]  }
   0x1   :  { %s1002_s20 = smov 0  }
   0x2 LB: > { %s34_s21 = sadd.s32 1, %s961_s19  ;;  %p839_p0 = scmp.ge.s32.totalorder %s965_s20, 1  ;;  %s965_s20 = sphi %s1002_s20, %s15_s20   ;;  %s961_s19 = sphi %s1000_s19, %s1154_s19   ;;  %s957_s18 = sphi %s998_s18, %s1153_s18  }
   0x3   : > { %p36_p1 = scmp.ge.s32.totalorder %s34_s21, 2  ;;  %p254_p2 = scmp.lt.s32.totalorder %s965_s20, 3 }
   0x5   : > { %s1156_s21 = smov (%p36_p1, %s34_s21), 0  ;;  %p255_p3 = pnand %p839_p0, %p254_p2 }
   0x6   : > { %v924_v0 = vld [vmem:[%s1148_s1] sm:$0xff] (!%p255_p3)   ;;  %s840_s24 = sshll.u32 (!%p255_p3), %s957_s18, 3  ;;  %v925_v1 = vld [vmem:[%s1148_s1 + $0x8] sm:$0xff] (!%p255_p3)   ;;  %vm346_vm0 = vcmask (!%p255_p3), 261120   ;;  %v926_v2 = vld [vmem:[%s1148_s1 + $0x10] sm:$0xff] (!%p255_p3)   ;;  %v967_v3 = vmov (!%p255_p3), 0.0  }
   0x7   : > { %258 = sbr.rel (%p255_p3) target bundleno = 578 (0x242), region = 40  ;;  %p306_p4 = scmp.lt.s32.totalorder (!%p255_p3), %s840_s24, 15  ;;  %879 = vmatprep.subr.bf16.mxu0 (!%p255_p3), %v924_v0  ;;  %893 = vmatprep.subr.bf16.mxu1 (!%p255_p3), %v924_v0  ;;  %349 = vst.msk [vmem:[#allocation2 + $0x10] sm:$0xff] (!%p255_p3), %vm346_vm0, %v967_v3  ;;  %347 = vst.msk [vmem:[#allocation2] sm:$0xff] (!%p255_p3), %vm346_vm0, %v967_v3  ;;  %vm399_vm1 = vcmask (!%p255_p3), 392192   ;;  %vm687_vm2 = vcmask (!%p255_p3), 257024  }
   0x8   : > { %880 = vmatpush3.bf16.msra.mxu0 (!%p255_p3), %v924_v0  ;;  %896 = vmatpush3.bf16.msra.mxu1 (!%p255_p3), %v924_v0  ;;  %348 = vst.msk [vmem:[#allocation2 + $0x8] sm:$0xff] (!%p255_p3), %vm346_vm0, %v967_v3  ;;  %350 = vst.msk [vmem:[#allocation2 + $0x18] sm:$0xff] (!%p255_p3), %vm346_vm0, %v967_v3  ;;  %v851_v40 = vld [vmem:[%s1149_s2] ss:$0 sm:$0xff] (!%p255_p3) }
   0x9   : > { %881 = vmatprep.subr.bf16.mxu0 (!%p255_p3), %v925_v1  ;;  %894 = vmatprep.subr.bf16.mxu1 (!%p255_p3), %v925_v1  ;;  %351 = vst.msk [vmem:[#allocation2 + $0x20] sm:$0xff] (!%p255_p3), %vm346_vm0, %v967_v3  ;;  %352 = vst.msk [vmem:[#allocation2 + $0x28] sm:$0xff] (!%p255_p3), %vm346_vm0, %v967_v3 }
   0xa   : > { %353 = vst.msk [vmem:[#allocation2 + $0x30] sm:$0xff] (!%p255_p3), %vm346_vm0, %v967_v3  ;;  %354 = vst.msk [vmem:[#allocation2 + $0x38] sm:$0xff] (!%p255_p3), %vm346_vm0, %v967_v3 }
   0xc   : > { %882 = vmatpush3.bf16.msra.mxu0 (!%p255_p3), %v925_v1  ;;  %897 = vmatpush3.bf16.msra.mxu1 (!%p255_p3), %v925_v1 }
   0xd   : > { %883 = vmatprep.subr.bf16.mxu0 (!%p255_p3), %v926_v2  ;;  %895 = vmatprep.subr.bf16.mxu1 (!%p255_p3), %v926_v2 }
   0xe   : > { %s1158_s24 = smov (!%p306_p4, %s840_s24), 15  ;;  %v365_v16 = vld [vmem:[#allocation2 + $0x10] sm:$0xff]  ;;  %v363_v18 = vld [vmem:[#allocation2] sm:$0xff] }
   0xf   : > { %s841_s29 = sshll.u32 %s1158_s24, 3  ;;  %v366_v22 = vld [vmem:[#allocation2 + $0x18] sm:$0xff]  ;;  %v364_v28 = vld [vmem:[#allocation2 + $0x8] sm:$0xff]  ;;  %s843_s14 = sshll.u32 %s1158_s24, 2 }
  0x10   : > { %s312_s7 = scalar_lea.vmem %s1147_s0, %s841_s29  ;;  %884 = vmatpush3.bf16.msra.mxu0 %v926_v2  ;;  %898 = vmatpush3.bf16.msra.mxu1 %v926_v2  ;;  %v367_v19 = vld [vmem:[#allocation2 + $0x20] sm:$0xff]  ;;  %v368_v29 = vld [vmem:[#allocation2 + $0x28] sm:$0xff]  ;;  %s1114_s17 = scalar_lea.vmem %s1152_s5, %s843_s14 }
  0x11   : > { %v355_v4 = vld [vmem:[%s312_s7] sm:$0xff]  ;;  %v356_v5 = vld [vmem:[%s312_s7 + $0x8] sm:$0xff]  ;;  %v357_v6 = vld [vmem:[%s312_s7 + $0x10] sm:$0xff] }
  0x12   : > { %v371_v7 = vpack.c.bf16 %v356_v5, %v355_v4  ;;  %v358_v8 = vld [vmem:[%s312_s7 + $0x18] sm:$0xff]  ;;  %v359_v9 = vld [vmem:[%s312_s7 + $0x20] sm:$0xff]  ;;  %v360_v10 = vld [vmem:[%s312_s7 + $0x28] sm:$0xff] }
  0x13   : > { %v373_v11 = vpack.c.bf16 %v360_v10, %v359_v9  ;;  %v361_v12 = vld [vmem:[%s312_s7 + $0x30] sm:$0xff]  ;;  %v362_v13 = vld [vmem:[%s312_s7 + $0x38] sm:$0xff]  ;;  %v372_v14 = vpack.c.bf16 %v358_v8, %v357_v6 }
  0x14   : > { %885 = vmatprep.mubr.msk.bf16.mxu0 %vm399_vm1, %v371_v7  ;;  %v374_v15 = vpack.c.bf16 %v362_v13, %v361_v12  ;;  %v369_v17 = vld [vmem:[#allocation2 + $0x30] sm:$0xff]  ;;  %v370_v23 = vld [vmem:[#allocation2 + $0x38] sm:$0xff] }
  0x15   : > { %889 = vmatprep.mubr.msk.bf16.mxu1 %vm399_vm1, %v373_v11  ;;  %886 = vmatmul.mubr.msk.bf16.vlgmr.msra.gmra.mrb[0].mxu0 %vm399_vm1, %v372_v14 }
  0x16   : > { %890 = vmatmul.mubr.msk.bf16.vlgmr.msra.gmra.mrb[0].mxu1 %vm399_vm1, %v374_v15 }
  0xe8   : > { %v887_v20 = vpop.f32.mrb[0].mxu0 }
  0xe9   : > { %v891_v21 = vpop.f32.mrb[0].mxu1  ;;  %v479_v24 = vadd.f32 %v887_v20, %v365_v16  ;;  %v446_v25 = vpop.f32.mrb[1].mxu0 }
  0xea   : > { %v483_v26 = vadd.f32 %v891_v21, %v369_v17  ;;  %v462_v27 = vpop.f32.mrb[1].mxu1  ;;  %v477_v30 = vadd.f32 %v446_v25, %v363_v18  ;;  %v888_v31 = vpop.f32.mrb[2].mxu0 }
  0xeb   : > { %v481_v32 = vadd.f32 %v462_v27, %v367_v19  ;;  %v892_v33 = vpop.f32.mrb[2].mxu1  ;;  %488 = vst.msk [vmem:[#allocation2 + $0x10] sm:$0xff] %vm346_vm0, %v479_v24  ;;  %v480_v34 = vadd.f32 %v888_v31, %v366_v22  ;;  %v449_v35 = vpop.f32.mrb[3].mxu0 }
  0xec   : > { %492 = vst.msk [vmem:[#allocation2 + $0x30] sm:$0xff] %vm346_vm0, %v483_v26  ;;  %v484_v36 = vadd.f32 %v892_v33, %v370_v23  ;;  %v465_v37 = vpop.f32.mrb[3].mxu1  ;;  %486 = vst.msk [vmem:[#allocation2] sm:$0xff] %vm346_vm0, %v477_v30  ;;  %v478_v38 = vadd.f32 %v449_v35, %v364_v28 }
  0xed   : > { %490 = vst.msk [vmem:[#allocation2 + $0x20] sm:$0xff] %vm346_vm0, %v481_v32  ;;  %v482_v39 = vadd.f32 %v465_v37, %v368_v29  ;;  %489 = vst.msk [vmem:[#allocation2 + $0x18] sm:$0xff] %vm346_vm0, %v480_v34 }
  0xee   : > { %493 = vst.msk [vmem:[#allocation2 + $0x38] sm:$0xff] %vm346_vm0, %v484_v36  ;;  %487 = vst.msk [vmem:[#allocation2 + $0x8] sm:$0xff] %vm346_vm0, %v478_v38 }
  0xef   : > { %491 = vst.msk [vmem:[#allocation2 + $0x28] sm:$0xff] %vm346_vm0, %v482_v39 }
  0xf2   : > { %v499_v41 = vld [vmem:[#allocation2 + $0x10] sm:$0xff] }
  0xf3   : > { %v514_v42 = vadd.f32 %v851_v40, %v499_v41  ;;  %v497_v43 = vld [vmem:[#allocation2] sm:$0xff]  ;;  %v503_v58 = vld [vmem:[#allocation2 + $0x30] sm:$0xff] }
  0xf4   : > { %v501_v44 = vld [vmem:[#allocation2 + $0x20] sm:$0xff]  ;;  %v512_v45 = vadd.f32 %v851_v40, %v497_v43  ;;  %v500_v46 = vld [vmem:[#allocation2 + $0x18] sm:$0xff]  ;;  %v518_v62 = vadd.f32 %v851_v40, %v503_v58 }
  0xf5   : > { %v516_v47 = vadd.f32 %v851_v40, %v501_v44  ;;  %v528_v48 = vsel %vm346_vm0, %v514_v42, 0.0  ;;  %v515_v49 = vadd.f32 %v851_v40, %v500_v46  ;;  %v498_v52 = vld [vmem:[#allocation2 + $0x8] sm:$0xff]  ;;  %v504_v57 = vld [vmem:[#allocation2 + $0x38] sm:$0xff] }
  0xf6   : > { %529 = vadd.xlane.f32.xlu1 %v528_v48  ;;  %v522_v50 = vsel %vm346_vm0, %v512_v45, 0.0  ;;  %v502_v51 = vld [vmem:[#allocation2 + $0x28] sm:$0xff]  ;;  %v513_v56 = vadd.f32 %v851_v40, %v498_v52  ;;  %v519_v60 = vadd.f32 %v851_v40, %v504_v57  ;;  %v540_v0 = vsel %vm346_vm0, %v518_v62, 0.0 }
  0xf7   : > { %523 = vadd.xlane.f32.xlu0 %v522_v50  ;;  %v534_v53 = vsel %vm346_vm0, %v516_v47, 0.0  ;;  %v531_v54 = vsel %vm346_vm0, %v515_v49, 0.0  ;;  %v517_v55 = vadd.f32 %v851_v40, %v502_v51 }
  0xf8   : > { %v525_v61 = vsel %vm346_vm0, %v513_v56, 0.0  ;;  %v543_v63 = vsel %vm346_vm0, %v519_v60, 0.0 }
  0xf9   : > { %v537_v59 = vsel %vm346_vm0, %v517_v55, 0.0 }
  0xfa   : > { %532 = vadd.xlane.f32.xlu1 %v531_v54 }
  0xfb   : > { %535 = vadd.xlane.f32.xlu0 %v534_v53 }
  0xfe   : > { %538 = vadd.xlane.f32.xlu1 %v537_v59 }
  0xff   : > { %526 = vadd.xlane.f32.xlu0 %v525_v61  ;;  %v852_v61 = vld [vmem:[%s1150_s3] ss:$0 sm:$0xff] }
 0x102   : > { %544 = vadd.xlane.f32.xlu1 %v543_v63 }
 0x103   : > { %541 = vadd.xlane.f32.xlu0 %v540_v0 }
 0x183   : > { %v530_v1 = vpop.xlane.xlu1 %529 }
 0x184   : > { %v549_v2 = vmul.f32 0.03125, %v530_v1  ;;  %v524_v3 = vpop.xlane.xlu0 %523  ;;  %v853_v1 = vld [vmem:[%s1151_s4] ss:$0 sm:$0xff] }
 0x185   : > { %v547_v4 = vmul.f32 0.03125, %v524_v3 }
 0x186   : > { %v1062_v5 = vsub.f32 %v514_v42, %v549_v2 }
 0x187   : > { %v1064_v6 = vsub.f32 %v512_v45, %v547_v4  ;;  %v533_v7 = vpop.xlane.xlu1 %532 }
 0x188   : > { %v550_v8 = vmul.f32 0.03125, %v533_v7  ;;  %v536_v9 = vpop.xlane.xlu0 %535  ;;  %v565_v10 = vmul.f32 %v1062_v5, %v1062_v5 }
 0x189   : > { %v551_v11 = vmul.f32 0.03125, %v536_v9  ;;  %v563_v14 = vmul.f32 %v1064_v6, %v1064_v6 }
 0x18a   : > { %v1068_v12 = vsub.f32 %v515_v49, %v550_v8  ;;  %v577_v13 = vsel %vm346_vm0, %v565_v10, 0.0 }
 0x18b   : > { %v1073_v15 = vsub.f32 %v516_v47, %v551_v11  ;;  %v539_v16 = vpop.xlane.xlu1 %538  ;;  %578 = vadd.xlane.f32.xlu0 %v577_v13  ;;  %v571_v22 = vsel %vm346_vm0, %v563_v14, 0.0 }
 0x18c   : > { %v552_v17 = vmul.f32 0.03125, %v539_v16  ;;  %v527_v18 = vpop.xlane.xlu0 %526  ;;  %v566_v19 = vmul.f32 %v1068_v12, %v1068_v12 }
 0x18d   : > { %v548_v20 = vmul.f32 0.03125, %v527_v18  ;;  %v567_v23 = vmul.f32 %v1073_v15, %v1073_v15 }
 0x18e   : > { %v580_v21 = vsel %vm346_vm0, %v566_v19, 0.0  ;;  %v1081_v24 = vsub.f32 %v517_v55, %v552_v17 }
 0x18f   : > { %v1083_v25 = vsub.f32 %v513_v56, %v548_v20  ;;  %581 = vadd.xlane.f32.xlu1 %v580_v21  ;;  %v545_v26 = vpop.xlane.xlu1 %544  ;;  %572 = vadd.xlane.f32.xlu0 %v571_v22  ;;  %v583_v31 = vsel %vm346_vm0, %v567_v23, 0.0 }
 0x190   : > { %v554_v27 = vmul.f32 0.03125, %v545_v26  ;;  %v542_v28 = vpop.xlane.xlu0 %541  ;;  %v568_v35 = vmul.f32 %v1081_v24, %v1081_v24 }
 0x191   : > { %v553_v29 = vmul.f32 0.03125, %v542_v28  ;;  %v564_v30 = vmul.f32 %v1083_v25, %v1083_v25 }
 0x192   : > { %v1088_v32 = vsub.f32 %v519_v60, %v554_v27  ;;  %v586_v37 = vsel %vm346_vm0, %v568_v35, 0.0 }
 0x193   : > { %v1090_v33 = vsub.f32 %v518_v62, %v553_v29  ;;  %584 = vadd.xlane.f32.xlu0 %v583_v31  ;;  %v574_v34 = vsel %vm346_vm0, %v564_v30, 0.0 }
 0x194   : > { %575 = vadd.xlane.f32.xlu1 %v574_v34  ;;  %v570_v39 = vmul.f32 %v1088_v32, %v1088_v32 }
 0x195   : > { %v569_v36 = vmul.f32 %v1090_v33, %v1090_v33 }
 0x196   : > { %v592_v40 = vsel %vm346_vm0, %v570_v39, 0.0 }
 0x197   : > { %v589_v38 = vsel %vm346_vm0, %v569_v36, 0.0 }
 0x198   : > { %587 = vadd.xlane.f32.xlu1 %v586_v37  ;;  %590 = vadd.xlane.f32.xlu0 %v589_v38 }
 0x19c   : > { %593 = vadd.xlane.f32.xlu1 %v592_v40 }
 0x218   : > { %v579_v41 = vpop.xlane.xlu0 %578 }
 0x219   : > { %v597_v42 = vmul.f32 0.03125, %v579_v41 }
 0x21b   : > { %v605_v43 = vadd.f32 1e-05, %v597_v42 }
 0x21c   : > { %v582_v44 = vpop.xlane.xlu1 %581  ;;  %v573_v45 = vpop.xlane.xlu0 %572 }
 0x21d   : > { %927 = vrsqrt.f32 %v605_v43  ;;  %v598_v46 = vmul.f32 0.03125, %v582_v44  ;;  %v595_v47 = vmul.f32 0.03125, %v573_v45 }
 0x21f   : > { %v606_v48 = vadd.f32 1e-05, %v598_v46  ;;  %v603_v49 = vadd.f32 1e-05, %v595_v47 }
 0x220   : > { %v585_v50 = vpop.xlane.xlu0 %584 }
 0x221   : > { %929 = vrsqrt.f32 %v606_v48  ;;  %v599_v51 = vmul.f32 0.03125, %v585_v50  ;;  %v576_v52 = vpop.xlane.xlu1 %575 }
 0x222   : > { %931 = vrsqrt.f32 %v603_v49  ;;  %v596_v53 = vmul.f32 0.03125, %v576_v52 }
 0x223   : > { %v607_v54 = vadd.f32 1e-05, %v599_v51 }
 0x224   : > { %v604_v55 = vadd.f32 1e-05, %v596_v53 }
 0x225   : > { %933 = vrsqrt.f32 %v607_v54  ;;  %v588_v56 = vpop.xlane.xlu1 %587  ;;  %v591_v57 = vpop.xlane.xlu0 %590 }
 0x226   : > { %935 = vrsqrt.f32 %v604_v55  ;;  %v600_v58 = vmul.f32 0.03125, %v588_v56  ;;  %v601_v59 = vmul.f32 0.03125, %v591_v57 }
 0x227   : > { %v928_v60 = vpop.eup %927 }
 0x228   : > { %v621_v62 = vmul.f32 %v928_v60, %v1062_v5  ;;  %v608_v63 = vadd.f32 1e-05, %v600_v58  ;;  %v609_v0 = vadd.f32 1e-05, %v601_v59 }
 0x229   : > { %v594_v2 = vpop.xlane.xlu1 %593 }
 0x22a   : > { %v635_v3 = vmul.f32 %v852_v61, %v621_v62  ;;  %937 = vrsqrt.f32 %v608_v63  ;;  %v602_v4 = vmul.f32 0.03125, %v594_v2 }
 0x22b   : > { %v930_v7 = vpop.eup %929  ;;  %939 = vrsqrt.f32 %v609_v0 }
 0x22c   : > { %v932_v8 = vpop.eup %931  ;;  %v649_v9 = vadd.f32 %v853_v1, %v635_v3  ;;  %v622_v10 = vmul.f32 %v930_v7, %v1068_v12  ;;  %v610_v11 = vadd.f32 1e-05, %v602_v4 }
 0x22d   : > { %v619_v5 = vmul.f32 %v932_v8, %v1064_v6 }
 0x22e   : > { %v866_v13 = vpack.c.bf16 %v649_v9, %v649_v9  ;;  %v636_v14 = vmul.f32 %v852_v61, %v622_v10  ;;  %941 = vrsqrt.f32 %v610_v11 }
 0x22f   : > { %v934_v16 = vpop.eup %933  ;;  %v633_v17 = vmul.f32 %v852_v61, %v619_v5 }
 0x230   : > { %v936_v18 = vpop.eup %935  ;;  %690 = vst.msk [vmem:[%s1114_s17 + $0x8] sm:$0xf] %vm687_vm2, %v866_v13  ;;  %v650_v12 = vadd.f32 %v853_v1, %v636_v14  ;;  %v623_v19 = vmul.f32 %v934_v16, %v1073_v15 }
 0x231   : > { %v647_v20 = vadd.f32 %v853_v1, %v633_v17  ;;  %v620_v21 = vmul.f32 %v936_v18, %v1083_v25 }
 0x232   : > { %v867_v22 = vpack.c.bf16 %v650_v12, %v650_v12  ;;  %v637_v23 = vmul.f32 %v852_v61, %v623_v19 }
 0x233   : > { %v864_v6 = vpack.c.bf16 %v647_v20, %v647_v20  ;;  %v634_v26 = vmul.f32 %v852_v61, %v620_v21 }
 0x234   : > { %v938_v27 = vpop.eup %937  ;;  %691 = vst.msk [vmem:[%s1114_s17 + $0xc] sm:$0xf] %vm687_vm2, %v867_v22  ;;  %v651_v28 = vadd.f32 %v853_v1, %v637_v23 }
 0x235   : > { %v940_v29 = vpop.eup %939  ;;  %688 = vst.msk [vmem:[%s1114_s17] sm:$0xf] %vm687_vm2, %v864_v6  ;;  %v648_v30 = vadd.f32 %v853_v1, %v634_v26  ;;  %v624_v15 = vmul.f32 %v938_v27, %v1081_v24 }
 0x236   : > { %v868_v31 = vpack.c.bf16 %v651_v28, %v651_v28  ;;  %v625_v25 = vmul.f32 %v940_v29, %v1090_v33 }
 0x237   : > { %v865_v34 = vpack.c.bf16 %v648_v30, %v648_v30  ;;  %v638_v35 = vmul.f32 %v852_v61, %v624_v15 }
 0x238   : > { %v942_v36 = vpop.eup %941  ;;  %692 = vst.msk [vmem:[%s1114_s17 + $0x10] sm:$0xf] %vm687_vm2, %v868_v31  ;;  %v639_v37 = vmul.f32 %v852_v61, %v625_v25 }
 0x239   : > { %689 = vst.msk [vmem:[%s1114_s17 + $0x4] sm:$0xf] %vm687_vm2, %v865_v34  ;;  %v652_v38 = vadd.f32 %v853_v1, %v638_v35  ;;  %v626_v39 = vmul.f32 %v942_v36, %v1088_v32 }
 0x23a   : > { %v653_v40 = vadd.f32 %v853_v1, %v639_v37 }
 0x23b   : > { %v869_v41 = vpack.c.bf16 %v652_v38, %v652_v38  ;;  %v640_v42 = vmul.f32 %v852_v61, %v626_v39 }
 0x23c   : > { %v870_v24 = vpack.c.bf16 %v653_v40, %v653_v40 }
 0x23d   : > { %693 = vst.msk [vmem:[%s1114_s17 + $0x14] sm:$0xf] %vm687_vm2, %v869_v41  ;;  %v654_v43 = vadd.f32 %v853_v1, %v640_v42 }
 0x23e   : > { %694 = vst.msk [vmem:[%s1114_s17 + $0x18] sm:$0xf] %vm687_vm2, %v870_v24 }
 0x23f   : > { %v871_v33 = vpack.c.bf16 %v654_v43, %v654_v43 }
 0x241   : > { %695 = vst.msk [vmem:[%s1114_s17 + $0x1c] sm:$0xf] %vm687_vm2, %v871_v33 }
 0x242 PF: > { %s15_s20 = sadd.s32 1, %s965_s20   ;;  %s1153_s18 = smov %s961_s19 }
 0x243   : > { %p12_p5 = scmp.ge.s32.totalorder %s15_s20, 4   ;;  %s1154_s19 = smov %s1156_s21 }
 0x245   :  { %14 = sbr.rel (!%p12_p5) target bundleno = 2 (0x2), region = 90 }

// kernel: forward.13
= control target key start
LH: loop header
LB: loop body
LE: loop exit
PB: predicated region body
PF: predicated region fallthrough
CT: control target
= control target key end

     0   :  { %s1324_s24 = smov 0   ;;  %s1326_s25 = smov 0   ;;  %s1600_s0 = inlined_call_operand.vmem [shape: bf16[128,32], index: 0, kind: input, shape index: {}]   ;;  %s1601_s1 = inlined_call_operand.vmem [shape: f32[1,32], index: 1, kind: input, shape index: {}]   ;;  %s1602_s2 = inlined_call_operand.vmem [shape: f32[1,32], index: 2, kind: input, shape index: {}]   ;;  %s1603_s3 = inlined_call_operand.vmem [shape: bf16[32,128], index: 3, kind: input, shape index: {}]   ;;  %s1604_s4 = inlined_call_operand.vmem [shape: f32[1,128], index: 4, kind: input, shape index: {}]   ;;  %s1605_s5 = inlined_call_operand.vmem [shape: bf16[128,32], index: 5, kind: input, shape index: {}]   ;;  %s1606_s6 = inlined_call_operand.vmem [shape: f32[1,32], index: 6, kind: input, shape index: {}]   ;;  %s1607_s7 = inlined_call_operand.vmem [shape: bf16[128,32], index: 7, kind: output, shape index: {}]  }
   0x1   :  { %s1328_s26 = smov 0  }
   0x2 LB: > { %s29_s27 = sadd.s32 1, %s1277_s25  ;;  %p1059_p0 = scmp.ge.s32.totalorder %s1281_s26, 1  ;;  %s1281_s26 = sphi %s1328_s26, %s17_s26   ;;  %s1277_s25 = sphi %s1326_s25, %s1609_s25   ;;  %s1273_s24 = sphi %s1324_s24, %s1608_s24  }
   0x3   : > { %p31_p1 = scmp.ge.s32.totalorder %s29_s27, 2  ;;  %p278_p2 = scmp.lt.s32.totalorder %s1281_s26, 3 }
   0x5   : > { %s1611_s27 = smov (%p31_p1, %s29_s27), 0  ;;  %p279_p3 = pnand %p1059_p0, %p278_p2 }
   0x6   : > { %s1060_s28 = sshll.u32 (!%p279_p3), %s1273_s24, 3  ;;  %vm370_vm0 = vcmask (!%p279_p3), 261120   ;;  %v1217_v60 = vld [vmem:[%s1603_s3] sm:$0xff] (!%p279_p3)   ;;  %v1218_v61 = vld [vmem:[%s1603_s3 + $0x8] sm:$0xff] (!%p279_p3)   ;;  %vm936_vm1 = vcmask (!%p279_p3), 257024  }
   0x7   : > { %282 = sbr.rel (%p279_p3) target bundleno = 838 (0x346), region = 48  ;;  %p323_p4 = scmp.lt.s32.totalorder (!%p279_p3), %s1060_s28, 15  ;;  %1156 = vmatprep.subr.bf16.mxu0 (!%p279_p3), %v1217_v60 }
   0x8   : > { %1157 = vmatpush3.bf16.msra.mxu0 (!%p279_p3), %v1217_v60 }
   0x9   : > { %1158 = vmatprep.subr.bf16.mxu0 (!%p279_p3), %v1218_v61 }
   0xc   : > { %1159 = vmatpush3.bf16.msra.mxu0 (!%p279_p3), %v1218_v61 }
   0xe   : > { %s1613_s28 = smov (!%p323_p4, %s1060_s28), 15 }
   0xf   : > { %s1061_s29 = sshll.u32 %s1613_s28, 2 }
  0x10   : > { %s326_s9 = scalar_lea.vmem %s1600_s0, %s1061_s29  ;;  %s1567_s22 = scalar_lea.vmem %s1607_s7, %s1061_s29 }
  0x11   : > { %v1101_v0 = vld [vmem:[%s326_s9] sm:$0xff]   ;;  %v1135_v1 = vld [vmem:[%s326_s9 + $0x8] sm:$0xff]   ;;  %v1136_v6 = vld [vmem:[%s326_s9 + $0x10] sm:$0xff]  }
  0x12   : > { %v1350_v2 = vunpack.c.l.bf16 %v1101_v0  ;;  %v1352_v3 = vunpack.c.h.bf16 %v1101_v0  ;;  %v1354_v4 = vunpack.c.l.bf16 %v1135_v1  ;;  %v1356_v5 = vunpack.c.h.bf16 %v1135_v1  ;;  %v1137_v13 = vld [vmem:[%s326_s9 + $0x18] sm:$0xff]  }
  0x13   : > { %v1362_v9 = vunpack.c.l.bf16 %v1136_v6  ;;  %v1364_v10 = vunpack.c.h.bf16 %v1136_v6  ;;  %v1370_v14 = vunpack.c.l.bf16 %v1137_v13  ;;  %v1372_v15 = vunpack.c.h.bf16 %v1137_v13 }
  0x14   : > { %v371_v7 = vsel %vm370_vm0, %v1350_v2, 0.0  ;;  %v377_v8 = vsel %vm370_vm0, %v1354_v4, 0.0  ;;  %v374_v11 = vsel %vm370_vm0, %v1352_v3, 0.0  ;;  %v380_v12 = vsel %vm370_vm0, %v1356_v5, 0.0 }
  0x15   : > { %372 = vadd.xlane.f32.xlu0 %v371_v7  ;;  %378 = vadd.xlane.f32.xlu1 %v377_v8  ;;  %v383_v16 = vsel %vm370_vm0, %v1362_v9, 0.0  ;;  %v386_v17 = vsel %vm370_vm0, %v1364_v10, 0.0  ;;  %v389_v18 = vsel %vm370_vm0, %v1370_v14, 0.0  ;;  %v392_v19 = vsel %vm370_vm0, %v1372_v15, 0.0 }
  0x19   : > { %375 = vadd.xlane.f32.xlu0 %v374_v11  ;;  %381 = vadd.xlane.f32.xlu1 %v380_v12 }
  0x1d   : > { %384 = vadd.xlane.f32.xlu0 %v383_v16  ;;  %387 = vadd.xlane.f32.xlu1 %v386_v17 }
  0x21   : > { %390 = vadd.xlane.f32.xlu0 %v389_v18  ;;  %393 = vadd.xlane.f32.xlu1 %v392_v19 }
  0xa2   : > { %v373_v20 = vpop.xlane.xlu0 %372  ;;  %v379_v21 = vpop.xlane.xlu1 %378 }
  0xa3   : > { %v396_v22 = vmul.f32 0.03125, %v373_v20  ;;  %v398_v23 = vmul.f32 0.03125, %v379_v21 }
  0xa5   : > { %v1383_v24 = vsub.f32 %v1350_v2, %v396_v22  ;;  %v1386_v25 = vsub.f32 %v1354_v4, %v398_v23 }
  0xa6   : > { %v376_v26 = vpop.xlane.xlu0 %375  ;;  %v382_v27 = vpop.xlane.xlu1 %381 }
  0xa7   : > { %v397_v28 = vmul.f32 0.03125, %v376_v26  ;;  %v399_v29 = vmul.f32 0.03125, %v382_v27  ;;  %v412_v30 = vmul.f32 %v1383_v24, %v1383_v24  ;;  %v414_v31 = vmul.f32 %v1386_v25, %v1386_v25 }
  0xa9   : > { %v1393_v32 = vsub.f32 %v1352_v3, %v397_v28  ;;  %v1396_v33 = vsub.f32 %v1356_v5, %v399_v29  ;;  %v420_v34 = vsel %vm370_vm0, %v412_v30, 0.0  ;;  %v426_v37 = vsel %vm370_vm0, %v414_v31, 0.0 }
  0xaa   : > { %421 = vadd.xlane.f32.xlu0 %v420_v34  ;;  %v385_v35 = vpop.xlane.xlu0 %384  ;;  %v388_v36 = vpop.xlane.xlu1 %387  ;;  %v1064_v34 = vld [vmem:[%s1601_s1] ss:$0 sm:$0xff] }
  0xab   : > { %v400_v38 = vmul.f32 0.03125, %v385_v35  ;;  %v401_v39 = vmul.f32 0.03125, %v388_v36  ;;  %v413_v40 = vmul.f32 %v1393_v32, %v1393_v32  ;;  %v415_v41 = vmul.f32 %v1396_v33, %v1396_v33 }
  0xad   : > { %v1405_v42 = vsub.f32 %v1362_v9, %v400_v38  ;;  %v1408_v43 = vsub.f32 %v1364_v10, %v401_v39  ;;  %v423_v44 = vsel %vm370_vm0, %v413_v40, 0.0  ;;  %v429_v47 = vsel %vm370_vm0, %v415_v41, 0.0  ;;  %v1065_v41 = vld [vmem:[%s1602_s2] ss:$0 sm:$0xff] }
  0xae   : > { %427 = vadd.xlane.f32.xlu0 %v426_v37  ;;  %424 = vadd.xlane.f32.xlu1 %v423_v44  ;;  %v391_v45 = vpop.xlane.xlu0 %390  ;;  %v394_v46 = vpop.xlane.xlu1 %393 }
  0xaf   : > { %v402_v48 = vmul.f32 0.03125, %v391_v45  ;;  %v403_v49 = vmul.f32 0.03125, %v394_v46  ;;  %v416_v50 = vmul.f32 %v1405_v42, %v1405_v42  ;;  %v417_v51 = vmul.f32 %v1408_v43, %v1408_v43 }
  0xb1   : > { %v1417_v52 = vsub.f32 %v1370_v14, %v402_v48  ;;  %v1420_v53 = vsub.f32 %v1372_v15, %v403_v49  ;;  %v432_v54 = vsel %vm370_vm0, %v416_v50, 0.0  ;;  %v435_v55 = vsel %vm370_vm0, %v417_v51, 0.0 }
  0xb2   : > { %430 = vadd.xlane.f32.xlu1 %v429_v47  ;;  %433 = vadd.xlane.f32.xlu0 %v432_v54 }
  0xb3   : > { %v418_v56 = vmul.f32 %v1417_v52, %v1417_v52  ;;  %v419_v57 = vmul.f32 %v1420_v53, %v1420_v53 }
  0xb5   : > { %v438_v58 = vsel %vm370_vm0, %v418_v56, 0.0  ;;  %v441_v59 = vsel %vm370_vm0, %v419_v57, 0.0 }
  0xb6   : > { %436 = vadd.xlane.f32.xlu1 %v435_v55  ;;  %439 = vadd.xlane.f32.xlu0 %v438_v58 }
  0xba   : > { %442 = vadd.xlane.f32.xlu1 %v441_v59 }
 0x137   : > { %v422_v62 = vpop.xlane.xlu0 %421 }
 0x138   : > { %v444_v63 = vmul.f32 0.03125, %v422_v62 }
 0x13a   : > { %v452_v0 = vadd.f32 1e-05, %v444_v63 }
 0x13b   : > { %v425_v1 = vpop.xlane.xlu1 %424  ;;  %v428_v6 = vpop.xlane.xlu0 %427 }
 0x13c   : > { %1227 = vrsqrt.f32 %v452_v0  ;;  %v445_v7 = vmul.f32 0.03125, %v425_v1  ;;  %v446_v8 = vmul.f32 0.03125, %v428_v6 }
 0x13e   : > { %v453_v11 = vadd.f32 1e-05, %v445_v7  ;;  %v454_v12 = vadd.f32 1e-05, %v446_v8 }
 0x13f   : > { %v431_v13 = vpop.xlane.xlu1 %430  ;;  %v434_v16 = vpop.xlane.xlu0 %433 }
 0x140   : > { %1229 = vrsqrt.f32 %v453_v11  ;;  %v447_v17 = vmul.f32 0.03125, %v431_v13  ;;  %v448_v18 = vmul.f32 0.03125, %v434_v16 }
 0x141   : > { %1231 = vrsqrt.f32 %v454_v12 }
 0x142   : > { %v455_v19 = vadd.f32 1e-05, %v447_v17  ;;  %v456_v20 = vadd.f32 1e-05, %v448_v18  ;;  %v1220_v17 = vld [vmem:[%s1605_s5 + $0x8] sm:$0xff]   ;;  %v1221_v18 = vld [vmem:[%s1605_s5 + $0x10] sm:$0xff]  }
 0x143   : > { %v437_v21 = vpop.xlane.xlu1 %436  ;;  %v440_v22 = vpop.xlane.xlu0 %439 }
 0x144   : > { %1233 = vrsqrt.f32 %v455_v19  ;;  %v449_v23 = vmul.f32 0.03125, %v437_v21  ;;  %v450_v26 = vmul.f32 0.03125, %v440_v22  ;;  %v1222_v19 = vld [vmem:[%s1605_s5 + $0x18] sm:$0xff]   ;;  %v1224_v21 = vld [vmem:[%s1605_s5 + $0x28] sm:$0xff]   ;;  %v1225_v22 = vld [vmem:[%s1605_s5 + $0x30] sm:$0xff]  }
 0x145   : > { %1235 = vrsqrt.f32 %v456_v20  ;;  %v1223_v20 = vld [vmem:[%s1605_s5 + $0x20] sm:$0xff]  }
 0x146   : > { %v1228_v27 = vpop.eup %1227  ;;  %v457_v28 = vadd.f32 1e-05, %v449_v23  ;;  %v458_v29 = vadd.f32 1e-05, %v450_v26  ;;  %v1226_v23 = vld [vmem:[%s1605_s5 + $0x38] sm:$0xff]   ;;  %v1283_v26 = vmov 0.0  }
 0x147   : > { %v468_v30 = vmul.f32 %v1228_v27, %v1383_v24  ;;  %v443_v31 = vpop.xlane.xlu1 %442  ;;  %514 = vst.msk [vmem:[#allocation2 + $0x10] sm:$0xff] %vm370_vm0, %v1283_v26  ;;  %512 = vst.msk [vmem:[#allocation2] sm:$0xff] %vm370_vm0, %v1283_v26  ;;  %v1066_v27 = vld [vmem:[%s1604_s4] ss:$0 sm:$0xff] }
 0x148   : > { %1237 = vrsqrt.f32 %v457_v28  ;;  %v451_v35 = vmul.f32 0.03125, %v443_v31  ;;  %513 = vst.msk [vmem:[#allocation2 + $0x8] sm:$0xff] %vm370_vm0, %v1283_v26  ;;  %515 = vst.msk [vmem:[#allocation2 + $0x18] sm:$0xff] %vm370_vm0, %v1283_v26 }
 0x149   : > { %1239 = vrsqrt.f32 %v458_v29  ;;  %v482_v39 = vmul.f32 %v1064_v34, %v468_v30  ;;  %516 = vst.msk [vmem:[#allocation2 + $0x20] sm:$0xff] %vm370_vm0, %v1283_v26  ;;  %517 = vst.msk [vmem:[#allocation2 + $0x28] sm:$0xff] %vm370_vm0, %v1283_v26 }
 0x14a   : > { %v1230_v36 = vpop.eup %1229  ;;  %v459_v37 = vadd.f32 1e-05, %v451_v35  ;;  %518 = vst.msk [vmem:[#allocation2 + $0x30] sm:$0xff] %vm370_vm0, %v1283_v26  ;;  %519 = vst.msk [vmem:[#allocation2 + $0x38] sm:$0xff] %vm370_vm0, %v1283_v26 }
 0x14b   : > { %v1232_v38 = vpop.eup %1231  ;;  %v469_v40 = vmul.f32 %v1230_v36, %v1393_v32  ;;  %v496_v47 = vadd.f32 %v1065_v41, %v482_v39 }
 0x14c   : > { %v470_v24 = vmul.f32 %v1232_v38, %v1386_v25  ;;  %1241 = vrsqrt.f32 %v459_v37 }
 0x14d   : > { %v483_v44 = vmul.f32 %v1064_v34, %v469_v40 }
 0x14e   : > { %v1234_v45 = vpop.eup %1233  ;;  %v484_v49 = vmul.f32 %v1064_v34, %v470_v24 }
 0x14f   : > { %v1236_v46 = vpop.eup %1235  ;;  %v497_v48 = vadd.f32 %v1065_v41, %v483_v44  ;;  %v471_v50 = vmul.f32 %v1234_v45, %v1396_v33 }
 0x150   : > { %v472_v51 = vmul.f32 %v1236_v46, %v1405_v42  ;;  %v498_v57 = vadd.f32 %v1065_v41, %v484_v49 }
 0x151   : > { %v504_v54 = vpack.c.bf16 %v497_v48, %v496_v47  ;;  %v485_v55 = vmul.f32 %v1064_v34, %v471_v50 }
 0x152   : > { %v1238_v32 = vpop.eup %1237  ;;  %v486_v25 = vmul.f32 %v1064_v34, %v472_v51 }
 0x153   : > { %v1240_v56 = vpop.eup %1239  ;;  %508 = vst.msk [vmem:[#allocation3] sm:$0xff] %vm370_vm0, %v504_v54  ;;  %v499_v58 = vadd.f32 %v1065_v41, %v485_v55  ;;  %v473_v59 = vmul.f32 %v1238_v32, %v1408_v43 }
 0x154   : > { %v474_v60 = vmul.f32 %v1240_v56, %v1417_v52  ;;  %v500_v33 = vadd.f32 %v1065_v41, %v486_v25 }
 0x155   : > { %v505_v61 = vpack.c.bf16 %v499_v58, %v498_v57  ;;  %v487_v62 = vmul.f32 %v1064_v34, %v473_v59 }
 0x156   : > { %v1242_v63 = vpop.eup %1241  ;;  %v488_v0 = vmul.f32 %v1064_v34, %v474_v60 }
 0x157   : > { %509 = vst.msk [vmem:[#allocation3 + $0x8] sm:$0xff] %vm370_vm0, %v505_v61  ;;  %v501_v42 = vadd.f32 %v1065_v41, %v487_v62  ;;  %v475_v1 = vmul.f32 %v1242_v63, %v1420_v53  ;;  %v1219_v53 = vld [vmem:[%s1605_s5] sm:$0xff]  }
 0x158   : > { %v502_v11 = vadd.f32 %v1065_v41, %v488_v0  ;;  %1168 = vmatprep.subr.bf16.mxu1 %v1219_v53 }
 0x159   : > { %v506_v6 = vpack.c.bf16 %v501_v42, %v500_v33  ;;  %v489_v7 = vmul.f32 %v1064_v34, %v475_v1  ;;  %1169 = vmatpush3.bf16.msra.mxu1 %v1219_v53 }
 0x15a   : > { %v520_v8 = vld [vmem:[#allocation3] sm:$0xff]  ;;  %1170 = vmatprep.subr.bf16.mxu1 %v1220_v17 }
 0x15b   : > { %510 = vst.msk [vmem:[#allocation3 + $0x10] sm:$0xff] %vm370_vm0, %v506_v6  ;;  %v503_v12 = vadd.f32 %v1065_v41, %v489_v7  ;;  %1160 = vmatprep.mubr.msk.bf16.mxu0 %vm370_vm0, %v520_v8 }
 0x15d   : > { %v507_v43 = vpack.c.bf16 %v503_v12, %v502_v11  ;;  %1171 = vmatpush3.bf16.msra.mxu1 %v1220_v17 }
 0x15e   : > { %v521_v52 = vld [vmem:[#allocation3 + $0x8] sm:$0xff]  ;;  %1172 = vmatprep.subr.bf16.mxu1 %v1221_v18 }
 0x15f   : > { %511 = vst.msk [vmem:[#allocation3 + $0x18] sm:$0xff] %vm370_vm0, %v507_v43  ;;  %1161 = vmatmul.mubr.msk.bf16.vlgmr.msra.gmra.mrb[0].mxu0 %vm370_vm0, %v521_v52 }
 0x161   : > { %1173 = vmatpush3.bf16.msra.mxu1 %v1221_v18 }
 0x162   : > { %v522_v13 = vld [vmem:[#allocation3 + $0x10] sm:$0xff]  ;;  %1174 = vmatprep.subr.bf16.mxu1 %v1222_v19 }
 0x163   : > { %1164 = vmatprep.mubr.msk.bf16.mxu0 %vm370_vm0, %v522_v13 }
 0x165   : > { %1175 = vmatpush3.bf16.msra.mxu1 %v1222_v19 }
 0x166   : > { %v523_v16 = vld [vmem:[#allocation3 + $0x18] sm:$0xff]  ;;  %1176 = vmatprep.subr.bf16.mxu1 %v1223_v20 }
 0x167   : > { %1165 = vmatmul.mubr.msk.bf16.gmra.mrb[4].mxu0 %vm370_vm0, %v523_v16 }
 0x169   : > { %1177 = vmatpush3.bf16.msra.mxu1 %v1223_v20 }
 0x16a   : > { %1178 = vmatprep.subr.bf16.mxu1 %v1224_v21 }
 0x16d   : > { %1179 = vmatpush3.bf16.msra.mxu1 %v1224_v21 }
 0x16e   : > { %1180 = vmatprep.subr.bf16.mxu1 %v1225_v22 }
 0x171   : > { %1181 = vmatpush3.bf16.msra.mxu1 %v1225_v22 }
 0x172   : > { %1182 = vmatprep.subr.bf16.mxu1 %v1226_v23 }
 0x175   : > { %1183 = vmatpush3.bf16.msra.mxu1 %v1226_v23 }
 0x232   : > { %v1162_v28 = vpop.f32.mrb[0].mxu0 }
 0x233   : > { %v1493_v29 = vadd.f32 %v1162_v28, %v1066_v27  ;;  %v594_v30 = vpop.f32.mrb[1].mxu0 }
 0x234   : > { %v1495_v31 = vadd.f32 %v1066_v27, %v594_v30  ;;  %v1163_v34 = vpop.f32.mrb[2].mxu0 }
 0x235   : > { %v627_v35 = vmul.f32 %v1493_v29, %v1493_v29  ;;  %v1499_v36 = vadd.f32 %v1163_v34, %v1066_v27  ;;  %v597_v37 = vpop.f32.mrb[3].mxu0 }
 0x236   : > { %v625_v38 = vmul.f32 %v1495_v31, %v1495_v31  ;;  %v1503_v39 = vadd.f32 %v1066_v27, %v597_v37 }
 0x237   : > { %v635_v40 = vmul.f32 %v627_v35, %v1493_v29  ;;  %v628_v41 = vmul.f32 %v1499_v36, %v1499_v36 }
 0x238   : > { %v633_v24 = vmul.f32 %v625_v38, %v1495_v31  ;;  %v626_v44 = vmul.f32 %v1503_v39, %v1503_v39 }
 0x239   : > { %v643_v45 = vmul.f32 0.044715, %v635_v40  ;;  %v636_v46 = vmul.f32 %v628_v41, %v1499_v36 }
 0x23a   : > { %v641_v47 = vmul.f32 0.044715, %v633_v24  ;;  %v634_v48 = vmul.f32 %v626_v44, %v1503_v39  ;;  %v1166_v49 = vpop.f32.mrb[4].mxu0 }
 0x23b   : > { %v651_v50 = vadd.f32 %v643_v45, %v1493_v29  ;;  %v644_v51 = vmul.f32 0.044715, %v636_v46  ;;  %v1514_v54 = vadd.f32 %v1166_v49, %v1066_v27  ;;  %v610_v55 = vpop.f32.mrb[5].mxu0 }
 0x23c   : > { %v642_v32 = vmul.f32 0.044715, %v634_v48  ;;  %v1516_v56 = vadd.f32 %v1066_v27, %v610_v55  ;;  %v1167_v57 = vpop.f32.mrb[6].mxu0  ;;  %v649_v58 = vadd.f32 %v641_v47, %v1495_v31 }
 0x23d   : > { %v659_v25 = vmul.f32 0.7978846, %v651_v50  ;;  %v652_v59 = vadd.f32 %v644_v51, %v1499_v36  ;;  %v631_v60 = vmul.f32 %v1514_v54, %v1514_v54  ;;  %v1522_v61 = vadd.f32 %v1167_v57, %v1066_v27  ;;  %v613_v62 = vpop.f32.mrb[7].mxu0 }
 0x23e   : > { %v629_v63 = vmul.f32 %v1516_v56, %v1516_v56  ;;  %v1526_v33 = vadd.f32 %v1066_v27, %v613_v62  ;;  %v650_v42 = vadd.f32 %v642_v32, %v1503_v39  ;;  %v657_v0 = vmul.f32 0.7978846, %v649_v58 }
 0x23f   : > { %1243 = vtanh.f32 %v659_v25  ;;  %v660_v1 = vmul.f32 0.7978846, %v652_v59  ;;  %v639_v6 = vmul.f32 %v631_v60, %v1514_v54  ;;  %v632_v7 = vmul.f32 %v1522_v61, %v1522_v61 }
 0x240   : > { %v637_v8 = vmul.f32 %v629_v63, %v1516_v56  ;;  %v630_v11 = vmul.f32 %v1526_v33, %v1526_v33  ;;  %v658_v12 = vmul.f32 0.7978846, %v650_v42  ;;  %1245 = vtanh.f32 %v657_v0 }
 0x241   : > { %1247 = vtanh.f32 %v660_v1  ;;  %v647_v43 = vmul.f32 0.044715, %v639_v6  ;;  %v640_v52 = vmul.f32 %v632_v7, %v1522_v61 }
 0x242   : > { %v645_v13 = vmul.f32 0.044715, %v637_v8  ;;  %v638_v16 = vmul.f32 %v630_v11, %v1526_v33  ;;  %1249 = vtanh.f32 %v658_v12  ;;  %v699_v11 = vld [vmem:[#allocation2 + $0x10] sm:$0xff]  ;;  %v697_v12 = vld [vmem:[#allocation2] sm:$0xff] }
 0x243   : > { %v655_v53 = vadd.f32 %v647_v43, %v1514_v54  ;;  %v648_v17 = vmul.f32 0.044715, %v640_v52  ;;  %v700_v52 = vld [vmem:[#allocation2 + $0x18] sm:$0xff] }
 0x244   : > { %v653_v18 = vadd.f32 %v645_v13, %v1516_v56  ;;  %v646_v19 = vmul.f32 0.044715, %v638_v16 }
 0x245   : > { %v663_v20 = vmul.f32 0.7978846, %v655_v53  ;;  %v656_v21 = vadd.f32 %v648_v17, %v1522_v61  ;;  %v698_v53 = vld [vmem:[#allocation2 + $0x8] sm:$0xff] }
 0x246   : > { %v661_v22 = vmul.f32 0.7978846, %v653_v18  ;;  %v654_v23 = vadd.f32 %v646_v19, %v1526_v33  ;;  %v701_v19 = vld [vmem:[#allocation2 + $0x20] sm:$0xff] }
 0x247   : > { %1251 = vtanh.f32 %v663_v20  ;;  %v664_v26 = vmul.f32 0.7978846, %v656_v21  ;;  %v704_v21 = vld [vmem:[#allocation2 + $0x38] sm:$0xff] }
 0x248   : > { %1253 = vtanh.f32 %v661_v22  ;;  %v662_v27 = vmul.f32 0.7978846, %v654_v23 }
 0x249   : > { %v1244_v28 = vpop.eup %1243  ;;  %1255 = vtanh.f32 %v664_v26  ;;  %v702_v26 = vld [vmem:[#allocation2 + $0x28] sm:$0xff] }
 0x24a   : > { %v1246_v30 = vpop.eup %1245  ;;  %1257 = vtanh.f32 %v662_v27  ;;  %v675_v34 = vadd.f32 1.0, %v1244_v28  ;;  %v1081_v28 = vld [vmem:[%s1606_s6] ss:$0 sm:$0xff] }
 0x24b   : > { %v1248_v35 = vpop.eup %1247  ;;  %v673_v37 = vadd.f32 1.0, %v1246_v30 }
 0x24c   : > { %v1250_v38 = vpop.eup %1249  ;;  %v676_v40 = vadd.f32 1.0, %v1248_v35  ;;  %v683_v41 = vmul.f32 0.5, %v675_v34 }
 0x24d   : > { %v674_v24 = vadd.f32 1.0, %v1250_v38  ;;  %v681_v44 = vmul.f32 0.5, %v673_v37 }
 0x24e   : > { %v684_v45 = vmul.f32 0.5, %v676_v40  ;;  %v691_v47 = vmul.f32 %v683_v41, %v1493_v29 }
 0x24f   : > { %v682_v46 = vmul.f32 0.5, %v674_v24  ;;  %v689_v50 = vmul.f32 %v681_v44, %v1495_v31 }
 0x250   : > { %v692_v48 = vmul.f32 %v684_v45, %v1499_v36 }
 0x251   : > { %v1252_v49 = vpop.eup %1251  ;;  %v690_v51 = vmul.f32 %v682_v46, %v1503_v39 }
 0x252   : > { %v1254_v55 = vpop.eup %1253  ;;  %v706_v32 = vpack.c.bf16 %v692_v48, %v691_v47  ;;  %v679_v57 = vadd.f32 1.0, %v1252_v49 }
 0x253   : > { %v1256_v58 = vpop.eup %1255  ;;  %v705_v25 = vpack.c.bf16 %v690_v51, %v689_v50  ;;  %v677_v59 = vadd.f32 1.0, %v1254_v55 }
 0x254   : > { %v1258_v60 = vpop.eup %1257  ;;  %v680_v62 = vadd.f32 1.0, %v1256_v58  ;;  %v687_v63 = vmul.f32 0.5, %v679_v57 }
 0x255   : > { %1184 = vmatprep.mubr.bf16.mxu1 %v705_v25  ;;  %v678_v42 = vadd.f32 1.0, %v1258_v60  ;;  %v685_v0 = vmul.f32 0.5, %v677_v59 }
 0x256   : > { %1185 = vmatmul.mubr.bf16.vlgmr.msra.gmra.mrb[0].mxu1 %v706_v32  ;;  %v688_v29 = vmul.f32 0.5, %v680_v62  ;;  %v695_v1 = vmul.f32 %v687_v63, %v1514_v54 }
 0x257   : > { %v686_v36 = vmul.f32 0.5, %v678_v42  ;;  %v693_v39 = vmul.f32 %v685_v0, %v1516_v56 }
 0x258   : > { %v696_v31 = vmul.f32 %v688_v29, %v1522_v61 }
 0x259   : > { %v694_v6 = vmul.f32 %v686_v36, %v1526_v33  ;;  %v703_v33 = vld [vmem:[#allocation2 + $0x30] sm:$0xff] }
 0x25a   : > { %v708_v7 = vpack.c.bf16 %v696_v31, %v695_v1 }
 0x25b   : > { %v707_v8 = vpack.c.bf16 %v694_v6, %v693_v39 }
 0x25d   : > { %1188 = vmatprep.mubr.bf16.mxu1 %v707_v8 }
 0x25e   : > { %1189 = vmatmul.mubr.bf16.gmra.mrb[4].mxu1 %v708_v7 }
 0x329   : > { %v1186_v43 = vpop.f32.mrb[0].mxu1 }
 0x32a   : > { %v840_v13 = vadd.f32 %v1186_v43, %v699_v11  ;;  %v807_v16 = vpop.f32.mrb[1].mxu1 }
 0x32b   : > { %v838_v17 = vadd.f32 %v807_v16, %v697_v12  ;;  %v1187_v18 = vpop.f32.mrb[2].mxu1 }
 0x32c   : > { %848 = vst.msk [vmem:[#allocation2 + $0x10] sm:$0xff] %vm370_vm0, %v840_v13  ;;  %v841_v54 = vadd.f32 %v1187_v18, %v700_v52  ;;  %v810_v61 = vpop.f32.mrb[3].mxu1 }
 0x32d   : > { %846 = vst.msk [vmem:[#allocation2] sm:$0xff] %vm370_vm0, %v838_v17  ;;  %v839_v56 = vadd.f32 %v810_v61, %v698_v53 }
 0x32e   : > { %849 = vst.msk [vmem:[#allocation2 + $0x18] sm:$0xff] %vm370_vm0, %v841_v54 }
 0x32f   : > { %847 = vst.msk [vmem:[#allocation2 + $0x8] sm:$0xff] %vm370_vm0, %v839_v56 }
 0x331   : > { %v1190_v20 = vpop.f32.mrb[4].mxu1 }
 0x332   : > { %v844_v22 = vadd.f32 %v1190_v20, %v703_v33  ;;  %v823_v23 = vpop.f32.mrb[5].mxu1 }
 0x333   : > { %v875_v27 = vld [vmem:[#allocation2 + $0x10] sm:$0xff]  ;;  %v842_v30 = vadd.f32 %v823_v23, %v701_v19  ;;  %v1191_v34 = vpop.f32.mrb[6].mxu1 }
 0x334   : > { %v883_v35 = vadd.f32 %v1354_v4, %v875_v27  ;;  %v873_v37 = vld [vmem:[#allocation2] sm:$0xff]  ;;  %852 = vst.msk [vmem:[#allocation2 + $0x30] sm:$0xff] %vm370_vm0, %v844_v22  ;;  %v845_v38 = vadd.f32 %v1191_v34, %v704_v21  ;;  %v826_v40 = vpop.f32.mrb[7].mxu1 }
 0x335   : > { %v881_v41 = vadd.f32 %v1350_v2, %v873_v37  ;;  %v876_v24 = vld [vmem:[#allocation2 + $0x18] sm:$0xff]  ;;  %850 = vst.msk [vmem:[#allocation2 + $0x20] sm:$0xff] %vm370_vm0, %v842_v30  ;;  %v843_v44 = vadd.f32 %v826_v40, %v702_v26 }
 0x336   : > { %v898_v45 = vadd.f32 %v1081_v28, %v883_v35  ;;  %v884_v46 = vadd.f32 %v1356_v5, %v876_v24  ;;  %v874_v47 = vld [vmem:[#allocation2 + $0x8] sm:$0xff]  ;;  %853 = vst.msk [vmem:[#allocation2 + $0x38] sm:$0xff] %vm370_vm0, %v845_v38 }
 0x337   : > { %v896_v2 = vadd.f32 %v1081_v28, %v881_v41  ;;  %v882_v4 = vadd.f32 %v1352_v3, %v874_v47  ;;  %851 = vst.msk [vmem:[#allocation2 + $0x28] sm:$0xff] %vm370_vm0, %v843_v44 }
 0x338   : > { %v1094_v5 = vpack.c.bf16 %v898_v45, %v898_v45  ;;  %v899_v48 = vadd.f32 %v1081_v28, %v884_v46 }
 0x339   : > { %v1092_v49 = vpack.c.bf16 %v896_v2, %v896_v2  ;;  %v897_v50 = vadd.f32 %v1081_v28, %v882_v4 }
 0x33a   : > { %939 = vst.msk [vmem:[%s1567_s22 + $0x8] sm:$0xf] %vm936_vm1, %v1094_v5  ;;  %v1095_v51 = vpack.c.bf16 %v899_v48, %v899_v48 }
 0x33b   : > { %937 = vst.msk [vmem:[%s1567_s22] sm:$0xf] %vm936_vm1, %v1092_v49  ;;  %v1093_v55 = vpack.c.bf16 %v897_v50, %v897_v50  ;;  %v879_v32 = vld [vmem:[#allocation2 + $0x30] sm:$0xff] }
 0x33c   : > { %940 = vst.msk [vmem:[%s1567_s22 + $0xc] sm:$0xf] %vm936_vm1, %v1095_v51  ;;  %v887_v57 = vadd.f32 %v1370_v14, %v879_v32  ;;  %v877_v3 = vld [vmem:[#allocation2 + $0x20] sm:$0xff] }
 0x33d   : > { %938 = vst.msk [vmem:[%s1567_s22 + $0x4] sm:$0xf] %vm936_vm1, %v1093_v55  ;;  %v885_v58 = vadd.f32 %v1362_v9, %v877_v3  ;;  %v880_v25 = vld [vmem:[#allocation2 + $0x38] sm:$0xff] }
 0x33e   : > { %v902_v59 = vadd.f32 %v1081_v28, %v887_v57  ;;  %v888_v60 = vadd.f32 %v1372_v15, %v880_v25  ;;  %v878_v62 = vld [vmem:[#allocation2 + $0x28] sm:$0xff] }
 0x33f   : > { %v900_v63 = vadd.f32 %v1081_v28, %v885_v58  ;;  %v886_v42 = vadd.f32 %v1364_v10, %v878_v62 }
 0x340   : > { %v1098_v0 = vpack.c.bf16 %v902_v59, %v902_v59  ;;  %v903_v29 = vadd.f32 %v1081_v28, %v888_v60 }
 0x341   : > { %v1096_v36 = vpack.c.bf16 %v900_v63, %v900_v63  ;;  %v901_v14 = vadd.f32 %v1081_v28, %v886_v42 }
 0x342   : > { %943 = vst.msk [vmem:[%s1567_s22 + $0x18] sm:$0xf] %vm936_vm1, %v1098_v0  ;;  %v1099_v1 = vpack.c.bf16 %v903_v29, %v903_v29 }
 0x343   : > { %941 = vst.msk [vmem:[%s1567_s22 + $0x10] sm:$0xf] %vm936_vm1, %v1096_v36  ;;  %v1097_v31 = vpack.c.bf16 %v901_v14, %v901_v14 }
 0x344   : > { %944 = vst.msk [vmem:[%s1567_s22 + $0x1c] sm:$0xf] %vm936_vm1, %v1099_v1 }
 0x345   : > { %942 = vst.msk [vmem:[%s1567_s22 + $0x14] sm:$0xf] %vm936_vm1, %v1097_v31 }
 0x346 PF: > { %s17_s26 = sadd.s32 1, %s1281_s26   ;;  %s1608_s24 = smov %s1277_s25 }
 0x347   : > { %p14_p5 = scmp.ge.s32.totalorder %s17_s26, 4   ;;  %s1609_s25 = smov %s1611_s27 }
 0x349   :  { %16 = sbr.rel (!%p14_p5) target bundleno = 2 (0x2), region = 95 }

// kernel: forward.12
= control target key start
LH: loop header
LB: loop body
LE: loop exit
PB: predicated region body
PF: predicated region fallthrough
CT: control target
= control target key end

     0   :  { %s2225_s27 = smov 0   ;;  %s2635_s0 = inlined_call_operand.vmem [shape: bf16[8,16,32], index: 0, kind: input, shape index: {}]   ;;  %s2636_s1 = inlined_call_operand.vmem [shape: f32[1,32], index: 1, kind: input, shape index: {}]   ;;  %s2637_s2 = inlined_call_operand.vmem [shape: f32[1,32], index: 2, kind: input, shape index: {}]   ;;  %s2638_s3 = inlined_call_operand.vmem [shape: bf16[32,96], index: 3, kind: input, shape index: {}]   ;;  %s2639_s4 = inlined_call_operand.vmem [shape: f32[1,96], index: 4, kind: input, shape index: {}]   ;;  %s2640_s5 = inlined_call_operand.vmem [shape: f32[2,16,16], index: 5, kind: input, shape index: {}]   ;;  %s2641_s6 = inlined_call_operand.vmem [shape: bf16[32,32], index: 6, kind: input, shape index: {}]   ;;  %s2642_s7 = inlined_call_operand.vmem [shape: f32[1,32], index: 7, kind: input, shape index: {}]   ;;  %s2643_s8 = inlined_call_operand.vmem [shape: bf16[8,16,32], index: 8, kind: output, shape index: {}]  }
   0x1 LB: > { %s1812_s28 = sadd.s32 4294967295, %s2170_s27   ;;  %p1816_p0 = scmp.ge.s32.totalorder %s2170_s27, 1  ;;  %s2170_s27 = sphi %s2225_s27, %s18_s27  }
   0x2   : > { %p264_p1 = scmp.lt.s32.totalorder %s2170_s27, 3 }
   0x4   : > { %p265_p2 = pnand %p1816_p0, %p264_p1 }
   0x5   : > { %s1817_s29 = sshll.u32 (!%p265_p2), %s1812_s28, 2  ;;  %vm333_vm0 = vcmask (!%p265_p2), 261120   ;;  %v2080_v60 = vld [vmem:[%s2638_s3] sm:$0xff] (!%p265_p2)   ;;  %v2081_v61 = vld [vmem:[%s2638_s3 + $0x8] sm:$0xff] (!%p265_p2)   ;;  %vm2173_vm1 = vmmov (!%p265_p2), 0   ;;  %s2174_s22 = smov (!%p265_p2), 96  }
   0x6   : > { %268 = sbr.rel (%p265_p2) target bundleno = 2499 (0x9c3), region = 52  ;;  %p301_p3 = scmp.lt.s32.totalorder (!%p265_p2), %s1817_s29, 7  ;;  %1940 = vmatprep.subr.bf16.mxu0 (!%p265_p2), %v2080_v60  ;;  %2060 = vmatprep.subr.bf16.mxu1 (!%p265_p2), %v2080_v60  ;;  %vm578_vm2 = vcmask (!%p265_p2), 130048   ;;  %vm1745_vm3 = vcmask (!%p265_p2), 257024  }
   0x7   : > { %1941 = vmatpush3.bf16.msra.mxu0 (!%p265_p2), %v2080_v60  ;;  %2062 = vmatpush3.bf16.msra.mxu1 (!%p265_p2), %v2080_v60  ;;  %s2175_s28 = smov (!%p265_p2), 64   ;;  %s2176_s9 = smov (!%p265_p2), 80  }
   0x8   : > { %1942 = vmatprep.subr.bf16.mxu0 (!%p265_p2), %v2081_v61  ;;  %2061 = vmatprep.subr.bf16.mxu1 (!%p265_p2), %v2081_v61  ;;  %s2177_s10 = smov (!%p265_p2), 112   ;;  %s2178_s15 = smov (!%p265_p2), 48  }
   0x9   : > { %s2179_s20 = smov (!%p265_p2), 16  }
   0xb   : > { %1943 = vmatpush3.bf16.msra.mxu0 (!%p265_p2), %v2081_v61  ;;  %2063 = vmatpush3.bf16.msra.mxu1 (!%p265_p2), %v2081_v61 }
   0xd   : > { %s2645_s29 = smov (!%p301_p3, %s1817_s29), 7 }
   0xe   : > { %s1867_s30 = sshll.u32 %s2645_s29, 3 }
   0xf   : > { %s305_s11 = scalar_lea.vmem %s2635_s0, %s1867_s30  ;;  %s2608_s25 = scalar_lea.vmem %s2643_s8, %s1867_s30 }
  0x10   : > { %v1878_v0 = vld [vmem:[%s305_s11] sm:$0xff]   ;;  %v1893_v1 = vld [vmem:[%s305_s11 + $0x8] sm:$0xff]   ;;  %v1894_v6 = vld [vmem:[%s305_s11 + $0x10] sm:$0xff]  }
  0x11   : > { %v2241_v2 = vunpack.c.l.bf16 %v1878_v0  ;;  %v2243_v3 = vunpack.c.l.bf16 %v1893_v1  ;;  %v2245_v4 = vunpack.c.h.bf16 %v1878_v0  ;;  %v2247_v5 = vunpack.c.h.bf16 %v1893_v1  ;;  %v1895_v13 = vld [vmem:[%s305_s11 + $0x18] sm:$0xff]  }
  0x12   : > { %v2257_v11 = vunpack.c.l.bf16 %v1894_v6  ;;  %v2259_v12 = vunpack.c.h.bf16 %v1894_v6  ;;  %v2265_v16 = vunpack.c.l.bf16 %v1895_v13  ;;  %v2267_v17 = vunpack.c.h.bf16 %v1895_v13 }
  0x13   : > { %v334_v7 = vsel %vm333_vm0, %v2241_v2, 0.0  ;;  %v340_v8 = vsel %vm333_vm0, %v2243_v3, 0.0  ;;  %v337_v9 = vsel %vm333_vm0, %v2245_v4, 0.0  ;;  %v343_v10 = vsel %vm333_vm0, %v2247_v5, 0.0 }
  0x14   : > { %335 = vadd.xlane.f32.xlu0 %v334_v7  ;;  %341 = vadd.xlane.f32.xlu1 %v340_v8  ;;  %v346_v14 = vsel %vm333_vm0, %v2257_v11, 0.0  ;;  %v349_v15 = vsel %vm333_vm0, %v2259_v12, 0.0  ;;  %v352_v18 = vsel %vm333_vm0, %v2265_v16, 0.0  ;;  %v355_v19 = vsel %vm333_vm0, %v2267_v17, 0.0 }
  0x18   : > { %338 = vadd.xlane.f32.xlu0 %v337_v9  ;;  %344 = vadd.xlane.f32.xlu1 %v343_v10 }
  0x1c   : > { %347 = vadd.xlane.f32.xlu0 %v346_v14  ;;  %350 = vadd.xlane.f32.xlu1 %v349_v15 }
  0x20   : > { %353 = vadd.xlane.f32.xlu0 %v352_v18  ;;  %356 = vadd.xlane.f32.xlu1 %v355_v19 }
  0xa1   : > { %v336_v20 = vpop.xlane.xlu0 %335  ;;  %v342_v21 = vpop.xlane.xlu1 %341 }
  0xa2   : > { %v359_v22 = vmul.f32 0.03125, %v336_v20  ;;  %v361_v23 = vmul.f32 0.03125, %v342_v21 }
  0xa4   : > { %v2274_v24 = vsub.f32 %v2241_v2, %v359_v22  ;;  %v2277_v25 = vsub.f32 %v2243_v3, %v361_v23 }
  0xa5   : > { %v339_v26 = vpop.xlane.xlu0 %338  ;;  %v345_v27 = vpop.xlane.xlu1 %344 }
  0xa6   : > { %v360_v28 = vmul.f32 0.03125, %v339_v26  ;;  %v362_v29 = vmul.f32 0.03125, %v345_v27  ;;  %v375_v30 = vmul.f32 %v2274_v24, %v2274_v24  ;;  %v377_v31 = vmul.f32 %v2277_v25, %v2277_v25 }
  0xa8   : > { %v2284_v32 = vsub.f32 %v2245_v4, %v360_v28  ;;  %v2287_v33 = vsub.f32 %v2247_v5, %v362_v29  ;;  %v383_v34 = vsel %vm333_vm0, %v375_v30, 0.0  ;;  %v389_v37 = vsel %vm333_vm0, %v377_v31, 0.0 }
  0xa9   : > { %384 = vadd.xlane.f32.xlu0 %v383_v34  ;;  %v348_v35 = vpop.xlane.xlu0 %347  ;;  %v351_v36 = vpop.xlane.xlu1 %350 }
  0xaa   : > { %v363_v38 = vmul.f32 0.03125, %v348_v35  ;;  %v364_v39 = vmul.f32 0.03125, %v351_v36  ;;  %v376_v40 = vmul.f32 %v2284_v32, %v2284_v32  ;;  %v378_v41 = vmul.f32 %v2287_v33, %v2287_v33  ;;  %v1823_v35 = vld [vmem:[%s2636_s1] ss:$0 sm:$0xff] }
  0xac   : > { %v2296_v42 = vsub.f32 %v2257_v11, %v363_v38  ;;  %v2299_v43 = vsub.f32 %v2259_v12, %v364_v39  ;;  %v386_v44 = vsel %vm333_vm0, %v376_v40, 0.0  ;;  %v392_v47 = vsel %vm333_vm0, %v378_v41, 0.0 }
  0xad   : > { %390 = vadd.xlane.f32.xlu0 %v389_v37  ;;  %387 = vadd.xlane.f32.xlu1 %v386_v44  ;;  %v354_v45 = vpop.xlane.xlu0 %353  ;;  %v357_v46 = vpop.xlane.xlu1 %356 }
  0xae   : > { %v365_v48 = vmul.f32 0.03125, %v354_v45  ;;  %v366_v49 = vmul.f32 0.03125, %v357_v46  ;;  %v379_v50 = vmul.f32 %v2296_v42, %v2296_v42  ;;  %v380_v51 = vmul.f32 %v2299_v43, %v2299_v43 }
  0xb0   : > { %v2308_v52 = vsub.f32 %v2265_v16, %v365_v48  ;;  %v2311_v53 = vsub.f32 %v2267_v17, %v366_v49  ;;  %v395_v54 = vsel %vm333_vm0, %v379_v50, 0.0  ;;  %v398_v55 = vsel %vm333_vm0, %v380_v51, 0.0 }
  0xb1   : > { %393 = vadd.xlane.f32.xlu1 %v392_v47  ;;  %396 = vadd.xlane.f32.xlu0 %v395_v54 }
  0xb2   : > { %v381_v56 = vmul.f32 %v2308_v52, %v2308_v52  ;;  %v382_v57 = vmul.f32 %v2311_v53, %v2311_v53 }
  0xb4   : > { %v401_v58 = vsel %vm333_vm0, %v381_v56, 0.0  ;;  %v404_v59 = vsel %vm333_vm0, %v382_v57, 0.0 }
  0xb5   : > { %399 = vadd.xlane.f32.xlu1 %v398_v55  ;;  %402 = vadd.xlane.f32.xlu0 %v401_v58 }
  0xb9   : > { %405 = vadd.xlane.f32.xlu1 %v404_v59 }
 0x136   : > { %v385_v62 = vpop.xlane.xlu0 %384 }
 0x137   : > { %v407_v63 = vmul.f32 0.03125, %v385_v62 }
 0x139   : > { %v415_v0 = vadd.f32 1e-05, %v407_v63 }
 0x13a   : > { %v388_v1 = vpop.xlane.xlu1 %387  ;;  %v391_v6 = vpop.xlane.xlu0 %390 }
 0x13b   : > { %2084 = vrsqrt.f32 %v415_v0  ;;  %v408_v7 = vmul.f32 0.03125, %v388_v1  ;;  %v409_v8 = vmul.f32 0.03125, %v391_v6 }
 0x13d   : > { %v416_v9 = vadd.f32 1e-05, %v408_v7  ;;  %v417_v10 = vadd.f32 1e-05, %v409_v8 }
 0x13e   : > { %v394_v13 = vpop.xlane.xlu1 %393  ;;  %v397_v14 = vpop.xlane.xlu0 %396 }
 0x13f   : > { %2086 = vrsqrt.f32 %v416_v9  ;;  %v410_v15 = vmul.f32 0.03125, %v394_v13  ;;  %v411_v18 = vmul.f32 0.03125, %v397_v14 }
 0x140   : > { %2088 = vrsqrt.f32 %v417_v10  ;;  %v1825_v10 = vld [vmem:[%s2639_s4] ss:$0 sm:$0xff] }
 0x141   : > { %v418_v19 = vadd.f32 1e-05, %v410_v15  ;;  %v419_v20 = vadd.f32 1e-05, %v411_v18 }
 0x142   : > { %v400_v21 = vpop.xlane.xlu1 %399  ;;  %v403_v22 = vpop.xlane.xlu0 %402 }
 0x143   : > { %2090 = vrsqrt.f32 %v418_v19  ;;  %v412_v23 = vmul.f32 0.03125, %v400_v21  ;;  %v413_v26 = vmul.f32 0.03125, %v403_v22 }
 0x144   : > { %2092 = vrsqrt.f32 %v419_v20 }
 0x145   : > { %v2085_v27 = vpop.eup %2084  ;;  %v420_v28 = vadd.f32 1e-05, %v412_v23  ;;  %v421_v29 = vadd.f32 1e-05, %v413_v26 }
 0x146   : > { %v406_v30 = vpop.xlane.xlu1 %405  ;;  %v431_v31 = vmul.f32 %v2085_v27, %v2274_v24  ;;  %v1824_v24 = vld [vmem:[%s2637_s2] ss:$0 sm:$0xff] }
 0x147   : > { %2094 = vrsqrt.f32 %v420_v28  ;;  %v414_v34 = vmul.f32 0.03125, %v406_v30 }
 0x148   : > { %2096 = vrsqrt.f32 %v421_v29  ;;  %v445_v40 = vmul.f32 %v1823_v35, %v431_v31 }
 0x149   : > { %v2087_v36 = vpop.eup %2086  ;;  %v422_v37 = vadd.f32 1e-05, %v414_v34 }
 0x14a   : > { %v2089_v38 = vpop.eup %2088  ;;  %v432_v39 = vmul.f32 %v2087_v36, %v2284_v32  ;;  %v459_v48 = vadd.f32 %v1824_v24, %v445_v40 }
 0x14b   : > { %v433_v41 = vmul.f32 %v2089_v38, %v2277_v25  ;;  %2098 = vrsqrt.f32 %v422_v37 }
 0x14c   : > { %v446_v44 = vmul.f32 %v1823_v35, %v432_v39 }
 0x14d   : > { %v2091_v45 = vpop.eup %2090  ;;  %v447_v50 = vmul.f32 %v1823_v35, %v433_v41 }
 0x14e   : > { %v2093_v46 = vpop.eup %2092  ;;  %v434_v47 = vmul.f32 %v2091_v45, %v2287_v33  ;;  %v460_v49 = vadd.f32 %v1824_v24, %v446_v44 }
 0x14f   : > { %v435_v51 = vmul.f32 %v2093_v46, %v2296_v42  ;;  %v461_v25 = vadd.f32 %v1824_v24, %v447_v50 }
 0x150   : > { %v467_v54 = vpack.c.bf16 %v460_v49, %v459_v48  ;;  %v448_v32 = vmul.f32 %v1823_v35, %v434_v47  ;;  %v784_v48 = vld [vmem:[%s2640_s5] sm:$0xff] }
 0x151   : > { %v2095_v55 = vpop.eup %2094  ;;  %v449_v59 = vmul.f32 %v1823_v35, %v435_v51 }
 0x152   : > { %v2097_v56 = vpop.eup %2096  ;;  %1944 = vmatprep.mubr.msk.bf16.mxu0 %vm333_vm0, %v467_v54  ;;  %v462_v57 = vadd.f32 %v1824_v24, %v448_v32  ;;  %v436_v58 = vmul.f32 %v2095_v55, %v2299_v43  ;;  %v785_v54 = vld [vmem:[%s2640_s5 + $0x8] sm:$0xff] }
 0x153   : > { %v437_v60 = vmul.f32 %v2097_v56, %v2308_v52  ;;  %v463_v42 = vadd.f32 %v1824_v24, %v449_v59  ;;  %v2172_v52 = vmov 0.0  }
 0x154   : > { %v468_v61 = vpack.c.bf16 %v462_v57, %v461_v25  ;;  %v450_v33 = vmul.f32 %v1823_v35, %v436_v58  ;;  %1952 = vmatprep.subr.bf16.mxu1 %v2172_v52  ;;  %1964 = vmatprep.subr.bf16.mxu0 %v2172_v52 }
 0x155   : > { %v2099_v62 = vpop.eup %2098  ;;  %v451_v1 = vmul.f32 %v1823_v35, %v437_v60 }
 0x156   : > { %v438_v63 = vmul.f32 %v2099_v62, %v2311_v53  ;;  %1945 = vmatmul.mubr.msk.bf16.vlgmr.msra.gmra.mrb[0].mxu0 %vm333_vm0, %v468_v61  ;;  %v464_v0 = vadd.f32 %v1824_v24, %v450_v33 }
 0x157   : > { %v465_v8 = vadd.f32 %v1824_v24, %v451_v1  ;;  %1966 = vmatprep.mubr.msk.bf16.mxu0 %vm2173_vm1, %v2172_v52 }
 0x158   : > { %v469_v6 = vpack.c.bf16 %v464_v0, %v463_v42  ;;  %v452_v7 = vmul.f32 %v1823_v35, %v438_v63 }
 0x15a   : > { %1948 = vmatprep.mubr.msk.bf16.mxu1 %vm333_vm0, %v469_v6  ;;  %v466_v9 = vadd.f32 %v1824_v24, %v452_v7 }
 0x15c   : > { %v470_v43 = vpack.c.bf16 %v466_v9, %v465_v8 }
 0x15e   : > { %1949 = vmatmul.mubr.msk.bf16.vlgmr.msra.gmra.mrb[0].mxu1 %vm333_vm0, %v470_v43 }
 0x15f   : > { %1954 = vmatprep.mubr.msk.bf16.mxu1 %vm2173_vm1, %v2172_v52 }
 0x229   : > { %v1946_v53 = vpop.f32.mrb[0].mxu0 }
 0x22a   : > { %v540_v13 = vpop.f32.mrb[1].mxu0  ;;  %v549_v15 = vadd.f32 %v1946_v53, %v1825_v10 }
 0x22b   : > { %v1947_v14 = vpop.f32.mrb[2].mxu0  ;;  %v541_v20 = vadd.f32 %v1825_v10, %v540_v13 }
 0x22c   : > { %v552_v18 = vadd.f32 %v1947_v14, %v1825_v10  ;;  %v543_v19 = vpop.f32.mrb[3].mxu0 }
 0x22d   : > { %v544_v21 = vadd.f32 %v1825_v10, %v543_v19 }
 0x22e   : > { %v2354_v22 = vpack.c.bf16 %v552_v18, %v549_v15 }
 0x22f   : > { %v2356_v23 = vpack.c.bf16 %v544_v21, %v541_v20 }
 0x230   : > { %627 = vrot.lane.b32.xlu1 %v2354_v22, %s2174_s22 }
 0x231   : > { %576 = vrot.lane.b32.xlu0 %v2356_v23, %s2174_s22  ;;  %v1950_v26 = vpop.f32.mrb[0].mxu1 }
 0x232   : > { %v556_v27 = vpop.f32.mrb[1].mxu1  ;;  %v565_v29 = vadd.f32 %v1950_v26, %v1825_v10 }
 0x233   : > { %v1951_v28 = vpop.f32.mrb[2].mxu1  ;;  %v557_v34 = vadd.f32 %v1825_v10, %v556_v27 }
 0x234   : > { %v568_v30 = vadd.f32 %v1951_v28, %v1825_v10  ;;  %v559_v31 = vpop.f32.mrb[3].mxu1 }
 0x235   : > { %v560_v35 = vadd.f32 %v1825_v10, %v559_v31 }
 0x236   : > { %v2360_v36 = vpack.c.bf16 %v568_v30, %v565_v29 }
 0x237   : > { %v2362_v37 = vpack.c.bf16 %v560_v35, %v557_v34 }
 0x239   : > { %677 = vrot.lane.b32.xlu1 %v2362_v37, %s2174_s22 }
 0x23d   : > { %727 = vrot.lane.b32.xlu1 %v2360_v36, %s2174_s22 }
 0x2a2   : > { %v628_v40 = vpop.permute.xlu1 %627 }
 0x2a3   : > { %v577_v38 = vpop.permute.xlu0 %576  ;;  %v633_v24 = vsel %vm578_vm2, %v628_v40, 0 }
 0x2a4   : > { %v583_v39 = vsel %vm578_vm2, %v577_v38, 0 }
 0x2a5   : > { %1953 = vmatpush3.bf16.xpose.msra.mxu1 %v583_v39 }
 0x2a6   : > { %1958 = vmatprep.subr.bf16.mxu1 %v2172_v52 }
 0x2ab   : > { %v678_v41 = vpop.permute.xlu1 %677 }
 0x2ac   : > { %v683_v44 = vsel %vm578_vm2, %v678_v41, 0  ;;  %1955 = vmatmul.mubr.msk.bf16.vlgmr.msra.gmra.mrb[4].mxu1 %vm578_vm2, %v2356_v23 }
 0x2ad   : > { %1959 = vmatpush3.bf16.xpose.msra.mxu1 %v633_v24  ;;  %1965 = vmatpush3.bf16.xpose.msra.mxu0 %v683_v44 }
 0x2ae   : > { %1960 = vmatprep.mubr.msk.bf16.mxu1 %vm2173_vm1, %v2172_v52  ;;  %1970 = vmatprep.subr.bf16.mxu1 %v2172_v52 }
 0x2af   : > { %1976 = vmatprep.subr.bf16.mxu0 %v2172_v52  ;;  %v728_v45 = vpop.permute.xlu1 %727 }
 0x2b0   : > { %v733_v46 = vsel %vm578_vm2, %v728_v45, 0 }
 0x2b4   : > { %1961 = vmatmul.mubr.msk.bf16.vlgmr.msra.gmra.mrb[8].mxu1 %vm578_vm2, %v2354_v22  ;;  %1967 = vmatmul.mubr.msk.bf16.vlgmr.msra.gmra.mrb[4].mxu0 %vm578_vm2, %v2362_v37 }
 0x2b5   : > { %1971 = vmatpush3.bf16.xpose.msra.mxu1 %v733_v46  ;;  %1972 = vmatprep.mubr.msk.bf16.mxu1 %vm2173_vm1, %v2172_v52 }
 0x2b6   : > { %1982 = vmatprep.subr.bf16.mxu1 %v2172_v52  ;;  %1978 = vmatprep.mubr.msk.bf16.mxu0 %vm2173_vm1, %v2172_v52 }
 0x2bc   : > { %1973 = vmatmul.mubr.msk.bf16.vlgmr.msra.gmra.mrb[12].mxu1 %vm578_vm2, %v2360_v36 }
 0x2bd   : > { %1984 = vmatprep.mubr.msk.bf16.mxu1 %vm2173_vm1, %v2172_v52 }
 0x37f   : > { %v619_v47 = vpop.f32.mrb[4].mxu1 }
 0x380   : > { %v776_v49 = vmul.f32 0.25, %v619_v47  ;;  %v1956_v50 = vpop.f32.mrb[5].mxu1 }
 0x381   : > { %v622_v51 = vpop.f32.mrb[6].mxu1 }
 0x382   : > { %v777_v32 = vmul.f32 0.25, %v622_v51  ;;  %v1957_v55 = vpop.f32.mrb[7].mxu1  ;;  %v786_v56 = vadd.f32 %v784_v48, %v776_v49 }
 0x384   : > { %v794_v25 = vsel %vm578_vm2, %v786_v56, -inf  ;;  %v787_v57 = vadd.f32 %v785_v54, %v777_v32 }
 0x385   : > { %795 = vmax.xlane.f32.xlu0 %v794_v25 }
 0x386   : > { %v797_v58 = vsel %vm578_vm2, %v787_v57, -inf }
 0x387   : > { %v719_v59 = vpop.f32.mrb[4].mxu0  ;;  %798 = vmax.xlane.f32.xlu1 %v797_v58  ;;  %v669_v60 = vpop.f32.mrb[8].mxu1 }
 0x388   : > { %v778_v61 = vmul.f32 0.25, %v669_v60  ;;  %v1962_v33 = vpop.f32.mrb[9].mxu1  ;;  %v1968_v62 = vpop.f32.mrb[5].mxu0  ;;  %v780_v9 = vmul.f32 0.25, %v719_v59 }
 0x389   : > { %v672_v63 = vpop.f32.mrb[10].mxu1  ;;  %v722_v42 = vpop.f32.mrb[6].mxu0 }
 0x38a   : > { %v779_v0 = vmul.f32 0.25, %v672_v63  ;;  %v781_v1 = vmul.f32 0.25, %v722_v42  ;;  %v1963_v6 = vpop.f32.mrb[11].mxu1  ;;  %v1969_v7 = vpop.f32.mrb[7].mxu0  ;;  %v788_v8 = vadd.f32 %v784_v48, %v778_v61  ;;  %v790_v20 = vadd.f32 %v784_v48, %v780_v9 }
 0x38c   : > { %v800_v43 = vsel %vm578_vm2, %v788_v8, -inf  ;;  %v791_v53 = vadd.f32 %v785_v54, %v781_v1  ;;  %v2399_v10 = vadd.f32 %v785_v54, %v779_v0  ;;  %v806_v28 = vsel %vm578_vm2, %v790_v20, -inf }
 0x38d   : > { %801 = vmax.xlane.f32.xlu0 %v800_v43 }
 0x38e   : > { %v809_v13 = vsel %vm578_vm2, %v791_v53, -inf  ;;  %v803_v19 = vsel %vm578_vm2, %v2399_v10, -inf }
 0x38f   : > { %810 = vmax.xlane.f32.xlu1 %v809_v13  ;;  %v769_v14 = vpop.f32.mrb[12].mxu1 }
 0x390   : > { %v782_v15 = vmul.f32 0.25, %v769_v14  ;;  %v1974_v18 = vpop.f32.mrb[13].mxu1 }
 0x391   : > { %804 = vmax.xlane.f32.xlu0 %v803_v19  ;;  %v772_v21 = vpop.f32.mrb[14].mxu1 }
 0x392   : > { %v783_v26 = vmul.f32 0.25, %v772_v21  ;;  %v1975_v27 = vpop.f32.mrb[15].mxu1  ;;  %v792_v30 = vadd.f32 %v784_v48, %v782_v15 }
 0x394   : > { %v2405_v29 = vadd.f32 %v785_v54, %v783_v26  ;;  %v812_v34 = vsel %vm578_vm2, %v792_v30, -inf }
 0x395   : > { %807 = vmax.xlane.f32.xlu0 %v806_v28 }
 0x396   : > { %v815_v31 = vsel %vm578_vm2, %v2405_v29, -inf }
 0x397   : > { %816 = vmax.xlane.f32.xlu1 %v815_v31 }
 0x399   : > { %813 = vmax.xlane.f32.xlu0 %v812_v34 }
 0x412   : > { %v796_v35 = vpop.xlane.xlu0 %795 }
 0x413   : > { %v818_v38 = vsub.f32 %v786_v56, %v796_v35 }
 0x414   : > { %v799_v39 = vpop.xlane.xlu1 %798 }
 0x415   : > { %v826_v40 = vmul.f32 1.442695, %v818_v38  ;;  %v819_v41 = vsub.f32 %v787_v57, %v799_v39 }
 0x417   : > { %2100 = vpow2.f32 %v826_v40  ;;  %v828_v24 = vmul.f32 1.442695, %v819_v41 }
 0x419   : > { %2102 = vpow2.f32 %v828_v24 }
 0x41a   : > { %v802_v44 = vpop.xlane.xlu0 %801 }
 0x41b   : > { %v820_v50 = vsub.f32 %v788_v8, %v802_v44 }
 0x41c   : > { %v811_v45 = vpop.xlane.xlu1 %810 }
 0x41d   : > { %v823_v46 = vsub.f32 %v791_v53, %v811_v45  ;;  %v830_v25 = vmul.f32 1.442695, %v820_v50 }
 0x41e   : > { %v805_v47 = vpop.xlane.xlu0 %804 }
 0x41f   : > { %v836_v48 = vmul.f32 1.442695, %v823_v46  ;;  %v821_v42 = vsub.f32 %v2399_v10, %v805_v47 }
 0x421   : > { %v2410_v49 = vpop.eup %2100  ;;  %2104 = vpow2.f32 %v836_v48  ;;  %v832_v1 = vmul.f32 1.442695, %v821_v42 }
 0x422   : > { %v808_v51 = vpop.xlane.xlu0 %807  ;;  %v842_v54 = vsel %vm578_vm2, %v2410_v49, 0.0 }
 0x423   : > { %v2414_v32 = vpop.eup %2102  ;;  %v822_v55 = vsub.f32 %v790_v20, %v808_v51  ;;  %843 = vadd.xlane.f32.xlu0 %v842_v54 }
 0x424   : > { %v845_v56 = vsel %vm578_vm2, %v2414_v32, 0.0  ;;  %v817_v53 = vpop.xlane.xlu1 %816 }
 0x425   : > { %v834_v57 = vmul.f32 1.442695, %v822_v55  ;;  %846 = vadd.xlane.f32.xlu1 %v845_v56  ;;  %v825_v10 = vsub.f32 %v2405_v29, %v817_v53 }
 0x426   : > { %v814_v63 = vpop.xlane.xlu0 %813 }
 0x427   : > { %2106 = vpow2.f32 %v834_v57  ;;  %v824_v0 = vsub.f32 %v792_v30, %v814_v63  ;;  %v840_v13 = vmul.f32 1.442695, %v825_v10 }
 0x428   : > { %2108 = vpow2.f32 %v830_v25 }
 0x429   : > { %v838_v6 = vmul.f32 1.442695, %v824_v0  ;;  %2110 = vpow2.f32 %v832_v1 }
 0x42b   : > { %v2418_v58 = vpop.eup %2104  ;;  %2112 = vpow2.f32 %v838_v6 }
 0x42c   : > { %v857_v59 = vsel %vm578_vm2, %v2418_v58, 0.0  ;;  %2114 = vpow2.f32 %v840_v13 }
 0x42d   : > { %858 = vadd.xlane.f32.xlu1 %v857_v59 }
 0x431   : > { %v2422_v60 = vpop.eup %2106 }
 0x432   : > { %v854_v61 = vsel %vm578_vm2, %v2422_v60, 0.0  ;;  %v2426_v33 = vpop.eup %2108 }
 0x433   : > { %855 = vadd.xlane.f32.xlu0 %v854_v61  ;;  %v848_v62 = vsel %vm578_vm2, %v2426_v33, 0.0  ;;  %v2435_v7 = vpop.eup %2110 }
 0x434   : > { %v851_v9 = vsel %vm578_vm2, %v2435_v7, 0.0 }
 0x435   : > { %v2437_v8 = vpop.eup %2112 }
 0x436   : > { %v860_v43 = vsel %vm578_vm2, %v2437_v8, 0.0  ;;  %v2449_v14 = vpop.eup %2114 }
 0x437   : > { %849 = vadd.xlane.f32.xlu0 %v848_v62  ;;  %v863_v15 = vsel %vm578_vm2, %v2449_v14, 0.0 }
 0x43e   : > { %933 = vrot.lane.b32.xlu1 %v2354_v22, %s2175_s28 }
 0x442   : > { %980 = vrot.lane.b32.xlu1 %v2362_v37, %s2175_s28 }
 0x446   : > { %1027 = vrot.lane.b32.xlu1 %v2360_v36, %s2175_s28 }
 0x44d   : > { %886 = vrot.lane.b32.xlu0 %v2356_v23, %s2175_s28 }
 0x46a   : > { %852 = vadd.xlane.f32.xlu1 %v851_v9 }
 0x46c   : > { %861 = vadd.xlane.f32.xlu0 %v860_v43 }
 0x47b   : > { %1131 = vrot.lane.b32.xlu1 %v2354_v22, %s2176_s9 }
 0x482   : > { %1080 = vrot.lane.b32.xlu0 %v2356_v23, %s2176_s9 }
 0x486   : > { %1078 = vrot.lane.b32.xlu0 %v2356_v23, %s2177_s10 }
 0x48a   : > { %1129 = vrot.lane.b32.xlu0 %v2354_v22, %s2177_s10 }
 0x48e   : > { %1180 = vrot.lane.b32.xlu0 %v2362_v37, %s2177_s10 }
 0x49f   : > { %864 = vadd.xlane.f32.xlu1 %v863_v15 }
 0x4b0   : > { %1182 = vrot.lane.b32.xlu1 %v2362_v37, %s2176_s9  ;;  %v844_v19 = vpop.xlane.xlu0 %843 }
 0x4b2   : > { %v847_v18 = vpop.xlane.xlu1 %846 }
 0x4b3   : > { %2116 = vrcp.f32 %v847_v18 }
 0x4b4   : > { %1233 = vrot.lane.b32.xlu1 %v2360_v36, %s2176_s9  ;;  %2118 = vrcp.f32 %v844_v19 }
 0x4b8   : > { %1231 = vrot.lane.b32.xlu1 %v2360_v36, %s2177_s10 }
 0x4ba   : > { %v859_v20 = vpop.xlane.xlu1 %858 }
 0x4bd   : > { %v2117_v27 = vpop.eup %2116 }
 0x4be   : > { %v934_v21 = vpop.permute.xlu1 %933  ;;  %v2119_v29 = vpop.eup %2118  ;;  %v875_v30 = vmul.f32 %v2117_v27, %v2414_v32 }
 0x4bf   : > { %1983 = vmatpush3.bf16.msra.mxu1 %v934_v21  ;;  %v874_v31 = vmul.f32 %v2119_v29, %v2410_v49 }
 0x4c0   : > { %v856_v26 = vpop.xlane.xlu0 %855  ;;  %1994 = vmatprep.subr.bf16.mxu1 %v2172_v52 }
 0x4c1   : > { %2120 = vrcp.f32 %v856_v26  ;;  %v882_v35 = vpack.c.bf16 %v875_v30, %v874_v31  ;;  %v1844_v26 = vld [vmem:[%s2640_s5 + $0x10] sm:$0xff] }
 0x4c2   : > { %2122 = vrcp.f32 %v859_v20  ;;  %v981_v39 = vpop.permute.xlu1 %980 }
 0x4c4   : > { %v850_v28 = vpop.xlane.xlu0 %849 }
 0x4c5   : > { %2124 = vrcp.f32 %v850_v28 }
 0x4c6   : > { %v1028_v45 = vpop.permute.xlu1 %1027 }
 0x4c8   : > { %v887_v34 = vpop.permute.xlu0 %886 }
 0x4c9   : > { %1977 = vmatpush3.bf16.msra.mxu0 %v887_v34  ;;  %v1845_v34 = vld [vmem:[%s2640_s5 + $0x18] sm:$0xff] }
 0x4ca   : > { %1988 = vmatprep.subr.bf16.mxu0 %v2172_v52 }
 0x4cb   : > { %v2121_v38 = vpop.eup %2120 }
 0x4cc   : > { %1979 = vmatmul.mubr.msk.bf16.vlgmr.msra.gmra.mrb[8].mxu0 %vm578_vm2, %v882_v35  ;;  %v2123_v40 = vpop.eup %2122  ;;  %v878_v41 = vmul.f32 %v2121_v38, %v2422_v60 }
 0x4cd   : > { %1989 = vmatpush3.bf16.msra.mxu0 %v981_v39  ;;  %1990 = vmatprep.mubr.msk.bf16.mxu0 %vm2173_vm1, %v2172_v52  ;;  %v879_v24 = vmul.f32 %v2123_v40, %v2418_v58 }
 0x4ce   : > { %2000 = vmatprep.subr.bf16.mxu0 %v2172_v52 }
 0x4cf   : > { %v884_v44 = vpack.c.bf16 %v879_v24, %v878_v41  ;;  %v2125_v50 = vpop.eup %2124 }
 0x4d0   : > { %v876_v54 = vmul.f32 %v2125_v50, %v2426_v33 }
 0x4d4   : > { %1991 = vmatmul.mubr.msk.bf16.vlgmr.msra.gmra.mrb[12].mxu0 %vm578_vm2, %v884_v44 }
 0x4d5   : > { %2002 = vmatprep.mubr.msk.bf16.mxu0 %vm2173_vm1, %v2172_v52 }
 0x4f7   : > { %v853_v46 = vpop.xlane.xlu1 %852 }
 0x4f8   : > { %2126 = vrcp.f32 %v853_v46 }
 0x4f9   : > { %v862_v47 = vpop.xlane.xlu0 %861 }
 0x4fa   : > { %2128 = vrcp.f32 %v862_v47 }
 0x4fb   : > { %v1132_v25 = vpop.permute.xlu1 %1131 }
 0x4fc   : > { %v1137_v1 = vsel %vm578_vm2, %v1132_v25, 0 }
 0x4fd   : > { %v1081_v48 = vpop.permute.xlu0 %1080 }
 0x4fe   : > { %v1086_v49 = vsel %vm578_vm2, %v1081_v48, 0 }
 0x4ff   : > { %2001 = vmatpush3.bf16.xpose.msra.mxu0 %v1086_v49 }
 0x500   : > { %2012 = vmatprep.subr.bf16.mxu0 %v2172_v52 }
 0x501   : > { %v1079_v55 = vpop.permute.xlu0 %1078 }
 0x502   : > { %v2127_v51 = vpop.eup %2126 }
 0x503   : > { %v877_v32 = vmul.f32 %v2127_v51, %v2435_v7 }
 0x504   : > { %v2129_v61 = vpop.eup %2128 }
 0x505   : > { %v883_v56 = vpack.c.bf16 %v877_v32, %v876_v54  ;;  %v1130_v60 = vpop.permute.xlu0 %1129  ;;  %v880_v62 = vmul.f32 %v2129_v61, %v2437_v8 }
 0x506   : > { %2003 = vmatmul.mubr.msk.bf16.vlgmr.msra.gmra.mrb[16].mxu0 %vm578_vm2, %v1079_v55 }
 0x507   : > { %1985 = vmatmul.mubr.msk.bf16.vlgmr.msra.gmra.mrb[16].mxu1 %vm578_vm2, %v883_v56  ;;  %2014 = vmatprep.mubr.msk.bf16.mxu0 %vm2173_vm1, %v2172_v52 }
 0x508   : > { %1995 = vmatpush3.bf16.msra.mxu1 %v1028_v45  ;;  %1996 = vmatprep.mubr.msk.bf16.mxu1 %vm2173_vm1, %v2172_v52 }
 0x509   : > { %2006 = vmatprep.subr.bf16.mxu1 %v2172_v52  ;;  %v1181_v63 = vpop.permute.xlu0 %1180 }
 0x52c   : > { %v865_v57 = vpop.xlane.xlu1 %864 }
 0x52d   : > { %2130 = vrcp.f32 %v865_v57 }
 0x530   : > { %v1183_v58 = vpop.permute.xlu1 %1182 }
 0x531   : > { %v1188_v59 = vsel %vm578_vm2, %v1183_v58, 0 }
 0x532   : > { %2013 = vmatpush3.bf16.xpose.msra.mxu0 %v1188_v59 }
 0x533   : > { %2024 = vmatprep.subr.bf16.mxu0 %v2172_v52 }
 0x534   : > { %v1234_v6 = vpop.permute.xlu1 %1233 }
 0x535   : > { %v1239_v7 = vsel %vm578_vm2, %v1234_v6, 0 }
 0x537   : > { %v2131_v33 = vpop.eup %2130 }
 0x538   : > { %v881_v42 = vmul.f32 %v2131_v33, %v2449_v14  ;;  %v1232_v8 = vpop.permute.xlu1 %1231 }
 0x539   : > { %2015 = vmatmul.mubr.msk.bf16.vlgmr.msra.gmra.mrb[20].mxu0 %vm578_vm2, %v1181_v63 }
 0x53a   : > { %v885_v0 = vpack.c.bf16 %v881_v42, %v880_v62  ;;  %2026 = vmatprep.mubr.msk.bf16.mxu0 %vm2173_vm1, %v2172_v52 }
 0x53c   : > { %1997 = vmatmul.mubr.msk.bf16.vlgmr.msra.gmra.mrb[20].mxu1 %vm578_vm2, %v885_v0 }
 0x53d   : > { %2007 = vmatpush3.bf16.xpose.msra.mxu1 %v1137_v1  ;;  %2008 = vmatprep.mubr.msk.bf16.mxu1 %vm2173_vm1, %v2172_v52 }
 0x53e   : > { %2018 = vmatprep.subr.bf16.mxu1 %v2172_v52 }
 0x544   : > { %2009 = vmatmul.mubr.msk.bf16.vlgmr.msra.gmra.mrb[24].mxu1 %vm578_vm2, %v1130_v60 }
 0x545   : > { %2019 = vmatpush3.bf16.xpose.msra.mxu1 %v1239_v7  ;;  %2020 = vmatprep.mubr.msk.bf16.mxu1 %vm2173_vm1, %v2172_v52 }
 0x546   : > { %2030 = vmatprep.subr.bf16.mxu1 %v2172_v52 }
 0x54c   : > { %2021 = vmatmul.mubr.msk.bf16.vlgmr.msra.gmra.mrb[28].mxu1 %vm578_vm2, %v1232_v8 }
 0x54d   : > { %2032 = vmatprep.mubr.msk.bf16.mxu1 %vm2173_vm1, %v2172_v52 }
 0x59f   : > { %v2500_v9 = vpop.f32.mrb[8].mxu0 }
 0x5a0   : > { %v1980_v43 = vpop.f32.mrb[9].mxu0 }
 0x5a1   : > { %v2502_v53 = vpop.f32.mrb[10].mxu0 }
 0x5a2   : > { %v1074_v10 = vpack.c.bf16 %v2502_v53, %v2500_v9  ;;  %v1981_v13 = vpop.f32.mrb[11].mxu0 }
 0x5a7   : > { %v2506_v14 = vpop.f32.mrb[12].mxu0 }
 0x5a8   : > { %v1992_v15 = vpop.f32.mrb[13].mxu0 }
 0x5a9   : > { %v2508_v18 = vpop.f32.mrb[14].mxu0 }
 0x5aa   : > { %v1076_v19 = vpack.c.bf16 %v2508_v18, %v2506_v14  ;;  %v1993_v20 = vpop.f32.mrb[15].mxu0 }
 0x5d9   : > { %v1122_v21 = vpop.f32.mrb[16].mxu0 }
 0x5da   : > { %v1282_v27 = vmul.f32 0.25, %v1122_v21  ;;  %v2515_v28 = vpop.f32.mrb[16].mxu1  ;;  %v2004_v29 = vpop.f32.mrb[17].mxu0 }
 0x5db   : > { %v1986_v30 = vpop.f32.mrb[17].mxu1  ;;  %v1125_v31 = vpop.f32.mrb[18].mxu0 }
 0x5dc   : > { %v1283_v35 = vmul.f32 0.25, %v1125_v31  ;;  %v2520_v38 = vpop.f32.mrb[18].mxu1  ;;  %v2005_v39 = vpop.f32.mrb[19].mxu0  ;;  %v1293_v40 = vadd.f32 %v1844_v26, %v1282_v27 }
 0x5dd   : > { %v1075_v41 = vpack.c.bf16 %v2520_v38, %v2515_v28  ;;  %v1987_v24 = vpop.f32.mrb[19].mxu1 }
 0x5de   : > { %v1301_v44 = vsel %vm578_vm2, %v1293_v40, -inf  ;;  %v1294_v45 = vadd.f32 %v1845_v34, %v1283_v35 }
 0x5df   : > { %1302 = vmax.xlane.f32.xlu0 %v1301_v44 }
 0x5e0   : > { %v1304_v46 = vsel %vm578_vm2, %v1294_v45, -inf }
 0x5e1   : > { %1305 = vmax.xlane.f32.xlu1 %v1304_v46 }
 0x60c   : > { %v1224_v47 = vpop.f32.mrb[20].mxu0 }
 0x60d   : > { %v2016_v48 = vpop.f32.mrb[21].mxu0  ;;  %v1286_v0 = vmul.f32 0.25, %v1224_v47 }
 0x60e   : > { %v1227_v49 = vpop.f32.mrb[22].mxu0 }
 0x60f   : > { %v1287_v50 = vmul.f32 0.25, %v1227_v49  ;;  %v2526_v51 = vpop.f32.mrb[20].mxu1  ;;  %v2017_v54 = vpop.f32.mrb[23].mxu0  ;;  %v1297_v15 = vadd.f32 %v1844_v26, %v1286_v0 }
 0x610   : > { %v1998_v32 = vpop.f32.mrb[21].mxu1 }
 0x611   : > { %v2528_v55 = vpop.f32.mrb[22].mxu1  ;;  %v1298_v56 = vadd.f32 %v1845_v34, %v1287_v50  ;;  %v1313_v29 = vsel %vm578_vm2, %v1297_v15, -inf }
 0x612   : > { %v1077_v25 = vpack.c.bf16 %v2528_v55, %v2526_v51  ;;  %v1999_v57 = vpop.f32.mrb[23].mxu1 }
 0x613   : > { %v1316_v58 = vsel %vm578_vm2, %v1298_v56, -inf }
 0x614   : > { %1317 = vmax.xlane.f32.xlu1 %v1316_v58 }
 0x617   : > { %v1173_v59 = vpop.f32.mrb[24].mxu1 }
 0x618   : > { %v1284_v60 = vmul.f32 0.25, %v1173_v59  ;;  %v2010_v61 = vpop.f32.mrb[25].mxu1 }
 0x619   : > { %v1176_v33 = vpop.f32.mrb[26].mxu1 }
 0x61a   : > { %v1285_v62 = vmul.f32 0.25, %v1176_v33  ;;  %v2011_v63 = vpop.f32.mrb[27].mxu1  ;;  %v1295_v42 = vadd.f32 %v1844_v26, %v1284_v60 }
 0x61c   : > { %v1307_v1 = vsel %vm578_vm2, %v1295_v42, -inf  ;;  %v1296_v6 = vadd.f32 %v1845_v34, %v1285_v62 }
 0x61d   : > { %1308 = vmax.xlane.f32.xlu0 %v1307_v1 }
 0x61e   : > { %v1310_v13 = vsel %vm578_vm2, %v1296_v6, -inf }
 0x61f   : > { %v1275_v7 = vpop.f32.mrb[28].mxu1 }
 0x620   : > { %v1288_v8 = vmul.f32 0.25, %v1275_v7  ;;  %v2022_v43 = vpop.f32.mrb[29].mxu1 }
 0x621   : > { %1311 = vmax.xlane.f32.xlu0 %v1310_v13  ;;  %v1278_v20 = vpop.f32.mrb[30].mxu1 }
 0x622   : > { %v1289_v21 = vmul.f32 0.25, %v1278_v20  ;;  %v2023_v27 = vpop.f32.mrb[31].mxu1  ;;  %v1299_v31 = vadd.f32 %v1844_v26, %v1288_v8 }
 0x624   : > { %v1300_v30 = vadd.f32 %v1845_v34, %v1289_v21  ;;  %v1319_v39 = vsel %vm578_vm2, %v1299_v31, -inf }
 0x625   : > { %1314 = vmax.xlane.f32.xlu0 %v1313_v29 }
 0x626   : > { %v1322_v35 = vsel %vm578_vm2, %v1300_v30, -inf }
 0x627   : > { %1323 = vmax.xlane.f32.xlu1 %v1322_v35 }
 0x629   : > { %1320 = vmax.xlane.f32.xlu0 %v1319_v39 }
 0x66c   : > { %v1303_v24 = vpop.xlane.xlu0 %1302 }
 0x66d   : > { %v1325_v44 = vsub.f32 %v1293_v40, %v1303_v24 }
 0x66e   : > { %v1306_v46 = vpop.xlane.xlu1 %1305 }
 0x66f   : > { %v1333_v47 = vmul.f32 1.442695, %v1325_v44  ;;  %v1326_v48 = vsub.f32 %v1294_v45, %v1306_v46 }
 0x671   : > { %2132 = vpow2.f32 %v1333_v47  ;;  %v1335_v49 = vmul.f32 1.442695, %v1326_v48 }
 0x673   : > { %2134 = vpow2.f32 %v1335_v49 }
 0x67b   : > { %v2538_v50 = vpop.eup %2132 }
 0x67c   : > { %v1349_v26 = vsel %vm578_vm2, %v2538_v50, 0.0 }
 0x67d   : > { %v2542_v34 = vpop.eup %2134  ;;  %1350 = vadd.xlane.f32.xlu0 %v1349_v26 }
 0x67e   : > { %v1352_v54 = vsel %vm578_vm2, %v2542_v34, 0.0 }
 0x67f   : > { %1353 = vadd.xlane.f32.xlu1 %v1352_v54 }
 0x6a1   : > { %v1318_v32 = vpop.xlane.xlu1 %1317 }
 0x6a2   : > { %v1330_v58 = vsub.f32 %v1298_v56, %v1318_v32 }
 0x6a4   : > { %v1343_v61 = vmul.f32 1.442695, %v1330_v58 }
 0x6aa   : > { %v1309_v40 = vpop.xlane.xlu0 %1308 }
 0x6ab   : > { %v1327_v57 = vsub.f32 %v1295_v42, %v1309_v40 }
 0x6ad   : > { %v1337_v45 = vmul.f32 1.442695, %v1327_v57 }
 0x6ae   : > { %v1312_v59 = vpop.xlane.xlu0 %1311 }
 0x6af   : > { %2136 = vpow2.f32 %v1337_v45  ;;  %v1328_v60 = vsub.f32 %v1296_v6, %v1312_v59 }
 0x6b1   : > { %v1339_v33 = vmul.f32 1.442695, %v1328_v60 }
 0x6b2   : > { %v1315_v62 = vpop.xlane.xlu0 %1314 }
 0x6b3   : > { %2138 = vpow2.f32 %v1339_v33  ;;  %v1329_v63 = vsub.f32 %v1297_v15, %v1315_v62 }
 0x6b4   : > { %2140 = vpow2.f32 %v1343_v61 }
 0x6b5   : > { %v1341_v0 = vmul.f32 1.442695, %v1329_v63 }
 0x6b6   : > { %v1321_v1 = vpop.xlane.xlu0 %1320 }
 0x6b7   : > { %2142 = vpow2.f32 %v1341_v0  ;;  %v1331_v7 = vsub.f32 %v1299_v31, %v1321_v1  ;;  %v1324_v31 = vpop.xlane.xlu1 %1323 }
 0x6b8   : > { %v1332_v35 = vsub.f32 %v1300_v30, %v1324_v31 }
 0x6b9   : > { %v2137_v8 = vpop.eup %2136  ;;  %v1345_v43 = vmul.f32 1.442695, %v1331_v7 }
 0x6ba   : > { %v1355_v13 = vsel %vm578_vm2, %v2137_v8, 0.0  ;;  %v1347_v39 = vmul.f32 1.442695, %v1332_v35 }
 0x6bb   : > { %2144 = vpow2.f32 %v1345_v43  ;;  %1356 = vadd.xlane.f32.xlu0 %v1355_v13 }
 0x6bc   : > { %2146 = vpow2.f32 %v1347_v39 }
 0x6bd   : > { %v2139_v56 = vpop.eup %2138 }
 0x6be   : > { %v1358_v42 = vsel %vm578_vm2, %v2139_v56, 0.0  ;;  %v2141_v6 = vpop.eup %2140 }
 0x6bf   : > { %1359 = vadd.xlane.f32.xlu1 %v1358_v42  ;;  %v1364_v15 = vsel %vm578_vm2, %v2141_v6, 0.0 }
 0x6c1   : > { %v2143_v20 = vpop.eup %2142 }
 0x6c2   : > { %v1361_v21 = vsel %vm578_vm2, %v2143_v20, 0.0 }
 0x6c3   : > { %1362 = vadd.xlane.f32.xlu0 %v1361_v21  ;;  %1365 = vadd.xlane.f32.xlu1 %v1364_v15 }
 0x6c5   : > { %v2550_v27 = vpop.eup %2144 }
 0x6c6   : > { %v1367_v29 = vsel %vm578_vm2, %v2550_v27, 0.0  ;;  %v2147_v24 = vpop.eup %2146 }
 0x6c7   : > { %1368 = vadd.xlane.f32.xlu0 %v1367_v29  ;;  %v1370_v44 = vsel %vm578_vm2, %v2147_v24, 0.0 }
 0x6d4   : > { %1440 = vrot.lane.b32.xlu1 %v2354_v22, %s2178_s15 }
 0x6d8   : > { %1487 = vrot.lane.b32.xlu1 %v2362_v37, %s2178_s15 }
 0x6dd   : > { %1393 = vrot.lane.b32.xlu0 %v2356_v23, %s2178_s15 }
 0x6fc   : > { %1371 = vadd.xlane.f32.xlu1 %v1370_v44 }
 0x70a   : > { %v1351_v46 = vpop.xlane.xlu0 %1350 }
 0x70c   : > { %v1354_v47 = vpop.xlane.xlu1 %1353 }
 0x70d   : > { %1534 = vrot.lane.b32.xlu1 %v2360_v36, %s2178_s15  ;;  %2148 = vrcp.f32 %v1354_v47 }
 0x70e   : > { %2150 = vrcp.f32 %v1351_v46 }
 0x717   : > { %v2149_v30 = vpop.eup %2148 }
 0x718   : > { %v2151_v49 = vpop.eup %2150  ;;  %v1382_v36 = vmul.f32 %v2149_v30, %v2542_v34 }
 0x719   : > { %v1381_v57 = vmul.f32 %v2151_v49, %v2538_v50 }
 0x71b   : > { %v1389_v60 = vpack.c.bf16 %v1382_v36, %v1381_v57 }
 0x748   : > { %v1357_v48 = vpop.xlane.xlu0 %1356 }
 0x749   : > { %2152 = vrcp.f32 %v1357_v48 }
 0x74c   : > { %v1360_v22 = vpop.xlane.xlu1 %1359 }
 0x74d   : > { %2154 = vrcp.f32 %v1360_v22 }
 0x750   : > { %v1363_v37 = vpop.xlane.xlu0 %1362  ;;  %v1366_v23 = vpop.xlane.xlu1 %1365 }
 0x751   : > { %2156 = vrcp.f32 %v1363_v37 }
 0x752   : > { %2158 = vrcp.f32 %v1366_v23 }
 0x753   : > { %v2153_v32 = vpop.eup %2152 }
 0x754   : > { %v1369_v26 = vpop.xlane.xlu0 %1368  ;;  %v1441_v54 = vpop.permute.xlu1 %1440  ;;  %v1383_v58 = vmul.f32 %v2153_v32, %v2137_v8 }
 0x755   : > { %2031 = vmatpush3.bf16.msra.mxu1 %v1441_v54  ;;  %2160 = vrcp.f32 %v1369_v26 }
 0x756   : > { %2042 = vmatprep.subr.bf16.mxu1 %v2172_v52 }
 0x757   : > { %v2155_v40 = vpop.eup %2154 }
 0x758   : > { %v1384_v45 = vmul.f32 %v2155_v40, %v2139_v56  ;;  %v1394_v59 = vpop.permute.xlu0 %1393  ;;  %v1488_v63 = vpop.permute.xlu1 %1487 }
 0x759   : > { %2025 = vmatpush3.bf16.msra.mxu0 %v1394_v59 }
 0x75a   : > { %v1390_v61 = vpack.c.bf16 %v1384_v45, %v1383_v58  ;;  %2036 = vmatprep.subr.bf16.mxu0 %v2172_v52 }
 0x75b   : > { %v2157_v33 = vpop.eup %2156 }
 0x75c   : > { %v2159_v62 = vpop.eup %2158  ;;  %2027 = vmatmul.mubr.msk.bf16.vlgmr.msra.gmra.mrb[24].mxu0 %vm578_vm2, %v1389_v60  ;;  %2033 = vmatmul.mubr.msk.bf16.vlgmr.msra.gmra.mrb[32].mxu1 %vm578_vm2, %v1390_v61  ;;  %v1385_v50 = vmul.f32 %v2157_v33, %v2143_v20 }
 0x75d   : > { %2037 = vmatpush3.bf16.msra.mxu0 %v1488_v63  ;;  %2038 = vmatprep.mubr.msk.bf16.mxu0 %vm2173_vm1, %v2172_v52  ;;  %v1386_v34 = vmul.f32 %v2159_v62, %v2141_v6  ;;  %v2083_v6 = vld [vmem:[%s2641_s6 + $0x8] sm:$0xff]  }
 0x75e   : > { %2044 = vmatprep.mubr.msk.bf16.mxu1 %vm2173_vm1, %v2172_v52  ;;  %v2082_v52 = vld [vmem:[%s2641_s6] sm:$0xff]  }
 0x75f   : > { %v1391_v0 = vpack.c.bf16 %v1386_v34, %v1385_v50  ;;  %v2161_v8 = vpop.eup %2160  ;;  %2048 = vmatprep.subr.bf16.mxu0 %v2082_v52 }
 0x760   : > { %v1387_v13 = vmul.f32 %v2161_v8, %v2550_v27 }
 0x764   : > { %2039 = vmatmul.mubr.msk.bf16.vlgmr.msra.gmra.mrb[28].mxu0 %vm578_vm2, %v1391_v0 }
 0x765   : > { %2049 = vmatpush3.bf16.msra.mxu0 %v2082_v52 }
 0x766   : > { %2050 = vmatprep.subr.bf16.mxu0 %v2083_v6 }
 0x769   : > { %2051 = vmatpush3.bf16.msra.mxu0 %v2083_v6 }
 0x789   : > { %v1372_v1 = vpop.xlane.xlu1 %1371 }
 0x78a   : > { %2162 = vrcp.f32 %v1372_v1 }
 0x78d   : > { %v1535_v7 = vpop.permute.xlu1 %1534 }
 0x78e   : > { %2043 = vmatpush3.bf16.msra.mxu1 %v1535_v7 }
 0x794   : > { %v2163_v43 = vpop.eup %2162 }
 0x795   : > { %v1388_v56 = vmul.f32 %v2163_v43, %v2147_v24 }
 0x797   : > { %v1392_v42 = vpack.c.bf16 %v1388_v56, %v1387_v13 }
 0x799   : > { %2045 = vmatmul.mubr.msk.bf16.vlgmr.msra.gmra.mrb[36].mxu1 %vm578_vm2, %v1392_v42 }
 0x82f   : > { %v1433_v20 = vpop.f32.mrb[24].mxu0  ;;  %v1480_v21 = vpop.f32.mrb[32].mxu1 }
 0x830   : > { %v2028_v15 = vpop.f32.mrb[25].mxu0  ;;  %v2034_v27 = vpop.f32.mrb[33].mxu1 }
 0x831   : > { %v1436_v29 = vpop.f32.mrb[26].mxu0  ;;  %v1483_v31 = vpop.f32.mrb[34].mxu1 }
 0x832   : > { %v1581_v35 = vpack.c.bf16 %v1436_v29, %v1433_v20  ;;  %v1582_v39 = vpack.c.bf16 %v1483_v31, %v1480_v21  ;;  %v2029_v24 = vpop.f32.mrb[27].mxu0  ;;  %v2035_v44 = vpop.f32.mrb[35].mxu1 }
 0x834   : > { %1589 = vrot.lane.b32.xlu0 %v1581_v35, %s2179_s20  ;;  %1591 = vrot.lane.b32.xlu1 %v1582_v39, %s2179_s20 }
 0x837   : > { %v1527_v46 = vpop.f32.mrb[28].mxu0 }
 0x838   : > { %v2040_v47 = vpop.f32.mrb[29].mxu0 }
 0x839   : > { %v1530_v48 = vpop.f32.mrb[30].mxu0 }
 0x83a   : > { %v1583_v22 = vpack.c.bf16 %v1530_v48, %v1527_v46  ;;  %v2041_v37 = vpop.f32.mrb[31].mxu0 }
 0x83c   : > { %1593 = vrot.lane.b32.xlu0 %v1583_v22, %s2179_s20 }
 0x86c   : > { %v1574_v23 = vpop.f32.mrb[36].mxu1 }
 0x86d   : > { %v2046_v30 = vpop.f32.mrb[37].mxu1 }
 0x86e   : > { %v1577_v49 = vpop.f32.mrb[38].mxu1 }
 0x86f   : > { %v1584_v26 = vpack.c.bf16 %v1577_v49, %v1574_v23  ;;  %v2047_v54 = vpop.f32.mrb[39].mxu1 }
 0x871   : > { %1595 = vrot.lane.b32.xlu1 %v1584_v26, %s2179_s20 }
 0x8a6   : > { %v1590_v32 = vpop.permute.xlu0 %1589  ;;  %v1592_v36 = vpop.permute.xlu1 %1591 }
 0x8a7   : > { %v1599_v40 = vsel %vm578_vm2, %v1074_v10, %v1590_v32  ;;  %v1602_v57 = vsel %vm578_vm2, %v1075_v41, %v1592_v36  ;;  %v1850_v10 = vld [vmem:[%s2642_s7] ss:$0 sm:$0xff] }
 0x8a8   : > { %2052 = vmatprep.mubr.msk.bf16.mxu0 %vm333_vm0, %v1599_v40 }
 0x8a9   : > { %2053 = vmatmul.mubr.msk.bf16.vlgmr.msra.gmra.mrb[32].mxu0 %vm333_vm0, %v1602_v57 }
 0x8ae   : > { %v1594_v58 = vpop.permute.xlu0 %1593 }
 0x8af   : > { %v1605_v45 = vsel %vm578_vm2, %v1076_v19, %v1594_v58 }
 0x8b0   : > { %2056 = vmatprep.mubr.msk.bf16.mxu0 %vm333_vm0, %v1605_v45 }
 0x8e3   : > { %v1596_v9 = vpop.permute.xlu1 %1595 }
 0x8e4   : > { %v1608_v53 = vsel %vm578_vm2, %v1077_v25, %v1596_v9 }
 0x8e5   : > { %2057 = vmatmul.mubr.msk.bf16.gmra.mrb[36].mxu0 %vm333_vm0, %v1608_v53 }
 0x97c   : > { %v2054_v28 = vpop.f32.mrb[32].mxu0 }
 0x97d   : > { %v1683_v38 = vadd.f32 %v2054_v28, %v1850_v10  ;;  %v1674_v14 = vpop.f32.mrb[33].mxu0 }
 0x97e   : > { %v1675_v18 = vadd.f32 %v1850_v10, %v1674_v14  ;;  %v2055_v19 = vpop.f32.mrb[34].mxu0 }
 0x97f   : > { %v1707_v41 = vadd.f32 %v2243_v3, %v1683_v38  ;;  %v1686_v59 = vadd.f32 %v2055_v19, %v1850_v10  ;;  %v1677_v60 = vpop.f32.mrb[35].mxu0 }
 0x980   : > { %v1705_v61 = vadd.f32 %v2241_v2, %v1675_v18  ;;  %v1678_v51 = vadd.f32 %v1850_v10, %v1677_v60 }
 0x981   : > { %v1708_v55 = vadd.f32 %v2247_v5, %v1686_v59  ;;  %v1871_v33 = vpack.c.bf16 %v1707_v41, %v1707_v41 }
 0x982   : > { %v1869_v25 = vpack.c.bf16 %v1705_v61, %v1705_v61  ;;  %v1706_v3 = vadd.f32 %v2245_v4, %v1678_v51 }
 0x983   : > { %1748 = vst.msk [vmem:[%s2608_s25 + $0x8] sm:$0xf] %vm1745_vm3, %v1871_v33  ;;  %v1872_v62 = vpack.c.bf16 %v1708_v55, %v1708_v55 }
 0x984   : > { %1746 = vst.msk [vmem:[%s2608_s25] sm:$0xf] %vm1745_vm3, %v1869_v25  ;;  %v1870_v2 = vpack.c.bf16 %v1706_v3, %v1706_v3 }
 0x985   : > { %1749 = vst.msk [vmem:[%s2608_s25 + $0xc] sm:$0xf] %vm1745_vm3, %v1872_v62 }
 0x986   : > { %1747 = vst.msk [vmem:[%s2608_s25 + $0x4] sm:$0xf] %vm1745_vm3, %v1870_v2 }
 0x9b8   : > { %v2058_v63 = vpop.f32.mrb[36].mxu0 }
 0x9b9   : > { %v1699_v50 = vadd.f32 %v2058_v63, %v1850_v10  ;;  %v1690_v34 = vpop.f32.mrb[37].mxu0 }
 0x9ba   : > { %v1691_v5 = vadd.f32 %v1850_v10, %v1690_v34  ;;  %v2059_v4 = vpop.f32.mrb[38].mxu0 }
 0x9bb   : > { %v1711_v0 = vadd.f32 %v2265_v16, %v1699_v50  ;;  %v1702_v1 = vadd.f32 %v2059_v4, %v1850_v10  ;;  %v1693_v7 = vpop.f32.mrb[39].mxu0 }
 0x9bc   : > { %v1709_v8 = vadd.f32 %v2257_v11, %v1691_v5  ;;  %v1694_v43 = vadd.f32 %v1850_v10, %v1693_v7 }
 0x9bd   : > { %v1712_v13 = vadd.f32 %v2267_v17, %v1702_v1  ;;  %v1875_v52 = vpack.c.bf16 %v1711_v0, %v1711_v0 }
 0x9be   : > { %v1873_v56 = vpack.c.bf16 %v1709_v8, %v1709_v8  ;;  %v1710_v42 = vadd.f32 %v2259_v12, %v1694_v43 }
 0x9bf   : > { %1752 = vst.msk [vmem:[%s2608_s25 + $0x18] sm:$0xf] %vm1745_vm3, %v1875_v52  ;;  %v1876_v20 = vpack.c.bf16 %v1712_v13, %v1712_v13 }
 0x9c0   : > { %1750 = vst.msk [vmem:[%s2608_s25 + $0x10] sm:$0xf] %vm1745_vm3, %v1873_v56  ;;  %v1874_v6 = vpack.c.bf16 %v1710_v42, %v1710_v42 }
 0x9c1   : > { %1753 = vst.msk [vmem:[%s2608_s25 + $0x1c] sm:$0xf] %vm1745_vm3, %v1876_v20 }
 0x9c2   : > { %1751 = vst.msk [vmem:[%s2608_s25 + $0x14] sm:$0xf] %vm1745_vm3, %v1874_v6 }
 0x9c3 PF: > { %s18_s27 = sadd.s32 1, %s2170_s27  }
 0x9c4   : > { %p15_p4 = scmp.ge.s32.totalorder %s18_s27, 4  }
 0x9c6   :  { %17 = sbr.rel (!%p15_p4) target bundleno = 1 (0x1), region = 83 }

// kernel: forward.16
= control target key start
LH: loop header
LB: loop body
LE: loop exit
PB: predicated region body
PF: predicated region fallthrough
CT: control target
= control target key end

     0   :  { %s935_s21 = smov 0   ;;  %s937_s22 = smov 0   ;;  %s1017_s0 = inlined_call_operand.vmem [shape: bf16[32,128], index: 0, kind: input, shape index: {}, may-alias: {0,1}]   ;;  %s1018_s1 = inlined_call_operand.vmem [shape: bf16[32,128], index: 1, kind: input, shape index: {}, may-alias: {0,1}]   ;;  %s1019_s2 = inlined_call_operand.vmem [shape: f32[1,128], index: 2, kind: input, shape index: {}]   ;;  %s1020_s3 = inlined_call_operand.vmem [shape: f32[1,128], index: 3, kind: input, shape index: {}]   ;;  %s1021_s4 = inlined_call_operand.vmem [shape: bf16[128,64], index: 4, kind: input, shape index: {}]   ;;  %s1022_s5 = inlined_call_operand.vmem [shape: f32[1,64], index: 5, kind: input, shape index: {}]   ;;  %s1023_s6 = inlined_call_operand.vmem [shape: bf16[32,64], index: 6, kind: output, shape index: {}]  }
   0x1   :  { %s939_s23 = smov 0  }
   0x2 LB: > { %s35_s24 = sadd.s32 1, %s891_s22  ;;  %p771_p0 = scmp.ge.s32.totalorder %s895_s23, 1  ;;  %s895_s23 = sphi %s939_s23, %s16_s23   ;;  %s891_s22 = sphi %s937_s22, %s1025_s22   ;;  %s887_s21 = sphi %s935_s21, %s1024_s21  }
   0x3   : > { %p37_p1 = scmp.ge.s32.totalorder %s35_s24, 2  ;;  %p290_p2 = scmp.lt.s32.totalorder %s895_s23, 3 }
   0x5   : > { %s1027_s24 = smov (%p37_p1, %s35_s24), 0  ;;  %p291_p3 = pnand %p771_p0, %p290_p2 }
   0x6   : > { %s772_s25 = sshll.u32 (!%p291_p3), %s887_s21, 1  ;;  %v897_v3 = vmov (!%p291_p3), 0   ;;  %vm419_vm0 = vcmask (!%p291_p3), 7168   ;;  %v861_v14 = vld [vmem:[%s1021_s4] sm:$0xff] (!%p291_p3)   ;;  %v898_v15 = vmov (!%p291_p3), 0.0   ;;  %v862_v16 = vld [vmem:[%s1021_s4 + $0x8] sm:$0xff] (!%p291_p3)  }
   0x7   : > { %294 = sbr.rel (%p291_p3) target bundleno = 702 (0x2be), region = 44  ;;  %p349_p4 = scmp.lt.s32.totalorder (!%p291_p3), %s772_s25, 3  ;;  %859 = vset.pattern.permute.xlu0 (!%p291_p3), %v897_v3  ;;  %860 = vset.pattern.permute.xlu1 (!%p291_p3), %v897_v3  ;;  %v863_v17 = vld [vmem:[%s1021_s4 + $0x10] sm:$0xff] (!%p291_p3)   ;;  %v864_v18 = vld [vmem:[%s1021_s4 + $0x18] sm:$0xff] (!%p291_p3)   ;;  %v865_v19 = vld [vmem:[%s1021_s4 + $0x20] sm:$0xff] (!%p291_p3)   ;;  %vm899_vm1 = vmmov (!%p291_p3), 0  }
   0x8   : > { %812 = vmatprep.subr.bf16.mxu0 (!%p291_p3), %v898_v15  ;;  %v866_v29 = vld [vmem:[%s1021_s4 + $0x28] sm:$0xff] (!%p291_p3)   ;;  %v867_v31 = vld [vmem:[%s1021_s4 + $0x30] sm:$0xff] (!%p291_p3)   ;;  %v868_v32 = vld [vmem:[%s1021_s4 + $0x38] sm:$0xff] (!%p291_p3)   ;;  %828 = vmatprep.mubr.msk.bf16.mxu0 (!%p291_p3), %vm899_vm1, %v898_v15  ;;  %vm395_vm2 = vcmask (!%p291_p3), 523264   ;;  %vm613_vm3 = vcmask (!%p291_p3), 519168  }
   0x9   : > { %813 = vmatpush3.bf16.msra.mxu0 (!%p291_p3), %v861_v14  ;;  %396 = vst.msk [vmem:[#allocation2] sm:$0xff] (!%p291_p3), %vm395_vm2, %v898_v15  ;;  %397 = vst.msk [vmem:[#allocation2 + $0x8] sm:$0xff] (!%p291_p3), %vm395_vm2, %v898_v15  ;;  %v778_v41 = vld [vmem:[%s1019_s2] ss:$0 sm:$0xff] (!%p291_p3) }
   0xa   : > { %814 = vmatprep.subr.bf16.mxu0 (!%p291_p3), %v898_v15  ;;  %v779_v46 = vld [vmem:[%s1020_s3] ss:$0 sm:$0xff] (!%p291_p3) }
   0xb   : > { %v788_v59 = vld [vmem:[%s1022_s5] ss:$0 sm:$0xff] (!%p291_p3) }
   0xd   : > { %815 = vmatpush3.bf16.msra.mxu0 (!%p291_p3), %v862_v16 }
   0xe   : > { %s1029_s25 = smov (!%p349_p4, %s772_s25), 3  ;;  %816 = vmatprep.subr.bf16.mxu0 %v898_v15 }
   0xf   : > { %s953_s26 = sshll.u32 %s1029_s25, 2 }
  0x10   : > { %s352_s29 = scalar_lea.vmem %s1017_s0, %s953_s26  ;;  %s361_s28 = scalar_lea.vmem %s1018_s1, %s953_s26  ;;  %v478_v51 = vld [vmem:[#allocation2] sm:$0xff]  ;;  %v479_v53 = vld [vmem:[#allocation2 + $0x8] sm:$0xff] }
  0x11   : > { %v796_v0 = vld [vmem:[%s352_s29] sm:$0xff]   ;;  %817 = vmatpush3.bf16.msra.mxu0 %v863_v17  ;;  %s388_s13 = scalar_lea.vmem %s1023_s6, %s953_s26 }
  0x12   : > { %v797_v1 = vunpack.c.l.bf16 %v796_v0  ;;  %v798_v2 = vunpack.c.h.bf16 %v796_v0  ;;  %818 = vmatprep.subr.bf16.mxu0 %v898_v15  ;;  %v800_v33 = vld [vmem:[%s361_s28] sm:$0xff]  }
  0x13   : > { %v801_v34 = vunpack.c.l.bf16 %v800_v33  ;;  %v802_v38 = vunpack.c.h.bf16 %v800_v33 }
  0x14   : > { %402 = vadd.xlane.f32.xlu0 %v797_v1 }
  0x15   : > { %819 = vmatpush3.bf16.msra.mxu0 %v864_v18 }
  0x16   : > { %820 = vmatprep.subr.bf16.mxu0 %v898_v15 }
  0x18   : > { %404 = vadd.xlane.f32.xlu0 %v798_v2 }
  0x19   : > { %821 = vmatpush3.bf16.msra.mxu0 %v865_v19 }
  0x1a   : > { %822 = vmatprep.subr.bf16.mxu0 %v898_v15 }
  0x1d   : > { %823 = vmatpush3.bf16.msra.mxu0 %v866_v29 }
  0x1e   : > { %824 = vmatprep.subr.bf16.mxu0 %v898_v15 }
  0x21   : > { %825 = vmatpush3.bf16.msra.mxu0 %v867_v31 }
  0x22   : > { %826 = vmatprep.subr.bf16.mxu0 %v898_v15 }
  0x25   : > { %827 = vmatpush3.bf16.msra.mxu0 %v868_v32 }
  0xa1   : > { %v403_v4 = vpop.xlane.xlu0 %402 }
  0xa2   : > { %v407_v5 = vmul.f32 0.0078125, %v403_v4 }
  0xa4   : > { %420 = vst.msk [vmem:[#allocation3] sm:$0xff] %vm419_vm0, %v407_v5  ;;  %v409_v6 = vsub.f32 %v797_v1, %v407_v5 }
  0xa5   : > { %v405_v7 = vpop.xlane.xlu0 %404 }
  0xa6   : > { %v408_v8 = vmul.f32 0.0078125, %v405_v7  ;;  %v411_v9 = vmul.f32 %v409_v6, %v409_v6 }
  0xa8   : > { %421 = vst.msk [vmem:[#allocation3 + $0x8] sm:$0xff] %vm419_vm0, %v408_v8  ;;  %413 = vadd.xlane.f32.xlu1 %v411_v9  ;;  %v410_v10 = vsub.f32 %v798_v2, %v408_v8 }
  0xaa   : > { %v412_v11 = vmul.f32 %v410_v10, %v410_v10 }
  0xab   : > { %v432_v12 = vld [vmem:[#allocation3] sm:$0xff] }
  0xac   : > { %436 = vperm.xlu0 %859, %v432_v12   ;;  %415 = vadd.xlane.f32.xlu1 %v412_v11 }
  0xaf   : > { %v433_v13 = vld [vmem:[#allocation3 + $0x8] sm:$0xff] }
  0xbd   : > { %441 = vperm.xlu1 %860, %v433_v13  }
 0x12b   : > { %v437_v35 = vpop.permute.xlu0 %436 }
 0x12c   : > { %v444_v37 = vsub.f32 %v801_v34, %v437_v35 }
 0x135   : > { %v414_v20 = vpop.xlane.xlu1 %413 }
 0x136   : > { %v417_v21 = vmul.f32 0.0078125, %v414_v20 }
 0x138   : > { %v422_v22 = vadd.f32 1e-05, %v417_v21 }
 0x139   : > { %v416_v23 = vpop.xlane.xlu1 %415 }
 0x13a   : > { %869 = vrsqrt.f32 %v422_v22  ;;  %v418_v24 = vmul.f32 0.0078125, %v416_v23 }
 0x13c   : > { %v423_v25 = vadd.f32 1e-05, %v418_v24 }
 0x13d   : > { %v442_v36 = vpop.permute.xlu1 %441 }
 0x13e   : > { %871 = vrsqrt.f32 %v423_v25  ;;  %v445_v42 = vsub.f32 %v802_v38, %v442_v36 }
 0x144   : > { %v870_v26 = vpop.eup %869 }
 0x145   : > { %426 = vst.msk [vmem:[#allocation4] sm:$0xff] %vm419_vm0, %v870_v26 }
 0x148   : > { %v872_v27 = vpop.eup %871 }
 0x149   : > { %427 = vst.msk [vmem:[#allocation4 + $0x8] sm:$0xff] %vm419_vm0, %v872_v27 }
 0x14c   : > { %v446_v28 = vld [vmem:[#allocation4] sm:$0xff] }
 0x14d   : > { %450 = vperm.xlu1 %860, %v446_v28  }
 0x150   : > { %v447_v30 = vld [vmem:[#allocation4 + $0x8] sm:$0xff] }
 0x151   : > { %455 = vperm.xlu1 %860, %v447_v30  }
 0x1cc   : > { %v451_v39 = vpop.permute.xlu1 %450 }
 0x1cd   : > { %v458_v40 = vmul.f32 %v451_v39, %v444_v37 }
 0x1cf   : > { %v467_v44 = vmul.f32 %v778_v41, %v458_v40 }
 0x1d0   : > { %v456_v43 = vpop.permute.xlu1 %455 }
 0x1d1   : > { %v459_v45 = vmul.f32 %v456_v43, %v445_v42  ;;  %v476_v48 = vadd.f32 %v779_v46, %v467_v44 }
 0x1d3   : > { %v468_v47 = vmul.f32 %v778_v41, %v459_v45 }
 0x1d5   : > { %v477_v49 = vadd.f32 %v779_v46, %v468_v47 }
 0x1d7   : > { %v480_v50 = vpack.c.bf16 %v477_v49, %v476_v48 }
 0x1d9   : > { %829 = vmatmul.mubr.bf16.vlgmr.msra.gmra.mrb[0].mxu0 %v480_v50 }
 0x2ac   : > { %v579_v52 = vpop.f32.mrb[0].mxu0 }
 0x2ad   : > { %v586_v54 = vadd.f32 %v579_v52, %v478_v51  ;;  %v830_v55 = vpop.f32.mrb[1].mxu0 }
 0x2ae   : > { %v582_v56 = vpop.f32.mrb[2].mxu0 }
 0x2af   : > { %589 = vst.msk [vmem:[#allocation2] sm:$0xff] %vm395_vm2, %v586_v54  ;;  %v587_v57 = vadd.f32 %v582_v56, %v479_v53  ;;  %v831_v58 = vpop.f32.mrb[3].mxu0 }
 0x2b1   : > { %590 = vst.msk [vmem:[#allocation2 + $0x8] sm:$0xff] %vm395_vm2, %v587_v57 }
 0x2b6   : > { %v594_v60 = vld [vmem:[#allocation2] sm:$0xff] }
 0x2b7   : > { %v603_v61 = vadd.f32 %v788_v59, %v594_v60 }
 0x2b8   : > { %v595_v62 = vld [vmem:[#allocation2 + $0x8] sm:$0xff] }
 0x2b9   : > { %v793_v63 = vpack.c.bf16 %v603_v61, %v603_v61  ;;  %v604_v0 = vadd.f32 %v788_v59, %v595_v62 }
 0x2bb   : > { %614 = vst.msk [vmem:[%s388_s13] sm:$0xf] %vm613_vm3, %v793_v63  ;;  %v794_v1 = vpack.c.bf16 %v604_v0, %v604_v0 }
 0x2bd   : > { %615 = vst.msk [vmem:[%s388_s13 + $0x4] sm:$0xf] %vm613_vm3, %v794_v1 }
 0x2be PF: > { %s16_s23 = sadd.s32 1, %s895_s23   ;;  %s1024_s21 = smov %s891_s22 }
 0x2bf   : > { %p13_p5 = scmp.ge.s32.totalorder %s16_s23, 4   ;;  %s1025_s22 = smov %s1027_s24 }
 0x2c1   :  { %15 = sbr.rel (!%p13_p5) target bundleno = 2 (0x2), region = 97 }

// kernel: forward.14
= control target key start
LH: loop header
LB: loop body
LE: loop exit
PB: predicated region body
PF: predicated region fallthrough
CT: control target
= control target key end

     0   :  { %s2281_s30 = smov 0   ;;  %s2747_s0 = inlined_call_operand.vmem [shape: bf16[8,16,32], index: 0, kind: input, shape index: {}]   ;;  %s2748_s1 = inlined_call_operand.vmem [shape: f32[1,32], index: 1, kind: input, shape index: {}]   ;;  %s2749_s2 = inlined_call_operand.vmem [shape: f32[1,32], index: 2, kind: input, shape index: {}]   ;;  %s2750_s3 = inlined_call_operand.vmem [shape: bf16[32,96], index: 3, kind: input, shape index: {}]   ;;  %s2751_s4 = inlined_call_operand.vmem [shape: f32[1,96], index: 4, kind: input, shape index: {}]   ;;  %s2752_s5 = inlined_call_operand.vmem [shape: f32[2,16,16], index: 5, kind: input, shape index: {}]   ;;  %s2753_s6 = inlined_call_operand.vmem [shape: bf16[32,32], index: 6, kind: input, shape index: {}]   ;;  %s2754_s7 = inlined_call_operand.vmem [shape: f32[1,32], index: 7, kind: input, shape index: {}]   ;;  %s2755_s8 = inlined_call_operand.vmem [shape: f32[4,16,16], index: 8, kind: input, shape index: {}]   ;;  %s2756_s9 = inlined_call_operand.vmem [shape: bf16[8,16,32], index: 9, kind: output, shape index: {}]  }
   0x1 LB: > { %s1863_s10 = sadd.s32 4294967295, %s2221_s30   ;;  %p1867_p0 = scmp.ge.s32.totalorder %s2221_s30, 1  ;;  %s2221_s30 = sphi %s2281_s30, %s19_s30  }
   0x2   : > { %p289_p1 = scmp.lt.s32.totalorder %s2221_s30, 3 }
   0x4   : > { %p290_p2 = pnand %p1867_p0, %p289_p1 }
   0x5   : > { %s1868_s11 = sshll.u32 (!%p290_p2), %s1863_s10, 2  ;;  %vm360_vm0 = vcmask (!%p290_p2), 261120   ;;  %v2131_v60 = vld [vmem:[%s2750_s3] sm:$0xff] (!%p290_p2)   ;;  %v2132_v61 = vld [vmem:[%s2750_s3 + $0x8] sm:$0xff] (!%p290_p2)   ;;  %vm2224_vm1 = vmmov (!%p290_p2), 0   ;;  %s2225_s26 = smov (!%p290_p2), 96  }
   0x6   : > { %293 = sbr.rel (%p290_p2) target bundleno = 2503 (0x9c7), region = 56  ;;  %p328_p3 = scmp.lt.s32.totalorder (!%p290_p2), %s1868_s11, 7  ;;  %1991 = vmatprep.subr.bf16.mxu0 (!%p290_p2), %v2131_v60  ;;  %2111 = vmatprep.subr.bf16.mxu1 (!%p290_p2), %v2131_v60  ;;  %vm613_vm2 = vcmask (!%p290_p2), 130048   ;;  %vm1796_vm3 = vcmask (!%p290_p2), 257024  }
   0x7   : > { %1992 = vmatpush3.bf16.msra.mxu0 (!%p290_p2), %v2131_v60  ;;  %2113 = vmatpush3.bf16.msra.mxu1 (!%p290_p2), %v2131_v60  ;;  %s2226_s29 = smov (!%p290_p2), 64   ;;  %s2227_s10 = smov (!%p290_p2), 80  }
   0x8   : > { %1993 = vmatprep.subr.bf16.mxu0 (!%p290_p2), %v2132_v61  ;;  %2112 = vmatprep.subr.bf16.mxu1 (!%p290_p2), %v2132_v61  ;;  %s2228_s13 = smov (!%p290_p2), 112   ;;  %s2229_s18 = smov (!%p290_p2), 48  }
   0x9   : > { %s2230_s23 = smov (!%p290_p2), 16  }
   0xb   : > { %1994 = vmatpush3.bf16.msra.mxu0 (!%p290_p2), %v2132_v61  ;;  %2114 = vmatpush3.bf16.msra.mxu1 (!%p290_p2), %v2132_v61 }
   0xd   : > { %s2758_s11 = smov (!%p328_p3, %s1868_s11), 7 }
   0xe   : > { %s1918_s12 = sshll.u32 %s2758_s11, 3 }
   0xf   : > { %s332_s15 = scalar_lea.vmem %s2747_s0, %s1918_s12  ;;  %s2720_s28 = scalar_lea.vmem %s2756_s9, %s1918_s12 }
  0x10   : > { %v1929_v0 = vld [vmem:[%s332_s15] sm:$0xff]   ;;  %v1944_v1 = vld [vmem:[%s332_s15 + $0x8] sm:$0xff]   ;;  %v1945_v6 = vld [vmem:[%s332_s15 + $0x10] sm:$0xff]  }
  0x11   : > { %v2297_v2 = vunpack.c.l.bf16 %v1929_v0  ;;  %v2299_v3 = vunpack.c.l.bf16 %v1944_v1  ;;  %v2301_v4 = vunpack.c.h.bf16 %v1929_v0  ;;  %v2303_v5 = vunpack.c.h.bf16 %v1944_v1  ;;  %v1946_v13 = vld [vmem:[%s332_s15 + $0x18] sm:$0xff]  }
  0x12   : > { %v2313_v11 = vunpack.c.l.bf16 %v1945_v6  ;;  %v2315_v12 = vunpack.c.h.bf16 %v1945_v6  ;;  %v2321_v16 = vunpack.c.l.bf16 %v1946_v13  ;;  %v2323_v17 = vunpack.c.h.bf16 %v1946_v13 }
  0x13   : > { %v361_v7 = vsel %vm360_vm0, %v2297_v2, 0.0  ;;  %v367_v8 = vsel %vm360_vm0, %v2299_v3, 0.0  ;;  %v364_v9 = vsel %vm360_vm0, %v2301_v4, 0.0  ;;  %v370_v10 = vsel %vm360_vm0, %v2303_v5, 0.0 }
  0x14   : > { %362 = vadd.xlane.f32.xlu0 %v361_v7  ;;  %368 = vadd.xlane.f32.xlu1 %v367_v8  ;;  %v373_v14 = vsel %vm360_vm0, %v2313_v11, 0.0  ;;  %v376_v15 = vsel %vm360_vm0, %v2315_v12, 0.0  ;;  %v379_v18 = vsel %vm360_vm0, %v2321_v16, 0.0  ;;  %v382_v19 = vsel %vm360_vm0, %v2323_v17, 0.0 }
  0x18   : > { %365 = vadd.xlane.f32.xlu0 %v364_v9  ;;  %371 = vadd.xlane.f32.xlu1 %v370_v10 }
  0x1c   : > { %374 = vadd.xlane.f32.xlu0 %v373_v14  ;;  %377 = vadd.xlane.f32.xlu1 %v376_v15 }
  0x20   : > { %380 = vadd.xlane.f32.xlu0 %v379_v18  ;;  %383 = vadd.xlane.f32.xlu1 %v382_v19 }
  0xa1   : > { %v363_v20 = vpop.xlane.xlu0 %362  ;;  %v369_v21 = vpop.xlane.xlu1 %368 }
  0xa2   : > { %v386_v22 = vmul.f32 0.03125, %v363_v20  ;;  %v388_v23 = vmul.f32 0.03125, %v369_v21 }
  0xa4   : > { %v2330_v24 = vsub.f32 %v2297_v2, %v386_v22  ;;  %v2333_v25 = vsub.f32 %v2299_v3, %v388_v23 }
  0xa5   : > { %v366_v26 = vpop.xlane.xlu0 %365  ;;  %v372_v27 = vpop.xlane.xlu1 %371 }
  0xa6   : > { %v387_v28 = vmul.f32 0.03125, %v366_v26  ;;  %v389_v29 = vmul.f32 0.03125, %v372_v27  ;;  %v402_v30 = vmul.f32 %v2330_v24, %v2330_v24  ;;  %v404_v31 = vmul.f32 %v2333_v25, %v2333_v25 }
  0xa8   : > { %v2340_v32 = vsub.f32 %v2301_v4, %v387_v28  ;;  %v2343_v33 = vsub.f32 %v2303_v5, %v389_v29  ;;  %v410_v34 = vsel %vm360_vm0, %v402_v30, 0.0  ;;  %v416_v37 = vsel %vm360_vm0, %v404_v31, 0.0 }
  0xa9   : > { %411 = vadd.xlane.f32.xlu0 %v410_v34  ;;  %v375_v35 = vpop.xlane.xlu0 %374  ;;  %v378_v36 = vpop.xlane.xlu1 %377 }
  0xaa   : > { %v390_v38 = vmul.f32 0.03125, %v375_v35  ;;  %v391_v39 = vmul.f32 0.03125, %v378_v36  ;;  %v403_v40 = vmul.f32 %v2340_v32, %v2340_v32  ;;  %v405_v41 = vmul.f32 %v2343_v33, %v2343_v33  ;;  %v1874_v35 = vld [vmem:[%s2748_s1] ss:$0 sm:$0xff] }
  0xac   : > { %v2352_v42 = vsub.f32 %v2313_v11, %v390_v38  ;;  %v2355_v43 = vsub.f32 %v2315_v12, %v391_v39  ;;  %v413_v44 = vsel %vm360_vm0, %v403_v40, 0.0  ;;  %v419_v47 = vsel %vm360_vm0, %v405_v41, 0.0 }
  0xad   : > { %417 = vadd.xlane.f32.xlu0 %v416_v37  ;;  %414 = vadd.xlane.f32.xlu1 %v413_v44  ;;  %v381_v45 = vpop.xlane.xlu0 %380  ;;  %v384_v46 = vpop.xlane.xlu1 %383 }
  0xae   : > { %v392_v48 = vmul.f32 0.03125, %v381_v45  ;;  %v393_v49 = vmul.f32 0.03125, %v384_v46  ;;  %v406_v50 = vmul.f32 %v2352_v42, %v2352_v42  ;;  %v407_v51 = vmul.f32 %v2355_v43, %v2355_v43 }
  0xb0   : > { %v2364_v52 = vsub.f32 %v2321_v16, %v392_v48  ;;  %v2367_v53 = vsub.f32 %v2323_v17, %v393_v49  ;;  %v422_v54 = vsel %vm360_vm0, %v406_v50, 0.0  ;;  %v425_v55 = vsel %vm360_vm0, %v407_v51, 0.0 }
  0xb1   : > { %420 = vadd.xlane.f32.xlu1 %v419_v47  ;;  %423 = vadd.xlane.f32.xlu0 %v422_v54 }
  0xb2   : > { %v408_v56 = vmul.f32 %v2364_v52, %v2364_v52  ;;  %v409_v57 = vmul.f32 %v2367_v53, %v2367_v53 }
  0xb4   : > { %v428_v58 = vsel %vm360_vm0, %v408_v56, 0.0  ;;  %v431_v59 = vsel %vm360_vm0, %v409_v57, 0.0 }
  0xb5   : > { %426 = vadd.xlane.f32.xlu1 %v425_v55  ;;  %429 = vadd.xlane.f32.xlu0 %v428_v58 }
  0xb9   : > { %432 = vadd.xlane.f32.xlu1 %v431_v59 }
 0x136   : > { %v412_v62 = vpop.xlane.xlu0 %411 }
 0x137   : > { %v434_v63 = vmul.f32 0.03125, %v412_v62 }
 0x139   : > { %v442_v0 = vadd.f32 1e-05, %v434_v63 }
 0x13a   : > { %v415_v1 = vpop.xlane.xlu1 %414  ;;  %v418_v6 = vpop.xlane.xlu0 %417 }
 0x13b   : > { %2135 = vrsqrt.f32 %v442_v0  ;;  %v435_v7 = vmul.f32 0.03125, %v415_v1  ;;  %v436_v8 = vmul.f32 0.03125, %v418_v6 }
 0x13d   : > { %v443_v9 = vadd.f32 1e-05, %v435_v7  ;;  %v444_v10 = vadd.f32 1e-05, %v436_v8 }
 0x13e   : > { %v421_v13 = vpop.xlane.xlu1 %420  ;;  %v424_v14 = vpop.xlane.xlu0 %423 }
 0x13f   : > { %2137 = vrsqrt.f32 %v443_v9  ;;  %v437_v15 = vmul.f32 0.03125, %v421_v13  ;;  %v438_v18 = vmul.f32 0.03125, %v424_v14 }
 0x140   : > { %2139 = vrsqrt.f32 %v444_v10  ;;  %v1876_v10 = vld [vmem:[%s2751_s4] ss:$0 sm:$0xff] }
 0x141   : > { %v445_v19 = vadd.f32 1e-05, %v437_v15  ;;  %v446_v20 = vadd.f32 1e-05, %v438_v18 }
 0x142   : > { %v427_v21 = vpop.xlane.xlu1 %426  ;;  %v430_v22 = vpop.xlane.xlu0 %429 }
 0x143   : > { %2141 = vrsqrt.f32 %v445_v19  ;;  %v439_v23 = vmul.f32 0.03125, %v427_v21  ;;  %v440_v26 = vmul.f32 0.03125, %v430_v22 }
 0x144   : > { %2143 = vrsqrt.f32 %v446_v20 }
 0x145   : > { %v2136_v27 = vpop.eup %2135  ;;  %v447_v28 = vadd.f32 1e-05, %v439_v23  ;;  %v448_v29 = vadd.f32 1e-05, %v440_v26 }
 0x146   : > { %v433_v30 = vpop.xlane.xlu1 %432  ;;  %v458_v31 = vmul.f32 %v2136_v27, %v2330_v24  ;;  %v1875_v24 = vld [vmem:[%s2749_s2] ss:$0 sm:$0xff] }
 0x147   : > { %2145 = vrsqrt.f32 %v447_v28  ;;  %v441_v34 = vmul.f32 0.03125, %v433_v30 }
 0x148   : > { %2147 = vrsqrt.f32 %v448_v29  ;;  %v472_v40 = vmul.f32 %v1874_v35, %v458_v31 }
 0x149   : > { %v2138_v36 = vpop.eup %2137  ;;  %v449_v37 = vadd.f32 1e-05, %v441_v34 }
 0x14a   : > { %v2140_v38 = vpop.eup %2139  ;;  %v459_v39 = vmul.f32 %v2138_v36, %v2340_v32  ;;  %v486_v48 = vadd.f32 %v1875_v24, %v472_v40 }
 0x14b   : > { %v460_v41 = vmul.f32 %v2140_v38, %v2333_v25  ;;  %2149 = vrsqrt.f32 %v449_v37 }
 0x14c   : > { %v473_v44 = vmul.f32 %v1874_v35, %v459_v39 }
 0x14d   : > { %v2142_v45 = vpop.eup %2141  ;;  %v474_v50 = vmul.f32 %v1874_v35, %v460_v41 }
 0x14e   : > { %v2144_v46 = vpop.eup %2143  ;;  %v461_v47 = vmul.f32 %v2142_v45, %v2343_v33  ;;  %v487_v49 = vadd.f32 %v1875_v24, %v473_v44 }
 0x14f   : > { %v462_v51 = vmul.f32 %v2144_v46, %v2352_v42  ;;  %v488_v25 = vadd.f32 %v1875_v24, %v474_v50 }
 0x150   : > { %v494_v54 = vpack.c.bf16 %v487_v49, %v486_v48  ;;  %v475_v32 = vmul.f32 %v1874_v35, %v461_v47  ;;  %v819_v48 = vld [vmem:[%s2752_s5] sm:$0xff] }
 0x151   : > { %v2146_v55 = vpop.eup %2145  ;;  %v476_v59 = vmul.f32 %v1874_v35, %v462_v51 }
 0x152   : > { %v2148_v56 = vpop.eup %2147  ;;  %1995 = vmatprep.mubr.msk.bf16.mxu0 %vm360_vm0, %v494_v54  ;;  %v489_v57 = vadd.f32 %v1875_v24, %v475_v32  ;;  %v463_v58 = vmul.f32 %v2146_v55, %v2355_v43  ;;  %v820_v54 = vld [vmem:[%s2752_s5 + $0x8] sm:$0xff]  ;;  %v2455_v32 = vld [vmem:[%s2755_s8] sm:$0xff] }
 0x153   : > { %v464_v60 = vmul.f32 %v2148_v56, %v2364_v52  ;;  %v490_v42 = vadd.f32 %v1875_v24, %v476_v59  ;;  %v2223_v52 = vmov 0.0  }
 0x154   : > { %v495_v61 = vpack.c.bf16 %v489_v57, %v488_v25  ;;  %v477_v33 = vmul.f32 %v1874_v35, %v463_v58  ;;  %2003 = vmatprep.subr.bf16.mxu1 %v2223_v52  ;;  %2015 = vmatprep.subr.bf16.mxu0 %v2223_v52  ;;  %v2460_v57 = vld [vmem:[%s2755_s8 + $0x8] sm:$0xff] }
 0x155   : > { %v2150_v62 = vpop.eup %2149  ;;  %v478_v1 = vmul.f32 %v1874_v35, %v464_v60 }
 0x156   : > { %v465_v63 = vmul.f32 %v2150_v62, %v2367_v53  ;;  %1996 = vmatmul.mubr.msk.bf16.vlgmr.msra.gmra.mrb[0].mxu0 %vm360_vm0, %v495_v61  ;;  %v491_v0 = vadd.f32 %v1875_v24, %v477_v33 }
 0x157   : > { %v492_v8 = vadd.f32 %v1875_v24, %v478_v1  ;;  %2017 = vmatprep.mubr.msk.bf16.mxu0 %vm2224_vm1, %v2223_v52 }
 0x158   : > { %v496_v6 = vpack.c.bf16 %v491_v0, %v490_v42  ;;  %v479_v7 = vmul.f32 %v1874_v35, %v465_v63 }
 0x15a   : > { %1999 = vmatprep.mubr.msk.bf16.mxu1 %vm360_vm0, %v496_v6  ;;  %v493_v9 = vadd.f32 %v1875_v24, %v479_v7 }
 0x15c   : > { %v497_v43 = vpack.c.bf16 %v493_v9, %v492_v8  ;;  %v2469_v8 = vld [vmem:[%s2755_s8 + $0x10] sm:$0xff] }
 0x15e   : > { %2000 = vmatmul.mubr.msk.bf16.vlgmr.msra.gmra.mrb[0].mxu1 %vm360_vm0, %v497_v43 }
 0x15f   : > { %2005 = vmatprep.mubr.msk.bf16.mxu1 %vm2224_vm1, %v2223_v52 }
 0x229   : > { %v1997_v53 = vpop.f32.mrb[0].mxu0 }
 0x22a   : > { %v567_v13 = vpop.f32.mrb[1].mxu0  ;;  %v576_v15 = vadd.f32 %v1997_v53, %v1876_v10 }
 0x22b   : > { %v1998_v14 = vpop.f32.mrb[2].mxu0  ;;  %v568_v20 = vadd.f32 %v1876_v10, %v567_v13 }
 0x22c   : > { %v579_v18 = vadd.f32 %v1998_v14, %v1876_v10  ;;  %v570_v19 = vpop.f32.mrb[3].mxu0 }
 0x22d   : > { %v571_v21 = vadd.f32 %v1876_v10, %v570_v19 }
 0x22e   : > { %v2410_v22 = vpack.c.bf16 %v579_v18, %v576_v15  ;;  %v2474_v15 = vld [vmem:[%s2755_s8 + $0x28] sm:$0xff]  ;;  %v2479_v18 = vld [vmem:[%s2755_s8 + $0x18] sm:$0xff] }
 0x22f   : > { %v2412_v23 = vpack.c.bf16 %v571_v21, %v568_v20 }
 0x230   : > { %662 = vrot.lane.b32.xlu1 %v2410_v22, %s2225_s26 }
 0x231   : > { %611 = vrot.lane.b32.xlu0 %v2412_v23, %s2225_s26  ;;  %v2001_v26 = vpop.f32.mrb[0].mxu1 }
 0x232   : > { %v583_v27 = vpop.f32.mrb[1].mxu1  ;;  %v592_v29 = vadd.f32 %v2001_v26, %v1876_v10 }
 0x233   : > { %v2002_v28 = vpop.f32.mrb[2].mxu1  ;;  %v584_v34 = vadd.f32 %v1876_v10, %v583_v27 }
 0x234   : > { %v595_v30 = vadd.f32 %v2002_v28, %v1876_v10  ;;  %v586_v31 = vpop.f32.mrb[3].mxu1 }
 0x235   : > { %v587_v35 = vadd.f32 %v1876_v10, %v586_v31  ;;  %v2490_v31 = vld [vmem:[%s2755_s8 + $0x20] sm:$0xff] }
 0x236   : > { %v2416_v36 = vpack.c.bf16 %v595_v30, %v592_v29 }
 0x237   : > { %v2418_v37 = vpack.c.bf16 %v587_v35, %v584_v34 }
 0x239   : > { %712 = vrot.lane.b32.xlu1 %v2418_v37, %s2225_s26 }
 0x23d   : > { %762 = vrot.lane.b32.xlu1 %v2416_v36, %s2225_s26 }
 0x2a2   : > { %v663_v40 = vpop.permute.xlu1 %662 }
 0x2a3   : > { %v612_v38 = vpop.permute.xlu0 %611  ;;  %v668_v24 = vsel %vm613_vm2, %v663_v40, 0 }
 0x2a4   : > { %v618_v39 = vsel %vm613_vm2, %v612_v38, 0 }
 0x2a5   : > { %2004 = vmatpush3.bf16.xpose.msra.mxu1 %v618_v39 }
 0x2a6   : > { %2009 = vmatprep.subr.bf16.mxu1 %v2223_v52 }
 0x2ab   : > { %v713_v41 = vpop.permute.xlu1 %712 }
 0x2ac   : > { %v718_v44 = vsel %vm613_vm2, %v713_v41, 0  ;;  %2006 = vmatmul.mubr.msk.bf16.vlgmr.msra.gmra.mrb[4].mxu1 %vm613_vm2, %v2412_v23 }
 0x2ad   : > { %2010 = vmatpush3.bf16.xpose.msra.mxu1 %v668_v24  ;;  %2016 = vmatpush3.bf16.xpose.msra.mxu0 %v718_v44 }
 0x2ae   : > { %2011 = vmatprep.mubr.msk.bf16.mxu1 %vm2224_vm1, %v2223_v52  ;;  %2021 = vmatprep.subr.bf16.mxu1 %v2223_v52 }
 0x2af   : > { %2027 = vmatprep.subr.bf16.mxu0 %v2223_v52  ;;  %v763_v45 = vpop.permute.xlu1 %762 }
 0x2b0   : > { %v768_v46 = vsel %vm613_vm2, %v763_v45, 0 }
 0x2b4   : > { %2012 = vmatmul.mubr.msk.bf16.vlgmr.msra.gmra.mrb[8].mxu1 %vm613_vm2, %v2410_v22  ;;  %2018 = vmatmul.mubr.msk.bf16.vlgmr.msra.gmra.mrb[4].mxu0 %vm613_vm2, %v2418_v37 }
 0x2b5   : > { %2022 = vmatpush3.bf16.xpose.msra.mxu1 %v768_v46  ;;  %2023 = vmatprep.mubr.msk.bf16.mxu1 %vm2224_vm1, %v2223_v52  ;;  %v2499_v46 = vld [vmem:[%s2755_s8 + $0x38] sm:$0xff] }
 0x2b6   : > { %2033 = vmatprep.subr.bf16.mxu1 %v2223_v52  ;;  %2029 = vmatprep.mubr.msk.bf16.mxu0 %vm2224_vm1, %v2223_v52 }
 0x2bc   : > { %2024 = vmatmul.mubr.msk.bf16.vlgmr.msra.gmra.mrb[12].mxu1 %vm613_vm2, %v2416_v36 }
 0x2bd   : > { %2035 = vmatprep.mubr.msk.bf16.mxu1 %vm2224_vm1, %v2223_v52 }
 0x37f   : > { %v654_v47 = vpop.f32.mrb[4].mxu1 }
 0x380   : > { %v811_v49 = vmul.f32 0.25, %v654_v47  ;;  %v2007_v50 = vpop.f32.mrb[5].mxu1  ;;  %v2504_v47 = vld [vmem:[%s2755_s8 + $0x30] sm:$0xff] }
 0x381   : > { %v657_v51 = vpop.f32.mrb[6].mxu1 }
 0x382   : > { %v821_v55 = vadd.f32 %v819_v48, %v811_v49  ;;  %v812_v56 = vmul.f32 0.25, %v657_v51  ;;  %v2008_v25 = vpop.f32.mrb[7].mxu1 }
 0x384   : > { %v822_v58 = vadd.f32 %v820_v54, %v812_v56  ;;  %v829_v59 = vadd.f32 %v821_v55, %v2455_v32 }
 0x386   : > { %v837_v60 = vsel %vm613_vm2, %v829_v59, -inf  ;;  %v830_v61 = vadd.f32 %v822_v58, %v2460_v57 }
 0x387   : > { %v754_v33 = vpop.f32.mrb[4].mxu0  ;;  %838 = vmax.xlane.f32.xlu0 %v837_v60  ;;  %v704_v62 = vpop.f32.mrb[8].mxu1 }
 0x388   : > { %v813_v63 = vmul.f32 0.25, %v704_v62  ;;  %v2013_v42 = vpop.f32.mrb[9].mxu1  ;;  %v2019_v0 = vpop.f32.mrb[5].mxu0  ;;  %v840_v1 = vsel %vm613_vm2, %v830_v61, -inf  ;;  %v815_v9 = vmul.f32 0.25, %v754_v33 }
 0x389   : > { %v757_v6 = vpop.f32.mrb[6].mxu0  ;;  %841 = vmax.xlane.f32.xlu1 %v840_v1  ;;  %v707_v7 = vpop.f32.mrb[10].mxu1 }
 0x38a   : > { %v823_v43 = vadd.f32 %v819_v48, %v813_v63  ;;  %v816_v53 = vmul.f32 0.25, %v757_v6  ;;  %v814_v10 = vmul.f32 0.25, %v707_v7  ;;  %v2014_v13 = vpop.f32.mrb[11].mxu1  ;;  %v2020_v14 = vpop.f32.mrb[7].mxu0  ;;  %v825_v26 = vadd.f32 %v819_v48, %v815_v9 }
 0x38c   : > { %v826_v19 = vadd.f32 %v820_v54, %v816_v53  ;;  %v824_v20 = vadd.f32 %v820_v54, %v814_v10  ;;  %v831_v21 = vadd.f32 %v823_v43, %v2469_v8  ;;  %v833_v45 = vadd.f32 %v825_v26, %v2490_v31 }
 0x38e   : > { %v843_v27 = vsel %vm613_vm2, %v831_v21, -inf  ;;  %v834_v28 = vadd.f32 %v826_v19, %v2474_v15  ;;  %v2485_v29 = vadd.f32 %v824_v20, %v2479_v18 }
 0x38f   : > { %844 = vmax.xlane.f32.xlu0 %v843_v27  ;;  %v804_v30 = vpop.f32.mrb[12].mxu1 }
 0x390   : > { %v817_v34 = vmul.f32 0.25, %v804_v30  ;;  %v2025_v35 = vpop.f32.mrb[13].mxu1  ;;  %v852_v38 = vsel %vm613_vm2, %v834_v28, -inf  ;;  %v846_v44 = vsel %vm613_vm2, %v2485_v29, -inf }
 0x391   : > { %853 = vmax.xlane.f32.xlu1 %v852_v38  ;;  %v807_v39 = vpop.f32.mrb[14].mxu1 }
 0x392   : > { %v827_v40 = vadd.f32 %v819_v48, %v817_v34  ;;  %v818_v41 = vmul.f32 0.25, %v807_v39  ;;  %v2026_v24 = vpop.f32.mrb[15].mxu1  ;;  %v849_v48 = vsel %vm613_vm2, %v833_v45, -inf }
 0x393   : > { %847 = vmax.xlane.f32.xlu0 %v846_v44 }
 0x394   : > { %v828_v49 = vadd.f32 %v820_v54, %v818_v41  ;;  %v835_v51 = vadd.f32 %v827_v40, %v2504_v47 }
 0x396   : > { %v2508_v50 = vadd.f32 %v828_v49, %v2499_v46  ;;  %v855_v56 = vsel %vm613_vm2, %v835_v51, -inf }
 0x397   : > { %850 = vmax.xlane.f32.xlu0 %v849_v48 }
 0x398   : > { %v858_v55 = vsel %vm613_vm2, %v2508_v50, -inf }
 0x399   : > { %859 = vmax.xlane.f32.xlu1 %v858_v55 }
 0x39b   : > { %856 = vmax.xlane.f32.xlu0 %v855_v56 }
 0x414   : > { %v839_v25 = vpop.xlane.xlu0 %838 }
 0x415   : > { %v861_v58 = vsub.f32 %v829_v59, %v839_v25 }
 0x416   : > { %v842_v60 = vpop.xlane.xlu1 %841 }
 0x417   : > { %v869_v33 = vmul.f32 1.442695, %v861_v58  ;;  %v862_v54 = vsub.f32 %v830_v61, %v842_v60 }
 0x419   : > { %2151 = vpow2.f32 %v869_v33  ;;  %v871_v62 = vmul.f32 1.442695, %v862_v54 }
 0x41b   : > { %2153 = vpow2.f32 %v871_v62 }
 0x41c   : > { %v845_v63 = vpop.xlane.xlu0 %844 }
 0x41d   : > { %v863_v9 = vsub.f32 %v831_v21, %v845_v63 }
 0x41e   : > { %v854_v42 = vpop.xlane.xlu1 %853 }
 0x41f   : > { %v866_v0 = vsub.f32 %v834_v28, %v854_v42  ;;  %v873_v13 = vmul.f32 1.442695, %v863_v9 }
 0x420   : > { %v848_v1 = vpop.xlane.xlu0 %847 }
 0x421   : > { %v879_v6 = vmul.f32 1.442695, %v866_v0  ;;  %v864_v34 = vsub.f32 %v2485_v29, %v848_v1 }
 0x423   : > { %v2514_v7 = vpop.eup %2151  ;;  %2155 = vpow2.f32 %v879_v6  ;;  %v875_v38 = vmul.f32 1.442695, %v864_v34 }
 0x424   : > { %v851_v43 = vpop.xlane.xlu0 %850  ;;  %v885_v53 = vsel %vm613_vm2, %v2514_v7, 0.0 }
 0x425   : > { %v2518_v59 = vpop.eup %2153  ;;  %v865_v10 = vsub.f32 %v833_v45, %v851_v43  ;;  %886 = vadd.xlane.f32.xlu0 %v885_v53 }
 0x426   : > { %v888_v61 = vsel %vm613_vm2, %v2518_v59, 0.0  ;;  %v860_v29 = vpop.xlane.xlu1 %859 }
 0x427   : > { %v877_v14 = vmul.f32 1.442695, %v865_v10  ;;  %889 = vadd.xlane.f32.xlu1 %v888_v61  ;;  %v868_v45 = vsub.f32 %v2508_v50, %v860_v29 }
 0x428   : > { %v857_v30 = vpop.xlane.xlu0 %856 }
 0x429   : > { %2157 = vpow2.f32 %v877_v14  ;;  %v867_v35 = vsub.f32 %v835_v51, %v857_v30  ;;  %v883_v49 = vmul.f32 1.442695, %v868_v45 }
 0x42a   : > { %2159 = vpow2.f32 %v873_v13 }
 0x42b   : > { %v881_v39 = vmul.f32 1.442695, %v867_v35  ;;  %2161 = vpow2.f32 %v875_v38 }
 0x42d   : > { %v2522_v19 = vpop.eup %2155  ;;  %2163 = vpow2.f32 %v881_v39 }
 0x42e   : > { %v900_v20 = vsel %vm613_vm2, %v2522_v19, 0.0  ;;  %2165 = vpow2.f32 %v883_v49 }
 0x42f   : > { %901 = vadd.xlane.f32.xlu1 %v900_v20 }
 0x433   : > { %v2526_v21 = vpop.eup %2157 }
 0x434   : > { %v897_v26 = vsel %vm613_vm2, %v2526_v21, 0.0  ;;  %v2530_v27 = vpop.eup %2159 }
 0x435   : > { %898 = vadd.xlane.f32.xlu0 %v897_v26  ;;  %v891_v28 = vsel %vm613_vm2, %v2530_v27, 0.0  ;;  %v2539_v40 = vpop.eup %2161 }
 0x436   : > { %v894_v24 = vsel %vm613_vm2, %v2539_v40, 0.0 }
 0x437   : > { %v2541_v41 = vpop.eup %2163 }
 0x438   : > { %v903_v44 = vsel %vm613_vm2, %v2541_v41, 0.0  ;;  %v2553_v48 = vpop.eup %2165 }
 0x439   : > { %892 = vadd.xlane.f32.xlu0 %v891_v28  ;;  %v906_v51 = vsel %vm613_vm2, %v2553_v48, 0.0 }
 0x440   : > { %976 = vrot.lane.b32.xlu1 %v2410_v22, %s2226_s29 }
 0x444   : > { %1023 = vrot.lane.b32.xlu1 %v2418_v37, %s2226_s29 }
 0x448   : > { %1070 = vrot.lane.b32.xlu1 %v2416_v36, %s2226_s29 }
 0x44f   : > { %929 = vrot.lane.b32.xlu0 %v2412_v23, %s2226_s29 }
 0x46c   : > { %895 = vadd.xlane.f32.xlu1 %v894_v24 }
 0x46e   : > { %904 = vadd.xlane.f32.xlu0 %v903_v44 }
 0x47d   : > { %1174 = vrot.lane.b32.xlu1 %v2410_v22, %s2227_s10 }
 0x484   : > { %1123 = vrot.lane.b32.xlu0 %v2412_v23, %s2227_s10 }
 0x488   : > { %1121 = vrot.lane.b32.xlu0 %v2412_v23, %s2228_s13 }
 0x48c   : > { %1172 = vrot.lane.b32.xlu0 %v2410_v22, %s2228_s13 }
 0x490   : > { %1223 = vrot.lane.b32.xlu0 %v2418_v37, %s2228_s13 }
 0x4a1   : > { %907 = vadd.xlane.f32.xlu1 %v906_v51 }
 0x4b2   : > { %1225 = vrot.lane.b32.xlu1 %v2418_v37, %s2227_s10  ;;  %v887_v56 = vpop.xlane.xlu0 %886 }
 0x4b4   : > { %v890_v55 = vpop.xlane.xlu1 %889 }
 0x4b5   : > { %2167 = vrcp.f32 %v890_v55 }
 0x4b6   : > { %1276 = vrot.lane.b32.xlu1 %v2416_v36, %s2227_s10  ;;  %2169 = vrcp.f32 %v887_v56 }
 0x4ba   : > { %1274 = vrot.lane.b32.xlu1 %v2416_v36, %s2228_s13 }
 0x4bc   : > { %v902_v50 = vpop.xlane.xlu1 %901 }
 0x4bf   : > { %v2168_v60 = vpop.eup %2167 }
 0x4c0   : > { %v977_v25 = vpop.permute.xlu1 %976  ;;  %v2170_v54 = vpop.eup %2169  ;;  %v918_v62 = vmul.f32 %v2168_v60, %v2518_v59 }
 0x4c1   : > { %2034 = vmatpush3.bf16.msra.mxu1 %v977_v25  ;;  %v917_v63 = vmul.f32 %v2170_v54, %v2514_v7 }
 0x4c2   : > { %v899_v58 = vpop.xlane.xlu0 %898  ;;  %2045 = vmatprep.subr.bf16.mxu1 %v2223_v52 }
 0x4c3   : > { %2171 = vrcp.f32 %v899_v58  ;;  %v925_v0 = vpack.c.bf16 %v918_v62, %v917_v63 }
 0x4c4   : > { %2173 = vrcp.f32 %v902_v50  ;;  %v1024_v6 = vpop.permute.xlu1 %1023 }
 0x4c6   : > { %v893_v33 = vpop.xlane.xlu0 %892 }
 0x4c7   : > { %2175 = vrcp.f32 %v893_v33 }
 0x4c8   : > { %v1071_v59 = vpop.permute.xlu1 %1070 }
 0x4ca   : > { %v930_v42 = vpop.permute.xlu0 %929 }
 0x4cb   : > { %2028 = vmatpush3.bf16.msra.mxu0 %v930_v42 }
 0x4cc   : > { %2039 = vmatprep.subr.bf16.mxu0 %v2223_v52 }
 0x4cd   : > { %v2172_v1 = vpop.eup %2171 }
 0x4ce   : > { %2030 = vmatmul.mubr.msk.bf16.vlgmr.msra.gmra.mrb[8].mxu0 %vm613_vm2, %v925_v0  ;;  %v2174_v9 = vpop.eup %2173  ;;  %v921_v43 = vmul.f32 %v2172_v1, %v2526_v21  ;;  %v1895_v1 = vld [vmem:[%s2752_s5 + $0x10] sm:$0xff] }
 0x4cf   : > { %2040 = vmatpush3.bf16.msra.mxu0 %v1024_v6  ;;  %2041 = vmatprep.mubr.msk.bf16.mxu0 %vm2224_vm1, %v2223_v52  ;;  %v922_v7 = vmul.f32 %v2174_v9, %v2522_v19 }
 0x4d0   : > { %2051 = vmatprep.subr.bf16.mxu0 %v2223_v52 }
 0x4d1   : > { %v927_v53 = vpack.c.bf16 %v922_v7, %v921_v43  ;;  %v2176_v20 = vpop.eup %2175 }
 0x4d2   : > { %v919_v19 = vmul.f32 %v2176_v20, %v2530_v27 }
 0x4d6   : > { %2042 = vmatmul.mubr.msk.bf16.vlgmr.msra.gmra.mrb[12].mxu0 %vm613_vm2, %v927_v53 }
 0x4d7   : > { %2053 = vmatprep.mubr.msk.bf16.mxu0 %vm2224_vm1, %v2223_v52 }
 0x4f9   : > { %v896_v10 = vpop.xlane.xlu1 %895 }
 0x4fa   : > { %2177 = vrcp.f32 %v896_v10 }
 0x4fb   : > { %v905_v61 = vpop.xlane.xlu0 %904 }
 0x4fc   : > { %2179 = vrcp.f32 %v905_v61 }
 0x4fd   : > { %v1175_v34 = vpop.permute.xlu1 %1174 }
 0x4fe   : > { %v1180_v51 = vsel %vm613_vm2, %v1175_v34, 0 }
 0x4ff   : > { %v1124_v13 = vpop.permute.xlu0 %1123 }
 0x500   : > { %v1129_v14 = vsel %vm613_vm2, %v1124_v13, 0 }
 0x501   : > { %2052 = vmatpush3.bf16.xpose.msra.mxu0 %v1129_v14 }
 0x502   : > { %2063 = vmatprep.subr.bf16.mxu0 %v2223_v52 }
 0x503   : > { %v1122_v28 = vpop.permute.xlu0 %1121 }
 0x504   : > { %v2178_v21 = vpop.eup %2177 }
 0x505   : > { %v920_v26 = vmul.f32 %v2178_v21, %v2539_v40 }
 0x506   : > { %v2180_v40 = vpop.eup %2179 }
 0x507   : > { %v926_v30 = vpack.c.bf16 %v920_v26, %v919_v19  ;;  %v1173_v39 = vpop.permute.xlu0 %1172  ;;  %v923_v44 = vmul.f32 %v2180_v40, %v2541_v41 }
 0x508   : > { %2054 = vmatmul.mubr.msk.bf16.vlgmr.msra.gmra.mrb[16].mxu0 %vm613_vm2, %v1122_v28 }
 0x509   : > { %2036 = vmatmul.mubr.msk.bf16.vlgmr.msra.gmra.mrb[16].mxu1 %vm613_vm2, %v926_v30  ;;  %2065 = vmatprep.mubr.msk.bf16.mxu0 %vm2224_vm1, %v2223_v52 }
 0x50a   : > { %2046 = vmatpush3.bf16.msra.mxu1 %v1071_v59  ;;  %2047 = vmatprep.mubr.msk.bf16.mxu1 %vm2224_vm1, %v2223_v52  ;;  %v1896_v59 = vld [vmem:[%s2752_s5 + $0x18] sm:$0xff] }
 0x50b   : > { %2057 = vmatprep.subr.bf16.mxu1 %v2223_v52  ;;  %v1224_v29 = vpop.permute.xlu0 %1223 }
 0x52e   : > { %v908_v27 = vpop.xlane.xlu1 %907 }
 0x52f   : > { %2181 = vrcp.f32 %v908_v27 }
 0x532   : > { %v1226_v35 = vpop.permute.xlu1 %1225 }
 0x533   : > { %v1231_v38 = vsel %vm613_vm2, %v1226_v35, 0 }
 0x534   : > { %2064 = vmatpush3.bf16.xpose.msra.mxu0 %v1231_v38 }
 0x535   : > { %2075 = vmatprep.subr.bf16.mxu0 %v2223_v52 }
 0x536   : > { %v1277_v41 = vpop.permute.xlu1 %1276 }
 0x537   : > { %v1282_v55 = vsel %vm613_vm2, %v1277_v41, 0 }
 0x539   : > { %v2182_v24 = vpop.eup %2181 }
 0x53a   : > { %v924_v45 = vmul.f32 %v2182_v24, %v2553_v48  ;;  %v1275_v48 = vpop.permute.xlu1 %1274 }
 0x53b   : > { %2066 = vmatmul.mubr.msk.bf16.vlgmr.msra.gmra.mrb[20].mxu0 %vm613_vm2, %v1224_v29 }
 0x53c   : > { %v928_v49 = vpack.c.bf16 %v924_v45, %v923_v44  ;;  %2077 = vmatprep.mubr.msk.bf16.mxu0 %vm2224_vm1, %v2223_v52 }
 0x53e   : > { %2048 = vmatmul.mubr.msk.bf16.vlgmr.msra.gmra.mrb[20].mxu1 %vm613_vm2, %v928_v49 }
 0x53f   : > { %2058 = vmatpush3.bf16.xpose.msra.mxu1 %v1180_v51  ;;  %2059 = vmatprep.mubr.msk.bf16.mxu1 %vm2224_vm1, %v2223_v52 }
 0x540   : > { %2069 = vmatprep.subr.bf16.mxu1 %v2223_v52 }
 0x546   : > { %2060 = vmatmul.mubr.msk.bf16.vlgmr.msra.gmra.mrb[24].mxu1 %vm613_vm2, %v1173_v39 }
 0x547   : > { %2070 = vmatpush3.bf16.xpose.msra.mxu1 %v1282_v55  ;;  %2071 = vmatprep.mubr.msk.bf16.mxu1 %vm2224_vm1, %v2223_v52 }
 0x548   : > { %2081 = vmatprep.subr.bf16.mxu1 %v2223_v52 }
 0x54e   : > { %2072 = vmatmul.mubr.msk.bf16.vlgmr.msra.gmra.mrb[28].mxu1 %vm613_vm2, %v1275_v48 }
 0x54f   : > { %2083 = vmatprep.mubr.msk.bf16.mxu1 %vm2224_vm1, %v2223_v52 }
 0x5a1   : > { %v2604_v56 = vpop.f32.mrb[8].mxu0 }
 0x5a2   : > { %v2031_v50 = vpop.f32.mrb[9].mxu0 }
 0x5a3   : > { %v2606_v25 = vpop.f32.mrb[10].mxu0 }
 0x5a4   : > { %v1117_v58 = vpack.c.bf16 %v2606_v25, %v2604_v56  ;;  %v2032_v60 = vpop.f32.mrb[11].mxu0 }
 0x5a9   : > { %v2610_v33 = vpop.f32.mrb[12].mxu0 }
 0x5aa   : > { %v2043_v54 = vpop.f32.mrb[13].mxu0 }
 0x5ab   : > { %v2612_v62 = vpop.f32.mrb[14].mxu0 }
 0x5ac   : > { %v1119_v63 = vpack.c.bf16 %v2612_v62, %v2610_v33  ;;  %v2044_v42 = vpop.f32.mrb[15].mxu0 }
 0x5db   : > { %v1165_v0 = vpop.f32.mrb[16].mxu0 }
 0x5dc   : > { %v1325_v6 = vmul.f32 0.25, %v1165_v0  ;;  %v2619_v9 = vpop.f32.mrb[16].mxu1  ;;  %v2055_v43 = vpop.f32.mrb[17].mxu0 }
 0x5dd   : > { %v2037_v7 = vpop.f32.mrb[17].mxu1  ;;  %v1168_v53 = vpop.f32.mrb[18].mxu0 }
 0x5de   : > { %v1336_v10 = vadd.f32 %v1895_v1, %v1325_v6  ;;  %v1326_v61 = vmul.f32 0.25, %v1168_v53  ;;  %v2624_v13 = vpop.f32.mrb[18].mxu1  ;;  %v2056_v14 = vpop.f32.mrb[19].mxu0 }
 0x5df   : > { %v1118_v20 = vpack.c.bf16 %v2624_v13, %v2619_v9  ;;  %v2038_v21 = vpop.f32.mrb[19].mxu1 }
 0x5e0   : > { %v1337_v19 = vadd.f32 %v1896_v59, %v1326_v61  ;;  %v1344_v26 = vadd.f32 %v1336_v10, %v2455_v32 }
 0x5e2   : > { %v1352_v28 = vsel %vm613_vm2, %v1344_v26, -inf  ;;  %v1345_v30 = vadd.f32 %v1337_v19, %v2460_v57 }
 0x5e3   : > { %1353 = vmax.xlane.f32.xlu0 %v1352_v28 }
 0x5e4   : > { %v1355_v34 = vsel %vm613_vm2, %v1345_v30, -inf }
 0x5e5   : > { %1356 = vmax.xlane.f32.xlu1 %v1355_v34 }
 0x60e   : > { %v1267_v27 = vpop.f32.mrb[20].mxu0 }
 0x60f   : > { %v2067_v35 = vpop.f32.mrb[21].mxu0  ;;  %v1329_v60 = vmul.f32 0.25, %v1267_v27 }
 0x610   : > { %v1270_v38 = vpop.f32.mrb[22].mxu0 }
 0x611   : > { %v1330_v39 = vmul.f32 0.25, %v1270_v38  ;;  %v2632_v40 = vpop.f32.mrb[20].mxu1  ;;  %v2068_v24 = vpop.f32.mrb[23].mxu0  ;;  %v1340_v7 = vadd.f32 %v1895_v1, %v1329_v60 }
 0x612   : > { %v2049_v44 = vpop.f32.mrb[21].mxu1 }
 0x613   : > { %v1341_v29 = vadd.f32 %v1896_v59, %v1330_v39  ;;  %v2634_v45 = vpop.f32.mrb[22].mxu1  ;;  %v1348_v35 = vadd.f32 %v1340_v7, %v2490_v31 }
 0x614   : > { %v1120_v32 = vpack.c.bf16 %v2634_v45, %v2632_v40  ;;  %v2050_v49 = vpop.f32.mrb[23].mxu1 }
 0x615   : > { %v1349_v57 = vadd.f32 %v1341_v29, %v2474_v15 }
 0x617   : > { %v1367_v51 = vsel %vm613_vm2, %v1349_v57, -inf }
 0x618   : > { %1368 = vmax.xlane.f32.xlu1 %v1367_v51 }
 0x619   : > { %v1216_v41 = vpop.f32.mrb[24].mxu1 }
 0x61a   : > { %v1327_v55 = vmul.f32 0.25, %v1216_v41  ;;  %v2061_v48 = vpop.f32.mrb[25].mxu1 }
 0x61b   : > { %v1219_v50 = vpop.f32.mrb[26].mxu1 }
 0x61c   : > { %v1338_v54 = vadd.f32 %v1895_v1, %v1327_v55  ;;  %v1328_v42 = vmul.f32 0.25, %v1219_v50  ;;  %v2062_v0 = vpop.f32.mrb[27].mxu1 }
 0x61e   : > { %v1339_v6 = vadd.f32 %v1896_v59, %v1328_v42  ;;  %v1346_v43 = vadd.f32 %v1338_v54, %v2469_v8  ;;  %v1364_v8 = vsel %vm613_vm2, %v1348_v35, -inf }
 0x620   : > { %v1358_v53 = vsel %vm613_vm2, %v1346_v43, -inf  ;;  %v1347_v10 = vadd.f32 %v1339_v6, %v2479_v18 }
 0x621   : > { %1359 = vmax.xlane.f32.xlu0 %v1358_v53  ;;  %v1318_v15 = vpop.f32.mrb[28].mxu1 }
 0x622   : > { %v1331_v61 = vmul.f32 0.25, %v1318_v15  ;;  %v2073_v14 = vpop.f32.mrb[29].mxu1  ;;  %v1361_v27 = vsel %vm613_vm2, %v1347_v10, -inf }
 0x623   : > { %v1321_v21 = vpop.f32.mrb[30].mxu1 }
 0x624   : > { %v1342_v19 = vadd.f32 %v1895_v1, %v1331_v61  ;;  %v1332_v28 = vmul.f32 0.25, %v1321_v21  ;;  %v2074_v34 = vpop.f32.mrb[31].mxu1 }
 0x625   : > { %1362 = vmax.xlane.f32.xlu0 %v1361_v27 }
 0x626   : > { %v1343_v38 = vadd.f32 %v1896_v59, %v1332_v28  ;;  %v1350_v18 = vadd.f32 %v1342_v19, %v2504_v47 }
 0x628   : > { %v1351_v39 = vadd.f32 %v1343_v38, %v2499_v46  ;;  %v1370_v1 = vsel %vm613_vm2, %v1350_v18, -inf }
 0x629   : > { %1365 = vmax.xlane.f32.xlu0 %v1364_v8 }
 0x62a   : > { %v1373_v24 = vsel %vm613_vm2, %v1351_v39, -inf }
 0x62b   : > { %1374 = vmax.xlane.f32.xlu1 %v1373_v24 }
 0x62d   : > { %1371 = vmax.xlane.f32.xlu0 %v1370_v1 }
 0x670   : > { %v1354_v44 = vpop.xlane.xlu0 %1353 }
 0x671   : > { %v1376_v29 = vsub.f32 %v1344_v26, %v1354_v44 }
 0x672   : > { %v1357_v49 = vpop.xlane.xlu1 %1356 }
 0x673   : > { %v1384_v51 = vmul.f32 1.442695, %v1376_v29  ;;  %v1377_v31 = vsub.f32 %v1345_v30, %v1357_v49 }
 0x675   : > { %2183 = vpow2.f32 %v1384_v51  ;;  %v1386_v59 = vmul.f32 1.442695, %v1377_v31 }
 0x677   : > { %2185 = vpow2.f32 %v1386_v59 }
 0x67f   : > { %v2650_v41 = vpop.eup %2183 }
 0x680   : > { %v1400_v46 = vsel %vm613_vm2, %v2650_v41, 0.0 }
 0x681   : > { %v2654_v47 = vpop.eup %2185  ;;  %1401 = vadd.xlane.f32.xlu0 %v1400_v46 }
 0x682   : > { %v1403_v55 = vsel %vm613_vm2, %v2654_v47, 0.0 }
 0x683   : > { %1404 = vadd.xlane.f32.xlu1 %v1403_v55 }
 0x6a5   : > { %v1369_v48 = vpop.xlane.xlu1 %1368 }
 0x6a6   : > { %v1381_v60 = vsub.f32 %v1349_v57, %v1369_v48 }
 0x6a8   : > { %v1394_v0 = vmul.f32 1.442695, %v1381_v60 }
 0x6ae   : > { %v1360_v26 = vpop.xlane.xlu0 %1359 }
 0x6af   : > { %v1378_v50 = vsub.f32 %v1346_v43, %v1360_v26 }
 0x6b1   : > { %v1388_v30 = vmul.f32 1.442695, %v1378_v50 }
 0x6b2   : > { %v1363_v54 = vpop.xlane.xlu0 %1362 }
 0x6b3   : > { %2187 = vpow2.f32 %v1388_v30  ;;  %v1379_v42 = vsub.f32 %v1347_v10, %v1363_v54 }
 0x6b5   : > { %v1390_v6 = vmul.f32 1.442695, %v1379_v42 }
 0x6b6   : > { %v1366_v7 = vpop.xlane.xlu0 %1365 }
 0x6b7   : > { %2189 = vpow2.f32 %v1390_v6  ;;  %v1380_v53 = vsub.f32 %v1348_v35, %v1366_v7 }
 0x6b8   : > { %2191 = vpow2.f32 %v1394_v0 }
 0x6b9   : > { %v1392_v15 = vmul.f32 1.442695, %v1380_v53 }
 0x6ba   : > { %v1372_v61 = vpop.xlane.xlu0 %1371 }
 0x6bb   : > { %2193 = vpow2.f32 %v1392_v15  ;;  %v1382_v14 = vsub.f32 %v1350_v18, %v1372_v61  ;;  %v1375_v18 = vpop.xlane.xlu1 %1374 }
 0x6bc   : > { %v1383_v24 = vsub.f32 %v1351_v39, %v1375_v18 }
 0x6bd   : > { %v2188_v21 = vpop.eup %2187  ;;  %v1396_v19 = vmul.f32 1.442695, %v1382_v14 }
 0x6be   : > { %v1406_v28 = vsel %vm613_vm2, %v2188_v21, 0.0  ;;  %v1398_v1 = vmul.f32 1.442695, %v1383_v24 }
 0x6bf   : > { %2195 = vpow2.f32 %v1396_v19  ;;  %1407 = vadd.xlane.f32.xlu0 %v1406_v28 }
 0x6c0   : > { %2197 = vpow2.f32 %v1398_v1 }
 0x6c1   : > { %v2190_v57 = vpop.eup %2189 }
 0x6c2   : > { %v1409_v43 = vsel %vm613_vm2, %v2190_v57, 0.0  ;;  %v2192_v10 = vpop.eup %2191 }
 0x6c3   : > { %1410 = vadd.xlane.f32.xlu1 %v1409_v43  ;;  %v1415_v35 = vsel %vm613_vm2, %v2192_v10, 0.0 }
 0x6c5   : > { %v2194_v34 = vpop.eup %2193 }
 0x6c6   : > { %v1412_v27 = vsel %vm613_vm2, %v2194_v34, 0.0 }
 0x6c7   : > { %1413 = vadd.xlane.f32.xlu0 %v1412_v27  ;;  %1416 = vadd.xlane.f32.xlu1 %v1415_v35 }
 0x6c9   : > { %v2662_v38 = vpop.eup %2195 }
 0x6ca   : > { %v1418_v8 = vsel %vm613_vm2, %v2662_v38, 0.0  ;;  %v2198_v44 = vpop.eup %2197 }
 0x6cb   : > { %1419 = vadd.xlane.f32.xlu0 %v1418_v8  ;;  %v1421_v29 = vsel %vm613_vm2, %v2198_v44, 0.0 }
 0x6d8   : > { %1491 = vrot.lane.b32.xlu1 %v2410_v22, %s2229_s18 }
 0x6dc   : > { %1538 = vrot.lane.b32.xlu1 %v2418_v37, %s2229_s18 }
 0x6e1   : > { %1444 = vrot.lane.b32.xlu0 %v2412_v23, %s2229_s18 }
 0x700   : > { %1422 = vadd.xlane.f32.xlu1 %v1421_v29 }
 0x70e   : > { %v1402_v49 = vpop.xlane.xlu0 %1401 }
 0x710   : > { %v1405_v51 = vpop.xlane.xlu1 %1404 }
 0x711   : > { %1585 = vrot.lane.b32.xlu1 %v2416_v36, %s2229_s18  ;;  %2199 = vrcp.f32 %v1405_v51 }
 0x712   : > { %2201 = vrcp.f32 %v1402_v49 }
 0x71b   : > { %v2200_v39 = vpop.eup %2199 }
 0x71c   : > { %v2202_v59 = vpop.eup %2201  ;;  %v1433_v36 = vmul.f32 %v2200_v39, %v2654_v47 }
 0x71d   : > { %v1432_v50 = vmul.f32 %v2202_v59, %v2650_v41 }
 0x71f   : > { %v1440_v42 = vpack.c.bf16 %v1433_v36, %v1432_v50 }
 0x74c   : > { %v1408_v31 = vpop.xlane.xlu0 %1407 }
 0x74d   : > { %2203 = vrcp.f32 %v1408_v31 }
 0x750   : > { %v1411_v22 = vpop.xlane.xlu1 %1410 }
 0x751   : > { %2205 = vrcp.f32 %v1411_v22 }
 0x754   : > { %v1414_v37 = vpop.xlane.xlu0 %1413  ;;  %v1417_v23 = vpop.xlane.xlu1 %1416 }
 0x755   : > { %2207 = vrcp.f32 %v1414_v37 }
 0x756   : > { %2209 = vrcp.f32 %v1417_v23 }
 0x757   : > { %v2204_v48 = vpop.eup %2203 }
 0x758   : > { %v1420_v46 = vpop.xlane.xlu0 %1419  ;;  %v1492_v55 = vpop.permute.xlu1 %1491  ;;  %v1434_v60 = vmul.f32 %v2204_v48, %v2188_v21 }
 0x759   : > { %2082 = vmatpush3.bf16.msra.mxu1 %v1492_v55  ;;  %2211 = vrcp.f32 %v1420_v46 }
 0x75a   : > { %2093 = vmatprep.subr.bf16.mxu1 %v2223_v52 }
 0x75b   : > { %v2206_v26 = vpop.eup %2205 }
 0x75c   : > { %v1435_v30 = vmul.f32 %v2206_v26, %v2190_v57  ;;  %v1445_v54 = vpop.permute.xlu0 %1444  ;;  %v1539_v53 = vpop.permute.xlu1 %1538 }
 0x75d   : > { %2076 = vmatpush3.bf16.msra.mxu0 %v1445_v54 }
 0x75e   : > { %v1441_v0 = vpack.c.bf16 %v1435_v30, %v1434_v60  ;;  %2087 = vmatprep.subr.bf16.mxu0 %v2223_v52 }
 0x75f   : > { %v2208_v6 = vpop.eup %2207 }
 0x760   : > { %v2210_v7 = vpop.eup %2209  ;;  %2078 = vmatmul.mubr.msk.bf16.vlgmr.msra.gmra.mrb[24].mxu0 %vm613_vm2, %v1440_v42  ;;  %2084 = vmatmul.mubr.msk.bf16.vlgmr.msra.gmra.mrb[32].mxu1 %vm613_vm2, %v1441_v0  ;;  %v1436_v41 = vmul.f32 %v2208_v6, %v2194_v34 }
 0x761   : > { %2088 = vmatpush3.bf16.msra.mxu0 %v1539_v53  ;;  %2089 = vmatprep.mubr.msk.bf16.mxu0 %vm2224_vm1, %v2223_v52  ;;  %v1437_v47 = vmul.f32 %v2210_v7, %v2192_v10  ;;  %v2134_v10 = vld [vmem:[%s2753_s6 + $0x8] sm:$0xff]  }
 0x762   : > { %2095 = vmatprep.mubr.msk.bf16.mxu1 %vm2224_vm1, %v2223_v52  ;;  %v2133_v52 = vld [vmem:[%s2753_s6] sm:$0xff]  }
 0x763   : > { %v1442_v15 = vpack.c.bf16 %v1437_v47, %v1436_v41  ;;  %v2212_v21 = vpop.eup %2211  ;;  %2099 = vmatprep.subr.bf16.mxu0 %v2133_v52 }
 0x764   : > { %v1438_v28 = vmul.f32 %v2212_v21, %v2662_v38 }
 0x768   : > { %2090 = vmatmul.mubr.msk.bf16.vlgmr.msra.gmra.mrb[28].mxu0 %vm613_vm2, %v1442_v15 }
 0x769   : > { %2100 = vmatpush3.bf16.msra.mxu0 %v2133_v52 }
 0x76a   : > { %2101 = vmatprep.subr.bf16.mxu0 %v2134_v10 }
 0x76d   : > { %2102 = vmatpush3.bf16.msra.mxu0 %v2134_v10 }
 0x78d   : > { %v1423_v61 = vpop.xlane.xlu1 %1422 }
 0x78e   : > { %2213 = vrcp.f32 %v1423_v61 }
 0x791   : > { %v1586_v14 = vpop.permute.xlu1 %1585 }
 0x792   : > { %2094 = vmatpush3.bf16.msra.mxu1 %v1586_v14 }
 0x798   : > { %v2214_v19 = vpop.eup %2213 }
 0x799   : > { %v1439_v57 = vmul.f32 %v2214_v19, %v2198_v44 }
 0x79b   : > { %v1443_v43 = vpack.c.bf16 %v1439_v57, %v1438_v28 }
 0x79d   : > { %2096 = vmatmul.mubr.msk.bf16.vlgmr.msra.gmra.mrb[36].mxu1 %vm613_vm2, %v1443_v43 }
 0x833   : > { %v1484_v34 = vpop.f32.mrb[24].mxu0  ;;  %v1531_v27 = vpop.f32.mrb[32].mxu1 }
 0x834   : > { %v2079_v35 = vpop.f32.mrb[25].mxu0  ;;  %v2085_v38 = vpop.f32.mrb[33].mxu1 }
 0x835   : > { %v1487_v8 = vpop.f32.mrb[26].mxu0  ;;  %v1534_v18 = vpop.f32.mrb[34].mxu1 }
 0x836   : > { %v1632_v24 = vpack.c.bf16 %v1487_v8, %v1484_v34  ;;  %v1633_v1 = vpack.c.bf16 %v1534_v18, %v1531_v27  ;;  %v2080_v44 = vpop.f32.mrb[27].mxu0  ;;  %v2086_v29 = vpop.f32.mrb[35].mxu1 }
 0x838   : > { %1640 = vrot.lane.b32.xlu0 %v1632_v24, %s2230_s23  ;;  %1642 = vrot.lane.b32.xlu1 %v1633_v1, %s2230_s23 }
 0x83b   : > { %v1578_v49 = vpop.f32.mrb[28].mxu0 }
 0x83c   : > { %v2091_v51 = vpop.f32.mrb[29].mxu0 }
 0x83d   : > { %v1581_v31 = vpop.f32.mrb[30].mxu0 }
 0x83e   : > { %v1634_v22 = vpack.c.bf16 %v1581_v31, %v1578_v49  ;;  %v2092_v37 = vpop.f32.mrb[31].mxu0 }
 0x840   : > { %1644 = vrot.lane.b32.xlu0 %v1634_v22, %s2230_s23 }
 0x870   : > { %v1625_v23 = vpop.f32.mrb[36].mxu1 }
 0x871   : > { %v2097_v39 = vpop.f32.mrb[37].mxu1 }
 0x872   : > { %v1628_v59 = vpop.f32.mrb[38].mxu1 }
 0x873   : > { %v1635_v46 = vpack.c.bf16 %v1628_v59, %v1625_v23  ;;  %v2098_v55 = vpop.f32.mrb[39].mxu1 }
 0x875   : > { %1646 = vrot.lane.b32.xlu1 %v1635_v46, %s2230_s23 }
 0x8aa   : > { %v1641_v48 = vpop.permute.xlu0 %1640  ;;  %v1643_v36 = vpop.permute.xlu1 %1642 }
 0x8ab   : > { %v1650_v26 = vsel %vm613_vm2, %v1117_v58, %v1641_v48  ;;  %v1653_v50 = vsel %vm613_vm2, %v1118_v20, %v1643_v36  ;;  %v1901_v58 = vld [vmem:[%s2754_s7] ss:$0 sm:$0xff] }
 0x8ac   : > { %2103 = vmatprep.mubr.msk.bf16.mxu0 %vm360_vm0, %v1650_v26 }
 0x8ad   : > { %2104 = vmatmul.mubr.msk.bf16.vlgmr.msra.gmra.mrb[32].mxu0 %vm360_vm0, %v1653_v50 }
 0x8b2   : > { %v1645_v60 = vpop.permute.xlu0 %1644 }
 0x8b3   : > { %v1656_v30 = vsel %vm613_vm2, %v1119_v63, %v1645_v60 }
 0x8b4   : > { %2107 = vmatprep.mubr.msk.bf16.mxu0 %vm360_vm0, %v1656_v30 }
 0x8e7   : > { %v1647_v56 = vpop.permute.xlu1 %1646 }
 0x8e8   : > { %v1659_v25 = vsel %vm613_vm2, %v1120_v32, %v1647_v56 }
 0x8e9   : > { %2108 = vmatmul.mubr.msk.bf16.gmra.mrb[36].mxu0 %vm360_vm0, %v1659_v25 }
 0x980   : > { %v2105_v9 = vpop.f32.mrb[32].mxu0 }
 0x981   : > { %v1734_v13 = vadd.f32 %v2105_v9, %v1901_v58  ;;  %v1725_v33 = vpop.f32.mrb[33].mxu0 }
 0x982   : > { %v1726_v62 = vadd.f32 %v1901_v58, %v1725_v33  ;;  %v2106_v63 = vpop.f32.mrb[34].mxu0 }
 0x983   : > { %v1758_v20 = vadd.f32 %v2299_v3, %v1734_v13  ;;  %v1737_v54 = vadd.f32 %v2106_v63, %v1901_v58  ;;  %v1728_v42 = vpop.f32.mrb[35].mxu0 }
 0x984   : > { %v1756_v0 = vadd.f32 %v2297_v2, %v1726_v62  ;;  %v1729_v40 = vadd.f32 %v1901_v58, %v1728_v42 }
 0x985   : > { %v1759_v45 = vadd.f32 %v2303_v5, %v1737_v54  ;;  %v1922_v6 = vpack.c.bf16 %v1758_v20, %v1758_v20 }
 0x986   : > { %v1920_v32 = vpack.c.bf16 %v1756_v0, %v1756_v0  ;;  %v1757_v3 = vadd.f32 %v2301_v4, %v1729_v40 }
 0x987   : > { %1799 = vst.msk [vmem:[%s2720_s28 + $0x8] sm:$0xf] %vm1796_vm3, %v1922_v6  ;;  %v1923_v7 = vpack.c.bf16 %v1759_v45, %v1759_v45 }
 0x988   : > { %1797 = vst.msk [vmem:[%s2720_s28] sm:$0xf] %vm1796_vm3, %v1920_v32  ;;  %v1921_v2 = vpack.c.bf16 %v1757_v3, %v1757_v3 }
 0x989   : > { %1800 = vst.msk [vmem:[%s2720_s28 + $0xc] sm:$0xf] %vm1796_vm3, %v1923_v7 }
 0x98a   : > { %1798 = vst.msk [vmem:[%s2720_s28 + $0x4] sm:$0xf] %vm1796_vm3, %v1921_v2 }
 0x9bc   : > { %v2109_v53 = vpop.f32.mrb[36].mxu0 }
 0x9bd   : > { %v1750_v41 = vadd.f32 %v2109_v53, %v1901_v58  ;;  %v1741_v47 = vpop.f32.mrb[37].mxu0 }
 0x9be   : > { %v1742_v5 = vadd.f32 %v1901_v58, %v1741_v47  ;;  %v2110_v4 = vpop.f32.mrb[38].mxu0 }
 0x9bf   : > { %v1762_v15 = vadd.f32 %v2321_v16, %v1750_v41  ;;  %v1753_v61 = vadd.f32 %v2110_v4, %v1901_v58  ;;  %v1744_v14 = vpop.f32.mrb[39].mxu0 }
 0x9c0   : > { %v1760_v21 = vadd.f32 %v2313_v11, %v1742_v5  ;;  %v1745_v19 = vadd.f32 %v1901_v58, %v1744_v14 }
 0x9c1   : > { %v1763_v28 = vadd.f32 %v2323_v17, %v1753_v61  ;;  %v1926_v52 = vpack.c.bf16 %v1762_v15, %v1762_v15 }
 0x9c2   : > { %v1924_v57 = vpack.c.bf16 %v1760_v21, %v1760_v21  ;;  %v1761_v43 = vadd.f32 %v2315_v12, %v1745_v19 }
 0x9c3   : > { %1803 = vst.msk [vmem:[%s2720_s28 + $0x18] sm:$0xf] %vm1796_vm3, %v1926_v52  ;;  %v1927_v34 = vpack.c.bf16 %v1763_v28, %v1763_v28 }
 0x9c4   : > { %1801 = vst.msk [vmem:[%s2720_s28 + $0x10] sm:$0xf] %vm1796_vm3, %v1924_v57  ;;  %v1925_v10 = vpack.c.bf16 %v1761_v43, %v1761_v43 }
 0x9c5   : > { %1804 = vst.msk [vmem:[%s2720_s28 + $0x1c] sm:$0xf] %vm1796_vm3, %v1927_v34 }
 0x9c6   : > { %1802 = vst.msk [vmem:[%s2720_s28 + $0x14] sm:$0xf] %vm1796_vm3, %v1925_v10 }
 0x9c7 PF: > { %s19_s30 = sadd.s32 1, %s2221_s30  }
 0x9c8   : > { %p16_p4 = scmp.ge.s32.totalorder %s19_s30, 4  }
 0x9ca   :  { %18 = sbr.rel (!%p16_p4) target bundleno = 1 (0x1), region = 87 }

// kernel: forward.18
= control target key start
LH: loop header
LB: loop body
LE: loop exit
PB: predicated region body
PF: predicated region fallthrough
CT: control target
= control target key end

     0   :  { %s1083_s24 = smov 0   ;;  %s1085_s25 = smov 0   ;;  %s1227_s0 = inlined_call_operand.vmem [shape: bf16[32,64], index: 0, kind: input, shape index: {}]   ;;  %s1228_s1 = inlined_call_operand.vmem [shape: f32[1,64], index: 1, kind: input, shape index: {}]   ;;  %s1229_s2 = inlined_call_operand.vmem [shape: f32[1,64], index: 2, kind: input, shape index: {}]   ;;  %s1230_s3 = inlined_call_operand.vmem [shape: bf16[64,256], index: 3, kind: input, shape index: {}]   ;;  %s1231_s4 = inlined_call_operand.vmem [shape: f32[1,256], index: 4, kind: input, shape index: {}]   ;;  %s1232_s5 = inlined_call_operand.vmem [shape: bf16[256,64], index: 5, kind: input, shape index: {}]   ;;  %s1233_s6 = inlined_call_operand.vmem [shape: f32[1,64], index: 6, kind: input, shape index: {}]   ;;  %s1234_s7 = inlined_call_operand.vmem [shape: bf16[32,64], index: 7, kind: output, shape index: {}]  }
   0x1   :  { %s1087_s26 = smov 0  }
   0x2 LB: > { %s29_s27 = sadd.s32 1, %s1035_s25  ;;  %p882_p0 = scmp.ge.s32.totalorder %s1039_s26, 1  ;;  %s1039_s26 = sphi %s1087_s26, %s17_s26   ;;  %s1035_s25 = sphi %s1085_s25, %s1236_s25   ;;  %s1031_s24 = sphi %s1083_s24, %s1235_s24  }
   0x3   : > { %p31_p1 = scmp.ge.s32.totalorder %s29_s27, 2  ;;  %p282_p2 = scmp.lt.s32.totalorder %s1039_s26, 3 }
   0x5   : > { %s1238_s27 = smov (%p31_p1, %s29_s27), 0  ;;  %p283_p3 = pnand %p882_p0, %p282_p2 }
   0x6   : > { %s883_s28 = sshll.u32 (!%p283_p3), %s1031_s24, 1  ;;  %vm368_vm0 = vcmask (!%p283_p3), 523264   ;;  %v977_v15 = vld [vmem:[%s1230_s3 + $0x4] ss:$8 sps:$4 sm:$0xff] (!%p283_p3)   ;;  %v979_v16 = vld [vmem:[%s1230_s3] ss:$8 sps:$4 sm:$0xff] (!%p283_p3)   ;;  %v427_v58 = vlaneseq (!%p283_p3) }
   0x7   : > { %286 = sbr.rel (%p283_p3) target bundleno = 828 (0x33c), region = 48  ;;  %p329_p4 = scmp.lt.s32.totalorder (!%p283_p3), %s883_s28, 3  ;;  %481 = vmatprep.subr.bf16.mxu0 (!%p283_p3), %v977_v15  ;;  %v980_v17 = vld [vmem:[%s1230_s3 + $0x14] ss:$8 sps:$4 sm:$0xff] (!%p283_p3)   ;;  %v982_v18 = vld [vmem:[%s1230_s3 + $0x10] ss:$8 sps:$4 sm:$0xff] (!%p283_p3)  }
   0x8   : > { %482 = vmatpush1.bf16.msra.mxu0 (!%p283_p3), %v979_v16  ;;  %v983_v19 = vld [vmem:[%s1230_s3 + $0x24] ss:$8 sps:$4 sm:$0xff] (!%p283_p3)   ;;  %v985_v20 = vld [vmem:[%s1230_s3 + $0x20] ss:$8 sps:$4 sm:$0xff] (!%p283_p3)   ;;  %v986_v21 = vld [vmem:[%s1230_s3 + $0x34] ss:$8 sps:$4 sm:$0xff] (!%p283_p3)  }
   0x9   : > { %483 = vmatprep.subr.bf16.mxu0 (!%p283_p3), %v980_v17  ;;  %v988_v22 = vld [vmem:[%s1230_s3 + $0x30] ss:$8 sps:$4 sm:$0xff] (!%p283_p3)   ;;  %v1041_v23 = vmov (!%p283_p3), 0   ;;  %v887_v32 = vld [vmem:[%s1228_s1] ss:$0 sm:$0xff] (!%p283_p3)  ;;  %v991_v44 = vld [vmem:[%s1232_s5 + $0x48] sm:$0xff] (!%p283_p3)  }
   0xa   : > { %513 = vmatprep.mubr.bf16.mxu0 (!%p283_p3), %v1041_v23  ;;  %v888_v36 = vld [vmem:[%s1229_s2] ss:$0 sm:$0xff] (!%p283_p3)  ;;  %v992_v45 = vld [vmem:[%s1232_s5 + $0x8] sm:$0xff] (!%p283_p3)   ;;  %v993_v46 = vld [vmem:[%s1232_s5 + $0x50] sm:$0xff] (!%p283_p3)   ;;  %v428_v59 = vshrl.u32 (!%p283_p3), %v427_v58, 7  ;;  %vm765_vm1 = vcmask (!%p283_p3), 519168  }
   0xb   : > { %v989_v42 = vld [vmem:[%s1232_s5 + $0x40] sm:$0xff] (!%p283_p3)   ;;  %v994_v47 = vld [vmem:[%s1232_s5 + $0x10] sm:$0xff] (!%p283_p3)   ;;  %v995_v48 = vld [vmem:[%s1232_s5 + $0x58] sm:$0xff] (!%p283_p3)  }
   0xc   : > { %484 = vmatpush1.bf16.msra.mxu0 (!%p283_p3), %v982_v18  ;;  %v990_v43 = vld [vmem:[%s1232_s5] sm:$0xff] (!%p283_p3)   ;;  %929 = vmatprep.subr.bf16.mxu1 (!%p283_p3), %v989_v42  ;;  %v996_v49 = vld [vmem:[%s1232_s5 + $0x18] sm:$0xff] (!%p283_p3)   ;;  %v999_v52 = vld [vmem:[%s1232_s5 + $0x68] sm:$0xff] (!%p283_p3)   ;;  %v429_v60 = vsub.s32 (!%p283_p3), 0, %v428_v59  ;;  %v433_v62 = vsub.s32 (!%p283_p3), 1, %v428_v59 }
   0xd   : > { %485 = vmatprep.subr.bf16.mxu0 (!%p283_p3), %v983_v19  ;;  %930 = vmatpush3.bf16.msra.mxu1 (!%p283_p3), %v990_v43  ;;  %v997_v50 = vld [vmem:[%s1232_s5 + $0x60] sm:$0xff] (!%p283_p3)   ;;  %v1000_v53 = vld [vmem:[%s1232_s5 + $0x28] sm:$0xff] (!%p283_p3)   ;;  %v1001_v54 = vld [vmem:[%s1232_s5 + $0x70] sm:$0xff] (!%p283_p3)  }
   0xe   : > { %s1240_s28 = smov (!%p329_p4, %s883_s28), 3  ;;  %931 = vmatprep.subr.bf16.mxu1 %v991_v44  ;;  %v998_v51 = vld [vmem:[%s1232_s5 + $0x20] sm:$0xff]   ;;  %v1002_v55 = vld [vmem:[%s1232_s5 + $0x30] sm:$0xff]   ;;  %v1003_v56 = vld [vmem:[%s1232_s5 + $0x78] sm:$0xff]  }
   0xf   : > { %s884_s29 = sshll.u32 %s1240_s28, 2  ;;  %v1004_v57 = vld [vmem:[%s1232_s5 + $0x38] sm:$0xff]   ;;  %v425_v61 = vld [vmem:[%s1231_s4] sm:$0x3] }
  0x10   : > { %s332_s9 = scalar_lea.vmem %s1227_s0, %s884_s29  ;;  %486 = vmatpush1.bf16.msra.mxu0 %v985_v20  ;;  %v430_v63 = vrot.slane %v425_v61, %v429_v60  ;;  %s355_s14 = scalar_lea.vmem %s1234_s7, %s884_s29 }
  0x11   : > { %v922_v0 = vld [vmem:[%s332_s9] sm:$0xff]   ;;  %487 = vmatprep.subr.bf16.mxu0 %v986_v21  ;;  %932 = vmatpush3.bf16.msra.mxu1 %v992_v45 }
  0x12   : > { %v1109_v1 = vunpack.c.l.bf16 %v922_v0  ;;  %v1111_v2 = vunpack.c.h.bf16 %v922_v0  ;;  %933 = vmatprep.subr.bf16.mxu1 %v993_v46  ;;  %v434_v0 = vrot.slane %v425_v61, %v433_v62  ;;  %v914_v61 = vld [vmem:[%s1233_s6] ss:$0 sm:$0xff] }
  0x14   : > { %v369_v3 = vsel %vm368_vm0, %v1109_v1, 0.0  ;;  %v372_v4 = vsel %vm368_vm0, %v1111_v2, 0.0  ;;  %488 = vmatpush1.bf16.msra.mxu0 %v988_v22 }
  0x15   : > { %370 = vadd.xlane.f32.xlu0 %v369_v3  ;;  %934 = vmatpush3.bf16.msra.mxu1 %v994_v47 }
  0x16   : > { %935 = vmatprep.subr.bf16.mxu1 %v995_v48 }
  0x19   : > { %373 = vadd.xlane.f32.xlu0 %v372_v4  ;;  %936 = vmatpush3.bf16.msra.mxu1 %v996_v49  ;;  %v1042_v49 = vmov 0.0  }
  0x1a   : > { %937 = vmatprep.subr.bf16.mxu1 %v997_v50  ;;  %414 = vst.msk [vmem:[#allocation2] sm:$0xff] %vm368_vm0, %v1042_v49  ;;  %415 = vst.msk [vmem:[#allocation2 + $0x8] sm:$0xff] %vm368_vm0, %v1042_v49 }
  0x1d   : > { %938 = vmatpush3.bf16.msra.mxu1 %v998_v51 }
  0x1e   : > { %939 = vmatprep.subr.bf16.mxu1 %v999_v52 }
  0x21   : > { %940 = vmatpush3.bf16.msra.mxu1 %v1000_v53  ;;  %v560_v51 = vld [vmem:[#allocation2] sm:$0xff] }
  0x22   : > { %941 = vmatprep.subr.bf16.mxu1 %v1001_v54 }
  0x25   : > { %942 = vmatpush3.bf16.msra.mxu1 %v1002_v55  ;;  %v561_v55 = vld [vmem:[#allocation2 + $0x8] sm:$0xff] }
  0x26   : > { %943 = vmatprep.subr.bf16.mxu1 %v1003_v56 }
  0x29   : > { %944 = vmatpush3.bf16.msra.mxu1 %v1004_v57 }
  0xa2   : > { %v371_v5 = vpop.xlane.xlu0 %370 }
  0xa3   : > { %v376_v6 = vmul.f32 0.015625, %v371_v5 }
  0xa5   : > { %v378_v7 = vsub.f32 %v1109_v1, %v376_v6 }
  0xa6   : > { %v374_v8 = vpop.xlane.xlu0 %373 }
  0xa7   : > { %v377_v9 = vmul.f32 0.015625, %v374_v8  ;;  %v380_v10 = vmul.f32 %v378_v7, %v378_v7 }
  0xa9   : > { %v379_v11 = vsub.f32 %v1111_v2, %v377_v9  ;;  %v382_v12 = vsel %vm368_vm0, %v380_v10, 0.0 }
  0xaa   : > { %383 = vadd.xlane.f32.xlu1 %v382_v12 }
  0xab   : > { %v381_v13 = vmul.f32 %v379_v11, %v379_v11 }
  0xad   : > { %v385_v14 = vsel %vm368_vm0, %v381_v13, 0.0 }
  0xae   : > { %386 = vadd.xlane.f32.xlu1 %v385_v14 }
 0x137   : > { %v384_v24 = vpop.xlane.xlu1 %383 }
 0x138   : > { %v388_v25 = vmul.f32 0.015625, %v384_v24 }
 0x13a   : > { %v390_v26 = vadd.f32 1e-05, %v388_v25 }
 0x13b   : > { %v387_v27 = vpop.xlane.xlu1 %386 }
 0x13c   : > { %1005 = vrsqrt.f32 %v390_v26  ;;  %v389_v28 = vmul.f32 0.015625, %v387_v27 }
 0x13e   : > { %v391_v29 = vadd.f32 1e-05, %v389_v28 }
 0x140   : > { %1007 = vrsqrt.f32 %v391_v29 }
 0x146   : > { %v1006_v30 = vpop.eup %1005 }
 0x147   : > { %v394_v31 = vmul.f32 %v1006_v30, %v378_v7 }
 0x149   : > { %v402_v34 = vmul.f32 %v887_v32, %v394_v31 }
 0x14a   : > { %v1008_v33 = vpop.eup %1007 }
 0x14b   : > { %v395_v35 = vmul.f32 %v1008_v33, %v379_v11  ;;  %v410_v38 = vadd.f32 %v888_v36, %v402_v34 }
 0x14d   : > { %v403_v37 = vmul.f32 %v887_v32, %v395_v35 }
 0x14f   : > { %v411_v39 = vadd.f32 %v888_v36, %v403_v37 }
 0x151   : > { %v412_v40 = vpack.c.bf16 %v411_v39, %v410_v38 }
 0x153   : > { %413 = vst.msk [vmem:[#allocation3] sm:$0xff] %vm368_vm0, %v412_v40 }
 0x15a   : > { %v416_v41 = vld [vmem:[#allocation3] sm:$0xff] }
 0x15b   : > { %897 = vmatmul.mubr.msk.bf16.vlgmr.msra.gmra.mrb[0].mxu0 %vm368_vm0, %v416_v41 }
 0x22e   : > { %v515_v3 = vpop.f32.mrb[0].mxu0 }
 0x22f   : > { %v516_v4 = vadd.f32 %v515_v3, %v430_v63  ;;  %v517_v5 = vpop.f32.mrb[1].mxu0 }
 0x230   : > { %v518_v6 = vadd.f32 %v517_v5, %v434_v0  ;;  %v519_v7 = vpop.f32.mrb[2].mxu0 }
 0x231   : > { %v524_v8 = vmul.f32 %v516_v4, %v516_v4  ;;  %v520_v9 = vadd.f32 %v519_v7, %v430_v63  ;;  %v521_v10 = vpop.f32.mrb[3].mxu0 }
 0x232   : > { %v525_v11 = vmul.f32 %v518_v6, %v518_v6  ;;  %v522_v12 = vadd.f32 %v521_v10, %v434_v0 }
 0x233   : > { %v528_v13 = vmul.f32 %v524_v8, %v516_v4  ;;  %v526_v14 = vmul.f32 %v520_v9, %v520_v9 }
 0x234   : > { %v529_v15 = vmul.f32 %v525_v11, %v518_v6  ;;  %v527_v16 = vmul.f32 %v522_v12, %v522_v12 }
 0x235   : > { %v532_v17 = vmul.f32 0.044715, %v528_v13  ;;  %v530_v18 = vmul.f32 %v526_v14, %v520_v9 }
 0x236   : > { %v533_v19 = vmul.f32 0.044715, %v529_v15  ;;  %v531_v20 = vmul.f32 %v527_v16, %v522_v12 }
 0x237   : > { %v536_v21 = vadd.f32 %v532_v17, %v516_v4  ;;  %v534_v22 = vmul.f32 0.044715, %v530_v18 }
 0x238   : > { %v535_v23 = vmul.f32 0.044715, %v531_v20  ;;  %v537_v24 = vadd.f32 %v533_v19, %v518_v6 }
 0x239   : > { %v540_v25 = vmul.f32 0.7978846, %v536_v21  ;;  %v538_v26 = vadd.f32 %v534_v22, %v520_v9 }
 0x23a   : > { %v539_v27 = vadd.f32 %v535_v23, %v522_v12  ;;  %v541_v28 = vmul.f32 0.7978846, %v537_v24 }
 0x23b   : > { %1009 = vtanh.f32 %v540_v25  ;;  %v542_v29 = vmul.f32 0.7978846, %v538_v26 }
 0x23c   : > { %v543_v30 = vmul.f32 0.7978846, %v539_v27  ;;  %1011 = vtanh.f32 %v541_v28 }
 0x23d   : > { %1013 = vtanh.f32 %v542_v29 }
 0x23e   : > { %1015 = vtanh.f32 %v543_v30 }
 0x245   : > { %v1010_v31 = vpop.eup %1009 }
 0x246   : > { %v1012_v32 = vpop.eup %1011  ;;  %v548_v33 = vadd.f32 1.0, %v1010_v31 }
 0x247   : > { %v1014_v34 = vpop.eup %1013  ;;  %v549_v35 = vadd.f32 1.0, %v1012_v32 }
 0x248   : > { %v1016_v36 = vpop.eup %1015  ;;  %v550_v37 = vadd.f32 1.0, %v1014_v34  ;;  %v552_v38 = vmul.f32 0.5, %v548_v33 }
 0x249   : > { %v551_v39 = vadd.f32 1.0, %v1016_v36  ;;  %v553_v40 = vmul.f32 0.5, %v549_v35 }
 0x24a   : > { %v554_v41 = vmul.f32 0.5, %v550_v37  ;;  %v556_v43 = vmul.f32 %v552_v38, %v516_v4 }
 0x24b   : > { %v555_v42 = vmul.f32 0.5, %v551_v39  ;;  %v557_v45 = vmul.f32 %v553_v40, %v518_v6 }
 0x24c   : > { %v558_v44 = vmul.f32 %v554_v41, %v520_v9 }
 0x24d   : > { %v559_v46 = vmul.f32 %v555_v42, %v522_v12 }
 0x24e   : > { %v562_v47 = vpack.c.bf16 %v558_v44, %v556_v43 }
 0x24f   : > { %v563_v48 = vpack.c.bf16 %v559_v46, %v557_v45 }
 0x251   : > { %724 = vmatprep.mubr.bf16.mxu1 %v563_v48 }
 0x252   : > { %725 = vmatmul.mubr.bf16.vlgmr.msra.gmra.mrb[0].mxu1 %v562_v47 }
 0x325   : > { %v945_v50 = vpop.f32.mrb[0].mxu1 }
 0x326   : > { %v946_v52 = vpop.f32.mrb[1].mxu1 }
 0x327   : > { %v947_v53 = vadd.f32 %v946_v52, %v945_v50  ;;  %v948_v54 = vpop.f32.mrb[2].mxu1 }
 0x328   : > { %v949_v56 = vpop.f32.mrb[3].mxu1 }
 0x329   : > { %v733_v57 = vadd.f32 %v947_v53, %v560_v51  ;;  %v950_v58 = vadd.f32 %v949_v56, %v948_v54 }
 0x32b   : > { %735 = vst.msk [vmem:[#allocation2] sm:$0xff] %vm368_vm0, %v733_v57  ;;  %v734_v59 = vadd.f32 %v950_v58, %v561_v55 }
 0x32d   : > { %736 = vst.msk [vmem:[#allocation2 + $0x8] sm:$0xff] %vm368_vm0, %v734_v59 }
 0x332   : > { %v744_v60 = vld [vmem:[#allocation2] sm:$0xff] }
 0x333   : > { %v746_v62 = vadd.f32 %v1109_v1, %v744_v60 }
 0x334   : > { %v745_v63 = vld [vmem:[#allocation2 + $0x8] sm:$0xff] }
 0x335   : > { %v755_v0 = vadd.f32 %v914_v61, %v746_v62  ;;  %v747_v3 = vadd.f32 %v1111_v2, %v745_v63 }
 0x337   : > { %v919_v4 = vpack.c.bf16 %v755_v0, %v755_v0  ;;  %v756_v5 = vadd.f32 %v914_v61, %v747_v3 }
 0x339   : > { %766 = vst.msk [vmem:[%s355_s14] sm:$0xf] %vm765_vm1, %v919_v4  ;;  %v920_v6 = vpack.c.bf16 %v756_v5, %v756_v5 }
 0x33b   : > { %767 = vst.msk [vmem:[%s355_s14 + $0x4] sm:$0xf] %vm765_vm1, %v920_v6 }
 0x33c PF: > { %s17_s26 = sadd.s32 1, %s1039_s26   ;;  %s1235_s24 = smov %s1035_s25 }
 0x33d   : > { %p14_p5 = scmp.ge.s32.totalorder %s17_s26, 4   ;;  %s1236_s25 = smov %s1238_s27 }
 0x33f   :  { %16 = sbr.rel (!%p14_p5) target bundleno = 2 (0x2), region = 95 }

// kernel: forward.17
= control target key start
LH: loop header
LB: loop body
LE: loop exit
PB: predicated region body
PF: predicated region fallthrough
CT: control target
= control target key end

     0   :  { %s1413_s27 = smov 0   ;;  %s1630_s0 = inlined_call_operand.vmem [shape: bf16[2,16,64], index: 0, kind: input, shape index: {}]   ;;  %s1631_s1 = inlined_call_operand.vmem [shape: f32[1,64], index: 1, kind: input, shape index: {}]   ;;  %s1632_s2 = inlined_call_operand.vmem [shape: f32[1,64], index: 2, kind: input, shape index: {}]   ;;  %s1633_s3 = inlined_call_operand.vmem [shape: bf16[64,192], index: 3, kind: input, shape index: {}]   ;;  %s1634_s4 = inlined_call_operand.vmem [shape: f32[1,192], index: 4, kind: input, shape index: {}]   ;;  %s1635_s5 = inlined_call_operand.vmem [shape: f32[4,16,16], index: 5, kind: input, shape index: {}]   ;;  %s1636_s6 = inlined_call_operand.vmem [shape: bf16[64,64], index: 6, kind: input, shape index: {}]   ;;  %s1637_s7 = inlined_call_operand.vmem [shape: f32[1,64], index: 7, kind: input, shape index: {}]   ;;  %s1638_s8 = inlined_call_operand.vmem [shape: bf16[2,16,64], index: 8, kind: output, shape index: {}]  }
   0x1 LB: > { %s1147_s28 = sadd.s32 4294967295, %s1356_s27   ;;  %p1151_p0 = scmp.ge.s32.totalorder %s1356_s27, 1  ;;  %s1356_s27 = sphi %s1413_s27, %s18_s27  }
   0x2   : > { %p262_p1 = scmp.lt.s32.totalorder %s1356_s27, 3 }
   0x4   : > { %p263_p2 = pnand %p1151_p0, %p262_p1 }
   0x5   : > { %p296_p3 = scmp.lt.s32.totalorder (!%p263_p2), %s1147_s28, 1  ;;  %vm313_vm0 = vcmask (!%p263_p2), 523264   ;;  %v1298_v15 = vld [vmem:[%s1633_s3 + $0x4] ss:$8 sps:$4 sm:$0xff] (!%p263_p2)   ;;  %v1300_v16 = vld [vmem:[%s1633_s3] ss:$8 sps:$4 sm:$0xff] (!%p263_p2)   ;;  %v368_v41 = vlaneseq (!%p263_p2) }
   0x6   : > { %266 = sbr.rel (%p263_p2) target bundleno = 2339 (0x923), region = 52  ;;  %421 = vmatprep.subr.bf16.mxu0 (!%p263_p2), %v1298_v15  ;;  %v1301_v17 = vld [vmem:[%s1633_s3 + $0x14] ss:$8 sps:$4 sm:$0xff] (!%p263_p2)   ;;  %v1303_v18 = vld [vmem:[%s1633_s3 + $0x10] ss:$8 sps:$4 sm:$0xff] (!%p263_p2)   ;;  %v1358_v23 = vmov (!%p263_p2), 0  }
   0x7   : > { %422 = vmatpush1.bf16.msra.mxu0 (!%p263_p2), %v1300_v16  ;;  %v1304_v19 = vld [vmem:[%s1633_s3 + $0x24] ss:$8 sps:$4 sm:$0xff] (!%p263_p2)   ;;  %v1306_v20 = vld [vmem:[%s1633_s3 + $0x20] ss:$8 sps:$4 sm:$0xff] (!%p263_p2)   ;;  %v1307_v21 = vld [vmem:[%s1633_s3 + $0x34] ss:$8 sps:$4 sm:$0xff] (!%p263_p2)   ;;  %453 = vmatprep.mubr.bf16.mxu0 (!%p263_p2), %v1358_v23 }
   0x8   : > { %423 = vmatprep.subr.bf16.mxu0 (!%p263_p2), %v1301_v17  ;;  %v1309_v22 = vld [vmem:[%s1633_s3 + $0x30] ss:$8 sps:$4 sm:$0xff] (!%p263_p2)   ;;  %v1156_v32 = vld [vmem:[%s1631_s1] ss:$0 sm:$0xff] (!%p263_p2)  ;;  %v369_v42 = vshrl.u32 (!%p263_p2), %v368_v41, 7  ;;  %v1359_v43 = vmov (!%p263_p2), 0.0  }
   0x9   : > { %v1157_v36 = vld [vmem:[%s1632_s2] ss:$0 sm:$0xff] (!%p263_p2)  ;;  %1220 = vmatprep.subr.bf16.mxu1 (!%p263_p2), %v1359_v43  ;;  %vm1360_vm1 = vmmov (!%p263_p2), 0   ;;  %s1361_s14 = smov (!%p263_p2), 64   ;;  %s1362_s15 = smov (!%p263_p2), 112   ;;  %vm469_vm2 = vcmask (!%p263_p2), 130048  }
   0xa   : > { %v370_v44 = vsub.s32 (!%p263_p2), 0, %v369_v42  ;;  %v366_v45 = vld [vmem:[%s1634_s4] sm:$0x3] (!%p263_p2)  ;;  %v374_v46 = vsub.s32 (!%p263_p2), 1, %v369_v42  ;;  %1222 = vmatprep.mubr.msk.bf16.mxu1 (!%p263_p2), %vm1360_vm1, %v1359_v43  ;;  %s1363_s16 = smov (!%p263_p2), 32   ;;  %s1364_s17 = smov (!%p263_p2), 96  }
   0xb   : > { %424 = vmatpush1.bf16.msra.mxu0 (!%p263_p2), %v1303_v18  ;;  %s1365_s18 = smov (!%p263_p2), 80   ;;  %s1366_s23 = smov (!%p263_p2), 48   ;;  %vm991_vm3 = vcmask (!%p263_p2), 261120   ;;  %vm994_vm4 = vcmask (!%p263_p2), 392192   ;;  %vm1089_vm5 = vcmask (!%p263_p2), 519168  }
   0xc   : > { %425 = vmatprep.subr.bf16.mxu0 (!%p263_p2), %v1304_v19  ;;  %v371_v47 = vrot.slane (!%p263_p2), %v366_v45, %v370_v44  ;;  %v375_v49 = vrot.slane (!%p263_p2), %v366_v45, %v374_v46  ;;  %s1367_s24 = smov (!%p263_p2), 16  }
   0xd   : > { %s1640_s28 = smov (!%p296_p3, %s1147_s28), 1 }
   0xe   : > { %s1191_s29 = sshll.u32 %s1640_s28, 3 }
   0xf   : > { %s300_s10 = scalar_lea.vmem %s1630_s0, %s1191_s29  ;;  %426 = vmatpush1.bf16.msra.mxu0 %v1306_v20  ;;  %s305_s11 = scalar_lea.vmem %s1638_s8, %s1191_s29 }
  0x10   : > { %v1196_v0 = vld [vmem:[%s300_s10] sm:$0xff]   ;;  %427 = vmatprep.subr.bf16.mxu0 %v1307_v21 }
  0x11   : > { %v1429_v1 = vunpack.c.l.bf16 %v1196_v0  ;;  %v1431_v2 = vunpack.c.h.bf16 %v1196_v0 }
  0x13   : > { %v314_v3 = vsel %vm313_vm0, %v1429_v1, 0.0  ;;  %v317_v4 = vsel %vm313_vm0, %v1431_v2, 0.0  ;;  %428 = vmatpush1.bf16.msra.mxu0 %v1309_v22 }
  0x14   : > { %315 = vadd.xlane.f32.xlu0 %v314_v3  ;;  %1244 = vmatprep.subr.bf16.mxu0 %v1359_v43 }
  0x18   : > { %318 = vadd.xlane.f32.xlu0 %v317_v4  ;;  %v519_v4 = vld [vmem:[%s1635_s5] sm:$0xff] }
  0xa1   : > { %v316_v5 = vpop.xlane.xlu0 %315 }
  0xa2   : > { %v321_v6 = vmul.f32 0.015625, %v316_v5 }
  0xa4   : > { %v323_v7 = vsub.f32 %v1429_v1, %v321_v6 }
  0xa5   : > { %v319_v8 = vpop.xlane.xlu0 %318 }
  0xa6   : > { %v322_v9 = vmul.f32 0.015625, %v319_v8  ;;  %v325_v10 = vmul.f32 %v323_v7, %v323_v7  ;;  %v520_v8 = vld [vmem:[%s1635_s5 + $0x8] sm:$0xff] }
  0xa8   : > { %v324_v11 = vsub.f32 %v1431_v2, %v322_v9  ;;  %v327_v12 = vsel %vm313_vm0, %v325_v10, 0.0 }
  0xa9   : > { %328 = vadd.xlane.f32.xlu1 %v327_v12 }
  0xaa   : > { %v326_v13 = vmul.f32 %v324_v11, %v324_v11 }
  0xac   : > { %v330_v14 = vsel %vm313_vm0, %v326_v13, 0.0 }
  0xad   : > { %331 = vadd.xlane.f32.xlu1 %v330_v14 }
 0x136   : > { %v329_v24 = vpop.xlane.xlu1 %328 }
 0x137   : > { %v333_v25 = vmul.f32 0.015625, %v329_v24 }
 0x139   : > { %v335_v26 = vadd.f32 1e-05, %v333_v25 }
 0x13a   : > { %v332_v27 = vpop.xlane.xlu1 %331 }
 0x13b   : > { %1314 = vrsqrt.f32 %v335_v26  ;;  %v334_v28 = vmul.f32 0.015625, %v332_v27 }
 0x13d   : > { %v336_v29 = vadd.f32 1e-05, %v334_v28 }
 0x13f   : > { %1316 = vrsqrt.f32 %v336_v29 }
 0x145   : > { %v1315_v30 = vpop.eup %1314 }
 0x146   : > { %v339_v31 = vmul.f32 %v1315_v30, %v323_v7 }
 0x148   : > { %v347_v35 = vmul.f32 %v1156_v32, %v339_v31 }
 0x149   : > { %v1317_v33 = vpop.eup %1316 }
 0x14a   : > { %v340_v34 = vmul.f32 %v1317_v33, %v324_v11  ;;  %v355_v38 = vadd.f32 %v1157_v36, %v347_v35 }
 0x14c   : > { %v348_v37 = vmul.f32 %v1156_v32, %v340_v34 }
 0x14e   : > { %v356_v39 = vadd.f32 %v1157_v36, %v348_v37 }
 0x150   : > { %v357_v40 = vpack.c.bf16 %v356_v39, %v355_v38 }
 0x152   : > { %1166 = vmatmul.mubr.msk.bf16.vlgmr.msra.gmra.mrb[0].mxu0 %vm313_vm0, %v357_v40 }
 0x153   : > { %1246 = vmatprep.mubr.msk.bf16.mxu0 %vm1360_vm1, %v1359_v43 }
 0x225   : > { %v455_v48 = vpop.f32.mrb[0].mxu0 }
 0x226   : > { %v457_v50 = vpop.f32.mrb[1].mxu0  ;;  %v456_v52 = vadd.f32 %v455_v48, %v371_v47 }
 0x227   : > { %v459_v51 = vpop.f32.mrb[2].mxu0  ;;  %v458_v55 = vadd.f32 %v457_v50, %v375_v49 }
 0x228   : > { %v460_v53 = vadd.f32 %v459_v51, %v371_v47  ;;  %v461_v54 = vpop.f32.mrb[3].mxu0 }
 0x229   : > { %v462_v56 = vadd.f32 %v461_v54, %v375_v49 }
 0x22a   : > { %v1481_v57 = vpack.c.bf16 %v460_v53, %v456_v52  ;;  %v1170_v52 = vld [vmem:[%s1635_s5 + $0x10] sm:$0xff] }
 0x22b   : > { %v1483_v58 = vpack.c.bf16 %v462_v56, %v458_v55 }
 0x22c   : > { %467 = vrot.lane.b32.xlu0 %v1481_v57, %s1361_s14 }
 0x230   : > { %591 = vrot.lane.b32.xlu0 %v1481_v57, %s1362_s15 }
 0x234   : > { %723 = vrot.lane.b32.xlu0 %v1481_v57, %s1363_s16 }
 0x238   : > { %721 = vrot.lane.b32.xlu0 %v1481_v57, %s1364_s17 }
 0x23c   : > { %850 = vrot.lane.b32.xlu0 %v1481_v57, %s1365_s18 }
 0x29e   : > { %v468_v59 = vpop.permute.xlu0 %467 }
 0x29f   : > { %v474_v60 = vsel %vm469_vm2, %v468_v59, 0  ;;  %v1178_v59 = vld [vmem:[%s1635_s5 + $0x30] sm:$0xff] }
 0x2a0   : > { %1221 = vmatpush3.bf16.xpose.msra.mxu1 %v474_v60 }
 0x2a1   : > { %1226 = vmatprep.subr.bf16.mxu1 %v1359_v43 }
 0x2a2   : > { %v1496_v61 = vpop.permute.xlu0 %591 }
 0x2a6   : > { %v724_v62 = vpop.permute.xlu0 %723 }
 0x2a7   : > { %v729_v63 = vsel %vm469_vm2, %v724_v62, 0  ;;  %1223 = vmatmul.mubr.msk.bf16.vlgmr.msra.gmra.mrb[0].mxu1 %vm469_vm2, %v1481_v57 }
 0x2a8   : > { %1227 = vmatpush3.bf16.msra.mxu1 %v1483_v58  ;;  %1245 = vmatpush3.bf16.xpose.msra.mxu0 %v729_v63 }
 0x2a9   : > { %1256 = vmatprep.subr.bf16.mxu0 %v1359_v43  ;;  %1228 = vmatprep.mubr.msk.bf16.mxu1 %vm1360_vm1, %v1359_v43 }
 0x2aa   : > { %1232 = vmatprep.subr.bf16.mxu1 %v1359_v43  ;;  %v722_v0 = vpop.permute.xlu0 %721 }
 0x2ae   : > { %v851_v39 = vpop.permute.xlu0 %850 }
 0x2af   : > { %1247 = vmatmul.mubr.msk.bf16.vlgmr.msra.gmra.mrb[4].mxu0 %vm469_vm2, %v722_v0  ;;  %v1174_v0 = vld [vmem:[%s1635_s5 + $0x20] sm:$0xff] }
 0x2b0   : > { %1258 = vmatprep.mubr.msk.bf16.mxu0 %vm1360_vm1, %v1359_v43 }
 0x37a   : > { %v510_v3 = vpop.f32.mrb[0].mxu1 }
 0x37b   : > { %v517_v5 = vmul.f32 0.25, %v510_v3  ;;  %v1224_v6 = vpop.f32.mrb[1].mxu1 }
 0x37c   : > { %v513_v7 = vpop.f32.mrb[2].mxu1 }
 0x37d   : > { %v518_v9 = vmul.f32 0.25, %v513_v7  ;;  %v1225_v10 = vpop.f32.mrb[3].mxu1  ;;  %v521_v11 = vadd.f32 %v519_v4, %v517_v5 }
 0x37f   : > { %v523_v12 = vsel %vm469_vm2, %v521_v11, -inf  ;;  %v522_v13 = vadd.f32 %v520_v8, %v518_v9  ;;  %v1175_v9 = vld [vmem:[%s1635_s5 + $0x28] sm:$0xff] }
 0x380   : > { %524 = vmax.xlane.f32.xlu1 %v523_v12 }
 0x381   : > { %v526_v16 = vsel %vm469_vm2, %v522_v13, -inf }
 0x382   : > { %v1516_v14 = vpop.f32.mrb[4].mxu0 }
 0x383   : > { %v1248_v15 = vpop.f32.mrb[5].mxu0  ;;  %v772_v60 = vmul.f32 0.25, %v1516_v14  ;;  %v1179_v14 = vld [vmem:[%s1635_s5 + $0x38] sm:$0xff] }
 0x384   : > { %527 = vmax.xlane.f32.xlu1 %v526_v16  ;;  %v1519_v17 = vpop.f32.mrb[6].mxu0 }
 0x385   : > { %v1249_v18 = vpop.f32.mrb[7].mxu0  ;;  %v773_v6 = vmul.f32 0.25, %v1519_v17  ;;  %v777_v8 = vadd.f32 %v1174_v0, %v772_v60 }
 0x387   : > { %v779_v12 = vsel %vm469_vm2, %v777_v8, -inf }
 0x40d   : > { %v525_v19 = vpop.xlane.xlu1 %524 }
 0x40e   : > { %v529_v20 = vsub.f32 %v521_v11, %v525_v19 }
 0x410   : > { %v531_v21 = vmul.f32 1.442695, %v529_v20 }
 0x411   : > { %v528_v22 = vpop.xlane.xlu1 %527 }
 0x412   : > { %1318 = vpow2.f32 %v531_v21  ;;  %v530_v23 = vsub.f32 %v522_v13, %v528_v22  ;;  %v778_v13 = vadd.f32 %v1175_v9, %v773_v6 }
 0x414   : > { %v533_v24 = vmul.f32 1.442695, %v530_v23  ;;  %v782_v15 = vsel %vm469_vm2, %v778_v13, -inf }
 0x416   : > { %1320 = vpow2.f32 %v533_v24 }
 0x41c   : > { %v1319_v25 = vpop.eup %1318 }
 0x41d   : > { %v535_v26 = vsel %vm469_vm2, %v1319_v25, 0.0 }
 0x41e   : > { %536 = vadd.xlane.f32.xlu1 %v535_v26 }
 0x420   : > { %v1321_v27 = vpop.eup %1320 }
 0x421   : > { %v538_v28 = vsel %vm469_vm2, %v1321_v27, 0.0 }
 0x422   : > { %539 = vadd.xlane.f32.xlu1 %v538_v28 }
 0x433   : > { %593 = vrot.lane.b32.xlu1 %v1481_v57, %s1366_s23 }
 0x437   : > { %852 = vrot.lane.b32.xlu1 %v1481_v57, %s1367_s24  ;;  %v1171_v57 = vld [vmem:[%s1635_s5 + $0x18] sm:$0xff] }
 0x4ab   : > { %v537_v29 = vpop.xlane.xlu1 %536 }
 0x4ac   : > { %1322 = vrcp.f32 %v537_v29 }
 0x4af   : > { %v540_v30 = vpop.xlane.xlu1 %539 }
 0x4b0   : > { %1324 = vrcp.f32 %v540_v30 }
 0x4b3   : > { %v594_v31 = vpop.permute.xlu1 %593 }
 0x4b4   : > { %v599_v40 = vsel %vm469_vm2, %v594_v31, 0 }
 0x4b6   : > { %v1323_v33 = vpop.eup %1322 }
 0x4b7   : > { %v853_v32 = vpop.permute.xlu1 %852  ;;  %v543_v36 = vmul.f32 %v1323_v33, %v1319_v25 }
 0x4b8   : > { %v858_v34 = vsel %vm469_vm2, %v853_v32, 0 }
 0x4b9   : > { %1257 = vmatpush3.bf16.xpose.msra.mxu0 %v858_v34 }
 0x4ba   : > { %v1325_v35 = vpop.eup %1324  ;;  %1268 = vmatprep.subr.bf16.mxu0 %v1359_v43 }
 0x4bb   : > { %v544_v37 = vmul.f32 %v1325_v35, %v1321_v27 }
 0x4bd   : > { %v545_v38 = vpack.c.bf16 %v544_v37, %v543_v36 }
 0x4bf   : > { %1229 = vmatmul.mubr.msk.bf16.vlgmr.msra.gmra.mrb[4].mxu1 %vm469_vm2, %v545_v38 }
 0x4c0   : > { %1233 = vmatpush3.bf16.xpose.msra.mxu1 %v599_v40  ;;  %1259 = vmatmul.mubr.msk.bf16.vlgmr.msra.gmra.mrb[8].mxu0 %vm469_vm2, %v851_v39 }
 0x4c1   : > { %1234 = vmatprep.mubr.msk.bf16.mxu1 %vm1360_vm1, %v1359_v43  ;;  %1238 = vmatprep.subr.bf16.mxu1 %v1359_v43 }
 0x4c2   : > { %1276 = vmatprep.mubr.msk.bf16.mxu0 %vm1360_vm1, %v1359_v43 }
 0x4c7   : > { %1235 = vmatmul.mubr.msk.bf16.vlgmr.msra.gmra.mrb[8].mxu1 %vm469_vm2, %v1496_v61 }
 0x4c8   : > { %1240 = vmatprep.mubr.msk.bf16.mxu1 %vm1360_vm1, %v1359_v43 }
 0x592   : > { %v1541_v41 = vpop.f32.mrb[4].mxu1 }
 0x593   : > { %v1230_v42 = vpop.f32.mrb[5].mxu1  ;;  %v894_v44 = vpop.f32.mrb[8].mxu0 }
 0x594   : > { %v1543_v45 = vpop.f32.mrb[6].mxu1  ;;  %v1260_v46 = vpop.f32.mrb[9].mxu0  ;;  %v901_v53 = vmul.f32 0.25, %v894_v44 }
 0x595   : > { %v590_v47 = vpack.c.bf16 %v1543_v45, %v1541_v41  ;;  %v1231_v48 = vpop.f32.mrb[7].mxu1  ;;  %v897_v49 = vpop.f32.mrb[10].mxu0 }
 0x596   : > { %v1261_v50 = vpop.f32.mrb[11].mxu0  ;;  %v906_v5 = vadd.f32 %v1178_v59, %v901_v53  ;;  %v902_v11 = vmul.f32 0.25, %v897_v49 }
 0x598   : > { %v908_v10 = vsel %vm469_vm2, %v906_v5, -inf  ;;  %v907_v16 = vadd.f32 %v1179_v14, %v902_v11  ;;  %v1310_v14 = vld [vmem:[%s1636_s6] sm:$0xff]  }
 0x599   : > { %1269 = vmatpush3.bf16.msra.mxu0 %v1310_v14 }
 0x59a   : > { %v635_v51 = vpop.f32.mrb[8].mxu1  ;;  %v911_v17 = vsel %vm469_vm2, %v907_v16, -inf  ;;  %1270 = vmatprep.subr.bf16.mxu0 %v1359_v43 }
 0x59b   : > { %v642_v54 = vmul.f32 0.25, %v635_v51  ;;  %v1236_v55 = vpop.f32.mrb[9].mxu1 }
 0x59c   : > { %v638_v56 = vpop.f32.mrb[10].mxu1 }
 0x59d   : > { %v643_v61 = vmul.f32 0.25, %v638_v56  ;;  %v1237_v62 = vpop.f32.mrb[11].mxu1  ;;  %v647_v63 = vadd.f32 %v1170_v52, %v642_v54 }
 0x59f   : > { %v649_v3 = vsel %vm469_vm2, %v647_v63, -inf  ;;  %v648_v4 = vadd.f32 %v1171_v57, %v643_v61 }
 0x5a0   : > { %650 = vmax.xlane.f32.xlu1 %v649_v3 }
 0x5a1   : > { %v652_v7 = vsel %vm469_vm2, %v648_v4, -inf }
 0x5a2   : > { %653 = vmax.xlane.f32.xlu0 %v652_v7 }
 0x5a4   : > { %909 = vmax.xlane.f32.xlu1 %v908_v10 }
 0x5a6   : > { %780 = vmax.xlane.f32.xlu0 %v779_v12 }
 0x5aa   : > { %783 = vmax.xlane.f32.xlu0 %v782_v15  ;;  %v1311_v15 = vld [vmem:[%s1636_s6 + $0x8] sm:$0xff]  }
 0x5ab   : > { %1271 = vmatpush3.bf16.msra.mxu0 %v1311_v15 }
 0x5ac   : > { %1272 = vmatprep.subr.bf16.mxu0 %v1359_v43 }
 0x5ae   : > { %912 = vmax.xlane.f32.xlu0 %v911_v17  ;;  %v1312_v17 = vld [vmem:[%s1636_s6 + $0x10] sm:$0xff]  }
 0x5af   : > { %1273 = vmatpush3.bf16.msra.mxu0 %v1312_v17 }
 0x5b0   : > { %1274 = vmatprep.subr.bf16.mxu0 %v1359_v43 }
 0x62d   : > { %v651_v18 = vpop.xlane.xlu1 %650 }
 0x62e   : > { %v655_v24 = vsub.f32 %v647_v63, %v651_v18 }
 0x62f   : > { %v654_v19 = vpop.xlane.xlu0 %653 }
 0x630   : > { %v656_v25 = vsub.f32 %v648_v4, %v654_v19  ;;  %v657_v30 = vmul.f32 1.442695, %v655_v24 }
 0x631   : > { %v910_v20 = vpop.xlane.xlu1 %909 }
 0x632   : > { %v914_v21 = vsub.f32 %v906_v5, %v910_v20  ;;  %v659_v31 = vmul.f32 1.442695, %v656_v25  ;;  %v1313_v20 = vld [vmem:[%s1636_s6 + $0x18] sm:$0xff]  }
 0x633   : > { %v781_v22 = vpop.xlane.xlu0 %780  ;;  %1275 = vmatpush3.bf16.msra.mxu0 %v1313_v20 }
 0x634   : > { %v785_v23 = vsub.f32 %v777_v8, %v781_v22  ;;  %v916_v26 = vmul.f32 1.442695, %v914_v21 }
 0x636   : > { %v787_v27 = vmul.f32 1.442695, %v785_v23 }
 0x637   : > { %v784_v28 = vpop.xlane.xlu0 %783 }
 0x638   : > { %1326 = vpow2.f32 %v787_v27  ;;  %v786_v29 = vsub.f32 %v778_v13, %v784_v28 }
 0x639   : > { %1328 = vpow2.f32 %v916_v26 }
 0x63a   : > { %v789_v32 = vmul.f32 1.442695, %v786_v29 }
 0x63b   : > { %v913_v33 = vpop.xlane.xlu0 %912 }
 0x63c   : > { %1330 = vpow2.f32 %v789_v32  ;;  %v915_v34 = vsub.f32 %v907_v16, %v913_v33 }
 0x63d   : > { %1332 = vpow2.f32 %v657_v30 }
 0x63e   : > { %1334 = vpow2.f32 %v659_v31  ;;  %v918_v35 = vmul.f32 1.442695, %v915_v34 }
 0x640   : > { %1336 = vpow2.f32 %v918_v35 }
 0x642   : > { %v1327_v36 = vpop.eup %1326 }
 0x643   : > { %v791_v37 = vsel %vm469_vm2, %v1327_v36, 0.0  ;;  %v1329_v38 = vpop.eup %1328 }
 0x644   : > { %792 = vadd.xlane.f32.xlu1 %v791_v37  ;;  %v920_v42 = vsel %vm469_vm2, %v1329_v38, 0.0 }
 0x646   : > { %v1331_v39 = vpop.eup %1330 }
 0x647   : > { %v1333_v40 = vpop.eup %1332  ;;  %v794_v44 = vsel %vm469_vm2, %v1331_v39, 0.0 }
 0x648   : > { %v1335_v46 = vpop.eup %1334  ;;  %921 = vadd.xlane.f32.xlu1 %v920_v42  ;;  %795 = vadd.xlane.f32.xlu0 %v794_v44  ;;  %v661_v48 = vsel %vm469_vm2, %v1333_v40, 0.0 }
 0x649   : > { %v664_v49 = vsel %vm469_vm2, %v1335_v46, 0.0 }
 0x64a   : > { %v1337_v50 = vpop.eup %1336 }
 0x64b   : > { %v923_v51 = vsel %vm469_vm2, %v1337_v50, 0.0 }
 0x64c   : > { %662 = vadd.xlane.f32.xlu1 %v661_v48  ;;  %665 = vadd.xlane.f32.xlu0 %v664_v49 }
 0x650   : > { %924 = vadd.xlane.f32.xlu0 %v923_v51 }
 0x65d   : > { %673 = vrot.lane.b32.xlu1 %v1483_v58, %s1362_s15 }
 0x661   : > { %931 = vrot.lane.b32.xlu1 %v1483_v58, %s1365_s18 }
 0x666   : > { %802 = vrot.lane.b32.xlu0 %v1483_v58, %s1364_s17 }
 0x6d1   : > { %v793_v52 = vpop.xlane.xlu1 %792 }
 0x6d5   : > { %v922_v53 = vpop.xlane.xlu1 %921  ;;  %v796_v54 = vpop.xlane.xlu0 %795 }
 0x6d9   : > { %v663_v55 = vpop.xlane.xlu1 %662  ;;  %v666_v56 = vpop.xlane.xlu0 %665 }
 0x6da   : > { %1338 = vrcp.f32 %v663_v55 }
 0x6db   : > { %1340 = vrcp.f32 %v666_v56 }
 0x6dc   : > { %1342 = vrcp.f32 %v796_v54 }
 0x6dd   : > { %v674_v57 = vpop.permute.xlu1 %673  ;;  %1344 = vrcp.f32 %v793_v52  ;;  %v925_v60 = vpop.xlane.xlu0 %924 }
 0x6de   : > { %1239 = vmatpush3.bf16.msra.mxu1 %v674_v57  ;;  %1346 = vrcp.f32 %v925_v60 }
 0x6df   : > { %1250 = vmatprep.subr.bf16.mxu1 %v1359_v43  ;;  %1348 = vrcp.f32 %v922_v53 }
 0x6e1   : > { %v803_v3 = vpop.permute.xlu0 %802  ;;  %v932_v9 = vpop.permute.xlu1 %931 }
 0x6e4   : > { %v1339_v59 = vpop.eup %1338 }
 0x6e5   : > { %v1341_v61 = vpop.eup %1340  ;;  %v669_v62 = vmul.f32 %v1339_v59, %v1333_v40 }
 0x6e6   : > { %v670_v63 = vmul.f32 %v1341_v61, %v1335_v46  ;;  %v1343_v0 = vpop.eup %1342 }
 0x6e7   : > { %v1345_v4 = vpop.eup %1344  ;;  %v800_v5 = vmul.f32 %v1343_v0, %v1331_v39 }
 0x6e8   : > { %v671_v58 = vpack.c.bf16 %v670_v63, %v669_v62  ;;  %v799_v6 = vmul.f32 %v1345_v4, %v1327_v36  ;;  %v1347_v8 = vpop.eup %1346 }
 0x6e9   : > { %v1349_v10 = vpop.eup %1348  ;;  %v929_v11 = vmul.f32 %v1347_v8, %v1337_v50 }
 0x6ea   : > { %1241 = vmatmul.mubr.msk.bf16.vlgmr.msra.gmra.mrb[12].mxu1 %vm469_vm2, %v671_v58  ;;  %v801_v7 = vpack.c.bf16 %v800_v5, %v799_v6  ;;  %v928_v12 = vmul.f32 %v1349_v10, %v1329_v38  ;;  %v1181_v38 = vld [vmem:[%s1637_s7] ss:$0 sm:$0xff] }
 0x6eb   : > { %1251 = vmatpush3.bf16.msra.mxu1 %v803_v3  ;;  %1252 = vmatprep.mubr.msk.bf16.mxu1 %vm1360_vm1, %v1359_v43 }
 0x6ec   : > { %1262 = vmatprep.subr.bf16.mxu1 %v1359_v43  ;;  %v930_v13 = vpack.c.bf16 %v929_v11, %v928_v12 }
 0x6f2   : > { %1253 = vmatmul.mubr.msk.bf16.vlgmr.msra.gmra.mrb[16].mxu1 %vm469_vm2, %v801_v7 }
 0x6f3   : > { %1263 = vmatpush3.bf16.msra.mxu1 %v932_v9  ;;  %1264 = vmatprep.mubr.msk.bf16.mxu1 %vm1360_vm1, %v1359_v43 }
 0x6fa   : > { %1265 = vmatmul.mubr.msk.bf16.vlgmr.msra.gmra.mrb[20].mxu1 %vm469_vm2, %v930_v13 }
 0x7bd   : > { %v713_v16 = vpop.f32.mrb[12].mxu1 }
 0x7be   : > { %v1242_v18 = vpop.f32.mrb[13].mxu1 }
 0x7bf   : > { %v716_v19 = vpop.f32.mrb[14].mxu1 }
 0x7c0   : > { %v720_v21 = vpack.c.bf16 %v716_v19, %v713_v16  ;;  %v1243_v22 = vpop.f32.mrb[15].mxu1 }
 0x7c2   : > { %980 = vrot.lane.b32.xlu1 %v720_v21, %s1367_s24 }
 0x7c5   : > { %v842_v23 = vpop.f32.mrb[16].mxu1 }
 0x7c6   : > { %v1254_v24 = vpop.f32.mrb[17].mxu1 }
 0x7c7   : > { %v845_v25 = vpop.f32.mrb[18].mxu1 }
 0x7c8   : > { %v849_v26 = vpack.c.bf16 %v845_v25, %v842_v23  ;;  %v1255_v27 = vpop.f32.mrb[19].mxu1 }
 0x7ca   : > { %983 = vrot.lane.b32.xlu1 %v849_v26, %s1363_s16 }
 0x7cd   : > { %v971_v28 = vpop.f32.mrb[20].mxu1 }
 0x7ce   : > { %v1266_v29 = vpop.f32.mrb[21].mxu1 }
 0x7cf   : > { %v974_v30 = vpop.f32.mrb[22].mxu1 }
 0x7d0   : > { %v978_v31 = vpack.c.bf16 %v974_v30, %v971_v28  ;;  %v1267_v32 = vpop.f32.mrb[23].mxu1 }
 0x7d2   : > { %986 = vrot.lane.b32.xlu0 %v978_v31, %s1366_s23 }
 0x834   : > { %v981_v33 = vpop.permute.xlu1 %980 }
 0x835   : > { %v990_v34 = vsel %vm469_vm2, %v590_v47, %v981_v33 }
 0x83c   : > { %v984_v43 = vpop.permute.xlu1 %983 }
 0x83d   : > { %v993_v35 = vsel %vm991_vm3, %v990_v34, %v984_v43 }
 0x844   : > { %v987_v36 = vpop.permute.xlu0 %986 }
 0x845   : > { %v996_v37 = vsel %vm994_vm4, %v993_v35, %v987_v36 }
 0x846   : > { %1277 = vmatmul.mubr.msk.bf16.vlgmr.msra.gmra.mrb[12].mxu0 %vm313_vm0, %v996_v37 }
 0x919   : > { %v1072_v39 = vpop.f32.mrb[12].mxu0 }
 0x91a   : > { %v1073_v40 = vadd.f32 %v1181_v38, %v1072_v39  ;;  %v1278_v42 = vpop.f32.mrb[13].mxu0 }
 0x91b   : > { %v1075_v44 = vpop.f32.mrb[14].mxu0 }
 0x91c   : > { %v1079_v46 = vadd.f32 %v1429_v1, %v1073_v40  ;;  %v1076_v48 = vadd.f32 %v1181_v38, %v1075_v44  ;;  %v1279_v49 = vpop.f32.mrb[15].mxu0 }
 0x91e   : > { %v1193_v41 = vpack.c.bf16 %v1079_v46, %v1079_v46  ;;  %v1080_v45 = vadd.f32 %v1431_v2, %v1076_v48 }
 0x920   : > { %1090 = vst.msk [vmem:[%s305_s11] sm:$0xf] %vm1089_vm5, %v1193_v41  ;;  %v1194_v47 = vpack.c.bf16 %v1080_v45, %v1080_v45 }
 0x922   : > { %1091 = vst.msk [vmem:[%s305_s11 + $0x4] sm:$0xf] %vm1089_vm5, %v1194_v47 }
 0x923 PF: > { %s18_s27 = sadd.s32 1, %s1356_s27  }
 0x924   : > { %p15_p4 = scmp.ge.s32.totalorder %s18_s27, 4  }
 0x926   :  { %17 = sbr.rel (!%p15_p4) target bundleno = 1 (0x1), region = 85 }

// kernel: forward.21
= control target key start
LH: loop header
LB: loop body
LE: loop exit
PB: predicated region body
PF: predicated region fallthrough
CT: control target
= control target key end

     0   :  { %10 = vsyncpa [#allocation3], 0  ;;  %s727_s0 = inlined_call_operand.vmem [shape: bf16[2,16,64], index: 0, kind: input, shape index: {}]   ;;  %s728_s1 = inlined_call_operand.vmem [shape: f32[1,64], index: 1, kind: input, shape index: {}]   ;;  %s729_s2 = inlined_call_operand.vmem [shape: f32[1,64], index: 2, kind: input, shape index: {}]   ;;  %s730_s3 = inlined_call_operand.vmem [shape: f32[64,18], index: 3, kind: input, shape index: {}]   ;;  %s731_s4 = inlined_call_operand.vmem [shape: f32[1,18], index: 4, kind: input, shape index: {}]   ;;  %s732_s5 = inlined_call_operand.hbm [shape: f32[2,1,18], index: 5, kind: output, shape index: {}]  }
   0x1   :  { %12 = vsyncpa [#allocation3 + $0x1], 0  ;;  %s587_s18 = smov 0   ;;  %s589_s19 = smov 0  }
   0x2   :  { %s591_s20 = smov 0   ;;  %s593_s21 = smov 0  }
   0x3 LB: > { %s608_s22 = sadd.s32 4294967295, %s552_s21   ;;  %s411_s23 = sadd.s32 4294967294, %s552_s21   ;;  %s552_s21 = sphi %s593_s21, %s738_s21   ;;  %s548_s20 = sphi %s591_s20, %s737_s20   ;;  %s544_s19 = sphi %s589_s19, %s736_s19   ;;  %s540_s18 = sphi %s587_s18, %s735_s18  }
   0x4   : > { %s612_s24 = sadd.s32 1, %s552_s21   ;;  %s135_s25 = sadd.s32 1, %s548_s20 }
   0x5   : > { %s132_s26 = ssub.s32 %s552_s21, %s612_s24  ;;  %p145_p0 = scmp.ne.s32.totalorder %s548_s20, %s544_s19 }
   0x6   : > { %p133_p1 = scmp.eq.s32.totalorder %s132_s26, 0  ;;  %p146_p2 = scmp.eq.s32.totalorder %s608_s22, 1 }
   0x7   : > { %p151_p3 = scmp.ne.s32.totalorder %s544_s19, %s540_s18  ;;  %p152_p4 = scmp.eq.s32.totalorder %s411_s23, 1 }
   0x8   : > { %s623_s27 = scalar_select %p133_p1, %s548_s20, %s135_s25  }
   0x9   : > { %p625_p5 = por %p146_p2, %p145_p0  ;;  %p629_p6 = por %p152_p4, %p151_p3 }
   0xa   : > { %p414_p7 = scmp.ge.s32.totalorder %s552_s21, 1  ;;  %p190_p8 = scmp.lt.s32.totalorder %s552_s21, 3 }
   0xc   : > { %p191_p9 = pnand %p414_p7, %p190_p8 }
   0xd   : > { %p217_p10 = scmp.lt.s32.totalorder (!%p191_p9), %s608_s22, 1  ;;  %vm229_vm0 = vcmask (!%p191_p9), 523264   ;;  %v285_v15 = vld [vmem:[%s730_s3] sm:$0xff] (!%p191_p9)  ;;  %v286_v16 = vld [vmem:[%s730_s3 + $0x8] sm:$0xff] (!%p191_p9)  ;;  %v287_v17 = vld [vmem:[%s730_s3 + $0x10] sm:$0xff] (!%p191_p9)  ;;  %v554_v18 = vmov (!%p191_p9), 0.0  }
   0xe   : > { %194 = sbr.rel (%p191_p9) target bundleno = 592 (0x250), region = 40  ;;  %433 = vmatprep.subr.bf16.mxu0 (!%p191_p9), %v554_v18  ;;  %v293_v19 = vpack.c.bf16 (!%p191_p9), %v286_v16, %v285_v15  ;;  %v288_v20 = vld [vmem:[%s730_s3 + $0x18] sm:$0xff] (!%p191_p9)  ;;  %vm555_vm1 = vmmov (!%p191_p9), 0   ;;  %v289_v22 = vld [vmem:[%s730_s3 + $0x20] sm:$0xff] (!%p191_p9)  ;;  %v290_v23 = vld [vmem:[%s730_s3 + $0x28] sm:$0xff] (!%p191_p9)  ;;  %s215_s14 = sand.u32 (!%p191_p9), 1, %s544_s19  }
   0xf   : > { %441 = vmatprep.mubr.msk.bf16.mxu0 (!%p191_p9), %vm555_vm1, %v554_v18  ;;  %v294_v21 = vpack.c.bf16 (!%p191_p9), %v288_v20, %v287_v17  ;;  %v295_v24 = vpack.c.bf16 (!%p191_p9), %v290_v23, %v289_v22  ;;  %v291_v25 = vld [vmem:[%s730_s3 + $0x30] sm:$0xff] (!%p191_p9)  ;;  %v292_v26 = vld [vmem:[%s730_s3 + $0x38] sm:$0xff] (!%p191_p9)  ;;  %v417_v35 = vld [vmem:[%s728_s1] ss:$0 sm:$0xff] (!%p191_p9)  ;;  %s420_s17 = sshll.u32 (!%p191_p9), %s608_s22, 4  ;;  %s216_s23 = scalar_lea.vmem (!%p191_p9), [#allocation2], %s215_s14 }
  0x10   : > { %434 = vmatpush3.bf16.msra.mxu0 (!%p191_p9), %v293_v19  ;;  %v296_v27 = vpack.c.bf16 (!%p191_p9), %v292_v26, %v291_v25  ;;  %v418_v39 = vld [vmem:[%s729_s2] ss:$0 sm:$0xff] (!%p191_p9)  ;;  %s356_s25 = sshll.u32 (!%p191_p9), %s216_s23, 4  ;;  %vm341_vm2 = vcmask (!%p191_p9), 139264   ;;  %s556_s8 = smov (!%p191_p9), [#allocation2]   ;;  %s687_s25 = int_to_ptr.vmem [resolvable:$true] %s356_s25 }
  0x11   : > { %435 = vmatprep.subr.bf16.mxu0 (!%p191_p9), %v554_v18  ;;  %v297_v55 = vld [vmem:[%s731_s4] sm:$0x1] (!%p191_p9)  ;;  %s490_s7 = scalar_lea.vmem (!%p191_p9), %s687_s25, 16 }
  0x12   : > { %p491_p11 = scmp.ne.s32.totalorder (!%p191_p9), %s687_s25, %s490_s7 }
  0x14   : > { %436 = vmatpush3.bf16.msra.mxu0 (!%p191_p9), %v294_v21  ;;  %p492_p12 = pnand (!%p191_p9), %p491_p11, %p625_p5 }
  0x15   : > { %s218_s30 = scalar_select %p217_p10, %s608_s22, 1  ;;  %437 = vmatprep.subr.bf16.mxu0 %v554_v18 }
  0x16   : > { %s344_s22 = scalar_lea.sflag [#allocation3], %s215_s14  ;;  %p493_p13 = pneg %p492_p12 }
  0x17   : > { %s423_s6 = sshll.u32 %s218_s30, 3 }
  0x18   : > { %s221_s9 = scalar_lea.vmem %s727_s0, %s423_s6  ;;  %438 = vmatpush3.bf16.msra.mxu0 %v295_v24  ;;  %s685_s6 = scalar_lea.hbm %s732_s5, %s420_s17 }
  0x19   : > { %v425_v0 = vld [vmem:[%s221_s9] sm:$0xff]   ;;  %439 = vmatprep.subr.bf16.mxu0 %v554_v18  ;;  %s494_s9 = sshll.u32 %s556_s8, 4  ;;  %s495_s9 = int_to_ptr.vmem [resolvable:$false] %s494_s9 }
  0x1a   : > { %v426_v1 = vunpack.c.l.bf16 %v425_v0  ;;  %v427_v2 = vunpack.c.h.bf16 %v425_v0  ;;  %s496_s10 = scalar_lea.vmem %s495_s9, 32  ;;  %p497_p0 = scmp.lt.s32.totalorder %s687_s25, %s495_s9 }
  0x1b   : > { %p498_p1 = scmp.lt.s32.totalorder %s496_s10, %s490_s7 }
  0x1c   : > { %v230_v3 = vsel %vm229_vm0, %v426_v1, 0.0  ;;  %v233_v4 = vsel %vm229_vm0, %v427_v2, 0.0  ;;  %440 = vmatpush3.bf16.msra.mxu0 %v296_v27 }
  0x1d   : > { %231 = vadd.xlane.f32.xlu0 %v230_v3  ;;  %p499_p2 = por %p498_p1, %p497_p0 }
  0x1f   : > { %p500_p3 = pnand %p499_p2, %p493_p13 }
  0x21   : > { %234 = vadd.xlane.f32.xlu0 %v233_v4 }
  0xaa   : > { %v232_v5 = vpop.xlane.xlu0 %231 }
  0xab   : > { %v237_v6 = vmul.f32 0.015625, %v232_v5 }
  0xad   : > { %v239_v7 = vsub.f32 %v426_v1, %v237_v6 }
  0xae   : > { %v235_v8 = vpop.xlane.xlu0 %234 }
  0xaf   : > { %v238_v9 = vmul.f32 0.015625, %v235_v8  ;;  %v241_v10 = vmul.f32 %v239_v7, %v239_v7 }
  0xb1   : > { %v240_v11 = vsub.f32 %v427_v2, %v238_v9  ;;  %v243_v12 = vsel %vm229_vm0, %v241_v10, 0.0 }
  0xb2   : > { %244 = vadd.xlane.f32.xlu1 %v243_v12 }
  0xb3   : > { %v242_v13 = vmul.f32 %v240_v11, %v240_v11 }
  0xb5   : > { %v246_v14 = vsel %vm229_vm0, %v242_v13, 0.0 }
  0xb6   : > { %247 = vadd.xlane.f32.xlu1 %v246_v14 }
 0x13f   : > { %v245_v28 = vpop.xlane.xlu1 %244 }
 0x140   : > { %v249_v29 = vmul.f32 0.015625, %v245_v28 }
 0x142   : > { %v251_v30 = vadd.f32 1e-05, %v249_v29 }
 0x143   : > { %v248_v31 = vpop.xlane.xlu1 %247 }
 0x144   : > { %486 = vrsqrt.f32 %v251_v30  ;;  %v250_v32 = vmul.f32 0.015625, %v248_v31 }
 0x146   : > { %v252_v33 = vadd.f32 1e-05, %v250_v32 }
 0x148   : > { %488 = vrsqrt.f32 %v252_v33 }
 0x14e   : > { %v487_v34 = vpop.eup %486 }
 0x14f   : > { %v255_v36 = vmul.f32 %v487_v34, %v239_v7 }
 0x151   : > { %v263_v37 = vmul.f32 %v417_v35, %v255_v36 }
 0x152   : > { %v489_v38 = vpop.eup %488 }
 0x153   : > { %v256_v40 = vmul.f32 %v489_v38, %v240_v11  ;;  %v271_v41 = vadd.f32 %v418_v39, %v263_v37 }
 0x155   : > { %v264_v42 = vmul.f32 %v417_v35, %v256_v40  ;;  %v273_v44 = vsel %vm229_vm0, %v271_v41, 0.0 }
 0x157   : > { %v272_v43 = vadd.f32 %v418_v39, %v264_v42 }
 0x159   : > { %v274_v45 = vsel %vm229_vm0, %v272_v43, 0.0 }
 0x15a   : > { %v275_v46 = vadd.f32 %v274_v45, %v273_v44 }
 0x15c   : > { %v276_v47 = vrot.slane %v275_v46, 4 }
 0x15e   : > { %v277_v48 = vadd.f32 %v276_v47, %v275_v46 }
 0x160   : > { %v278_v49 = vrot.slane %v277_v48, 2 }
 0x162   : > { %v279_v50 = vadd.f32 %v278_v49, %v277_v48 }
 0x164   : > { %v280_v51 = vrot.slane %v279_v50, 1 }
 0x166   : > { %v281_v52 = vadd.f32 %v280_v51, %v279_v50 }
 0x168   : > { %v283_v53 = vmul.f32 0.0625, %v281_v52 }
 0x16a   : > { %v284_v54 = vpack.c.bf16 %v283_v53, %v283_v53 }
 0x16c   : > { %442 = vmatmul.mubr.msk.bf16.vlgmr.msra.gmra.mrb[0].mxu0 %vm229_vm0, %v284_v54 }
 0x23f   : > { %v335_v56 = vpop.f32.mrb[0].mxu0 }
 0x240   : > { %v336_v57 = vadd.f32 %v335_v56, %v297_v55  ;;  %v443_v58 = vpop.f32.mrb[1].mxu0 }
 0x241   : > { %v338_v59 = vpop.f32.mrb[2].mxu0 }
 0x242   : > { %v444_v60 = vpop.f32.mrb[3].mxu0  ;;  %342 = vst.msk [vmem:[%s216_s23] sm:$0x1] %vm341_vm2, %v336_v57 }
 0x243   : > { %503 = shalt.err (!%p500_p3)
}
 0x244   : > { %s504_s11 = scalar_lea.hbm %s685_s6, 16  ;;  %s508_s14 = scalar_lea.hbm %s732_s5, 32 }
 0x245   : > { %p505_p4 = scmp.ne.s32.totalorder %s685_s6, %s504_s11  ;;  %p509_p9 = scmp.lt.u32.totalorder %s685_s6, %s732_s5 }
 0x246   : > { %p510_p10 = scmp.lt.u32.totalorder %s508_s14, %s504_s11  ;;  %p512_p12 = scmp.lt.u32.totalorder %s504_s11, %s685_s6 }
 0x247   : > { %p506_p7 = pnand %p505_p4, %p625_p5 }
 0x248   : > { %p511_p11 = por %p510_p10, %p509_p9 }
 0x249   : > { %p507_p8 = pneg %p506_p7 }
 0x24a   : > { %p513_p13 = por %p512_p12, %p511_p11 }
 0x24c   : > { %p514_p0 = pnand %p513_p13, %p507_p8 }
 0x24e   : > { %517 = shalt.err (!%p514_p0)
}
 0x24f   : > { %445 = dma.vmem_to_hbm [thread:$0]  (%p625_p5), %s687_s25, 16, %s685_s6, %s344_s22  }
 0x250 PF: > { %p451_p1 = scmp.ge.s32.totalorder %s552_s21, 2  ;;  %s368_s17 = sand.u32 1, %s540_s18  }
 0x251   : > { %s369_s23 = scalar_lea.sflag [#allocation3], %s368_s17 }
 0x252   : > { %p448_p2 = pnand %p451_p1, %p629_p6 }
 0x254   : > { %535 = dma.done.wait (!%p448_p2), %s369_s23, 16  }
 0x255   : > { %537 = vsyncadd (!%p448_p2), %s369_s23, 4294967280  ;;  %p15_p3 = scmp.ge.s32.totalorder %s612_s24, 4   ;;  %s735_s18 = smov %s544_s19 }
 0x256   : > { %s736_s19 = smov %s548_s20  ;;  %s737_s20 = smov %s623_s27 }
 0x257   : > { %s738_s21 = smov %s612_s24  ;;  %17 = sbr.rel (!%p15_p3) target bundleno = 3 (0x3), region = 75 }
 0x25e   :  { %373 = vsyncpa [#allocation3], 1 }
 0x25f   :  { %375 = vsyncpa [#allocation3 + $0x1], 1 }

</bundles_post_ra>
